<compile_context>
chip_gen: v7x
topology: tpu7x:2x2x1
jax: 0.10.0
libtpu: 0.0.40
codegen_flags: <defaults>
</compile_context>

<pallas_src>
import functools
import math

import jax
import jax.numpy as jnp
from jax import lax
from jax.experimental import pallas as pl
from jax.experimental.pallas import tpu as pltpu


def _round_up(a, b):
    return ((a + b - 1) // b) * b


def _basic_block_kernel(x_ref, wt_ref, mw1_ref, bias_ref, mw2_ref, o_ref, xpad_ref,
                        *, C, P, off_r, off_c):
    _, H, WC = x_ref.shape                      # WC = W * C (lane-dense)

    # Zero halo + stale interior.  Cheap in the lane-dense layout and safe even
    # when the parallel grid axis is split across TensorCores (v7x).
    xpad_ref[...] = jnp.zeros_like(xpad_ref)

    # Aligned interior store: the image sits at a sublane/lane-aligned offset.
    x = x_ref[0]                                             # (H, W*C), aligned
    xpad_ref[pl.ds(off_r, H), pl.ds(off_c * C, WC)] = x

    # Fused depthwise taps: a single 49-tap pass over the lane-dense slab.
    # wt is zero where a branch's kernel does not cover a tap; channels
    # [0, C/4) carry an identity centre tap (conv_1 is folded into mw1).
    w_all = wt_ref[...]                                      # (49, W*C), read once
    acc = jnp.zeros((H, WC), jnp.float32)
    for i in range(7):
        for j in range(7):
            patch = xpad_ref[pl.ds(off_r - P + 3 * i, H),
                             pl.ds((off_c - P + 3 * j) * C, WC)]
            k = i * 7 + j
            acc = acc + patch * w_all[k:k + 1, :]

    # MLP (1x1 -> ReLU -> 1x1) as two block-diagonal MXU matmuls.  conv_1, all
    # conv biases and layer_scale are pre-folded by the wrapper; block-diagonal
    # weights keep the activations lane-dense (no relayout before the store).
    h = jnp.dot(acc, mw1_ref[...], preferred_element_type=jnp.float32) + bias_ref[...]
    h = jnp.maximum(h, 0.0)
    m = jnp.dot(h, mw2_ref[...], preferred_element_type=jnp.float32)

    # Residual from the aligned x block; lane-dense unmasked store.
    o_ref[0] = (m + x).astype(o_ref.dtype)


def basic_block_pallas(x_nchw, params):
    N, C, H, W = x_nchw.shape
    assert C % 4 == 0, "dim must be divisible by division_ratio=4"
    Cp, Ch = C // 4, 4 * C
    WC, WCh = W * C, W * Ch
    assert H % 8 == 0 and WC % 128 == 0, \
        "lane-dense layout needs H % 8 == 0 and (W*C) % 128 == 0"

    P = 9                                                   # halo of the 7x7 dil-3 grid
    off_r = _round_up(P, 8)                                 # sublane-aligned interior
    off_c = _round_up(P, max(1, 128 // math.gcd(C, 128)))   # lane-aligned interior
    Hp = off_r + H + P
    WpC = (off_c + W + P) * C

    f32 = jnp.float32
    w1, b1 = params["w1"].astype(f32), params["b1"].astype(f32)
    w3, b3 = params["w3"].astype(f32), params["b3"].astype(f32)
    w5, b5 = params["w5"].astype(f32), params["b5"].astype(f32)
    w7, b7 = params["w7"].astype(f32), params["b7"].astype(f32)
    mw1 = params["mlp_w1"].astype(f32)
    mw2 = params["mlp_w2"].astype(f32)
    ls = params["ls"].astype(f32)

    # --- parameter folding.  TODO(synk): do this once at model-load time. ---
    # Fused (49, C) depthwise tap table on the concentric 7x7 dilated grid,
    # tiled across W so it applies directly to the lane-dense slab.
    wt = jnp.zeros((7, 7, C), f32)
    wt = wt.at[3, 3, 0:Cp].set(1.0)                                   # x_1 passthrough
    wt = wt.at[2:5, 2:5, Cp:2 * Cp].set(w3.reshape(3, 3, Cp))         # conv_3 (pad 3)
    wt = wt.at[1:6, 1:6, 2 * Cp:3 * Cp].set(w5.reshape(5, 5, Cp))     # conv_5 (pad 6)
    wt = wt.at[:, :, 3 * Cp:].set(w7.reshape(7, 7, Cp))               # conv_7 (pad 9)
    wt = jnp.tile(wt.reshape(49, C), (1, W))                          # (49, W*C)

    # conv_1 folded into MLP-1, all biases into one fused bias, layer_scale
    # into MLP-2; then expanded to block-diagonal (per-pixel) form so the MLP
    # runs directly on the lane-dense (H, W*C) activations.
    mw1_eff = jnp.concatenate([w1 @ mw1[:Cp], mw1[Cp:]], axis=0)              # (C, 4C)
    bias_eff = (b1 @ mw1[:Cp] + b3 @ mw1[Cp:2 * Cp]
                + b5 @ mw1[2 * Cp:3 * Cp] + b7 @ mw1[3 * Cp:])                # (1, 4C)
    mw2_eff = mw2 * ls                                                        # (4C, C)

    eye_w = jnp.eye(W, dtype=f32)
    mw1_blk = jnp.kron(eye_w, mw1_eff)            # (W*C,  W*4C) block-diagonal
    mw2_blk = jnp.kron(eye_w, mw2_eff)            # (W*4C, W*C)  block-diagonal
    bias_blk = jnp.tile(bias_eff, (1, W))         # (1, W*4C)

    # NCHW -> lane-dense (N, H, W*C).  TODO(synk): keep the network NHWC so
    # this per-block transpose moves to the model boundary.
    x_ld = jnp.transpose(x_nchw, (0, 2, 3, 1)).reshape(N, H, WC).astype(f32)

    kernel = functools.partial(_basic_block_kernel, C=C, P=P, off_r=off_r, off_c=off_c)

    out = pl.pallas_call(
        kernel,
        out_shape=jax.ShapeDtypeStruct((N, H, WC), f32),
        grid=(N,),
        in_specs=[
            pl.BlockSpec((1, H, WC), lambda n: (n, 0, 0)),    # x, lane-dense
            pl.BlockSpec((49, WC), lambda n: (0, 0)),         # fused depthwise taps
            pl.BlockSpec((WC, WCh), lambda n: (0, 0)),        # block-diag MLP-1
            pl.BlockSpec((1, WCh), lambda n: (0, 0)),         # fused bias
            pl.BlockSpec((WCh, WC), lambda n: (0, 0)),        # block-diag MLP-2
        ],
        out_specs=pl.BlockSpec((1, H, WC), lambda n: (n, 0, 0)),
        scratch_shapes=[pltpu.VMEM((Hp, WpC), f32)],
        compiler_params=pltpu.CompilerParams(
            dimension_semantics=("parallel",),
            vmem_limit_bytes=32 * 1024 * 1024),
    )(x_ld, wt, mw1_blk, bias_blk, mw2_blk)

    out_nhwc = out.reshape(N, H, W, C)                        # metadata-only reshape
    return jnp.transpose(out_nhwc, (0, 3, 1, 2)).astype(x_nchw.dtype)


def basic_block_ref(x, p, Cp):
    """Pure-JAX (lax.conv) reference mirroring the PyTorch forward (NCHW)."""
    x1, x2, x3, x4 = jnp.split(x, 4, axis=1)

    def conv(xx, w_oihw, pad, dil, groups):
        return lax.conv_general_dilated(
            xx, w_oihw, (1, 1), ((pad, pad), (pad, pad)),
            rhs_dilation=(dil, dil), feature_group_count=groups)

    y1 = conv(x1, jnp.transpose(p["w1"], (1, 0))[:, :, None, None], 0, 1, 1) \
        + p["b1"][0][None, :, None, None]
    w3 = jnp.transpose(p["w3"].reshape(3, 3, Cp), (2, 0, 1))[:, None, :, :]
    y2 = conv(x2, w3, 3, 3, Cp) + p["b3"][0][None, :, None, None]
    w5 = jnp.transpose(p["w5"].reshape(5, 5, Cp), (2, 0, 1))[:, None, :, :]
    y3 = conv(x3, w5, 6, 3, Cp) + p["b5"][0][None, :, None, None]
    w7 = jnp.transpose(p["w7"].reshape(7, 7, Cp), (2, 0, 1))[:, None, :, :]
    y4 = conv(x4, w7, 9, 3, Cp) + p["b7"][0][None, :, None, None]
    y = jnp.concatenate([y1, y2, y3, y4], axis=1)
    h = jnp.maximum(
        conv(y, jnp.transpose(p["mlp_w1"], (1, 0))[:, :, None, None], 0, 1, 1), 0.0)
    m = conv(h, jnp.transpose(p["mlp_w2"], (1, 0))[:, :, None, None], 0, 1, 1)
    return p["ls"][0][None, :, None, None] * m + x


if __name__ == "__main__":
    N, C, H, W = 2, 16, 16, 16          # dim=16, division_ratio=4 -> dim_partial=4
    Cp, Ch = C // 4, 4 * C

    key = jax.random.PRNGKey(0)
    ks = jax.random.split(key, 12)
    params = {
        "w1":     0.2 * jax.random.normal(ks[0], (Cp, Cp), jnp.float32),
        "b1":     0.1 * jax.random.normal(ks[1], (1, Cp), jnp.float32),
        "w3":     0.2 * jax.random.normal(ks[2], (9, Cp), jnp.float32),
        "b3":     0.1 * jax.random.normal(ks[3], (1, Cp), jnp.float32),
        "w5":     0.2 * jax.random.normal(ks[4], (25, Cp), jnp.float32),
        "b5":     0.1 * jax.random.normal(ks[5], (1, Cp), jnp.float32),
        "w7":     0.2 * jax.random.normal(ks[6], (49, Cp), jnp.float32),
        "b7":     0.1 * jax.random.normal(ks[7], (1, Cp), jnp.float32),
        "mlp_w1": 0.1 * jax.random.normal(ks[8], (C, Ch), jnp.float32),
        "mlp_w2": 0.1 * jax.random.normal(ks[9], (Ch, C), jnp.float32),
        # Module initializes layer_scale to 0.0; nonzero deterministic values
        # here so the conv/MLP path is actually exercised and checked.
        "ls":     0.5 * jax.random.normal(ks[10], (1, C), jnp.float32),
    }
    x = jax.random.normal(ks[11], (N, C, H, W), jnp.float32)

    out = jax.block_until_ready(basic_block_pallas(x, params))
    ref = jax.block_until_ready(basic_block_ref(x, params, Cp))

    assert out.shape == (N, C, H, W)
    assert jnp.allclose(out, ref, rtol=3e-3, atol=3e-3), float(jnp.max(jnp.abs(out - ref)))
    print("KERNEL_OK")
</pallas_src>

<mosaic_0001>
module attributes {stable_mosaic.version = 11 : i64} {
  func.func @_basic_block_kernel(%arg0: i32, %arg1: memref<1x16x256xf32, #tpu.memory_space<vmem>>, %arg2: memref<49x256xf32, #tpu.memory_space<vmem>>, %arg3: memref<256x1024xf32, #tpu.memory_space<vmem>>, %arg4: memref<1x1024xf32, #tpu.memory_space<vmem>>, %arg5: memref<1024x256xf32, #tpu.memory_space<vmem>>, %arg6: memref<1x16x256xf32, #tpu.memory_space<vmem>>, %arg7: memref<41x656xf32, #tpu.memory_space<vmem>>) attributes {dimension_semantics = [#tpu.dimension_semantics<parallel>], iteration_bounds = array<i64: 2>, scalar_prefetch = 0 : i64, scratch_operands = 1 : i64, tpu.core_type = #tpu.core_type<tc>, window_params = [{transform_indices = @transform_0, window_bounds = array<i64: 1, 16, 256>}, {pipeline_mode = #tpu.pipeline_mode<synchronous>, transform_indices = @transform_1, window_bounds = array<i64: 49, 256>}, {pipeline_mode = #tpu.pipeline_mode<synchronous>, transform_indices = @transform_2, window_bounds = array<i64: 256, 1024>}, {pipeline_mode = #tpu.pipeline_mode<synchronous>, transform_indices = @transform_3, window_bounds = array<i64: 1, 1024>}, {pipeline_mode = #tpu.pipeline_mode<synchronous>, transform_indices = @transform_4, window_bounds = array<i64: 1024, 256>}, {transform_indices = @transform_5, window_bounds = array<i64: 1, 16, 256>}]} {
    %cst = arith.constant 0.000000e+00 : f32
    %0 = vector.broadcast %cst : f32 to vector<41x656xf32>
    %c0 = arith.constant 0 : index
    %c0_0 = arith.constant 0 : index
    %1 = vector.load %arg7[%c0, %c0_0] : memref<41x656xf32, #tpu.memory_space<vmem>>, vector<41x656xf32>
    tpu.vector_store %arg7[%c0, %c0_0], %0 {strides = array<i32>} : memref<41x656xf32, #tpu.memory_space<vmem>>, vector<41x656xf32>,
    %c0_1 = arith.constant 0 : index
    %c0_2 = arith.constant 0 : index
    %c0_3 = arith.constant 0 : index
    %2 = vector.load %arg1[%c0_1, %c0_2, %c0_3] : memref<1x16x256xf32, #tpu.memory_space<vmem>>, vector<1x16x256xf32>
    %3 = vector.shape_cast %2 : vector<1x16x256xf32> to vector<16x256xf32>
    %c16 = arith.constant 16 : index
    %c256 = arith.constant 256 : index
    %4 = vector.load %arg7[%c16, %c256] : memref<41x656xf32, #tpu.memory_space<vmem>>, vector<16x256xf32>
    tpu.vector_store %arg7[%c16, %c256], %3 {strides = array<i32>} : memref<41x656xf32, #tpu.memory_space<vmem>>, vector<16x256xf32>,
    %c0_4 = arith.constant 0 : index
    %c0_5 = arith.constant 0 : index
    %5 = vector.load %arg2[%c0_4, %c0_5] : memref<49x256xf32, #tpu.memory_space<vmem>>, vector<49x256xf32>
    %cst_6 = arith.constant 0.000000e+00 : f32
    %6 = vector.broadcast %cst_6 : f32 to vector<16x256xf32>
    %c7 = arith.constant 7 : index
    %c112 = arith.constant 112 : index
    %7 = vector.load %arg7[%c7, %c112] : memref<41x656xf32, #tpu.memory_space<vmem>>, vector<16x256xf32>
    %8 = vector.extract_strided_slice %5 {offsets = [0, 0], sizes = [1, 256], strides = [1, 1]} : vector<49x256xf32> to vector<1x256xf32>
    %9 = vector.broadcast %8 : vector<1x256xf32> to vector<16x256xf32>
    %10 = arith.mulf %7, %9 : vector<16x256xf32>
    %11 = arith.addf %6, %10 : vector<16x256xf32>
    %c7_7 = arith.constant 7 : index
    %c160 = arith.constant 160 : index
    %12 = vector.load %arg7[%c7_7, %c160] : memref<41x656xf32, #tpu.memory_space<vmem>>, vector<16x256xf32>
    %13 = vector.extract_strided_slice %5 {offsets = [1, 0], sizes = [1, 256], strides = [1, 1]} : vector<49x256xf32> to vector<1x256xf32>
    %14 = vector.broadcast %13 : vector<1x256xf32> to vector<16x256xf32>
    %15 = arith.mulf %12, %14 : vector<16x256xf32>
    %16 = arith.addf %11, %15 : vector<16x256xf32>
    %c7_8 = arith.constant 7 : index
    %c208 = arith.constant 208 : index
    %17 = vector.load %arg7[%c7_8, %c208] : memref<41x656xf32, #tpu.memory_space<vmem>>, vector<16x256xf32>
    %18 = vector.extract_strided_slice %5 {offsets = [2, 0], sizes = [1, 256], strides = [1, 1]} : vector<49x256xf32> to vector<1x256xf32>
    %19 = vector.broadcast %18 : vector<1x256xf32> to vector<16x256xf32>
    %20 = arith.mulf %17, %19 : vector<16x256xf32>
    %21 = arith.addf %16, %20 : vector<16x256xf32>
    %c7_9 = arith.constant 7 : index
    %c256_10 = arith.constant 256 : index
    %22 = vector.load %arg7[%c7_9, %c256_10] : memref<41x656xf32, #tpu.memory_space<vmem>>, vector<16x256xf32>
    %23 = vector.extract_strided_slice %5 {offsets = [3, 0], sizes = [1, 256], strides = [1, 1]} : vector<49x256xf32> to vector<1x256xf32>
    %24 = vector.broadcast %23 : vector<1x256xf32> to vector<16x256xf32>
    %25 = arith.mulf %22, %24 : vector<16x256xf32>
    %26 = arith.addf %21, %25 : vector<16x256xf32>
    %c7_11 = arith.constant 7 : index
    %c304 = arith.constant 304 : index
    %27 = vector.load %arg7[%c7_11, %c304] : memref<41x656xf32, #tpu.memory_space<vmem>>, vector<16x256xf32>
    %28 = vector.extract_strided_slice %5 {offsets = [4, 0], sizes = [1, 256], strides = [1, 1]} : vector<49x256xf32> to vector<1x256xf32>
    %29 = vector.broadcast %28 : vector<1x256xf32> to vector<16x256xf32>
    %30 = arith.mulf %27, %29 : vector<16x256xf32>
    %31 = arith.addf %26, %30 : vector<16x256xf32>
    %c7_12 = arith.constant 7 : index
    %c352 = arith.constant 352 : index
    %32 = vector.load %arg7[%c7_12, %c352] : memref<41x656xf32, #tpu.memory_space<vmem>>, vector<16x256xf32>
    %33 = vector.extract_strided_slice %5 {offsets = [5, 0], sizes = [1, 256], strides = [1, 1]} : vector<49x256xf32> to vector<1x256xf32>
    %34 = vector.broadcast %33 : vector<1x256xf32> to vector<16x256xf32>
    %35 = arith.mulf %32, %34 : vector<16x256xf32>
    %36 = arith.addf %31, %35 : vector<16x256xf32>
    %c7_13 = arith.constant 7 : index
    %c400 = arith.constant 400 : index
    %37 = vector.load %arg7[%c7_13, %c400] : memref<41x656xf32, #tpu.memory_space<vmem>>, vector<16x256xf32>
    %38 = vector.extract_strided_slice %5 {offsets = [6, 0], sizes = [1, 256], strides = [1, 1]} : vector<49x256xf32> to vector<1x256xf32>
    %39 = vector.broadcast %38 : vector<1x256xf32> to vector<16x256xf32>
    %40 = arith.mulf %37, %39 : vector<16x256xf32>
    %41 = arith.addf %36, %40 : vector<16x256xf32>
    %c10 = arith.constant 10 : index
    %c112_14 = arith.constant 112 : index
    %42 = vector.load %arg7[%c10, %c112_14] : memref<41x656xf32, #tpu.memory_space<vmem>>, vector<16x256xf32>
    %43 = vector.extract_strided_slice %5 {offsets = [7, 0], sizes = [1, 256], strides = [1, 1]} : vector<49x256xf32> to vector<1x256xf32>
    %44 = vector.broadcast %43 : vector<1x256xf32> to vector<16x256xf32>
    %45 = arith.mulf %42, %44 : vector<16x256xf32>
    %46 = arith.addf %41, %45 : vector<16x256xf32>
    %c10_15 = arith.constant 10 : index
    %c160_16 = arith.constant 160 : index
    %47 = vector.load %arg7[%c10_15, %c160_16] : memref<41x656xf32, #tpu.memory_space<vmem>>, vector<16x256xf32>
    %48 = vector.extract_strided_slice %5 {offsets = [8, 0], sizes = [1, 256], strides = [1, 1]} : vector<49x256xf32> to vector<1x256xf32>
    %49 = vector.broadcast %48 : vector<1x256xf32> to vector<16x256xf32>
    %50 = arith.mulf %47, %49 : vector<16x256xf32>
    %51 = arith.addf %46, %50 : vector<16x256xf32>
    %c10_17 = arith.constant 10 : index
    %c208_18 = arith.constant 208 : index
    %52 = vector.load %arg7[%c10_17, %c208_18] : memref<41x656xf32, #tpu.memory_space<vmem>>, vector<16x256xf32>
    %53 = vector.extract_strided_slice %5 {offsets = [9, 0], sizes = [1, 256], strides = [1, 1]} : vector<49x256xf32> to vector<1x256xf32>
    %54 = vector.broadcast %53 : vector<1x256xf32> to vector<16x256xf32>
    %55 = arith.mulf %52, %54 : vector<16x256xf32>
    %56 = arith.addf %51, %55 : vector<16x256xf32>
    %c10_19 = arith.constant 10 : index
    %c256_20 = arith.constant 256 : index
    %57 = vector.load %arg7[%c10_19, %c256_20] : memref<41x656xf32, #tpu.memory_space<vmem>>, vector<16x256xf32>
    %58 = vector.extract_strided_slice %5 {offsets = [10, 0], sizes = [1, 256], strides = [1, 1]} : vector<49x256xf32> to vector<1x256xf32>
    %59 = vector.broadcast %58 : vector<1x256xf32> to vector<16x256xf32>
    %60 = arith.mulf %57, %59 : vector<16x256xf32>
    %61 = arith.addf %56, %60 : vector<16x256xf32>
    %c10_21 = arith.constant 10 : index
    %c304_22 = arith.constant 304 : index
    %62 = vector.load %arg7[%c10_21, %c304_22] : memref<41x656xf32, #tpu.memory_space<vmem>>, vector<16x256xf32>
    %63 = vector.extract_strided_slice %5 {offsets = [11, 0], sizes = [1, 256], strides = [1, 1]} : vector<49x256xf32> to vector<1x256xf32>
    %64 = vector.broadcast %63 : vector<1x256xf32> to vector<16x256xf32>
    %65 = arith.mulf %62, %64 : vector<16x256xf32>
    %66 = arith.addf %61, %65 : vector<16x256xf32>
    %c10_23 = arith.constant 10 : index
    %c352_24 = arith.constant 352 : index
    %67 = vector.load %arg7[%c10_23, %c352_24] : memref<41x656xf32, #tpu.memory_space<vmem>>, vector<16x256xf32>
    %68 = vector.extract_strided_slice %5 {offsets = [12, 0], sizes = [1, 256], strides = [1, 1]} : vector<49x256xf32> to vector<1x256xf32>
    %69 = vector.broadcast %68 : vector<1x256xf32> to vector<16x256xf32>
    %70 = arith.mulf %67, %69 : vector<16x256xf32>
    %71 = arith.addf %66, %70 : vector<16x256xf32>
    %c10_25 = arith.constant 10 : index
    %c400_26 = arith.constant 400 : index
    %72 = vector.load %arg7[%c10_25, %c400_26] : memref<41x656xf32, #tpu.memory_space<vmem>>, vector<16x256xf32>
    %73 = vector.extract_strided_slice %5 {offsets = [13, 0], sizes = [1, 256], strides = [1, 1]} : vector<49x256xf32> to vector<1x256xf32>
    %74 = vector.broadcast %73 : vector<1x256xf32> to vector<16x256xf32>
    %75 = arith.mulf %72, %74 : vector<16x256xf32>
    %76 = arith.addf %71, %75 : vector<16x256xf32>
    %c13 = arith.constant 13 : index
    %c112_27 = arith.constant 112 : index
    %77 = vector.load %arg7[%c13, %c112_27] : memref<41x656xf32, #tpu.memory_space<vmem>>, vector<16x256xf32>
    %78 = vector.extract_strided_slice %5 {offsets = [14, 0], sizes = [1, 256], strides = [1, 1]} : vector<49x256xf32> to vector<1x256xf32>
    %79 = vector.broadcast %78 : vector<1x256xf32> to vector<16x256xf32>
    %80 = arith.mulf %77, %79 : vector<16x256xf32>
    %81 = arith.addf %76, %80 : vector<16x256xf32>
    %c13_28 = arith.constant 13 : index
    %c160_29 = arith.constant 160 : index
    %82 = vector.load %arg7[%c13_28, %c160_29] : memref<41x656xf32, #tpu.memory_space<vmem>>, vector<16x256xf32>
    %83 = vector.extract_strided_slice %5 {offsets = [15, 0], sizes = [1, 256], strides = [1, 1]} : vector<49x256xf32> to vector<1x256xf32>
    %84 = vector.broadcast %83 : vector<1x256xf32> to vector<16x256xf32>
    %85 = arith.mulf %82, %84 : vector<16x256xf32>
    %86 = arith.addf %81, %85 : vector<16x256xf32>
    %c13_30 = arith.constant 13 : index
    %c208_31 = arith.constant 208 : index
    %87 = vector.load %arg7[%c13_30, %c208_31] : memref<41x656xf32, #tpu.memory_space<vmem>>, vector<16x256xf32>
    %88 = vector.extract_strided_slice %5 {offsets = [16, 0], sizes = [1, 256], strides = [1, 1]} : vector<49x256xf32> to vector<1x256xf32>
    %89 = vector.broadcast %88 : vector<1x256xf32> to vector<16x256xf32>
    %90 = arith.mulf %87, %89 : vector<16x256xf32>
    %91 = arith.addf %86, %90 : vector<16x256xf32>
    %c13_32 = arith.constant 13 : index
    %c256_33 = arith.constant 256 : index
    %92 = vector.load %arg7[%c13_32, %c256_33] : memref<41x656xf32, #tpu.memory_space<vmem>>, vector<16x256xf32>
    %93 = vector.extract_strided_slice %5 {offsets = [17, 0], sizes = [1, 256], strides = [1, 1]} : vector<49x256xf32> to vector<1x256xf32>
    %94 = vector.broadcast %93 : vector<1x256xf32> to vector<16x256xf32>
    %95 = arith.mulf %92, %94 : vector<16x256xf32>
    %96 = arith.addf %91, %95 : vector<16x256xf32>
    %c13_34 = arith.constant 13 : index
    %c304_35 = arith.constant 304 : index
    %97 = vector.load %arg7[%c13_34, %c304_35] : memref<41x656xf32, #tpu.memory_space<vmem>>, vector<16x256xf32>
    %98 = vector.extract_strided_slice %5 {offsets = [18, 0], sizes = [1, 256], strides = [1, 1]} : vector<49x256xf32> to vector<1x256xf32>
    %99 = vector.broadcast %98 : vector<1x256xf32> to vector<16x256xf32>
    %100 = arith.mulf %97, %99 : vector<16x256xf32>
    %101 = arith.addf %96, %100 : vector<16x256xf32>
    %c13_36 = arith.constant 13 : index
    %c352_37 = arith.constant 352 : index
    %102 = vector.load %arg7[%c13_36, %c352_37] : memref<41x656xf32, #tpu.memory_space<vmem>>, vector<16x256xf32>
    %103 = vector.extract_strided_slice %5 {offsets = [19, 0], sizes = [1, 256], strides = [1, 1]} : vector<49x256xf32> to vector<1x256xf32>
    %104 = vector.broadcast %103 : vector<1x256xf32> to vector<16x256xf32>
    %105 = arith.mulf %102, %104 : vector<16x256xf32>
    %106 = arith.addf %101, %105 : vector<16x256xf32>
    %c13_38 = arith.constant 13 : index
    %c400_39 = arith.constant 400 : index
    %107 = vector.load %arg7[%c13_38, %c400_39] : memref<41x656xf32, #tpu.memory_space<vmem>>, vector<16x256xf32>
    %108 = vector.extract_strided_slice %5 {offsets = [20, 0], sizes = [1, 256], strides = [1, 1]} : vector<49x256xf32> to vector<1x256xf32>
    %109 = vector.broadcast %108 : vector<1x256xf32> to vector<16x256xf32>
    %110 = arith.mulf %107, %109 : vector<16x256xf32>
    %111 = arith.addf %106, %110 : vector<16x256xf32>
    %c16_40 = arith.constant 16 : index
    %c112_41 = arith.constant 112 : index
    %112 = vector.load %arg7[%c16_40, %c112_41] : memref<41x656xf32, #tpu.memory_space<vmem>>, vector<16x256xf32>
    %113 = vector.extract_strided_slice %5 {offsets = [21, 0], sizes = [1, 256], strides = [1, 1]} : vector<49x256xf32> to vector<1x256xf32>
    %114 = vector.broadcast %113 : vector<1x256xf32> to vector<16x256xf32>
    %115 = arith.mulf %112, %114 : vector<16x256xf32>
    %116 = arith.addf %111, %115 : vector<16x256xf32>
    %c16_42 = arith.constant 16 : index
    %c160_43 = arith.constant 160 : index
    %117 = vector.load %arg7[%c16_42, %c160_43] : memref<41x656xf32, #tpu.memory_space<vmem>>, vector<16x256xf32>
    %118 = vector.extract_strided_slice %5 {offsets = [22, 0], sizes = [1, 256], strides = [1, 1]} : vector<49x256xf32> to vector<1x256xf32>
    %119 = vector.broadcast %118 : vector<1x256xf32> to vector<16x256xf32>
    %120 = arith.mulf %117, %119 : vector<16x256xf32>
    %121 = arith.addf %116, %120 : vector<16x256xf32>
    %c16_44 = arith.constant 16 : index
    %c208_45 = arith.constant 208 : index
    %122 = vector.load %arg7[%c16_44, %c208_45] : memref<41x656xf32, #tpu.memory_space<vmem>>, vector<16x256xf32>
    %123 = vector.extract_strided_slice %5 {offsets = [23, 0], sizes = [1, 256], strides = [1, 1]} : vector<49x256xf32> to vector<1x256xf32>
    %124 = vector.broadcast %123 : vector<1x256xf32> to vector<16x256xf32>
    %125 = arith.mulf %122, %124 : vector<16x256xf32>
    %126 = arith.addf %121, %125 : vector<16x256xf32>
    %c16_46 = arith.constant 16 : index
    %c256_47 = arith.constant 256 : index
    %127 = vector.load %arg7[%c16_46, %c256_47] : memref<41x656xf32, #tpu.memory_space<vmem>>, vector<16x256xf32>
    %128 = vector.extract_strided_slice %5 {offsets = [24, 0], sizes = [1, 256], strides = [1, 1]} : vector<49x256xf32> to vector<1x256xf32>
    %129 = vector.broadcast %128 : vector<1x256xf32> to vector<16x256xf32>
    %130 = arith.mulf %127, %129 : vector<16x256xf32>
    %131 = arith.addf %126, %130 : vector<16x256xf32>
    %c16_48 = arith.constant 16 : index
    %c304_49 = arith.constant 304 : index
    %132 = vector.load %arg7[%c16_48, %c304_49] : memref<41x656xf32, #tpu.memory_space<vmem>>, vector<16x256xf32>
    %133 = vector.extract_strided_slice %5 {offsets = [25, 0], sizes = [1, 256], strides = [1, 1]} : vector<49x256xf32> to vector<1x256xf32>
    %134 = vector.broadcast %133 : vector<1x256xf32> to vector<16x256xf32>
    %135 = arith.mulf %132, %134 : vector<16x256xf32>
    %136 = arith.addf %131, %135 : vector<16x256xf32>
    %c16_50 = arith.constant 16 : index
    %c352_51 = arith.constant 352 : index
    %137 = vector.load %arg7[%c16_50, %c352_51] : memref<41x656xf32, #tpu.memory_space<vmem>>, vector<16x256xf32>
    %138 = vector.extract_strided_slice %5 {offsets = [26, 0], sizes = [1, 256], strides = [1, 1]} : vector<49x256xf32> to vector<1x256xf32>
    %139 = vector.broadcast %138 : vector<1x256xf32> to vector<16x256xf32>
    %140 = arith.mulf %137, %139 : vector<16x256xf32>
    %141 = arith.addf %136, %140 : vector<16x256xf32>
    %c16_52 = arith.constant 16 : index
    %c400_53 = arith.constant 400 : index
    %142 = vector.load %arg7[%c16_52, %c400_53] : memref<41x656xf32, #tpu.memory_space<vmem>>, vector<16x256xf32>
    %143 = vector.extract_strided_slice %5 {offsets = [27, 0], sizes = [1, 256], strides = [1, 1]} : vector<49x256xf32> to vector<1x256xf32>
    %144 = vector.broadcast %143 : vector<1x256xf32> to vector<16x256xf32>
    %145 = arith.mulf %142, %144 : vector<16x256xf32>
    %146 = arith.addf %141, %145 : vector<16x256xf32>
    %c19 = arith.constant 19 : index
    %c112_54 = arith.constant 112 : index
    %147 = vector.load %arg7[%c19, %c112_54] : memref<41x656xf32, #tpu.memory_space<vmem>>, vector<16x256xf32>
    %148 = vector.extract_strided_slice %5 {offsets = [28, 0], sizes = [1, 256], strides = [1, 1]} : vector<49x256xf32> to vector<1x256xf32>
    %149 = vector.broadcast %148 : vector<1x256xf32> to vector<16x256xf32>
    %150 = arith.mulf %147, %149 : vector<16x256xf32>
    %151 = arith.addf %146, %150 : vector<16x256xf32>
    %c19_55 = arith.constant 19 : index
    %c160_56 = arith.constant 160 : index
    %152 = vector.load %arg7[%c19_55, %c160_56] : memref<41x656xf32, #tpu.memory_space<vmem>>, vector<16x256xf32>
    %153 = vector.extract_strided_slice %5 {offsets = [29, 0], sizes = [1, 256], strides = [1, 1]} : vector<49x256xf32> to vector<1x256xf32>
    %154 = vector.broadcast %153 : vector<1x256xf32> to vector<16x256xf32>
    %155 = arith.mulf %152, %154 : vector<16x256xf32>
    %156 = arith.addf %151, %155 : vector<16x256xf32>
    %c19_57 = arith.constant 19 : index
    %c208_58 = arith.constant 208 : index
    %157 = vector.load %arg7[%c19_57, %c208_58] : memref<41x656xf32, #tpu.memory_space<vmem>>, vector<16x256xf32>
    %158 = vector.extract_strided_slice %5 {offsets = [30, 0], sizes = [1, 256], strides = [1, 1]} : vector<49x256xf32> to vector<1x256xf32>
    %159 = vector.broadcast %158 : vector<1x256xf32> to vector<16x256xf32>
    %160 = arith.mulf %157, %159 : vector<16x256xf32>
    %161 = arith.addf %156, %160 : vector<16x256xf32>
    %c19_59 = arith.constant 19 : index
    %c256_60 = arith.constant 256 : index
    %162 = vector.load %arg7[%c19_59, %c256_60] : memref<41x656xf32, #tpu.memory_space<vmem>>, vector<16x256xf32>
    %163 = vector.extract_strided_slice %5 {offsets = [31, 0], sizes = [1, 256], strides = [1, 1]} : vector<49x256xf32> to vector<1x256xf32>
    %164 = vector.broadcast %163 : vector<1x256xf32> to vector<16x256xf32>
    %165 = arith.mulf %162, %164 : vector<16x256xf32>
    %166 = arith.addf %161, %165 : vector<16x256xf32>
    %c19_61 = arith.constant 19 : index
    %c304_62 = arith.constant 304 : index
    %167 = vector.load %arg7[%c19_61, %c304_62] : memref<41x656xf32, #tpu.memory_space<vmem>>, vector<16x256xf32>
    %168 = vector.extract_strided_slice %5 {offsets = [32, 0], sizes = [1, 256], strides = [1, 1]} : vector<49x256xf32> to vector<1x256xf32>
    %169 = vector.broadcast %168 : vector<1x256xf32> to vector<16x256xf32>
    %170 = arith.mulf %167, %169 : vector<16x256xf32>
    %171 = arith.addf %166, %170 : vector<16x256xf32>
    %c19_63 = arith.constant 19 : index
    %c352_64 = arith.constant 352 : index
    %172 = vector.load %arg7[%c19_63, %c352_64] : memref<41x656xf32, #tpu.memory_space<vmem>>, vector<16x256xf32>
    %173 = vector.extract_strided_slice %5 {offsets = [33, 0], sizes = [1, 256], strides = [1, 1]} : vector<49x256xf32> to vector<1x256xf32>
    %174 = vector.broadcast %173 : vector<1x256xf32> to vector<16x256xf32>
    %175 = arith.mulf %172, %174 : vector<16x256xf32>
    %176 = arith.addf %171, %175 : vector<16x256xf32>
    %c19_65 = arith.constant 19 : index
    %c400_66 = arith.constant 400 : index
    %177 = vector.load %arg7[%c19_65, %c400_66] : memref<41x656xf32, #tpu.memory_space<vmem>>, vector<16x256xf32>
    %178 = vector.extract_strided_slice %5 {offsets = [34, 0], sizes = [1, 256], strides = [1, 1]} : vector<49x256xf32> to vector<1x256xf32>
    %179 = vector.broadcast %178 : vector<1x256xf32> to vector<16x256xf32>
    %180 = arith.mulf %177, %179 : vector<16x256xf32>
    %181 = arith.addf %176, %180 : vector<16x256xf32>
    %c22 = arith.constant 22 : index
    %c112_67 = arith.constant 112 : index
    %182 = vector.load %arg7[%c22, %c112_67] : memref<41x656xf32, #tpu.memory_space<vmem>>, vector<16x256xf32>
    %183 = vector.extract_strided_slice %5 {offsets = [35, 0], sizes = [1, 256], strides = [1, 1]} : vector<49x256xf32> to vector<1x256xf32>
    %184 = vector.broadcast %183 : vector<1x256xf32> to vector<16x256xf32>
    %185 = arith.mulf %182, %184 : vector<16x256xf32>
    %186 = arith.addf %181, %185 : vector<16x256xf32>
    %c22_68 = arith.constant 22 : index
    %c160_69 = arith.constant 160 : index
    %187 = vector.load %arg7[%c22_68, %c160_69] : memref<41x656xf32, #tpu.memory_space<vmem>>, vector<16x256xf32>
    %188 = vector.extract_strided_slice %5 {offsets = [36, 0], sizes = [1, 256], strides = [1, 1]} : vector<49x256xf32> to vector<1x256xf32>
    %189 = vector.broadcast %188 : vector<1x256xf32> to vector<16x256xf32>
    %190 = arith.mulf %187, %189 : vector<16x256xf32>
    %191 = arith.addf %186, %190 : vector<16x256xf32>
    %c22_70 = arith.constant 22 : index
    %c208_71 = arith.constant 208 : index
    %192 = vector.load %arg7[%c22_70, %c208_71] : memref<41x656xf32, #tpu.memory_space<vmem>>, vector<16x256xf32>
    %193 = vector.extract_strided_slice %5 {offsets = [37, 0], sizes = [1, 256], strides = [1, 1]} : vector<49x256xf32> to vector<1x256xf32>
    %194 = vector.broadcast %193 : vector<1x256xf32> to vector<16x256xf32>
    %195 = arith.mulf %192, %194 : vector<16x256xf32>
    %196 = arith.addf %191, %195 : vector<16x256xf32>
    %c22_72 = arith.constant 22 : index
    %c256_73 = arith.constant 256 : index
    %197 = vector.load %arg7[%c22_72, %c256_73] : memref<41x656xf32, #tpu.memory_space<vmem>>, vector<16x256xf32>
    %198 = vector.extract_strided_slice %5 {offsets = [38, 0], sizes = [1, 256], strides = [1, 1]} : vector<49x256xf32> to vector<1x256xf32>
    %199 = vector.broadcast %198 : vector<1x256xf32> to vector<16x256xf32>
    %200 = arith.mulf %197, %199 : vector<16x256xf32>
    %201 = arith.addf %196, %200 : vector<16x256xf32>
    %c22_74 = arith.constant 22 : index
    %c304_75 = arith.constant 304 : index
    %202 = vector.load %arg7[%c22_74, %c304_75] : memref<41x656xf32, #tpu.memory_space<vmem>>, vector<16x256xf32>
    %203 = vector.extract_strided_slice %5 {offsets = [39, 0], sizes = [1, 256], strides = [1, 1]} : vector<49x256xf32> to vector<1x256xf32>
    %204 = vector.broadcast %203 : vector<1x256xf32> to vector<16x256xf32>
    %205 = arith.mulf %202, %204 : vector<16x256xf32>
    %206 = arith.addf %201, %205 : vector<16x256xf32>
    %c22_76 = arith.constant 22 : index
    %c352_77 = arith.constant 352 : index
    %207 = vector.load %arg7[%c22_76, %c352_77] : memref<41x656xf32, #tpu.memory_space<vmem>>, vector<16x256xf32>
    %208 = vector.extract_strided_slice %5 {offsets = [40, 0], sizes = [1, 256], strides = [1, 1]} : vector<49x256xf32> to vector<1x256xf32>
    %209 = vector.broadcast %208 : vector<1x256xf32> to vector<16x256xf32>
    %210 = arith.mulf %207, %209 : vector<16x256xf32>
    %211 = arith.addf %206, %210 : vector<16x256xf32>
    %c22_78 = arith.constant 22 : index
    %c400_79 = arith.constant 400 : index
    %212 = vector.load %arg7[%c22_78, %c400_79] : memref<41x656xf32, #tpu.memory_space<vmem>>, vector<16x256xf32>
    %213 = vector.extract_strided_slice %5 {offsets = [41, 0], sizes = [1, 256], strides = [1, 1]} : vector<49x256xf32> to vector<1x256xf32>
    %214 = vector.broadcast %213 : vector<1x256xf32> to vector<16x256xf32>
    %215 = arith.mulf %212, %214 : vector<16x256xf32>
    %216 = arith.addf %211, %215 : vector<16x256xf32>
    %c25 = arith.constant 25 : index
    %c112_80 = arith.constant 112 : index
    %217 = vector.load %arg7[%c25, %c112_80] : memref<41x656xf32, #tpu.memory_space<vmem>>, vector<16x256xf32>
    %218 = vector.extract_strided_slice %5 {offsets = [42, 0], sizes = [1, 256], strides = [1, 1]} : vector<49x256xf32> to vector<1x256xf32>
    %219 = vector.broadcast %218 : vector<1x256xf32> to vector<16x256xf32>
    %220 = arith.mulf %217, %219 : vector<16x256xf32>
    %221 = arith.addf %216, %220 : vector<16x256xf32>
    %c25_81 = arith.constant 25 : index
    %c160_82 = arith.constant 160 : index
    %222 = vector.load %arg7[%c25_81, %c160_82] : memref<41x656xf32, #tpu.memory_space<vmem>>, vector<16x256xf32>
    %223 = vector.extract_strided_slice %5 {offsets = [43, 0], sizes = [1, 256], strides = [1, 1]} : vector<49x256xf32> to vector<1x256xf32>
    %224 = vector.broadcast %223 : vector<1x256xf32> to vector<16x256xf32>
    %225 = arith.mulf %222, %224 : vector<16x256xf32>
    %226 = arith.addf %221, %225 : vector<16x256xf32>
    %c25_83 = arith.constant 25 : index
    %c208_84 = arith.constant 208 : index
    %227 = vector.load %arg7[%c25_83, %c208_84] : memref<41x656xf32, #tpu.memory_space<vmem>>, vector<16x256xf32>
    %228 = vector.extract_strided_slice %5 {offsets = [44, 0], sizes = [1, 256], strides = [1, 1]} : vector<49x256xf32> to vector<1x256xf32>
    %229 = vector.broadcast %228 : vector<1x256xf32> to vector<16x256xf32>
    %230 = arith.mulf %227, %229 : vector<16x256xf32>
    %231 = arith.addf %226, %230 : vector<16x256xf32>
    %c25_85 = arith.constant 25 : index
    %c256_86 = arith.constant 256 : index
    %232 = vector.load %arg7[%c25_85, %c256_86] : memref<41x656xf32, #tpu.memory_space<vmem>>, vector<16x256xf32>
    %233 = vector.extract_strided_slice %5 {offsets = [45, 0], sizes = [1, 256], strides = [1, 1]} : vector<49x256xf32> to vector<1x256xf32>
    %234 = vector.broadcast %233 : vector<1x256xf32> to vector<16x256xf32>
    %235 = arith.mulf %232, %234 : vector<16x256xf32>
    %236 = arith.addf %231, %235 : vector<16x256xf32>
    %c25_87 = arith.constant 25 : index
    %c304_88 = arith.constant 304 : index
    %237 = vector.load %arg7[%c25_87, %c304_88] : memref<41x656xf32, #tpu.memory_space<vmem>>, vector<16x256xf32>
    %238 = vector.extract_strided_slice %5 {offsets = [46, 0], sizes = [1, 256], strides = [1, 1]} : vector<49x256xf32> to vector<1x256xf32>
    %239 = vector.broadcast %238 : vector<1x256xf32> to vector<16x256xf32>
    %240 = arith.mulf %237, %239 : vector<16x256xf32>
    %241 = arith.addf %236, %240 : vector<16x256xf32>
    %c25_89 = arith.constant 25 : index
    %c352_90 = arith.constant 352 : index
    %242 = vector.load %arg7[%c25_89, %c352_90] : memref<41x656xf32, #tpu.memory_space<vmem>>, vector<16x256xf32>
    %243 = vector.extract_strided_slice %5 {offsets = [47, 0], sizes = [1, 256], strides = [1, 1]} : vector<49x256xf32> to vector<1x256xf32>
    %244 = vector.broadcast %243 : vector<1x256xf32> to vector<16x256xf32>
    %245 = arith.mulf %242, %244 : vector<16x256xf32>
    %246 = arith.addf %241, %245 : vector<16x256xf32>
    %c25_91 = arith.constant 25 : index
    %c400_92 = arith.constant 400 : index
    %247 = vector.load %arg7[%c25_91, %c400_92] : memref<41x656xf32, #tpu.memory_space<vmem>>, vector<16x256xf32>
    %248 = vector.extract_strided_slice %5 {offsets = [48, 0], sizes = [1, 256], strides = [1, 1]} : vector<49x256xf32> to vector<1x256xf32>
    %249 = vector.broadcast %248 : vector<1x256xf32> to vector<16x256xf32>
    %250 = arith.mulf %247, %249 : vector<16x256xf32>
    %251 = arith.addf %246, %250 : vector<16x256xf32>
    %c0_93 = arith.constant 0 : index
    %c0_94 = arith.constant 0 : index
    %252 = vector.load %arg3[%c0_93, %c0_94] : memref<256x1024xf32, #tpu.memory_space<vmem>>, vector<256x1024xf32>
    %cst_95 = arith.constant dense<0.000000e+00> : vector<16x1024xf32>
    %253 = tpu.matmul %251, %252, %cst_95 {dimension_numbers = #tpu.dot_dimension_numbers<[1], [0], [0], [1], [0, 0, 1, 1], [], []>} : vector<16x256xf32>, vector<256x1024xf32>, vector<16x1024xf32> -> vector<16x1024xf32>
    %c0_96 = arith.constant 0 : index
    %c0_97 = arith.constant 0 : index
    %254 = vector.load %arg4[%c0_96, %c0_97] : memref<1x1024xf32, #tpu.memory_space<vmem>>, vector<1x1024xf32>
    %255 = vector.broadcast %254 : vector<1x1024xf32> to vector<16x1024xf32>
    %256 = arith.addf %253, %255 : vector<16x1024xf32>
    %cst_98 = arith.constant 0.000000e+00 : f32
    %257 = vector.broadcast %cst_98 : f32 to vector<16x1024xf32>
    %258 = arith.maximumf %256, %257 : vector<16x1024xf32>
    %c0_99 = arith.constant 0 : index
    %c0_100 = arith.constant 0 : index
    %259 = vector.load %arg5[%c0_99, %c0_100] : memref<1024x256xf32, #tpu.memory_space<vmem>>, vector<1024x256xf32>
    %cst_101 = arith.constant dense<0.000000e+00> : vector<16x256xf32>
    %260 = tpu.matmul %258, %259, %cst_101 {dimension_numbers = #tpu.dot_dimension_numbers<[1], [0], [0], [1], [0, 0, 1, 1], [], []>} : vector<16x1024xf32>, vector<1024x256xf32>, vector<16x256xf32> -> vector<16x256xf32>
    %261 = arith.addf %260, %3 : vector<16x256xf32>
    %c0_102 = arith.constant 0 : index
    %c0_103 = arith.constant 0 : index
    %c0_104 = arith.constant 0 : index
    %262 = vector.load %arg6[%c0_102, %c0_103, %c0_104] : memref<1x16x256xf32, #tpu.memory_space<vmem>>, vector<1x16x256xf32>
    %263 = vector.shape_cast %262 : vector<1x16x256xf32> to vector<16x256xf32>
    %264 = vector.shape_cast %261 : vector<16x256xf32> to vector<1x16x256xf32>
    tpu.vector_store %arg6[%c0_102, %c0_103, %c0_104], %264 {strides = array<i32>} : memref<1x16x256xf32, #tpu.memory_space<vmem>>, vector<1x16x256xf32>,
    return
  }
  func.func @transform_0(%arg0: i32) -> (i32, i32, i32) {
    %c0_i32 = arith.constant 0 : i32
    %c0_i32_0 = arith.constant 0 : i32
    %c0_i32_1 = arith.constant 0 : i32
    return %arg0, %c0_i32, %c0_i32_0 : i32, i32, i32
  }
  func.func @transform_1(%arg0: i32) -> (i32, i32) {
    %c0_i32 = arith.constant 0 : i32
    %c0_i32_0 = arith.constant 0 : i32
    %c0_i32_1 = arith.constant 0 : i32
    return %c0_i32, %c0_i32_0 : i32, i32
  }
  func.func @transform_2(%arg0: i32) -> (i32, i32) {
    %c0_i32 = arith.constant 0 : i32
    %c0_i32_0 = arith.constant 0 : i32
    %c0_i32_1 = arith.constant 0 : i32
    return %c0_i32, %c0_i32_0 : i32, i32
  }
  func.func @transform_3(%arg0: i32) -> (i32, i32) {
    %c0_i32 = arith.constant 0 : i32
    %c0_i32_0 = arith.constant 0 : i32
    %c0_i32_1 = arith.constant 0 : i32
    return %c0_i32, %c0_i32_0 : i32, i32
  }
  func.func @transform_4(%arg0: i32) -> (i32, i32) {
    %c0_i32 = arith.constant 0 : i32
    %c0_i32_0 = arith.constant 0 : i32
    %c0_i32_1 = arith.constant 0 : i32
    return %c0_i32, %c0_i32_0 : i32, i32
  }
  func.func @transform_5(%arg0: i32) -> (i32, i32, i32) {
    %c0_i32 = arith.constant 0 : i32
    %c0_i32_0 = arith.constant 0 : i32
    %c0_i32_1 = arith.constant 0 : i32
    return %arg0, %c0_i32, %c0_i32_0 : i32, i32, i32
  }
}

</mosaic_0001>

<bundles_post_ra>
// kernel: tpu_custom_call.1
= control target key start
LH: loop header
LB: loop body
LE: loop exit
PB: predicated region body
PF: predicated region fallthrough
CT: control target
= control target key end

     0   :  { %10 = vsyncpa [#allocation4], 0  ;;  %s11632_s0 = inlined_call_operand.hbm [shape: f32[2,16,256], index: 0, kind: input, shape index: {}]   ;;  %s11633_s1 = inlined_call_operand.hbm [shape: f32[49,256], index: 1, kind: input, shape index: {}]   ;;  %s11634_s2 = inlined_call_operand.hbm [shape: f32[256,1024], index: 2, kind: input, shape index: {}]   ;;  %s11635_s3 = inlined_call_operand.vmem [shape: f32[1,1024], index: 3, kind: input, shape index: {}]   ;;  %s11636_s4 = inlined_call_operand.hbm [shape: f32[1024,256], index: 4, kind: input, shape index: {}]   ;;  %s11637_s5 = inlined_call_operand.hbm [shape: f32[2,16,256], index: 5, kind: output, shape index: {}]  }
   0x1   :  { %12 = vsyncpa [#allocation4 + $0x1], 0 }
   0x2   :  { %13 = vsyncpa [#allocation7], 0 }
   0x3   :  { %14 = vsyncpa [#allocation10], 0 }
   0x4   :  { %15 = vsyncpa [#allocation5], 0 }
   0x5   :  { %17 = vsyncpa [#allocation5 + $0x1], 0  ;;  %s6731_s18 = smov 0   ;;  %s6733_s19 = smov 0  }
   0x6   :  { %s6735_s20 = smov 0   ;;  %s6737_s21 = smov 0  }
   0x7 LB: > { %s6752_s22 = sadd.s32 4294967295, %s6681_s21   ;;  %s5786_s23 = sadd.s32 4294967294, %s6681_s21   ;;  %s6681_s21 = sphi %s6737_s21, %s13366_s21   ;;  %s6677_s20 = sphi %s6735_s20, %s13365_s20   ;;  %s6673_s19 = sphi %s6733_s19, %s13364_s19   ;;  %s6669_s18 = sphi %s6731_s18, %s13363_s18  }
   0x8   : > { %p43_p0 = scmp.ne.s32.totalorder %s6673_s19, %s6669_s18  ;;  %p11638_p1 = scmp.eq.s32.totalorder %s6752_s22, 0 }
   0x9   : > { %p157_p3 = scmp.eq.s32.totalorder %s5786_s23, 1  ;;  %p5787_p5 = scmp.ge.s32.totalorder %s6681_s21, 1 }
   0xa   : > { %p6761_p4 = por %p11638_p1, %p43_p0  ;;  %p164_p7 = scmp.lt.s32.totalorder %s6681_s21, 3 }
   0xb   : > { %p6766_p6 = por %p157_p3, %p43_p0  ;;  %s6683_s27 = smov [#allocation6]  }
   0xc   : > { %s12150_s24 = scalar_select %p6761_p4, 1, 0 }
   0xd   : > { %s12151_s25 = scalar_select %p6766_p6, 1, 0 }
   0xe   : > { %p6771_p8 = pnand %p5787_p5, %p164_p7  ;;  %s176_s28 = sshll.u32 %s6683_s27, 4  ;;  %s6775_s28 = int_to_ptr.vmem [resolvable:$true] %s176_s28 }
   0xf   : > { %s6684_s30 = smov [#allocation8]   ;;  %s6493_s9 = scalar_lea.hbm %s11633_s1, 1792 }
  0x10   : > { %s12152_s26 = scalar_select %p6771_p8, 1, 0 }
  0x11   : > { %p6354_p9 = pneg %p6771_p8  ;;  %s189_s6 = sshll.u32 %s6684_s30, 4  ;;  %s6786_s6 = int_to_ptr.vmem [resolvable:$true] %s189_s6 }
  0x12   : > { %p6494_p12 = scmp.ne.s32.totalorder %s11633_s1, %s6493_s9  ;;  %p6500_p5 = scmp.lt.u32.totalorder %s6493_s9, %s11633_s1 }
  0x13   : > { %p6782_p11 = pnand %p6354_p9, %p11638_p1 }
  0x15   : > { %p6796_p13 = pneg %p6782_p11 }
  0x17   : > { %p6496_p0 = pnand %p6796_p13, %p6494_p12 }
  0x19   : > { %p6497_p3 = pneg %p6496_p0 }
  0x1b   : > { %p6502_p7 = pnand %p6500_p5, %p6497_p3 }
  0x1d   : > { %6505 = shalt.err (!%p6502_p7)
}
  0x1e   : > { %s6506_s15 = scalar_lea.vmem %s6775_s28, 1792  ;;  %p6514_p2 = scmp.lt.s32.totalorder %s6775_s28, %s6775_s28 }
  0x1f   : > { %p6507_p9 = scmp.ne.s32.totalorder %s6775_s28, %s6506_s15  ;;  %p6515_p6 = scmp.lt.s32.totalorder %s6506_s15, %s6506_s15 }
  0x21   : > { %p6509_p10 = pnand %p6507_p9, %p6796_p13  ;;  %p6516_p12 = por %p6515_p6, %p6514_p2 }
  0x23   : > { %p6510_p1 = pneg %p6509_p10 }
  0x25   : > { %p6517_p0 = pnand %p6516_p12, %p6510_p1 }
  0x27   : > { %6520 = shalt.err (!%p6517_p0)
}
  0x28   : > { %s11639_s16 = smov 256   ;;  %s11641_s17 = smov 16  }
  0x29   : > { %6357 = dma.hbm_to_vmem [thread:$0]  (!%p6782_p11), %s11633_s1, 1792, %s6775_s28, [#allocation7], %s11639_s16, %s11639_s16, %s11641_s17  }
  0x2a   : > { %s6521_s8 = scalar_lea.hbm %s11634_s2, 32768 }
  0x2b   : > { %p6522_p1 = scmp.ne.s32.totalorder %s11634_s2, %s6521_s8  ;;  %p6528_p10 = scmp.lt.u32.totalorder %s6521_s8, %s11634_s2 }
  0x2d   : > { %p6524_p2 = pnand %p6522_p1, %p6796_p13 }
  0x2f   : > { %p6525_p6 = pneg %p6524_p2 }
  0x31   : > { %p6530_p3 = pnand %p6528_p10, %p6525_p6 }
  0x33   : > { %6533 = shalt.err (!%p6530_p3)
}
  0x34   : > { %s6534_s28 = scalar_lea.vmem %s6786_s6, 32768  ;;  %p6542_p12 = scmp.lt.s32.totalorder %s6786_s6, %s6786_s6 }
  0x35   : > { %p6535_p5 = scmp.ne.s32.totalorder %s6786_s6, %s6534_s28  ;;  %p6543_p0 = scmp.lt.s32.totalorder %s6534_s28, %s6534_s28 }
  0x37   : > { %p6537_p7 = pnand %p6535_p5, %p6796_p13  ;;  %p6544_p1 = por %p6543_p0, %p6542_p12 }
  0x39   : > { %p6538_p9 = pneg %p6537_p7 }
  0x3b   : > { %p6545_p2 = pnand %p6544_p1, %p6538_p9 }
  0x3d   : > { %6548 = shalt.err (!%p6545_p2)
}
  0x3e   : > { %s6687_s14 = smov 1024   ;;  %s6688_s15 = smov 64  }
  0x3f   : > { %6360 = dma.hbm_to_vmem [thread:$0]  (!%p6782_p11), %s11634_s2, 32768, %s6786_s6, [#allocation7], %s6687_s14, %s6687_s14, %s6688_s15  }
  0x40   : > { %s6689_s30 = smov [#allocation9]   ;;  %s6844_s8 = sadd.s32 1, %s6681_s21  }
  0x41   : > { %s205_s7 = sshll.u32 %s6689_s30, 4  ;;  %s6549_s11 = scalar_lea.hbm %s11636_s4, 32768  ;;  %s206_s7 = int_to_ptr.vmem [resolvable:$true] %s205_s7 }
  0x42   : > { %p6550_p6 = scmp.ne.s32.totalorder %s11636_s4, %s6549_s11  ;;  %p6556_p5 = scmp.lt.u32.totalorder %s6549_s11, %s11636_s4 }
  0x44   : > { %p6552_p10 = pnand %p6550_p6, %p6796_p13 }
  0x46   : > { %p6553_p3 = pneg %p6552_p10 }
  0x48   : > { %p6558_p7 = pnand %p6556_p5, %p6553_p3 }
  0x4a   : > { %6561 = shalt.err (!%p6558_p7)
}
  0x4b   : > { %s6562_s6 = scalar_lea.vmem %s206_s7, 32768  ;;  %p6570_p1 = scmp.lt.s32.totalorder %s206_s7, %s206_s7 }
  0x4c   : > { %p6563_p9 = scmp.ne.s32.totalorder %s206_s7, %s6562_s6  ;;  %p6571_p2 = scmp.lt.s32.totalorder %s6562_s6, %s6562_s6 }
  0x4e   : > { %p6565_p12 = pnand %p6563_p9, %p6796_p13  ;;  %p6572_p4 = por %p6571_p2, %p6570_p1 }
  0x50   : > { %p6566_p0 = pneg %p6565_p12 }
  0x52   : > { %p6573_p8 = pnand %p6572_p4, %p6566_p0 }
  0x54   : > { %6576 = shalt.err (!%p6573_p8)
}
  0x55   : > { %s12155_s14 = smov 16   ;;  %s12156_s15 = smov 256  }
  0x56   : > { %6363 = dma.hbm_to_vmem [thread:$0]  (!%p6782_p11), %s11636_s4, 32768, %s206_s7, [#allocation10], %s12156_s15, %s12156_s15, %s12155_s14  }
  0x57   : > { %s27_s12 = ssub.s32 %s6681_s21, %s6844_s8  ;;  %s30_s29 = sadd.s32 1, %s6677_s20 }
  0x58   : > { %p28_p4 = scmp.eq.s32.totalorder %s27_s12, 0  ;;  %p37_p8 = scmp.ne.s32.totalorder %s6677_s20, %s6673_s19 }
  0x59   : > { %p38_p13 = scmp.eq.s32.totalorder %s6681_s21, 0  ;;  %p6375_p6 = scmp.lt.s32.totalorder %s6681_s21, 2 }
  0x5a   : > { %s6875_s23 = scalar_select %p28_p4, %s6677_s20, %s30_s29  }
  0x5b   : > { %p39_p10 = por %p38_p13, %p37_p8  ;;  %p12157_p3 = scmp.eq.s32.totalorder %s6752_s22, 1 }
  0x5c   : > { %s219_s30 = sand.u32 1, %s6677_s20   ;;  %s5808_s9 = sshll.u32 %s6681_s21, 9 }
  0x5d   : > { %p6879_p5 = por %p12157_p3, %p37_p8  ;;  %s5792_s10 = sshll.u32 %s219_s30, 5 }
  0x5e   : > { %s6888_s7 = scalar_lea.hbm %s11632_s0, %s5808_s9  ;;  %s223_s28 = scalar_lea.vmem [#allocation3], %s5792_s10 }
  0x5f   : > { %s230_s6 = sshll.u32 %s223_s28, 4  ;;  %p6890_p11 = pnand %p6375_p6, %p39_p10  ;;  %s6894_s6 = int_to_ptr.vmem [resolvable:$true] %s230_s6 }
  0x60   : > { %s6896_s17 = scalar_lea.sflag [#allocation4], %s219_s30  ;;  %s6577_s12 = scalar_lea.hbm %s6888_s7, 512 }
  0x61   : > { %p6578_p7 = scmp.ne.s32.totalorder %s6888_s7, %s6577_s12  ;;  %p6579_p9 = pneg %p6890_p11 }
  0x62   : > { %s6582_s10 = scalar_lea.hbm %s11632_s0, 1024  ;;  %p6583_p1 = scmp.lt.u32.totalorder %s6888_s7, %s11632_s0 }
  0x63   : > { %p6580_p12 = pnand %p6579_p9, %p6578_p7  ;;  %p6584_p2 = scmp.lt.u32.totalorder %s6582_s10, %s6577_s12 }
  0x64   : > { %p6586_p8 = scmp.lt.u32.totalorder %s6577_s12, %s6888_s7 }
  0x65   : > { %p6581_p0 = pneg %p6580_p12  ;;  %p6585_p4 = por %p6584_p2, %p6583_p1 }
  0x67   : > { %p6587_p13 = por %p6586_p8, %p6585_p4 }
  0x69   : > { %p6588_p6 = pnand %p6587_p13, %p6581_p0 }
  0x6b   : > { %6591 = shalt.err (!%p6588_p6)
}
  0x6c   : > { %s6592_s30 = scalar_lea.vmem %s6894_s6, 512  ;;  %s6690_s28 = smov [#allocation3]  }
  0x6d   : > { %p6593_p10 = scmp.ne.s32.totalorder %s6894_s6, %s6592_s30  ;;  %s6597_s29 = sshll.u32 %s6690_s28, 4  ;;  %s6598_s29 = int_to_ptr.vmem [resolvable:$false] %s6597_s29 }
  0x6e   : > { %s6599_s9 = scalar_lea.vmem %s6598_s29, 1024  ;;  %p6600_p12 = scmp.lt.s32.totalorder %s6894_s6, %s6598_s29 }
  0x6f   : > { %p6595_p3 = pnand %p6593_p10, %p6579_p9  ;;  %p6601_p1 = scmp.lt.s32.totalorder %s6599_s9, %s6592_s30 }
  0x71   : > { %p6596_p7 = pneg %p6595_p3  ;;  %p6602_p2 = por %p6601_p1, %p6600_p12 }
  0x73   : > { %p6603_p4 = pnand %p6602_p2, %p6596_p7 }
  0x75   : > { %6606 = shalt.err (!%p6603_p4)
}
  0x76   : > { %6367 = dma.hbm_to_vmem [thread:$0]  (!%p6890_p11), %s6888_s7, 512, %s6894_s6, %s6896_s17, %s12156_s15, %s12156_s15, %s12155_s14  }
  0x77   : > { %p12160_p9 = scmp.ne.s32.totalorder %s12152_s26, 0 }
  0x79   : > { %242 = sbr.rel (%p12160_p9) target bundleno = 1888 (0x760), region = 40 }
  0x80   : > { %s6930_s12 = sand.u32 1, %s6673_s19   ;;  %p12161_p0 = scmp.ne.s32.totalorder %s12150_s24, 0 }
  0x81   : > { %s5796_s10 = sshll.u32 %s6930_s12, 5  ;;  %s245_s11 = scalar_lea.sflag [#allocation4], %s6930_s12 }
  0x82   : > { %s6936_s16 = scalar_lea.vmem [#allocation3], %s5796_s10 }
  0x83   : > { %6652 = dma.done.wait (%p12161_p0), %s245_s11, 512  }
  0x84   : > { %6654 = vsyncadd (%p12161_p0), %s245_s11, 4294966784  ;;  %p12162_p11 = scmp.eq.s32.totalorder %s6752_s22, 0 }
  0x86   : > { %6656 = dma.done.wait (%p12162_p11), [#allocation7], 34560   ;;  %p12163_p8 = pmov %p12162_p11 }
  0x88   : > { %6658 = vsyncadd (%p12163_p8), [#allocation7], 4294932736  ;;  %p12164_p13 = pmov %p12163_p8 }
  0x89   : > { %p12165_p6 = pmov %p12163_p8 }
  0x8a   : > { %6660 = dma.done.wait (%p12164_p13), [#allocation10], 32768  }
  0x8b   : > { %6662 = vsyncadd (%p12165_p6), [#allocation10], 4294934528  ;;  %v356_v0 = vlaneseq  ;;  %v6691_v1 = vmov 0.0   ;;  %v6984_v5 = vld [vmem:[#allocation6] sm:$0xff]  ;;  %v6986_v6 = vld [vmem:[#allocation6 + $0x8] sm:$0xff]  ;;  %s6692_s24 = smov 32  }
  0x8c   : > { %290 = vst [vmem:[#allocation2 + $0x18] sm:$0xff] %v6691_v1  ;;  %287 = vst [vmem:[#allocation2] sm:$0xff] %v6691_v1  ;;  %s6693_s26 = smov 80   ;;  %v7002_v12 = vld [vmem:[%s6936_s16 + $0x8] sm:$0xff]  ;;  %v7005_v13 = vld [vmem:[%s6936_s16] sm:$0xff]  ;;  %s6694_s14 = smov 48  }
  0x8d   : > { %288 = vst [vmem:[#allocation2 + $0x8] sm:$0xff] %v6691_v1  ;;  %289 = vst [vmem:[#allocation2 + $0x10] sm:$0xff] %v6691_v1  ;;  %v6976_v2 = vshrl.u32 %v356_v0, 7  ;;  %v7028_v20 = vld [vmem:[%s6936_s16 + $0x10] sm:$0xff]  ;;  %s6695_s15 = smov 96   ;;  %vm292_vm0 = vcmask 130048  }
  0x8e   : > { %291 = vst [vmem:[#allocation2 + $0x20] sm:$0xff] %v6691_v1  ;;  %294 = vst [vmem:[#allocation2 + $0x30] sm:$0xff] %v6691_v1  ;;  %v7041_v24 = vld [vmem:[%s6936_s16 + $0x18] sm:$0xff]  ;;  %v7045_v26 = vld [vmem:[#allocation6 + $0x10] sm:$0xff]  ;;  %s6696_s7 = smov 16   ;;  %s6697_s6 = smov 112  }
  0x8f   : > { %295 = vst [vmem:[#allocation2 + $0x38] sm:$0xff] %v6691_v1  ;;  %296 = vst [vmem:[#allocation2 + $0x40] sm:$0xff] %v6691_v1  ;;  %v6979_v3 = vsub.s32 1, %v6976_v2  ;;  %v6982_v4 = vsub.s32 2, %v6976_v2  ;;  %v6999_v11 = vsub.s32 4, %v6976_v2  ;;  %v7016_v16 = vsub.s32 5, %v6976_v2 }
  0x90   : > { %297 = vst [vmem:[#allocation2 + $0x48] sm:$0xff] %v6691_v1  ;;  %298 = vst [vmem:[#allocation2 + $0x50] sm:$0xff] %v6691_v1  ;;  %v7025_v19 = vsub.s32 6, %v6976_v2  ;;  %v7038_v23 = vsub.s32 0, %v6976_v2  ;;  %v7043_v25 = vld [vmem:[#allocation6 + $0x18] sm:$0xff]  ;;  %v7071_v31 = vsub.s32 3, %v6976_v2 }
  0x91   : > { %300 = vst [vmem:[#allocation2 + $0x60] sm:$0xff] %v6691_v1  ;;  %301 = vst [vmem:[#allocation2 + $0x68] sm:$0xff] %v6691_v1  ;;  %v399_v7 = vrot.slane %v6984_v5, %v6979_v3  ;;  %v479_v8 = vrot.slane %v6984_v5, %v6982_v4  ;;  %v403_v9 = vrot.slane %v6986_v6, %v6979_v3  ;;  %v7092_v38 = vsub.s32 7, %v6976_v2  ;;  %v338_v41 = vld [vmem:[#allocation6 + $0x28] sm:$0xff]  ;;  %v337_v42 = vld [vmem:[#allocation6 + $0x20] sm:$0xff]  ;;  %s6698_s17 = smov 64  }
  0x92   : > { %304 = vst [vmem:[#allocation2 + $0x80] sm:$0xff] %v6691_v1  ;;  %306 = vst [vmem:[#allocation2 + $0x90] sm:$0xff] %v6691_v1  ;;  %v483_v10 = vrot.slane %v6986_v6, %v6982_v4  ;;  %v617_v14 = vrot.slane %v6986_v6, %v6999_v11  ;;  %v613_v15 = vrot.slane %v6984_v5, %v6999_v11  ;;  %v340_v55 = vld [vmem:[#allocation6 + $0x38] sm:$0xff]  ;;  %v339_v56 = vld [vmem:[#allocation6 + $0x30] sm:$0xff]  ;;  %vm410_vm1 = vcmask 261120   ;;  %s286_s9 = scalar_lea.vmem [#allocation11], %s5796_s10 }
  0x93   : > { %307 = vst [vmem:[#allocation2 + $0x98] sm:$0xff] %v6691_v1  ;;  %310 = vst [vmem:[#allocation2 + $0xb0] sm:$0xff] %v6691_v1  ;;  %406 = vrot.lane.b32.xlu0 %v399_v7, %s6692_s24  ;;  %486 = vrot.lane.b32.xlu1 %v479_v8, %s6693_s26  ;;  %v697_v17 = vrot.slane %v6986_v6, %v7016_v16  ;;  %v693_v18 = vrot.slane %v6984_v5, %v7016_v16  ;;  %vm451_vm2 = vcmask 654336   ;;  %vm624_vm3 = vcmask 392192   ;;  %s5684_s11 = sshll.u32 %s286_s9, 4  ;;  %s5809_s16 = sshll.u32 %s6752_s22, 9  ;;  %s11582_s11 = int_to_ptr.vmem [resolvable:$true] %s5684_s11 }
  0x94   : > { %312 = vst [vmem:[#allocation2 + $0xc0] sm:$0xff] %v6691_v1  ;;  %313 = vst [vmem:[#allocation2 + $0xc8] sm:$0xff] %v6691_v1  ;;  %v779_v21 = vrot.slane %v6986_v6, %v7025_v19  ;;  %v775_v22 = vrot.slane %v6984_v5, %v7025_v19  ;;  %v939_v27 = vrot.slane %v7043_v25, %v7038_v23  ;;  %vm704_vm4 = vcmask 785408   ;;  %s5671_s22 = scalar_lea.sflag [#allocation5], %s6930_s12 }
  0x95   : > { %314 = vst [vmem:[#allocation2 + $0xd0] sm:$0xff] %v6691_v1  ;;  %315 = vst [vmem:[#allocation2 + $0xd8] sm:$0xff] %v6691_v1  ;;  %v935_v28 = vrot.slane %v7045_v26, %v7038_v23  ;;  %v1032_v29 = vrot.slane %v7043_v25, %v6979_v3  ;;  %v1028_v30 = vrot.slane %v7045_v26, %v6979_v3  ;;  %vm895_vm5 = vcmask 1044480  }
  0x96   : > { %316 = vst [vmem:[#allocation2 + $0xe0] sm:$0xff] %v6691_v1  ;;  %318 = vst [vmem:[#allocation2 + $0xf0] sm:$0x1] %v6691_v1  ;;  %v1191_v32 = vrot.slane %v7043_v25, %v7071_v31  ;;  %v1187_v33 = vrot.slane %v7045_v26, %v7071_v31  ;;  %v1284_v34 = vrot.slane %v7043_v25, %v6999_v11  ;;  %vm2642_vm6 = vcmask 1043456  }
  0x97   : > { %319 = vst [vmem:[#allocation2 + $0xf8] sm:$0x1] %v6691_v1  ;;  %320 = vst [vmem:[#allocation2 + $0x100] sm:$0x1] %v6691_v1  ;;  %408 = vrot.lane.b32.xlu0 %v403_v9, %s6692_s24  ;;  %488 = vrot.lane.b32.xlu1 %v483_v10, %s6693_s26  ;;  %v1280_v35 = vrot.slane %v7045_v26, %v6999_v11  ;;  %v1380_v36 = vrot.slane %v7043_v25, %v7016_v16  ;;  %v7150_v9 = vld [vmem:[#allocation6 + $0x48] sm:$0xff]  ;;  %v7152_v10 = vld [vmem:[#allocation6 + $0x40] sm:$0xff] }
  0x98   : > { %321 = vst [vmem:[#allocation2 + $0x108] sm:$0x1] %v6691_v1  ;;  %322 = vst [vmem:[#allocation2 + $0x110] sm:$0x1] %v6691_v1  ;;  %v1376_v37 = vrot.slane %v7045_v26, %v7016_v16  ;;  %v1551_v39 = vrot.slane %v7043_v25, %v7092_v38  ;;  %v1547_v40 = vrot.slane %v7045_v26, %v7092_v38  ;;  %vm370_vm7 = vcmask 916480  }
  0x99   : > { %12166 = vst [vmem:[#allocation16_spill] sm:$0xff] %v6979_v3  ;;  %12167 = vst [vmem:[#allocation17_spill] sm:$0xff] %v6982_v4  ;;  %v1644_v43 = vrot.slane %v338_v41, %v7038_v23  ;;  %v1640_v44 = vrot.slane %v337_v42, %v7038_v23  ;;  %v1802_v45 = vrot.slane %v338_v41, %v6982_v4  ;;  %vm3252_vm8 = vcmask 1040384  }
  0x9a   : > { %12168 = vst [vmem:[#allocation18_spill] sm:$0xff] %v6999_v11  ;;  %330 = vst [vmem:[#allocation2 + $0x78] sm:$0xff] %v7002_v12  ;;  %v1798_v46 = vrot.slane %v337_v42, %v6982_v4  ;;  %v1895_v47 = vrot.slane %v338_v41, %v7071_v31  ;;  %v1891_v48 = vrot.slane %v337_v42, %v7071_v31  ;;  %vm1508_vm9 = vcmask 1041408  }
  0x9b   : > { %329 = vst [vmem:[#allocation2 + $0x70] sm:$0xff] %v7005_v13  ;;  %12169 = vst [vmem:[#allocation19_spill] sm:$0xff] %v7016_v16  ;;  %622 = vrot.lane.b32.xlu1 %v617_v14, %s6694_s14  ;;  %620 = vrot.lane.b32.xlu0 %v613_v15, %s6694_s14  ;;  %v1990_v49 = vrot.slane %v338_v41, %v6999_v11  ;;  %v1986_v50 = vrot.slane %v337_v42, %v6999_v11  ;;  %vm2109_vm10 = vcmask 1046528   ;;  %vm3865_vm11 = vcmask 1045504  }
  0x9c   : > { %12170 = vst [vmem:[#allocation20_spill] sm:$0xff] %v7025_v19  ;;  %331 = vst [vmem:[#allocation2 + $0xa0] sm:$0xff] %v7028_v20  ;;  %v2145_v51 = vrot.slane %v338_v41, %v7025_v19  ;;  %v2141_v52 = vrot.slane %v337_v42, %v7025_v19  ;;  %v2226_v53 = vrot.slane %v338_v41, %v7092_v38  ;;  %vm323_vm12 = vcmask 122880  }
  0x9d   : > { %12171 = vst [vmem:[#allocation21_spill] sm:$0xff] %v7038_v23  ;;  %293 = vst.msk [vmem:[#allocation2 + $0x28] sm:$0xff] %vm292_vm0, %v6691_v1  ;;  %v2222_v54 = vrot.slane %v337_v42, %v7092_v38  ;;  %v2363_v57 = vrot.slane %v340_v55, %v6979_v3  ;;  %v2359_v58 = vrot.slane %v339_v56, %v6979_v3  ;;  %vm665_vm13 = vcmask 523264  }
  0x9e   : > { %299 = vst.msk [vmem:[#allocation2 + $0x58] sm:$0xff] %vm292_vm0, %v6691_v1  ;;  %305 = vst.msk [vmem:[#allocation2 + $0x88] sm:$0xff] %vm292_vm0, %v6691_v1  ;;  %v2444_v59 = vrot.slane %v340_v55, %v6982_v4  ;;  %v2440_v60 = vrot.slane %v339_v56, %v6982_v4  ;;  %v2526_v61 = vrot.slane %v340_v55, %v7071_v31 }
  0x9f   : > { %702 = vrot.lane.b32.xlu1 %v697_v17, %s6695_s15  ;;  %700 = vrot.lane.b32.xlu0 %v693_v18, %s6695_s15  ;;  %311 = vst.msk [vmem:[#allocation2 + $0xb8] sm:$0xff] %vm292_vm0, %v6691_v1  ;;  %317 = vst.msk [vmem:[#allocation2 + $0xe8] sm:$0xff] %vm292_vm0, %v6691_v1  ;;  %v2522_v62 = vrot.slane %v339_v56, %v7071_v31  ;;  %v2685_v63 = vrot.slane %v340_v55, %v7016_v16 }
  0xa0   : > { %332 = vst [vmem:[#allocation2 + $0xa8] sm:$0xff] %v7041_v24  ;;  %12172 = vst [vmem:[#allocation22_spill] sm:$0xff] %v7071_v31  ;;  %v2681_v0 = vrot.slane %v339_v56, %v7016_v16  ;;  %v2778_v1 = vrot.slane %v340_v55, %v7025_v19  ;;  %v2774_v2 = vrot.slane %v339_v56, %v7025_v19 }
  0xa1   : > { %12173 = vst [vmem:[#allocation23_spill] sm:$0xff] %v7092_v38  ;;  %v363_v7 = vrot.slane %v6986_v6, %v7038_v23  ;;  %v359_v8 = vrot.slane %v6984_v5, %v7038_v23  ;;  %v2936_v14 = vrot.slane %v7150_v9, %v7038_v23  ;;  %v2932_v15 = vrot.slane %v7152_v10, %v7038_v23 }
  0xa2   : > { %v3029_v17 = vrot.slane %v7150_v9, %v6979_v3  ;;  %v3025_v18 = vrot.slane %v7152_v10, %v6979_v3 }
  0xa3   : > { %784 = vrot.lane.b32.xlu1 %v779_v21, %s6696_s7  ;;  %782 = vrot.lane.b32.xlu0 %v775_v22, %s6696_s7  ;;  %v3124_v21 = vrot.slane %v7150_v9, %v6982_v4  ;;  %v3120_v22 = vrot.slane %v7152_v10, %v6982_v4 }
  0xa7   : > { %944 = vrot.lane.b32.xlu1 %v939_v27, %s6692_s24  ;;  %942 = vrot.lane.b32.xlu0 %v935_v28, %s6692_s24  ;;  %v7174_v27 = vrot.slane %v6986_v6, %v7071_v31  ;;  %v7178_v28 = vrot.slane %v6984_v5, %v7071_v31 }
  0xa9   : > { %12174 = vst [vmem:[#allocation24_spill] sm:$0xff] %v7174_v27  ;;  %12175 = vst [vmem:[#allocation25_spill] sm:$0xff] %v7178_v28 }
  0xab   : > { %1037 = vrot.lane.b32.xlu1 %v1032_v29, %s6693_s26  ;;  %1035 = vrot.lane.b32.xlu0 %v1028_v30, %s6693_s26  ;;  %v7180_v29 = vld [vmem:[#allocation2 + $0x18] sm:$0x80]  ;;  %v7182_v30 = vld [vmem:[#allocation2 + $0x10] sm:$0x80] }
  0xaf   : > { %1196 = vrot.lane.b32.xlu1 %v1191_v32, %s6694_s14  ;;  %1194 = vrot.lane.b32.xlu0 %v1187_v33, %s6694_s14  ;;  %v563_v32 = vmul.f32 %v7174_v27, %v7180_v29  ;;  %v562_v33 = vmul.f32 %v7178_v28, %v7182_v30 }
  0xb3   : > { %1289 = vrot.lane.b32.xlu1 %v1284_v34, %s6695_s15  ;;  %1287 = vrot.lane.b32.xlu0 %v1280_v35, %s6695_s15  ;;  %v348_v34 = vld [vmem:[#allocation2 + $0x8] sm:$0x80] }
  0xb7   : > { %1385 = vrot.lane.b32.xlu1 %v1380_v36, %s6696_s7  ;;  %1383 = vrot.lane.b32.xlu0 %v1376_v37, %s6696_s7 }
  0xbb   : > { %1556 = vrot.lane.b32.xlu1 %v1551_v39, %s6692_s24  ;;  %1554 = vrot.lane.b32.xlu0 %v1547_v40, %s6692_s24 }
  0xbf   : > { %1649 = vrot.lane.b32.xlu1 %v1644_v43, %s6693_s26  ;;  %1647 = vrot.lane.b32.xlu0 %v1640_v44, %s6693_s26 }
  0xc3   : > { %1807 = vrot.lane.b32.xlu1 %v1802_v45, %s6694_s14  ;;  %1805 = vrot.lane.b32.xlu0 %v1798_v46, %s6694_s14 }
  0xc7   : > { %1900 = vrot.lane.b32.xlu1 %v1895_v47, %s6695_s15  ;;  %1898 = vrot.lane.b32.xlu0 %v1891_v48, %s6695_s15 }
  0xcb   : > { %1995 = vrot.lane.b32.xlu1 %v1990_v49, %s6696_s7  ;;  %1993 = vrot.lane.b32.xlu0 %v1986_v50, %s6696_s7 }
  0xcf   : > { %2150 = vrot.lane.b32.xlu1 %v2145_v51, %s6692_s24  ;;  %2148 = vrot.lane.b32.xlu0 %v2141_v52, %s6692_s24 }
  0xd3   : > { %2231 = vrot.lane.b32.xlu1 %v2226_v53, %s6693_s26  ;;  %2229 = vrot.lane.b32.xlu0 %v2222_v54, %s6693_s26 }
  0xd7   : > { %2368 = vrot.lane.b32.xlu1 %v2363_v57, %s6694_s14  ;;  %2366 = vrot.lane.b32.xlu0 %v2359_v58, %s6694_s14 }
  0xdb   : > { %2449 = vrot.lane.b32.xlu1 %v2444_v59, %s6695_s15  ;;  %2447 = vrot.lane.b32.xlu0 %v2440_v60, %s6695_s15 }
  0xdf   : > { %2531 = vrot.lane.b32.xlu1 %v2526_v61, %s6696_s7  ;;  %2529 = vrot.lane.b32.xlu0 %v2522_v62, %s6696_s7  ;;  %v565_v62 = vmul.f32 0.0, %v7174_v27 }
  0xe3   : > { %2690 = vrot.lane.b32.xlu1 %v2685_v63, %s6692_s24  ;;  %2688 = vrot.lane.b32.xlu0 %v2681_v0, %s6692_s24  ;;  %v564_v63 = vmul.f32 0.0, %v7178_v28 }
  0xe7   : > { %2783 = vrot.lane.b32.xlu1 %v2778_v1, %s6693_s26  ;;  %2781 = vrot.lane.b32.xlu0 %v2774_v2, %s6693_s26 }
  0xeb   : > { %368 = vrot.lane.b32.xlu1 %v363_v7, %s6697_s6  ;;  %366 = vrot.lane.b32.xlu0 %v359_v8, %s6697_s6 }
  0xef   : > { %2941 = vrot.lane.b32.xlu1 %v2936_v14, %s6694_s14  ;;  %2939 = vrot.lane.b32.xlu0 %v2932_v15, %s6694_s14 }
  0xf3   : > { %3034 = vrot.lane.b32.xlu1 %v3029_v17, %s6695_s15  ;;  %3032 = vrot.lane.b32.xlu0 %v3025_v18, %s6695_s15  ;;  %v607_v17 = vld [vmem:[#allocation2 + $0x20] sm:$0x80] }
  0xf7   : > { %3129 = vrot.lane.b32.xlu1 %v3124_v21, %s6696_s7  ;;  %3127 = vrot.lane.b32.xlu0 %v3120_v22, %s6696_s7 }
  0xfb   : > { %576 = vrot.lane.b32.xlu1 %v563_v32, %s6697_s6  ;;  %574 = vrot.lane.b32.xlu0 %v562_v33, %s6697_s6 }
 0x105   : > { %v7192_v35 = vpop.permute.xlu0 %406  ;;  %v7194_v36 = vpop.permute.xlu1 %486 }
 0x106   : > { %12176 = vst [vmem:[#allocation26_spill] sm:$0xff] %v7192_v35  ;;  %12177 = vst [vmem:[#allocation27_spill] sm:$0xff] %v7194_v36  ;;  %v418_v37 = vmul.f32 0.0, %v7192_v35  ;;  %v415_v39 = vmul.f32 %v7192_v35, %v348_v34  ;;  %v497_v44 = vmul.f32 0.0, %v7194_v36  ;;  %v494_v45 = vmul.f32 %v7194_v36, %v348_v34 }
 0x108   : > { %439 = vrot.lane.b32.xlu1 %v418_v37, %s6693_s26  ;;  %433 = vrot.lane.b32.xlu0 %v415_v39, %s6693_s26 }
 0x109   : > { %v7200_v40 = vpop.permute.xlu0 %408  ;;  %v7202_v41 = vpop.permute.xlu1 %488 }
 0x10a   : > { %12178 = vst [vmem:[#allocation28_spill] sm:$0xff] %v7200_v40  ;;  %12179 = vst [vmem:[#allocation29_spill] sm:$0xff] %v7202_v41  ;;  %v420_v42 = vmul.f32 0.0, %v7200_v40  ;;  %v417_v43 = vmul.f32 %v7200_v40, %v7180_v29  ;;  %v499_v48 = vmul.f32 0.0, %v7202_v41  ;;  %v496_v49 = vmul.f32 %v7202_v41, %v7180_v29 }
 0x10b   : > { %v7227_v52 = vsel %vm410_vm1, %v7192_v35, %v7200_v40  ;;  %v7241_v57 = vsel %vm451_vm2, %v7194_v36, %v7202_v41  ;;  %v7439_v40 = vld [vmem:[#allocation6 + $0x50] sm:$0xff] }
 0x10c   : > { %443 = vrot.lane.b32.xlu1 %v420_v42, %s6693_s26  ;;  %437 = vrot.lane.b32.xlu0 %v417_v43, %s6693_s26  ;;  %12184 = vst [vmem:[#allocation34_spill] sm:$0xff] %v7227_v52  ;;  %v416_v55 = vmul.f32 %v7227_v52, %v7182_v30  ;;  %v419_v56 = vmul.f32 0.0, %v7227_v52  ;;  %12187 = vst [vmem:[#allocation37_spill] sm:$0xff] %v7241_v57  ;;  %v495_v60 = vmul.f32 %v7241_v57, %v7182_v30 }
 0x10d   : > { %v7211_v46 = vpop.permute.xlu1 %622  ;;  %v7213_v47 = vpop.permute.xlu0 %620  ;;  %v498_v61 = vmul.f32 0.0, %v7241_v57  ;;  %v3295_v42 = vrot.slane %v7150_v9, %v6999_v11  ;;  %v3291_v43 = vrot.slane %v7152_v10, %v6999_v11 }
 0x10e   : > { %12180 = vst [vmem:[#allocation30_spill] sm:$0xff] %v7211_v46  ;;  %12181 = vst [vmem:[#allocation31_spill] sm:$0xff] %v7213_v47  ;;  %v7263_v2 = vsel %vm624_vm3, %v7213_v47, %v7211_v46  ;;  %v629_v15 = vmul.f32 %v7213_v47, %v7182_v30  ;;  %v632_v22 = vmul.f32 0.0, %v7213_v47  ;;  %v631_v32 = vmul.f32 %v7211_v46, %v607_v17 }
 0x10f   : > { %12192 = vst [vmem:[#allocation42_spill] sm:$0xff] %v7263_v2  ;;  %v630_v14 = vmul.f32 %v7263_v2, %v7180_v29  ;;  %v634_v37 = vmul.f32 0.0, %v7211_v46  ;;  %v633_v39 = vmul.f32 0.0, %v7263_v2  ;;  %v7382_v46 = vld [vmem:[#allocation2 + $0x40] sm:$0xfc] }
 0x110   : > { %518 = vrot.lane.b32.xlu1 %v497_v44, %s6692_s24  ;;  %512 = vrot.lane.b32.xlu0 %v494_v45, %s6692_s24 }
 0x111   : > { %v7220_v50 = vpop.permute.xlu1 %702  ;;  %v7222_v51 = vpop.permute.xlu0 %700 }
 0x112   : > { %12182 = vst [vmem:[#allocation32_spill] sm:$0xff] %v7220_v50  ;;  %12183 = vst [vmem:[#allocation33_spill] sm:$0xff] %v7222_v51 }
 0x114   : > { %522 = vrot.lane.b32.xlu1 %v499_v48, %s6692_s24  ;;  %516 = vrot.lane.b32.xlu0 %v496_v49, %s6692_s24  ;;  %v866_v48 = vrot.slane %v6986_v6, %v7092_v38  ;;  %v862_v49 = vrot.slane %v6984_v5, %v7092_v38  ;;  %v709_v6 = vmul.f32 %v7222_v51, %v7182_v30  ;;  %v714_v30 = vmul.f32 0.0, %v7220_v50 }
 0x115   : > { %v7231_v53 = vpop.permute.xlu1 %784  ;;  %v7233_v54 = vpop.permute.xlu0 %782 }
 0x116   : > { %12185 = vst [vmem:[#allocation35_spill] sm:$0xff] %v7231_v53  ;;  %12186 = vst [vmem:[#allocation36_spill] sm:$0xff] %v7233_v54 }
 0x118   : > { %435 = vrot.lane.b32.xlu1 %v416_v55, %s6693_s26  ;;  %441 = vrot.lane.b32.xlu0 %v419_v56, %s6693_s26 }
 0x119   : > { %v7245_v58 = vpop.permute.xlu1 %944  ;;  %v7247_v59 = vpop.permute.xlu0 %942 }
 0x11a   : > { %12188 = vst [vmem:[#allocation38_spill] sm:$0xff] %v7245_v58  ;;  %12189 = vst [vmem:[#allocation39_spill] sm:$0xff] %v7247_v59  ;;  %v7403_v2 = vmul.f32 0.0, %v7247_v59 }
 0x11c   : > { %514 = vrot.lane.b32.xlu1 %v495_v60, %s6692_s24  ;;  %520 = vrot.lane.b32.xlu0 %v498_v61, %s6692_s24  ;;  %v7314_v60 = vsel %vm704_vm4, %v7222_v51, %v7220_v50  ;;  %12215 = vst [vmem:[#allocation65_spill] sm:$0xff] %v7403_v2  ;;  %v11665_v57 = vrot.slane %v7403_v2, 3 }
 0x11d   : > { %v7256_v0 = vpop.permute.xlu1 %1037  ;;  %v7258_v1 = vpop.permute.xlu0 %1035  ;;  %12203 = vst [vmem:[#allocation53_spill] sm:$0xff] %v7314_v60  ;;  %v710_v5 = vmul.f32 %v7314_v60, %v7180_v29 }
 0x11e   : > { %12190 = vst [vmem:[#allocation40_spill] sm:$0xff] %v7256_v0  ;;  %12191 = vst [vmem:[#allocation41_spill] sm:$0xff] %v7258_v1 }
 0x120   : > { %580 = vrot.lane.b32.xlu1 %v565_v62, %s6697_s6  ;;  %578 = vrot.lane.b32.xlu0 %v564_v63, %s6697_s6 }
 0x121   : > { %v7267_v7 = vpop.permute.xlu1 %1196  ;;  %v7269_v8 = vpop.permute.xlu0 %1194 }
 0x122   : > { %12193 = vst [vmem:[#allocation43_spill] sm:$0xff] %v7267_v7  ;;  %12194 = vst [vmem:[#allocation44_spill] sm:$0xff] %v7269_v8 }
 0x124   : > { %649 = vrot.lane.b32.xlu1 %v630_v14, %s6698_s17  ;;  %647 = vrot.lane.b32.xlu0 %v629_v15, %s6698_s17  ;;  %v712_v15 = vmul.f32 0.0, %v7222_v51  ;;  %v770_v51 = vld [vmem:[#allocation2 + $0x58] sm:$0xff] }
 0x125   : > { %v7277_v18 = vpop.permute.xlu1 %1289  ;;  %v7279_v21 = vpop.permute.xlu0 %1287 }
 0x126   : > { %12195 = vst [vmem:[#allocation45_spill] sm:$0xff] %v7277_v18  ;;  %12196 = vst [vmem:[#allocation46_spill] sm:$0xff] %v7279_v21 }
 0x128   : > { %653 = vrot.lane.b32.xlu1 %v632_v22, %s6698_s17  ;;  %651 = vrot.lane.b32.xlu0 %v631_v32, %s6698_s17  ;;  %v711_v22 = vmul.f32 %v7220_v50, %v607_v17 }
 0x129   : > { %v7285_v33 = vpop.permute.xlu1 %1385  ;;  %v7287_v34 = vpop.permute.xlu0 %1383 }
 0x12a   : > { %12197 = vst [vmem:[#allocation47_spill] sm:$0xff] %v7285_v33  ;;  %12198 = vst [vmem:[#allocation48_spill] sm:$0xff] %v7287_v34 }
 0x12c   : > { %657 = vrot.lane.b32.xlu1 %v634_v37, %s6698_s17  ;;  %655 = vrot.lane.b32.xlu0 %v633_v39, %s6698_s17  ;;  %v713_v39 = vmul.f32 0.0, %v7314_v60 }
 0x12d   : > { %v7297_v44 = vpop.permute.xlu1 %1556  ;;  %v7299_v45 = vpop.permute.xlu0 %1554 }
 0x12e   : > { %12199 = vst [vmem:[#allocation49_spill] sm:$0xff] %v7297_v44  ;;  %12200 = vst [vmem:[#allocation50_spill] sm:$0xff] %v7299_v45 }
 0x130   : > { %3300 = vrot.lane.b32.xlu1 %v3295_v42, %s6692_s24  ;;  %3298 = vrot.lane.b32.xlu0 %v3291_v43, %s6692_s24  ;;  %v3388_v42 = vrot.slane %v7150_v9, %v7016_v16  ;;  %v3384_v43 = vrot.slane %v7152_v10, %v7016_v16 }
 0x131   : > { %v7307_v55 = vpop.permute.xlu1 %1649  ;;  %v7309_v56 = vpop.permute.xlu0 %1647 }
 0x132   : > { %12201 = vst [vmem:[#allocation51_spill] sm:$0xff] %v7307_v55  ;;  %12202 = vst [vmem:[#allocation52_spill] sm:$0xff] %v7309_v56 }
 0x134   : > { %871 = vrot.lane.b32.xlu1 %v866_v48, %s6697_s6  ;;  %869 = vrot.lane.b32.xlu0 %v862_v49, %s6697_s6 }
 0x135   : > { %v7318_v61 = vpop.permute.xlu1 %1807  ;;  %v7320_v62 = vpop.permute.xlu0 %1805 }
 0x136   : > { %12204 = vst [vmem:[#allocation54_spill] sm:$0xff] %v7318_v61  ;;  %12205 = vst [vmem:[#allocation55_spill] sm:$0xff] %v7320_v62 }
 0x138   : > { %729 = vrot.lane.b32.xlu1 %v710_v5, %s6696_s7  ;;  %727 = vrot.lane.b32.xlu0 %v709_v6, %s6696_s7  ;;  %v7355_v5 = vsel %vm292_vm0, %v7233_v54, %v7231_v53 }
 0x139   : > { %v7328_v63 = vpop.permute.xlu1 %1900  ;;  %v7330_v14 = vpop.permute.xlu0 %1898  ;;  %12210 = vst [vmem:[#allocation60_spill] sm:$0xff] %v7355_v5 }
 0x13a   : > { %12206 = vst [vmem:[#allocation56_spill] sm:$0xff] %v7328_v63  ;;  %12207 = vst [vmem:[#allocation57_spill] sm:$0xff] %v7330_v14 }
 0x13c   : > { %733 = vrot.lane.b32.xlu1 %v712_v15, %s6696_s7  ;;  %731 = vrot.lane.b32.xlu0 %v711_v22, %s6696_s7  ;;  %v791_v22 = vmul.f32 %v7355_v5, %v607_v17 }
 0x13d   : > { %v7336_v32 = vpop.permute.xlu1 %1995  ;;  %v7338_v37 = vpop.permute.xlu0 %1993 }
 0x13e   : > { %12208 = vst [vmem:[#allocation58_spill] sm:$0xff] %v7336_v32  ;;  %12209 = vst [vmem:[#allocation59_spill] sm:$0xff] %v7338_v37 }
 0x140   : > { %737 = vrot.lane.b32.xlu1 %v714_v30, %s6696_s7  ;;  %735 = vrot.lane.b32.xlu0 %v713_v39, %s6696_s7  ;;  %v790_v30 = vmul.f32 %v7233_v54, %v7180_v29  ;;  %v769_v39 = vld [vmem:[#allocation2 + $0x28] sm:$0x80] }
 0x141   : > { %v7348_v48 = vpop.permute.xlu1 %2150  ;;  %v7350_v49 = vpop.permute.xlu0 %2148 }
 0x144   : > { %3393 = vrot.lane.b32.xlu1 %v3388_v42, %s6693_s26  ;;  %3391 = vrot.lane.b32.xlu0 %v3384_v43, %s6693_s26  ;;  %v793_v42 = vmul.f32 0.0, %v7233_v54  ;;  %v792_v43 = vmul.f32 %v7231_v53, %v769_v39  ;;  %v7387_v54 = vsel %vm410_vm1, %v7247_v59, %v7245_v58  ;;  %v851_v39 = vld [vmem:[#allocation2 + $0x38] sm:$0xfc] }
 0x145   : > { %v7359_v6 = vpop.permute.xlu1 %2231  ;;  %v7361_v15 = vpop.permute.xlu0 %2229  ;;  %12212 = vst [vmem:[#allocation62_spill] sm:$0xff] %v7387_v54  ;;  %v950_v47 = vmul.f32 %v7247_v59, %v851_v39  ;;  %v7418_v59 = vmul.f32 %v7245_v58, %v7002_v12 }
 0x147   : > { %v968_v28 = vrot.slane %v950_v47, 3  ;;  %12217 = vst [vmem:[#allocation67_spill] sm:$0xff] %v7418_v59 }
 0x148   : > { %810 = vrot.lane.b32.xlu1 %v791_v22, %s6695_s15  ;;  %808 = vrot.lane.b32.xlu0 %v790_v30, %s6695_s15  ;;  %v795_v22 = vmul.f32 %v7231_v53, %v770_v51  ;;  %v794_v30 = vmul.f32 0.0, %v7355_v5  ;;  %v3542_v51 = vrot.slane %v7152_v10, %v7092_v38  ;;  %v951_v5 = vmul.f32 %v7387_v54, %v7382_v46 }
 0x149   : > { %v7368_v60 = vpop.permute.xlu1 %2368  ;;  %v7370_v50 = vpop.permute.xlu0 %2366  ;;  %v972_v41 = vsel %vm895_vm5, %v968_v28, %v11665_v57 }
 0x14c   : > { %814 = vrot.lane.b32.xlu1 %v793_v42, %s6695_s15  ;;  %812 = vrot.lane.b32.xlu0 %v792_v43, %s6695_s15  ;;  %v3546_v42 = vrot.slane %v7150_v9, %v7092_v38 }
 0x14d   : > { %v7376_v17 = vpop.permute.xlu1 %2449  ;;  %v7378_v29 = vpop.permute.xlu0 %2447 }
 0x14e   : > { %12211 = vst [vmem:[#allocation61_spill] sm:$0xff] %v7378_v29 }
 0x150   : > { %818 = vrot.lane.b32.xlu1 %v795_v22, %s6695_s15  ;;  %816 = vrot.lane.b32.xlu0 %v794_v30, %s6695_s15  ;;  %v7405_v22 = vld [vmem:[#allocation2 + $0x48] sm:$0xfc]  ;;  %v969_v30 = vrot.slane %v951_v5, 3 }
 0x151   : > { %v7395_v43 = vpop.permute.xlu1 %2531  ;;  %v7397_v53 = vpop.permute.xlu0 %2529  ;;  %v952_v27 = vmul.f32 %v7245_v58, %v7405_v22  ;;  %v11669_v58 = vrot.slane %v7418_v59, 3  ;;  %v1043_v59 = vmul.f32 %v7258_v1, %v851_v39  ;;  %v7479_v39 = vmul.f32 %v7256_v0, %v7002_v12 }
 0x152   : > { %12213 = vst [vmem:[#allocation63_spill] sm:$0xff] %v7395_v43  ;;  %12214 = vst [vmem:[#allocation64_spill] sm:$0xff] %v7397_v53  ;;  %v7504_v53 = vrot.slane %v7045_v26, %v6982_v4 }
 0x153   : > { %12224 = vst [vmem:[#allocation74_spill] sm:$0xff] %v7479_v39 }
 0x154   : > { %3551 = vrot.lane.b32.xlu1 %v3546_v42, %s6694_s14  ;;  %3549 = vrot.lane.b32.xlu0 %v3542_v51, %s6694_s14  ;;  %v7422_v42 = vmul.f32 %v7387_v54, %v7005_v13  ;;  %v970_v51 = vrot.slane %v952_v27, 3  ;;  %v7437_v54 = vld [vmem:[#allocation6 + $0x58] sm:$0xff]  ;;  %v7448_v27 = vsel %vm451_vm2, %v7258_v1, %v7256_v0  ;;  %12229 = vst [vmem:[#allocation79_spill] sm:$0xff] %v7504_v53 }
 0x155   : > { %v7409_v9 = vpop.permute.xlu1 %2690  ;;  %v7411_v10 = vpop.permute.xlu0 %2688  ;;  %12222 = vst [vmem:[#allocation72_spill] sm:$0xff] %v7448_v27  ;;  %v3639_v57 = vrot.slane %v7437_v54, %v7038_v23  ;;  %v7483_v2 = vmul.f32 %v7448_v27, %v7005_v13 }
 0x156   : > { %12216 = vst [vmem:[#allocation66_spill] sm:$0xff] %v7409_v9  ;;  %12218 = vst [vmem:[#allocation68_spill] sm:$0xff] %v7422_v42  ;;  %v11670_v36 = vrot.slane %v7422_v42, 3 }
 0x157   : > { %12225 = vst [vmem:[#allocation75_spill] sm:$0xff] %v7483_v2 }
 0x158   : > { %985 = vrot.lane.b32.xlu1 %v969_v30, %s6693_s26  ;;  %983 = vrot.lane.b32.xlu0 %v968_v28, %s6693_s26  ;;  %v976_v28 = vsel %vm895_vm5, %v970_v51, %v11669_v58 }
 0x159   : > { %v7426_v5 = vpop.permute.xlu1 %2783  ;;  %v7428_v47 = vpop.permute.xlu0 %2781 }
 0x15a   : > { %12219 = vst [vmem:[#allocation69_spill] sm:$0xff] %v7426_v5 }
 0x15c   : > { %989 = vrot.lane.b32.xlu1 %v972_v41, %s6693_s26  ;;  %987 = vrot.lane.b32.xlu0 %v970_v51, %s6693_s26  ;;  %v974_v41 = vsel %vm895_vm5, %v969_v30, %v11670_v36  ;;  %v7470_v30 = vmul.f32 0.0, %v7258_v1  ;;  %v1045_v36 = vmul.f32 %v7256_v0, %v7405_v22  ;;  %v11682_v0 = vrot.slane %v7479_v39, 3 }
 0x15d   : > { %v7441_v35 = vpop.permute.xlu1 %368  ;;  %v7443_v52 = vpop.permute.xlu0 %366  ;;  %v11683_v1 = vrot.slane %v7483_v2, 3 }
 0x15e   : > { %12220 = vst [vmem:[#allocation70_spill] sm:$0xff] %v7441_v35  ;;  %12221 = vst [vmem:[#allocation71_spill] sm:$0xff] %v7443_v52  ;;  %v3635_v52 = vrot.slane %v7439_v40, %v7038_v23  ;;  %v1044_v35 = vmul.f32 %v7448_v27, %v7382_v46  ;;  %v11678_v42 = vrot.slane %v7470_v30, 3  ;;  %v7500_v27 = vrot.slane %v7043_v25, %v6982_v4 }
 0x15f   : > { %12223 = vst [vmem:[#allocation73_spill] sm:$0xff] %v7470_v30  ;;  %v3730_v4 = vrot.slane %v7439_v40, %v6979_v3 }
 0x160   : > { %993 = vrot.lane.b32.xlu1 %v976_v28, %s6693_s26  ;;  %991 = vrot.lane.b32.xlu0 %v974_v41, %s6693_s26  ;;  %v1062_v28 = vrot.slane %v1044_v35, 3  ;;  %v1061_v41 = vrot.slane %v1043_v59, 3  ;;  %12228 = vst [vmem:[#allocation78_spill] sm:$0xff] %v7500_v27  ;;  %v1127_v43 = vmul.f32 %v7500_v27, %v7405_v22 }
 0x161   : > { %v7465_v51 = vpop.permute.xlu1 %2941  ;;  %v7467_v58 = vpop.permute.xlu0 %2939 }
 0x162   : > { %v1065_v59 = vsel %vm895_vm5, %v1061_v41, %v11678_v42  ;;  %v3734_v42 = vrot.slane %v7437_v54, %v6979_v3 }
 0x164   : > { %3644 = vrot.lane.b32.xlu1 %v3639_v57, %s6695_s15  ;;  %3642 = vrot.lane.b32.xlu0 %v3635_v52, %s6695_s15  ;;  %v1063_v57 = vrot.slane %v1045_v36, 3 }
 0x165   : > { %v7487_v52 = vpop.permute.xlu1 %3034  ;;  %v7489_v35 = vpop.permute.xlu0 %3032 }
 0x166   : > { %12226 = vst [vmem:[#allocation76_spill] sm:$0xff] %v7487_v52  ;;  %12227 = vst [vmem:[#allocation77_spill] sm:$0xff] %v7489_v35 }
 0x168   : > { %1078 = vrot.lane.b32.xlu1 %v1062_v28, %s6692_s24  ;;  %1076 = vrot.lane.b32.xlu0 %v1061_v41, %s6692_s24  ;;  %v1069_v41 = vsel %vm895_vm5, %v1063_v57, %v11682_v0  ;;  %v7528_v0 = vmul.f32 %v7500_v27, %v7002_v12  ;;  %v7545_v27 = vsel %vm624_vm3, %v7269_v8, %v7267_v7 }
 0x169   : > { %v7506_v36 = vpop.permute.xlu1 %3129  ;;  %v7508_v30 = vpop.permute.xlu0 %3127  ;;  %12236 = vst [vmem:[#allocation86_spill] sm:$0xff] %v7545_v27 }
 0x16a   : > { %12230 = vst [vmem:[#allocation80_spill] sm:$0xff] %v7506_v36  ;;  %12231 = vst [vmem:[#allocation81_spill] sm:$0xff] %v7508_v30  ;;  %v11692_v2 = vrot.slane %v7528_v0, 3 }
 0x16b   : > { %12232 = vst [vmem:[#allocation82_spill] sm:$0xff] %v7528_v0  ;;  %v7567_v0 = vld [vmem:[#allocation2 + $0x50] sm:$0xfc] }
 0x16c   : > { %1082 = vrot.lane.b32.xlu1 %v1065_v59, %s6692_s24  ;;  %1080 = vrot.lane.b32.xlu0 %v1063_v57, %s6692_s24  ;;  %v1067_v59 = vsel %vm895_vm5, %v1062_v28, %v11683_v1  ;;  %v1126_v57 = vmul.f32 %v7504_v53, %v7382_v46  ;;  %v7532_v28 = vmul.f32 %v7504_v53, %v7005_v13  ;;  %v1139_v1 = vrot.slane %v1127_v43, 3 }
 0x16d   : > { %v7565_v53 = vmul.f32 %v7269_v8, %v7005_v13 }
 0x16e   : > { %12233 = vst [vmem:[#allocation83_spill] sm:$0xff] %v7532_v28  ;;  %v1138_v39 = vrot.slane %v1126_v57, 3  ;;  %v11693_v29 = vrot.slane %v7532_v28, 3 }
 0x16f   : > { %12239 = vst [vmem:[#allocation89_spill] sm:$0xff] %v7565_v53 }
 0x170   : > { %1086 = vrot.lane.b32.xlu1 %v1069_v41, %s6692_s24  ;;  %1084 = vrot.lane.b32.xlu0 %v1067_v59, %s6692_s24  ;;  %v7536_v41 = vpop.permute.xlu1 %576  ;;  %v7538_v59 = vpop.permute.xlu0 %574  ;;  %v1141_v43 = vsel %vm895_vm5, %v1138_v39, %v11693_v29 }
 0x171   : > { %12234 = vst [vmem:[#allocation84_spill] sm:$0xff] %v7536_v41  ;;  %12235 = vst [vmem:[#allocation85_spill] sm:$0xff] %v7538_v59  ;;  %v1203_v59 = vmul.f32 %v7545_v27, %v7405_v22  ;;  %v1202_v41 = vmul.f32 %v7269_v8, %v7382_v46  ;;  %v11704_v8 = vrot.slane %v7565_v53, 3 }
 0x173   : > { %v1220_v29 = vrot.slane %v1202_v41, 3 }
 0x174   : > { %3739 = vrot.lane.b32.xlu1 %v3734_v42, %s6696_s7  ;;  %3737 = vrot.lane.b32.xlu0 %v3730_v4, %s6696_s7  ;;  %v1143_v4 = vsel %vm895_vm5, %v1139_v1, %v11692_v2  ;;  %v1221_v2 = vrot.slane %v1203_v59, 3 }
 0x178   : > { %1150 = vrot.lane.b32.xlu1 %v1139_v1, %s6697_s6  ;;  %1148 = vrot.lane.b32.xlu0 %v1138_v39, %s6697_s6 }
 0x17a   : > { %v7555_v42 = vpop.permute.xlu1 %439  ;;  %v7557_v57 = vpop.permute.xlu0 %433 }
 0x17b   : > { %12237 = vst [vmem:[#allocation87_spill] sm:$0xff] %v7555_v42  ;;  %12238 = vst [vmem:[#allocation88_spill] sm:$0xff] %v7557_v57  ;;  %v1204_v57 = vmul.f32 %v7267_v7, %v7567_v0  ;;  %v7580_v42 = vsel %vm410_vm1, %v7411_v10, %v7409_v9  ;;  %v2605_v9 = vld [vmem:[#allocation2 + $0xd0] sm:$0x7] }
 0x17c   : > { %1154 = vrot.lane.b32.xlu1 %v1143_v4, %s6697_s6  ;;  %1152 = vrot.lane.b32.xlu0 %v1141_v43, %s6697_s6  ;;  %v7584_v4 = vmul.f32 0.0, %v7267_v7  ;;  %v7588_v43 = vmul.f32 %v7545_v27, %v7002_v12  ;;  %v1224_v7 = vsel %vm895_vm5, %v1220_v29, %v11704_v8  ;;  %v2703_v8 = vmul.f32 %v7580_v42, %v2605_v9 }
 0x17e   : > { %v7571_v1 = vpop.permute.xlu1 %443  ;;  %v7573_v39 = vpop.permute.xlu0 %437  ;;  %12242 = vst [vmem:[#allocation92_spill] sm:$0xff] %v7584_v4  ;;  %12243 = vst [vmem:[#allocation93_spill] sm:$0xff] %v7588_v43  ;;  %v11708_v27 = vrot.slane %v7584_v4, 3 }
 0x17f   : > { %12240 = vst [vmem:[#allocation90_spill] sm:$0xff] %v7571_v1  ;;  %12241 = vst [vmem:[#allocation91_spill] sm:$0xff] %v7573_v39  ;;  %v1222_v1 = vrot.slane %v1204_v57, 3  ;;  %v7598_v39 = vmul.f32 %v7580_v42, %v7028_v20  ;;  %v7610_v57 = vsel %vm451_vm2, %v7428_v47, %v7426_v5  ;;  %v7627_v5 = vsel %vm624_vm3, %v7467_v58, %v7465_v51 }
 0x180   : > { %1237 = vrot.lane.b32.xlu1 %v1221_v2, %s6698_s17  ;;  %1235 = vrot.lane.b32.xlu0 %v1220_v29, %s6698_s17  ;;  %v3909_v29 = vrot.slane %v7437_v54, %v7071_v31 }
 0x181   : > { %v1228_v28 = vsel %vm895_vm5, %v1222_v1, %v11708_v27 }
 0x182   : > { %v7592_v41 = vpop.permute.xlu1 %518  ;;  %v7594_v59 = vpop.permute.xlu0 %512 }
 0x183   : > { %12244 = vst [vmem:[#allocation94_spill] sm:$0xff] %v7592_v41  ;;  %12245 = vst [vmem:[#allocation95_spill] sm:$0xff] %v7594_v59 }
 0x184   : > { %1241 = vrot.lane.b32.xlu1 %v1224_v7, %s6698_s17  ;;  %1239 = vrot.lane.b32.xlu0 %v1222_v1, %s6698_s17  ;;  %v12248_v7 = vrot.slane %v7588_v43, 3  ;;  %v3905_v1 = vrot.slane %v7439_v40, %v7071_v31  ;;  %v7656_v43 = vmul.f32 %v7627_v5, %v7041_v24 }
 0x186   : > { %v7612_v41 = vpop.permute.xlu1 %522  ;;  %v7614_v59 = vpop.permute.xlu0 %516  ;;  %v1226_v53 = vsel %vm895_vm5, %v1221_v2, %v12248_v7  ;;  %v7637_v2 = vmul.f32 %v7610_v57, %v7028_v20 }
 0x187   : > { %12246 = vst [vmem:[#allocation96_spill] sm:$0xff] %v7612_v41  ;;  %12247 = vst [vmem:[#allocation97_spill] sm:$0xff] %v7614_v59  ;;  %v2725_v41 = vrot.slane %v2703_v8, 4  ;;  %v12251_v59 = vrot.slane %v7598_v39, 4  ;;  %v7652_v8 = vsel %vm704_vm4, %v7279_v21, %v7277_v18 }
 0x188   : > { %1245 = vrot.lane.b32.xlu1 %v1228_v28, %s6698_s17  ;;  %1243 = vrot.lane.b32.xlu0 %v1226_v53, %s6698_s17  ;;  %v2796_v53 = vmul.f32 %v7610_v57, %v2605_v9  ;;  %12253 = vst [vmem:[#allocation101_spill] sm:$0xff] %v7652_v8  ;;  %v7686_v9 = vmul.f32 %v7279_v21, %v7005_v13 }
 0x189   : > { %v7646_v28 = vsel %vm2642_vm6, %v12251_v59, %v2725_v41  ;;  %v1475_v41 = vrot.slane %v7045_v26, %v7025_v19  ;;  %v2677_v59 = vld [vmem:[#allocation2 + $0xd8] sm:$0x7]  ;;  %v7680_v26 = vsel %vm292_vm0, %v7508_v30, %v7506_v36  ;;  %v12257_v36 = vrot.slane %v7637_v2, 4 }
 0x18a   : > { %v7639_v7 = vpop.permute.xlu1 %435  ;;  %v7641_v27 = vpop.permute.xlu0 %441  ;;  %12252 = vst [vmem:[#allocation100_spill] sm:$0xff] %v7646_v28  ;;  %v2818_v28 = vrot.slane %v2796_v53, 4  ;;  %v1295_v53 = vmul.f32 %v7279_v21, %v7382_v46  ;;  %12256 = vst [vmem:[#allocation104_spill] sm:$0xff] %v7686_v9 }
 0x18b   : > { %12249 = vst [vmem:[#allocation98_spill] sm:$0xff] %v7639_v7  ;;  %12250 = vst [vmem:[#allocation99_spill] sm:$0xff] %v7641_v27  ;;  %v1479_v27 = vrot.slane %v7043_v25, %v7025_v19  ;;  %v7668_v7 = vsel %vm704_vm4, %v7489_v35, %v7487_v52  ;;  %v1296_v25 = vmul.f32 %v7652_v8, %v7405_v22  ;;  %v7711_v35 = vmul.f32 0.0, %v7277_v18 }
 0x18c   : > { %3914 = vrot.lane.b32.xlu1 %v3909_v29, %s6692_s24  ;;  %3912 = vrot.lane.b32.xlu0 %v3905_v1, %s6692_s24  ;;  %v2954_v1 = vmul.f32 %v7627_v5, %v2677_v59  ;;  %v7698_v30 = vsel %vm2642_vm6, %v12257_v36, %v2818_v28  ;;  %v12262_v36 = vrot.slane %v7656_v43, 4 }
 0x18d   : > { %12258 = vst [vmem:[#allocation105_spill] sm:$0xff] %v7698_v30  ;;  %v1314_v21 = vrot.slane %v1296_v25, 3  ;;  %12261 = vst [vmem:[#allocation108_spill] sm:$0xff] %v7711_v35  ;;  %v7721_v25 = vmul.f32 %v7652_v8, %v7002_v12  ;;  %v11732_v8 = vrot.slane %v7711_v35, 3  ;;  %v857_v35 = vld [vmem:[#allocation2 + $0x98] sm:$0x3] }
 0x18e   : > { %v7670_v4 = vpop.permute.xlu1 %514  ;;  %v7672_v29 = vpop.permute.xlu0 %520  ;;  %v2976_v46 = vrot.slane %v2954_v1, 4  ;;  %v2928_v1 = vld [vmem:[#allocation2 + $0xe0] sm:$0x7] }
 0x18f   : > { %12254 = vst [vmem:[#allocation102_spill] sm:$0xff] %v7670_v4  ;;  %12255 = vst [vmem:[#allocation103_spill] sm:$0xff] %v7672_v29  ;;  %v7693_v29 = vmul.f32 %v7668_v7, %v7041_v24  ;;  %v1313_v4 = vrot.slane %v1295_v53, 3  ;;  %v3047_v24 = vmul.f32 %v7668_v7, %v2677_v59  ;;  %v3142_v30 = vmul.f32 %v7680_v26, %v2928_v1 }
 0x190   : > { %1484 = vrot.lane.b32.xlu1 %v1479_v27, %s6697_s6  ;;  %1482 = vrot.lane.b32.xlu0 %v1475_v41, %s6697_s6  ;;  %v1297_v27 = vmul.f32 %v7277_v18, %v7567_v0  ;;  %v7707_v41 = vmul.f32 0.0, %v7680_v26  ;;  %v7716_v28 = vsel %vm2642_vm6, %v12262_v36, %v2976_v46  ;;  %12264 = vst [vmem:[#allocation110_spill] sm:$0xff] %v7721_v25  ;;  %v12267_v36 = vrot.slane %v7686_v9, 3  ;;  %v7843_v9 = vld [vmem:[#allocation2 + $0x40] sm:$0xe0] }
 0x191   : > { %12263 = vst [vmem:[#allocation109_spill] sm:$0xff] %v7716_v28  ;;  %v3069_v31 = vrot.slane %v3047_v24, 4  ;;  %v11733_v59 = vrot.slane %v7721_v25, 3  ;;  %v3164_v53 = vrot.slane %v3142_v30, 4  ;;  %v12268_v1 = vrot.slane %v7693_v29, 4  ;;  %v7887_v25 = vld [vmem:[#allocation2 + $0x78] sm:$0xff] }
 0x192   : > { %v7700_v52 = vpop.permute.xlu1 %580  ;;  %v7702_v13 = vpop.permute.xlu0 %578  ;;  %v1317_v28 = vsel %vm895_vm5, %v1313_v4, %v12267_v36  ;;  %v1315_v18 = vrot.slane %v1297_v27, 3  ;;  %v7756_v30 = vsel %vm292_vm0, %v7287_v34, %v7285_v33 }
 0x193   : > { %12259 = vst [vmem:[#allocation106_spill] sm:$0xff] %v7700_v52  ;;  %12260 = vst [vmem:[#allocation107_spill] sm:$0xff] %v7702_v13 }
 0x194   : > { %1330 = vrot.lane.b32.xlu1 %v1314_v21, %s6696_s7  ;;  %1328 = vrot.lane.b32.xlu0 %v1313_v4, %s6696_s7  ;;  %v12272_v4 = vrot.slane %v7707_v41, 4  ;;  %12274 = vst [vmem:[#allocation117_spill] sm:$0xff] %v7756_v30  ;;  %v1321_v24 = vsel %vm895_vm5, %v1315_v18, %v11732_v8 }
 0x196   : > { %v7727_v13 = vpop.permute.xlu1 %649  ;;  %v7729_v52 = vpop.permute.xlu0 %647  ;;  %v7751_v27 = vsel %vm2642_vm6, %v12272_v4, %v3164_v53  ;;  %v3998_v53 = vrot.slane %v7439_v40, %v6999_v11  ;;  %v1391_v4 = vmul.f32 %v7287_v34, %v7405_v22 }
 0x197   : > { %12265 = vst [vmem:[#allocation111_spill] sm:$0xff] %v7727_v13  ;;  %12266 = vst [vmem:[#allocation112_spill] sm:$0xff] %v7729_v52  ;;  %v7742_v52 = vsel %vm2642_vm6, %v12268_v1, %v3069_v31  ;;  %v1319_v31 = vsel %vm895_vm5, %v1314_v21, %v11733_v59  ;;  %v7780_v21 = vmul.f32 %v7287_v34, %v7002_v12  ;;  %v7921_v34 = vld [vmem:[#allocation2 + $0xa0] sm:$0xff] }
 0x198   : > { %1334 = vrot.lane.b32.xlu1 %v1317_v28, %s6696_s7  ;;  %1332 = vrot.lane.b32.xlu0 %v1315_v18, %s6696_s7  ;;  %12269 = vst [vmem:[#allocation113_spill] sm:$0xff] %v7742_v52  ;;  %12273 = vst [vmem:[#allocation116_spill] sm:$0xff] %v7751_v27  ;;  %v4002_v28 = vrot.slane %v7437_v54, %v6999_v11  ;;  %v1392_v18 = vmul.f32 %v7756_v30, %v7567_v0  ;;  %v1409_v0 = vrot.slane %v1391_v4, 3 }
 0x199   : > { %12277 = vst [vmem:[#allocation120_spill] sm:$0xff] %v7780_v21  ;;  %v11742_v52 = vrot.slane %v7780_v21, 3 }
 0x19a   : > { %v7744_v46 = vpop.permute.xlu1 %653  ;;  %v7746_v13 = vpop.permute.xlu0 %651  ;;  %v1410_v27 = vrot.slane %v1392_v18, 3 }
 0x19b   : > { %12270 = vst [vmem:[#allocation114_spill] sm:$0xff] %v7744_v46  ;;  %12271 = vst [vmem:[#allocation115_spill] sm:$0xff] %v7746_v13  ;;  %v7838_v13 = vsel %vm410_vm1, %v7299_v45, %v7297_v44 }
 0x19c   : > { %1338 = vrot.lane.b32.xlu1 %v1321_v24, %s6696_s7  ;;  %1336 = vrot.lane.b32.xlu0 %v1319_v31, %s6696_s7  ;;  %v7782_v24 = vld [vmem:[#allocation2 + $0x88] sm:$0xff]  ;;  %v1370_v31 = vld [vmem:[#allocation2 + $0x58] sm:$0xfc]  ;;  %12288 = vst [vmem:[#allocation131_spill] sm:$0xff] %v7838_v13 }
 0x19d   : > { %v1393_v22 = vmul.f32 %v7285_v33, %v1370_v31  ;;  %v7794_v12 = vmul.f32 %v7285_v33, %v7782_v24 }
 0x19e   : > { %v7770_v36 = vpop.permute.xlu1 %657  ;;  %v7772_v1 = vpop.permute.xlu0 %655 }
 0x19f   : > { %12275 = vst [vmem:[#allocation118_spill] sm:$0xff] %v7770_v36  ;;  %12276 = vst [vmem:[#allocation119_spill] sm:$0xff] %v7772_v1  ;;  %v1413_v36 = vsel %vm895_vm5, %v1409_v0, %v11742_v52  ;;  %v1411_v1 = vrot.slane %v1393_v22, 3 }
 0x1a0   : > { %4007 = vrot.lane.b32.xlu1 %v4002_v28, %s6693_s26  ;;  %4005 = vrot.lane.b32.xlu0 %v3998_v53, %s6693_s26  ;;  %12280 = vst [vmem:[#allocation123_spill] sm:$0xff] %v7794_v12  ;;  %v7797_v28 = vld [vmem:[#allocation2 + $0x18] sm:$0xff] }
 0x1a1   : > { %v7801_v53 = vmul.f32 %v7797_v28, %v7756_v30  ;;  %324 = vst.msk [vmem:[#allocation2 + $0x118] sm:$0x1] %vm323_vm12, %v7797_v28 }
 0x1a2   : > { %v7786_v8 = vpop.permute.xlu1 %3300  ;;  %v7788_v59 = vpop.permute.xlu0 %3298 }
 0x1a3   : > { %12278 = vst [vmem:[#allocation121_spill] sm:$0xff] %v7786_v8  ;;  %12279 = vst [vmem:[#allocation122_spill] sm:$0xff] %v7788_v59  ;;  %v7820_v46 = vsel %vm410_vm1, %v7788_v59, %v7786_v8 }
 0x1a4   : > { %1426 = vrot.lane.b32.xlu1 %v1410_v27, %s6695_s15  ;;  %12281 = vst [vmem:[#allocation124_spill] sm:$0xff] %v7801_v53  ;;  %1424 = vrot.lane.b32.xlu0 %v1409_v0, %s6695_s15  ;;  %v7847_v0 = vmul.f32 %v7820_v46, %v7028_v20  ;;  %v4157_v20 = vrot.slane %v7439_v40, %v7025_v19 }
 0x1a6   : > { %v7804_v18 = vpop.permute.xlu1 %871  ;;  %v7806_v4 = vpop.permute.xlu0 %869 }
 0x1a7   : > { %12282 = vst [vmem:[#allocation125_spill] sm:$0xff] %v7804_v18  ;;  %12283 = vst [vmem:[#allocation126_spill] sm:$0xff] %v7806_v4  ;;  %v7811_v31 = vsel %vm370_vm7, %v7806_v4, %v7804_v18 }
 0x1a8   : > { %12284 = vst [vmem:[#allocation127_spill] sm:$0xff] %v7811_v31  ;;  %v7824_v30 = vmul.f32 %v7797_v28, %v7811_v31  ;;  %1430 = vrot.lane.b32.xlu1 %v1413_v36, %s6695_s15  ;;  %v884_v4 = vmul.f32 %v7811_v31, %v857_v35  ;;  %1428 = vrot.lane.b32.xlu0 %v1411_v1, %s6695_s15  ;;  %v12289_v36 = vrot.slane %v7794_v12, 3  ;;  %v1467_v35 = vld [vmem:[#allocation2 + $0x38] sm:$0xe0]  ;;  %v3215_v31 = vld [vmem:[#allocation2 + $0xd0] sm:$0x3f] }
 0x1aa   : > { %12285 = vst [vmem:[#allocation128_spill] sm:$0xff] %v7824_v30  ;;  %v7831_v22 = vpop.permute.xlu1 %729  ;;  %v7833_v52 = vpop.permute.xlu0 %727  ;;  %v907_v21 = vrot.slane %v884_v4, 3  ;;  %v1417_v18 = vsel %vm895_vm5, %v1411_v1, %v12289_v36  ;;  %v4161_v4 = vrot.slane %v7437_v54, %v7025_v19  ;;  %v12291_v12 = vrot.slane %v7824_v30, 3 }
 0x1ab   : > { %12286 = vst [vmem:[#allocation129_spill] sm:$0xff] %v7831_v22  ;;  %12287 = vst [vmem:[#allocation130_spill] sm:$0xff] %v7833_v52  ;;  %v12290_v52 = vrot.slane %v7801_v53, 3  ;;  %v7872_v30 = vmul.f32 %v7797_v28, %v7299_v45 }
 0x1ac   : > { %1434 = vrot.lane.b32.xlu1 %v1417_v18, %s6695_s15  ;;  %v7858_v1 = vsel %vm895_vm5, %v12291_v12, %v907_v21  ;;  %v3313_v12 = vmul.f32 %v7820_v46, %v3215_v31 }
 0x1ad   : > { %v1415_v22 = vsel %vm895_vm5, %v1410_v27, %v12290_v52  ;;  %12292 = vst [vmem:[#allocation132_spill] sm:$0xff] %v7858_v1  ;;  %v1563_v52 = vmul.f32 %v7838_v13, %v7843_v9  ;;  %v1562_v27 = vmul.f32 %v7299_v45, %v1467_v35  ;;  %12295 = vst [vmem:[#allocation135_spill] sm:$0xff] %v7872_v30 }
 0x1ae   : > { %1432 = vrot.lane.b32.xlu0 %v1415_v22, %s6695_s15  ;;  %v7863_v36 = vpop.permute.xlu1 %733  ;;  %v7865_v18 = vpop.permute.xlu0 %731  ;;  %v7877_v22 = vld [vmem:[#allocation2 + $0x48] sm:$0xe0] }
 0x1af   : > { %12293 = vst [vmem:[#allocation133_spill] sm:$0xff] %v7863_v36  ;;  %12294 = vst [vmem:[#allocation134_spill] sm:$0xff] %v7865_v18  ;;  %v3335_v36 = vrot.slane %v3313_v12, 7  ;;  %v1581_v53 = vrot.slane %v1563_v52, 6  ;;  %v1580_v33 = vrot.slane %v1562_v27, 6  ;;  %v1564_v21 = vmul.f32 %v7297_v44, %v7877_v22  ;;  %v7899_v52 = vld [vmem:[#allocation2 + $0x70] sm:$0xff] }
 0x1b0   : > { %4166 = vrot.lane.b32.xlu1 %v4161_v4, %s6694_s14  ;;  %v7891_v4 = vmul.f32 %v7887_v25, %v7297_v44  ;;  %v7903_v27 = vmul.f32 %v7899_v52, %v7838_v13 }
 0x1b2   : > { %4164 = vrot.lane.b32.xlu0 %v4157_v20, %s6694_s14  ;;  %v7880_v18 = vpop.permute.xlu1 %737  ;;  %v7882_v1 = vpop.permute.xlu0 %735  ;;  %12298 = vst [vmem:[#allocation138_spill] sm:$0xff] %v7891_v4  ;;  %v12299_v20 = vrot.slane %v7847_v0, 7  ;;  %12301 = vst [vmem:[#allocation140_spill] sm:$0xff] %v7903_v27  ;;  %v11767_v44 = vrot.slane %v7891_v4, 6  ;;  %v4250_v4 = vrot.slane %v7439_v40, %v7092_v38  ;;  %s6607_s14 = scalar_lea.vmem %s11582_s11, 512 }
 0x1b3   : > { %12296 = vst [vmem:[#allocation136_spill] sm:$0xff] %v7880_v18  ;;  %12297 = vst [vmem:[#allocation137_spill] sm:$0xff] %v7882_v1  ;;  %v1582_v1 = vrot.slane %v1564_v21, 6  ;;  %p6608_p10 = scmp.ne.s32.totalorder %s11582_s11, %s6607_s14 }
 0x1b4   : > { %v7896_v12 = vsel %vm3252_vm8, %v12299_v20, %v3335_v36  ;;  %1597 = vrot.lane.b32.xlu1 %v1581_v53, %s6693_s26  ;;  %v12305_v20 = vrot.slane %v7872_v30, 6 }
 0x1b5   : > { %12300 = vst [vmem:[#allocation139_spill] sm:$0xff] %v7896_v12  ;;  %v1588_v13 = vsel %vm1508_vm9, %v1582_v1, %v11767_v44  ;;  %p6609_p3 = pnand %p6608_p10, %p6879_p5 }
 0x1b6   : > { %1595 = vrot.lane.b32.xlu0 %v1580_v33, %s6693_s26  ;;  %v7906_v45 = vpop.permute.xlu1 %3393  ;;  %v7908_v18 = vpop.permute.xlu0 %3391  ;;  %v1584_v12 = vsel %vm1508_vm9, %v1580_v33, %v12305_v20 }
 0x1b7   : > { %12302 = vst [vmem:[#allocation141_spill] sm:$0xff] %v7906_v45  ;;  %12303 = vst [vmem:[#allocation142_spill] sm:$0xff] %v7908_v18  ;;  %v7913_v36 = vsel %vm451_vm2, %v7908_v18, %v7906_v45  ;;  %p6610_p7 = pneg %p6609_p3 }
 0x1b8   : > { %12304 = vst [vmem:[#allocation143_spill] sm:$0xff] %v7913_v36  ;;  %1601 = vrot.lane.b32.xlu1 %v1584_v12, %s6693_s26  ;;  %v7925_v19 = vmul.f32 %v7921_v34, %v7913_v36  ;;  %v3406_v45 = vmul.f32 %v7913_v36, %v3215_v31  ;;  %v7937_v12 = vsel %vm451_vm2, %v7309_v56, %v7307_v55  ;;  %v12310_v31 = vrot.slane %v7903_v27, 6  ;;  %v8001_v27 = vld [vmem:[#allocation6 + $0x28] sm:$0xff] }
 0x1b9   : > { %12309 = vst [vmem:[#allocation147_spill] sm:$0xff] %v7937_v12 }
 0x1ba   : > { %12306 = vst [vmem:[#allocation144_spill] sm:$0xff] %v7925_v19  ;;  %1599 = vrot.lane.b32.xlu0 %v1582_v1, %s6693_s26  ;;  %v7929_v30 = vpop.permute.xlu1 %810  ;;  %v7931_v33 = vpop.permute.xlu0 %808  ;;  %v11768_v21 = vrot.slane %v7925_v19, 7  ;;  %v3428_v20 = vrot.slane %v3406_v45, 7  ;;  %v5802_v19 = vld [vmem:[#allocation6 + $0x68] ss:$0 sm:$0xff] }
 0x1bb   : > { %12307 = vst [vmem:[#allocation145_spill] sm:$0xff] %v7929_v30  ;;  %12308 = vst [vmem:[#allocation146_spill] sm:$0xff] %v7931_v33  ;;  %v1586_v30 = vsel %vm1508_vm9, %v1581_v53, %v12310_v31  ;;  %v4254_v33 = vrot.slane %v7437_v54, %v7092_v38  ;;  %v1656_v53 = vmul.f32 %v7937_v12, %v7843_v9 }
 0x1bc   : > { %1605 = vrot.lane.b32.xlu1 %v1588_v13, %s6693_s26  ;;  %v7951_v45 = vsel %vm3252_vm8, %v11768_v21, %v3428_v20  ;;  %v1655_v31 = vmul.f32 %v7309_v56, %v1467_v35  ;;  %v7965_v54 = vmul.f32 %v7797_v28, %v7309_v56  ;;  %v7978_v35 = vmul.f32 %v7887_v25, %v7307_v55 }
 0x1bd   : > { %12311 = vst [vmem:[#allocation148_spill] sm:$0xff] %v7951_v45  ;;  %v1674_v20 = vrot.slane %v1656_v53, 6  ;;  %v1657_v45 = vmul.f32 %v7307_v55, %v7877_v22  ;;  %v8008_v55 = vld [vmem:[#allocation6 + $0x20] sm:$0xff] }
 0x1be   : > { %1603 = vrot.lane.b32.xlu0 %v1586_v30, %s6693_s26  ;;  %v7956_v1 = vpop.permute.xlu1 %814  ;;  %v7958_v13 = vpop.permute.xlu0 %812  ;;  %12314 = vst [vmem:[#allocation151_spill] sm:$0xff] %v7965_v54  ;;  %v1673_v44 = vrot.slane %v1655_v31, 6  ;;  %v11774_v21 = vrot.slane %v7965_v54, 6  ;;  %12317 = vst [vmem:[#allocation154_spill] sm:$0xff] %v7978_v35 }
 0x1bf   : > { %12312 = vst [vmem:[#allocation149_spill] sm:$0xff] %v7956_v1  ;;  %12313 = vst [vmem:[#allocation150_spill] sm:$0xff] %v7958_v13  ;;  %v11785_v1 = vrot.slane %v7978_v35, 6 }
 0x1c0   : > { %4259 = vrot.lane.b32.xlu1 %v4254_v33, %s6695_s15 }
 0x1c2   : > { %4257 = vrot.lane.b32.xlu0 %v4250_v4, %s6695_s15  ;;  %v7969_v30 = vpop.permute.xlu1 %818  ;;  %v7971_v40 = vpop.permute.xlu0 %816  ;;  %v7983_v4 = vmul.f32 %v7899_v52, %v7937_v12  ;;  %v8005_v12 = vrot.slane %v8001_v27, %v6979_v3 }
 0x1c3   : > { %12315 = vst [vmem:[#allocation152_spill] sm:$0xff] %v7969_v30  ;;  %12316 = vst [vmem:[#allocation153_spill] sm:$0xff] %v7971_v40  ;;  %v1677_v30 = vsel %vm1508_vm9, %v1673_v44, %v11774_v21  ;;  %v1675_v40 = vrot.slane %v1657_v45, 6  ;;  %v8014_v45 = vld [vmem:[#allocation2 + $0xa8] sm:$0xff] }
 0x1c4   : > { %1690 = vrot.lane.b32.xlu1 %v1674_v20, %s6692_s24  ;;  %12318 = vst [vmem:[#allocation155_spill] sm:$0xff] %v7983_v4  ;;  %12322 = vst [vmem:[#allocation159_spill] sm:$0xff] %v8005_v12  ;;  %v12327_v56 = vrot.slane %v7983_v4, 6 }
 0x1c5   : > { %v1681_v54 = vsel %vm1508_vm9, %v1675_v40, %v11785_v1 }
 0x1c6   : > { %1688 = vrot.lane.b32.xlu0 %v1673_v44, %s6692_s24  ;;  %v7986_v33 = vpop.permute.xlu1 %3551  ;;  %v7988_v53 = vpop.permute.xlu0 %3549  ;;  %v8012_v44 = vrot.slane %v8008_v55, %v6979_v3  ;;  %v1679_v3 = vsel %vm1508_vm9, %v1674_v20, %v12327_v56  ;;  %v5801_v20 = vld [vmem:[#allocation6 + $0x60] ss:$0 sm:$0xff] }
 0x1c7   : > { %12319 = vst [vmem:[#allocation156_spill] sm:$0xff] %v7986_v33  ;;  %12320 = vst [vmem:[#allocation157_spill] sm:$0xff] %v7988_v53  ;;  %v7993_v31 = vsel %vm624_vm3, %v7988_v53, %v7986_v33  ;;  %v1739_v33 = vmul.f32 %v8005_v12, %v7877_v22  ;;  %v3287_v53 = vld [vmem:[#allocation2 + $0xd8] sm:$0x3f] }
 0x1c8   : > { %12321 = vst [vmem:[#allocation158_spill] sm:$0xff] %v7993_v31  ;;  %1694 = vrot.lane.b32.xlu1 %v1677_v30, %s6692_s24  ;;  %12323 = vst [vmem:[#allocation160_spill] sm:$0xff] %v8012_v44  ;;  %v8018_v30 = vmul.f32 %v8014_v45, %v7993_v31 }
 0x1c9   : > { %v1751_v35 = vrot.slane %v1739_v33, 6 }
 0x1ca   : > { %1692 = vrot.lane.b32.xlu0 %v1675_v40, %s6692_s24  ;;  %12324 = vst [vmem:[#allocation161_spill] sm:$0xff] %v8018_v30  ;;  %v8020_v21 = vpop.permute.xlu1 %985  ;;  %v8022_v13 = vpop.permute.xlu0 %983  ;;  %v3564_v40 = vmul.f32 %v7993_v31, %v3287_v53  ;;  %v12332_v31 = vrot.slane %v8018_v30, 7  ;;  %v8112_v30 = vmul.f32 %v7797_v28, %v7318_v61 }
 0x1cb   : > { %12325 = vst [vmem:[#allocation162_spill] sm:$0xff] %v8020_v21  ;;  %12326 = vst [vmem:[#allocation163_spill] sm:$0xff] %v8022_v13  ;;  %v1738_v13 = vmul.f32 %v8012_v44, %v7843_v9  ;;  %v8038_v21 = vmul.f32 %v7887_v25, %v8005_v12 }
 0x1cc   : > { %1698 = vrot.lane.b32.xlu1 %v1681_v54, %s6692_s24  ;;  %v3586_v4 = vrot.slane %v3564_v40, 7  ;;  %12341 = vst [vmem:[#allocation176_spill] sm:$0xff] %v8112_v30 }
 0x1cd   : > { %12328 = vst [vmem:[#allocation164_spill] sm:$0xff] %v8038_v21  ;;  %v1750_v12 = vrot.slane %v1738_v13, 6  ;;  %v11793_v54 = vrot.slane %v8038_v21, 6 }
 0x1ce   : > { %1696 = vrot.lane.b32.xlu0 %v1679_v3, %s6692_s24  ;;  %v8042_v1 = vpop.permute.xlu1 %989  ;;  %v8044_v56 = vpop.permute.xlu0 %987  ;;  %v8048_v3 = vmul.f32 %v7899_v52, %v8012_v44 }
 0x1cf   : > { %12329 = vst [vmem:[#allocation165_spill] sm:$0xff] %v8042_v1  ;;  %12330 = vst [vmem:[#allocation166_spill] sm:$0xff] %v8044_v56  ;;  %v8056_v1 = vsel %vm3252_vm8, %v12332_v31, %v3586_v4  ;;  %v1755_v13 = vsel %vm1508_vm9, %v1751_v35, %v11793_v54  ;;  %v8094_v54 = vld [vmem:[#allocation2 + $0x50] sm:$0xe0] }
 0x1d0   : > { %12331 = vst [vmem:[#allocation167_spill] sm:$0xff] %v8048_v3  ;;  %4355 = vrot.lane.b32.xlu1 %v5802_v19, %s6696_s7  ;;  %12333 = vst [vmem:[#allocation168_spill] sm:$0xff] %v8056_v1  ;;  %v11794_v44 = vrot.slane %v8048_v3, 6  ;;  %v8066_v19 = vsel %vm624_vm3, %v7320_v62, %v7318_v61  ;;  %v1813_v1 = vmul.f32 %v7320_v62, %v7843_v9 }
 0x1d1   : > { %v1814_v40 = vmul.f32 %v8066_v19, %v7877_v22 }
 0x1d2   : > { %4353 = vrot.lane.b32.xlu0 %v5801_v20, %s6696_s7  ;;  %v8058_v56 = vpop.permute.xlu1 %993  ;;  %v8060_v36 = vpop.permute.xlu0 %991  ;;  %v1753_v31 = vsel %vm1508_vm9, %v1750_v12, %v11794_v44 }
 0x1d3   : > { %12334 = vst [vmem:[#allocation169_spill] sm:$0xff] %v8058_v56  ;;  %12335 = vst [vmem:[#allocation170_spill] sm:$0xff] %v8060_v36  ;;  %v1832_v3 = vrot.slane %v1814_v40, 6 }
 0x1d4   : > { %1762 = vrot.lane.b32.xlu1 %v1751_v35, %s6697_s6  ;;  %v8091_v35 = vmul.f32 %v7899_v52, %v7320_v62 }
 0x1d6   : > { %1760 = vrot.lane.b32.xlu0 %v1750_v12, %s6697_s6  ;;  %v8073_v4 = vpop.permute.xlu1 %3644  ;;  %v8075_v33 = vpop.permute.xlu0 %3642  ;;  %12338 = vst [vmem:[#allocation173_spill] sm:$0xff] %v8091_v35 }
 0x1d7   : > { %12336 = vst [vmem:[#allocation171_spill] sm:$0xff] %v8073_v4  ;;  %12337 = vst [vmem:[#allocation172_spill] sm:$0xff] %v8075_v33  ;;  %v8085_v20 = vsel %vm704_vm4, %v8075_v33, %v8073_v4  ;;  %v1831_v4 = vrot.slane %v1813_v1, 6  ;;  %v1815_v33 = vmul.f32 %v7318_v61, %v8094_v54 }
 0x1d8   : > { %1766 = vrot.lane.b32.xlu1 %v1755_v13, %s6697_s6  ;;  %v8098_v12 = vmul.f32 %v8014_v45, %v8085_v20  ;;  %v3657_v44 = vmul.f32 %v8085_v20, %v3287_v53  ;;  %v11808_v13 = vrot.slane %v8091_v35, 6  ;;  %v8117_v53 = vmul.f32 %v7887_v25, %v8066_v19 }
 0x1da   : > { %1764 = vrot.lane.b32.xlu0 %v1753_v31, %s6697_s6  ;;  %v8102_v56 = vpop.permute.xlu1 %1078  ;;  %v8104_v36 = vpop.permute.xlu0 %1076  ;;  %v11807_v21 = vrot.slane %v8098_v12, 7  ;;  %v3679_v62 = vrot.slane %v3657_v44, 7  ;;  %12342 = vst [vmem:[#allocation177_spill] sm:$0xff] %v8117_v53  ;;  %v1835_v40 = vsel %vm1508_vm9, %v1831_v4, %v11808_v13  ;;  %v11811_v61 = vrot.slane %v8117_v53, 6 }
 0x1db   : > { %12339 = vst [vmem:[#allocation174_spill] sm:$0xff] %v8102_v56  ;;  %12340 = vst [vmem:[#allocation175_spill] sm:$0xff] %v8104_v36  ;;  %v1833_v36 = vrot.slane %v1815_v33, 6  ;;  %v11810_v56 = vrot.slane %v8112_v30, 6  ;;  %v2082_v13 = vrot.slane %v8008_v55, %v7016_v16  ;;  %v8206_v30 = vsel %vm292_vm0, %v7338_v37, %v7336_v32 }
 0x1dc   : > { %1848 = vrot.lane.b32.xlu1 %v1832_v3, %s6698_s17  ;;  %v8122_v44 = vsel %vm3252_vm8, %v11807_v21, %v3679_v62  ;;  %v1837_v33 = vsel %vm1508_vm9, %v1832_v3, %v11811_v61  ;;  %v8172_v3 = vmul.f32 %v7899_v52, %v7330_v14  ;;  %12358 = vst [vmem:[#allocation193_spill] sm:$0xff] %v8206_v30 }
 0x1dd   : > { %12343 = vst [vmem:[#allocation178_spill] sm:$0xff] %v8122_v44  ;;  %v8143_v44 = vsel %vm704_vm4, %v7330_v14, %v7328_v63 }
 0x1de   : > { %1846 = vrot.lane.b32.xlu0 %v1831_v4, %s6698_s17  ;;  %v8125_v1 = vpop.permute.xlu1 %1082  ;;  %v8127_v31 = vpop.permute.xlu0 %1080  ;;  %12348 = vst [vmem:[#allocation183_spill] sm:$0xff] %v8143_v44  ;;  %v1839_v4 = vsel %vm1508_vm9, %v1833_v36, %v11810_v56  ;;  %12351 = vst [vmem:[#allocation186_spill] sm:$0xff] %v8172_v3  ;;  %v12359_v35 = vrot.slane %v8172_v3, 6 }
 0x1df   : > { %12344 = vst [vmem:[#allocation179_spill] sm:$0xff] %v8125_v1  ;;  %12345 = vst [vmem:[#allocation180_spill] sm:$0xff] %v8127_v31  ;;  %v1908_v31 = vmul.f32 %v7328_v63, %v8094_v54 }
 0x1e0   : > { %1852 = vrot.lane.b32.xlu1 %v1835_v40, %s6698_s17  ;;  %v2086_v40 = vrot.slane %v8001_v27, %v7016_v16  ;;  %v1906_v27 = vmul.f32 %v7330_v14, %v7843_v9 }
 0x1e1   : > { %v1926_v16 = vrot.slane %v1908_v31, 6  ;;  %v8233_v31 = vmul.f32 %v7887_v25, %v7338_v37 }
 0x1e2   : > { %1850 = vrot.lane.b32.xlu0 %v1833_v36, %s6698_s17  ;;  %v8136_v62 = vpop.permute.xlu1 %1086  ;;  %v8138_v21 = vpop.permute.xlu0 %1084  ;;  %v1907_v36 = vmul.f32 %v8143_v44, %v7877_v22  ;;  %v1924_v1 = vrot.slane %v1906_v27, 6 }
 0x1e3   : > { %12346 = vst [vmem:[#allocation181_spill] sm:$0xff] %v8136_v62  ;;  %12347 = vst [vmem:[#allocation182_spill] sm:$0xff] %v8138_v21 }
 0x1e4   : > { %1856 = vrot.lane.b32.xlu1 %v1839_v4, %s6698_s17  ;;  %v1925_v56 = vrot.slane %v1907_v36, 6  ;;  %v3538_v36 = vld [vmem:[#allocation2 + $0xe0] sm:$0x3f]  ;;  %v1928_v53 = vsel %vm1508_vm9, %v1924_v1, %v12359_v35  ;;  %12364 = vst [vmem:[#allocation197_spill] sm:$0xff] %v8233_v31 }
 0x1e6   : > { %1854 = vrot.lane.b32.xlu0 %v1837_v33, %s6698_s17  ;;  %v8157_v62 = vpop.permute.xlu1 %3739  ;;  %v8159_v21 = vpop.permute.xlu0 %3737 }
 0x1e7   : > { %12349 = vst [vmem:[#allocation184_spill] sm:$0xff] %v8157_v62  ;;  %12350 = vst [vmem:[#allocation185_spill] sm:$0xff] %v8159_v21  ;;  %v8166_v4 = vsel %vm292_vm0, %v8159_v21, %v8157_v62 }
 0x1e8   : > { %2091 = vrot.lane.b32.xlu1 %v2086_v40, %s6697_s6  ;;  %v8182_v61 = vmul.f32 %v7797_v28, %v8166_v4  ;;  %v8189_v40 = vmul.f32 %v7797_v28, %v7328_v63  ;;  %v2002_v63 = vmul.f32 %v8206_v30, %v8094_v54 }
 0x1ea   : > { %2089 = vrot.lane.b32.xlu0 %v2082_v13, %s6697_s6  ;;  %v8176_v55 = vpop.permute.xlu1 %1150  ;;  %v8178_v33 = vpop.permute.xlu0 %1148  ;;  %12354 = vst [vmem:[#allocation189_spill] sm:$0xff] %v8189_v40  ;;  %v8194_v13 = vmul.f32 %v7887_v25, %v8143_v44  ;;  %v11825_v44 = vrot.slane %v8189_v40, 6  ;;  %v12362_v3 = vrot.slane %v8182_v61, 7 }
 0x1eb   : > { %12352 = vst [vmem:[#allocation187_spill] sm:$0xff] %v8176_v55  ;;  %12353 = vst [vmem:[#allocation188_spill] sm:$0xff] %v8178_v33  ;;  %v3752_v55 = vmul.f32 %v8166_v4, %v3538_v36 }
 0x1ec   : > { %1941 = vrot.lane.b32.xlu1 %v1925_v56, %s6696_s7  ;;  %12355 = vst [vmem:[#allocation190_spill] sm:$0xff] %v8194_v13 }
 0x1ee   : > { %1939 = vrot.lane.b32.xlu0 %v1924_v1, %s6696_s7  ;;  %v8197_v33 = vpop.permute.xlu1 %1154  ;;  %v8199_v27 = vpop.permute.xlu0 %1152  ;;  %v2001_v1 = vmul.f32 %v7338_v37, %v7877_v22  ;;  %v11831_v22 = vrot.slane %v8233_v31, 6 }
 0x1ef   : > { %12356 = vst [vmem:[#allocation191_spill] sm:$0xff] %v8197_v33  ;;  %12357 = vst [vmem:[#allocation192_spill] sm:$0xff] %v8199_v27  ;;  %v11826_v27 = vrot.slane %v8194_v13, 6  ;;  %v3774_v33 = vrot.slane %v3752_v55, 7  ;;  %v1981_v55 = vld [vmem:[#allocation2 + $0x58] sm:$0xe0] }
 0x1f0   : > { %1945 = vrot.lane.b32.xlu1 %v1928_v53, %s6696_s7  ;;  %v1932_v53 = vsel %vm1508_vm9, %v1926_v16, %v11825_v44  ;;  %v2019_v44 = vrot.slane %v2001_v1, 6  ;;  %v2152_v1 = vsel %vm410_vm1, %v7350_v49, %v7348_v48 }
 0x1f1   : > { %v8224_v35 = vsel %vm3252_vm8, %v12362_v3, %v3774_v33  ;;  %v1930_v54 = vsel %vm1508_vm9, %v1925_v56, %v11826_v27  ;;  %v8253_v56 = vmul.f32 %v7797_v28, %v8206_v30 }
 0x1f2   : > { %1943 = vrot.lane.b32.xlu0 %v1926_v16, %s6696_s7  ;;  %v8215_v36 = vpop.permute.xlu1 %1237  ;;  %v8217_v9 = vpop.permute.xlu0 %1235  ;;  %12363 = vst [vmem:[#allocation196_spill] sm:$0xff] %v8224_v35  ;;  %v2020_v16 = vrot.slane %v2002_v63, 6  ;;  %v2003_v35 = vmul.f32 %v7336_v32, %v1981_v55  ;;  %v2023_v55 = vsel %vm1508_vm9, %v2019_v44, %v11831_v22 }
 0x1f3   : > { %12360 = vst [vmem:[#allocation194_spill] sm:$0xff] %v8215_v36  ;;  %12361 = vst [vmem:[#allocation195_spill] sm:$0xff] %v8217_v9  ;;  %v2156_v9 = vmul.f32 %v7797_v28, %v7350_v49  ;;  %v8289_v49 = vmul.f32 %v8014_v45, %v7348_v48 }
 0x1f4   : > { %1949 = vrot.lane.b32.xlu1 %v1932_v53, %s6696_s7  ;;  %v8248_v53 = vmul.f32 %v7336_v32, %v7782_v24  ;;  %12368 = vst [vmem:[#allocation201_spill] sm:$0xff] %v8253_v56  ;;  %v2021_v27 = vrot.slane %v2003_v35, 6 }
 0x1f5   : > { %12373 = vst [vmem:[#allocation206_spill] sm:$0xff] %v8289_v49 }
 0x1f6   : > { %1947 = vrot.lane.b32.xlu0 %v1930_v54, %s6696_s7  ;;  %v8240_v3 = vpop.permute.xlu1 %1241  ;;  %v8242_v33 = vpop.permute.xlu0 %1239  ;;  %12367 = vst [vmem:[#allocation200_spill] sm:$0xff] %v8248_v53 }
 0x1f7   : > { %12365 = vst [vmem:[#allocation198_spill] sm:$0xff] %v8240_v3  ;;  %12366 = vst [vmem:[#allocation199_spill] sm:$0xff] %v8242_v33  ;;  %v11834_v3 = vrot.slane %v8248_v53, 6  ;;  %v11835_v33 = vrot.slane %v8253_v56, 6  ;;  %v8293_v53 = vrot.slane %v2156_v9, 1 }
 0x1f8   : > { %2036 = vrot.lane.b32.xlu1 %v2020_v16, %s6695_s15  ;;  %v1470_v9 = vld [vmem:[#allocation2 + $0x98] sm:$0x1f] }
 0x1f9   : > { %v2025_v35 = vsel %vm1508_vm9, %v2020_v16, %v11835_v33  ;;  %12375 = vst [vmem:[#allocation208_spill] sm:$0xff] %v8293_v53 }
 0x1fa   : > { %2034 = vrot.lane.b32.xlu0 %v2019_v44, %s6695_s15  ;;  %v8256_v54 = vpop.permute.xlu1 %1245  ;;  %v8258_v63 = vpop.permute.xlu0 %1243  ;;  %v2027_v44 = vsel %vm1508_vm9, %v2021_v27, %v11834_v3  ;;  %v2237_v3 = vmul.f32 %v7797_v28, %v7361_v15 }
 0x1fb   : > { %12369 = vst [vmem:[#allocation202_spill] sm:$0xff] %v8256_v54  ;;  %12370 = vst [vmem:[#allocation203_spill] sm:$0xff] %v8258_v63  ;;  %v2157_v54 = vmul.f32 %v7899_v52, %v2152_v1 }
 0x1fc   : > { %2040 = vrot.lane.b32.xlu1 %v2023_v55, %s6695_s15  ;;  %v2158_v55 = vmul.f32 %v7887_v25, %v7348_v48 }
 0x1fd   : > { %v2169_v22 = vrot.slane %v2157_v54, 1 }
 0x1fe   : > { %2038 = vrot.lane.b32.xlu0 %v2021_v27, %s6695_s15  ;;  %v8271_v63 = vpop.permute.xlu1 %3914  ;;  %v8275_v36 = vpop.permute.xlu0 %3912 }
 0x1ff   : > { %12371 = vst [vmem:[#allocation204_spill] sm:$0xff] %v8271_v63  ;;  %12372 = vst [vmem:[#allocation205_spill] sm:$0xff] %v8275_v36  ;;  %v8303_v16 = vsel %vm410_vm1, %v8275_v36, %v8271_v63 }
 0x200   : > { %2044 = vrot.lane.b32.xlu1 %v2027_v44, %s6695_s15  ;;  %v8298_v44 = vmul.f32 %v7921_v34, %v2152_v1  ;;  %v3828_v1 = vld [vmem:[#allocation2 + $0x100] sm:$0x1]  ;;  %v8329_v40 = vmul.f32 %v7797_v28, %v8303_v16 }
 0x202   : > { %2042 = vrot.lane.b32.xlu0 %v2025_v35, %s6695_s15  ;;  %v8291_v31 = vpop.permute.xlu1 %1484  ;;  %v8295_v27 = vpop.permute.xlu0 %1482  ;;  %12377 = vst [vmem:[#allocation210_spill] sm:$0xff] %v8298_v44  ;;  %v2170_v35 = vrot.slane %v2158_v55, 1  ;;  %12382 = vst [vmem:[#allocation215_spill] sm:$0xff] %v8329_v40  ;;  %v11852_v55 = vrot.slane %v8329_v40, 2 }
 0x203   : > { %12374 = vst [vmem:[#allocation207_spill] sm:$0xff] %v8291_v31  ;;  %12376 = vst [vmem:[#allocation209_spill] sm:$0xff] %v8295_v27  ;;  %v8308_v48 = vsel %vm370_vm7, %v8295_v27, %v8291_v31  ;;  %v2233_v31 = vsel %vm451_vm2, %v7361_v15, %v7359_v6  ;;  %v12388_v15 = vrot.slane %v8298_v44, 1 }
 0x204   : > { %12378 = vst [vmem:[#allocation211_spill] sm:$0xff] %v8308_v48  ;;  %2179 = vrot.lane.b32.xlu1 %v2169_v22, %s6693_s26  ;;  %v8313_v54 = vmul.f32 %v7797_v28, %v8308_v48  ;;  %v1497_v33 = vmul.f32 %v8308_v48, %v1470_v9  ;;  %v3927_v9 = vmul.f32 %v8303_v16, %v3828_v1  ;;  %v12385_v48 = vrot.slane %v8289_v49, 1 }
 0x205   : > { %v2238_v27 = vmul.f32 %v7899_v52, %v2233_v31 }
 0x206   : > { %12379 = vst [vmem:[#allocation212_spill] sm:$0xff] %v8313_v54  ;;  %2177 = vrot.lane.b32.xlu0 %v8293_v53, %s6693_s26  ;;  %v8319_v56 = vpop.permute.xlu1 %1330  ;;  %v8325_v13 = vpop.permute.xlu0 %1328  ;;  %v1520_v32 = vrot.slane %v1497_v33, 6  ;;  %v2176_v33 = vsel %vm2109_vm10, %v2170_v35, %v12385_v48  ;;  %v3949_v30 = vrot.slane %v3927_v9, 2 }
 0x207   : > { %12380 = vst [vmem:[#allocation213_spill] sm:$0xff] %v8319_v56  ;;  %12381 = vst [vmem:[#allocation214_spill] sm:$0xff] %v8325_v13  ;;  %v2250_v49 = vrot.slane %v2238_v27, 1  ;;  %v8376_v27 = vmul.f32 %v7921_v34, %v2233_v31 }
 0x208   : > { %2183 = vrot.lane.b32.xlu1 %v8293_v53, %s6693_s26  ;;  %v12386_v53 = vrot.slane %v8313_v54, 6 }
 0x209   : > { %12394 = vst [vmem:[#allocation224_spill] sm:$0xff] %v8376_v27 }
 0x20a   : > { %2181 = vrot.lane.b32.xlu0 %v2170_v35, %s6693_s26  ;;  %v8339_v13 = vpop.permute.xlu1 %1334  ;;  %v8341_v56 = vpop.permute.xlu0 %1332  ;;  %v8350_v37 = vsel %vm1508_vm9, %v12386_v53, %v1520_v32  ;;  %v8362_v35 = vsel %vm3865_vm11, %v11852_v55, %v3949_v30  ;;  %v2239_v32 = vmul.f32 %v7887_v25, %v7359_v6  ;;  %v8371_v53 = vrot.slane %v2237_v3, 1  ;;  %v8379_v30 = vld [vmem:[#allocation6 + $0x38] sm:$0xff] }
 0x20b   : > { %12383 = vst [vmem:[#allocation216_spill] sm:$0xff] %v8339_v13  ;;  %12384 = vst [vmem:[#allocation217_spill] sm:$0xff] %v8341_v56  ;;  %v2174_v13 = vsel %vm2109_vm10, %v2169_v22, %v12388_v15  ;;  %v8369_v22 = vmul.f32 %v8014_v45, %v7359_v6  ;;  %v2307_v9 = vrot.slane %v8379_v30, %v7038_v23 }
 0x20c   : > { %12387 = vst [vmem:[#allocation218_spill] sm:$0xff] %v8350_v37  ;;  %2187 = vrot.lane.b32.xlu1 %v2176_v33, %s6693_s26  ;;  %12390 = vst [vmem:[#allocation220_spill] sm:$0xff] %v8362_v35  ;;  %v8385_v33 = vld [vmem:[#allocation6 + $0x30] sm:$0xff]  ;;  %v2251_v15 = vrot.slane %v2239_v32, 1 }
 0x20d   : > { %12391 = vst [vmem:[#allocation221_spill] sm:$0xff] %v8369_v22  ;;  %12392 = vst [vmem:[#allocation222_spill] sm:$0xff] %v8371_v53  ;;  %v2303_v6 = vrot.slane %v8385_v33, %v7038_v23  ;;  %v2309_v44 = vmul.f32 %v7887_v25, %v2307_v9  ;;  %v8406_v31 = vmul.f32 %v8014_v45, %v2307_v9 }
 0x20e   : > { %2185 = vrot.lane.b32.xlu0 %v2174_v13, %s6693_s26  ;;  %v8357_v48 = vpop.permute.xlu1 %1338  ;;  %v8373_v13 = vpop.permute.xlu0 %1336 }
 0x20f   : > { %12389 = vst [vmem:[#allocation219_spill] sm:$0xff] %v8357_v48  ;;  %12393 = vst [vmem:[#allocation223_spill] sm:$0xff] %v8373_v13  ;;  %v2308_v32 = vmul.f32 %v7899_v52, %v2303_v6  ;;  %v8415_v48 = vmul.f32 %v7921_v34, %v2303_v6 }
 0x210   : > { %2260 = vrot.lane.b32.xlu1 %v2250_v49, %s6692_s24  ;;  %12397 = vst [vmem:[#allocation227_spill] sm:$0xff] %v8406_v31 }
 0x211   : > { %12399 = vst [vmem:[#allocation229_spill] sm:$0xff] %v8415_v48  ;;  %v2316_v6 = vrot.slane %v2308_v32, 1  ;;  %v8458_v32 = vmul.f32 %v7921_v34, %v7370_v50 }
 0x212   : > { %2258 = vrot.lane.b32.xlu0 %v8371_v53, %s6692_s24  ;;  %v8389_v3 = vpop.permute.xlu1 %4007  ;;  %v8392_v55 = vpop.permute.xlu0 %4005 }
 0x213   : > { %12395 = vst [vmem:[#allocation225_spill] sm:$0xff] %v8389_v3  ;;  %12396 = vst [vmem:[#allocation226_spill] sm:$0xff] %v8392_v55  ;;  %v8398_v37 = vsel %vm451_vm2, %v8392_v55, %v8389_v3  ;;  %v12402_v3 = vrot.slane %v8376_v27, 1 }
 0x214   : > { %2264 = vrot.lane.b32.xlu1 %v8371_v53, %s6692_s24  ;;  %v8410_v35 = vmul.f32 %v7797_v28, %v8398_v37  ;;  %v12401_v53 = vrot.slane %v8369_v22, 1  ;;  %v4020_v9 = vmul.f32 %v8398_v37, %v3828_v1  ;;  %v2370_v1 = vsel %vm624_vm3, %v7370_v50, %v7368_v60  ;;  %12407 = vst [vmem:[#allocation235_spill] sm:$0xff] %v8458_v32 }
 0x215   : > { %v2255_v14 = vsel %vm2109_vm10, %v2250_v49, %v12402_v3 }
 0x216   : > { %2262 = vrot.lane.b32.xlu0 %v2251_v15, %s6692_s24  ;;  %v8412_v23 = vpop.permute.xlu1 %1426  ;;  %v8417_v54 = vpop.permute.xlu0 %1424  ;;  %v2257_v13 = vsel %vm2109_vm10, %v2251_v15, %v12401_v53  ;;  %v11866_v56 = vrot.slane %v8410_v35, 2  ;;  %v4042_v40 = vrot.slane %v4020_v9, 2  ;;  %v11867_v53 = vrot.slane %v8415_v48, 1 }
 0x217   : > { %12398 = vst [vmem:[#allocation228_spill] sm:$0xff] %v8412_v23  ;;  %12400 = vst [vmem:[#allocation230_spill] sm:$0xff] %v8417_v54  ;;  %v2317_v23 = vrot.slane %v2309_v44, 1  ;;  %v11865_v54 = vrot.slane %v8406_v31, 1  ;;  %v2375_v44 = vmul.f32 %v7887_v25, %v2370_v1  ;;  %v12417_v31 = vrot.slane %v8458_v32, 1  ;;  %v12420_v32 = vld [vmem:[#allocation61_spill] sm:$0xff] }
 0x218   : > { %2268 = vrot.lane.b32.xlu1 %v2257_v13, %s6692_s24  ;;  %v8441_v49 = vsel %vm3865_vm11, %v11866_v56, %v4042_v40  ;;  %v2319_v15 = vsel %vm2109_vm10, %v2316_v6, %v11867_v53  ;;  %v2374_v40 = vmul.f32 %v7899_v52, %v7370_v50  ;;  %v2376_v56 = vmul.f32 %v7797_v28, %v7368_v60 }
 0x219   : > { %12405 = vst [vmem:[#allocation233_spill] sm:$0xff] %v8441_v49  ;;  %v8472_v50 = vmul.f32 %v8014_v45, %v2370_v1 }
 0x21a   : > { %2266 = vrot.lane.b32.xlu0 %v2255_v14, %s6692_s24  ;;  %v8430_v22 = vpop.permute.xlu1 %1430  ;;  %v8436_v13 = vpop.permute.xlu0 %1428  ;;  %v2321_v14 = vsel %vm2109_vm10, %v2317_v23, %v11865_v54  ;;  %v8488_v1 = vrot.slane %v2376_v56, 1 }
 0x21b   : > { %12403 = vst [vmem:[#allocation231_spill] sm:$0xff] %v8430_v22  ;;  %12404 = vst [vmem:[#allocation232_spill] sm:$0xff] %v8436_v13 }
 0x21c   : > { %2324 = vrot.lane.b32.xlu1 %v2317_v23, %s6697_s6  ;;  %v2387_v23 = vrot.slane %v2375_v44, 1  ;;  %12411 = vst [vmem:[#allocation239_spill] sm:$0xff] %v8472_v50  ;;  %v3901_v44 = vld [vmem:[#allocation2 + $0x108] sm:$0x1]  ;;  %12415 = vst [vmem:[#allocation243_spill] sm:$0xff] %v8488_v1 }
 0x21e   : > { %2322 = vrot.lane.b32.xlu0 %v2316_v6, %s6697_s6  ;;  %v8449_v3 = vpop.permute.xlu1 %1434  ;;  %v2386_v6 = vrot.slane %v2374_v40, 1 }
 0x21f   : > { %12406 = vst [vmem:[#allocation234_spill] sm:$0xff] %v8449_v3  ;;  %v11877_v3 = vrot.slane %v8472_v50, 1  ;;  %v8529_v50 = vmul.f32 %v7921_v34, %v12420_v32 }
 0x220   : > { %v8460_v9 = vpop.permute.xlu0 %1432  ;;  %2328 = vrot.lane.b32.xlu1 %v2321_v14, %s6697_s6  ;;  %v2390_v48 = vsel %vm2109_vm10, %v2386_v6, %v12417_v31  ;;  %v2451_v31 = vsel %vm704_vm4, %v12420_v32, %v7376_v17 }
 0x221   : > { %12408 = vst [vmem:[#allocation236_spill] sm:$0xff] %v8460_v9  ;;  %12423 = vst [vmem:[#allocation248_spill] sm:$0xff] %v8529_v50 }
 0x222   : > { %2326 = vrot.lane.b32.xlu0 %v2319_v15, %s6697_s6  ;;  %v8464_v54 = vpop.permute.xlu1 %4166 }
 0x223   : > { %12409 = vst [vmem:[#allocation237_spill] sm:$0xff] %v8464_v54 }
 0x224   : > { %v8469_v49 = vpop.permute.xlu0 %4164  ;;  %2397 = vrot.lane.b32.xlu1 %v2387_v23, %s6698_s17 }
 0x225   : > { %12410 = vst [vmem:[#allocation238_spill] sm:$0xff] %v8469_v49  ;;  %v8477_v14 = vsel %vm624_vm3, %v8469_v49, %v8464_v54 }
 0x226   : > { %12412 = vst [vmem:[#allocation240_spill] sm:$0xff] %v8477_v14  ;;  %2395 = vrot.lane.b32.xlu0 %v2386_v6, %s6698_s17  ;;  %v8483_v60 = vmul.f32 %v7797_v28, %v8477_v14  ;;  %v8485_v15 = vpop.permute.xlu1 %1597  ;;  %v4179_v40 = vmul.f32 %v8477_v14, %v3901_v44  ;;  %v3211_v14 = vld [vmem:[#allocation2 + $0x68] sm:$0xc0] }
 0x227   : > { %12414 = vst [vmem:[#allocation242_spill] sm:$0xff] %v8485_v15 }
 0x228   : > { %12413 = vst [vmem:[#allocation241_spill] sm:$0xff] %v8483_v60  ;;  %v8490_v53 = vpop.permute.xlu0 %1595  ;;  %v11874_v27 = vrot.slane %v8483_v60, 2  ;;  %2401 = vrot.lane.b32.xlu1 %v2390_v48, %s6698_s17  ;;  %v4201_v22 = vrot.slane %v4179_v40, 2  ;;  %v2392_v48 = vsel %vm2109_vm10, %v2387_v23, %v11877_v3  ;;  %v2613_v40 = vrot.slane %v8379_v30, %v6999_v11 }
 0x229   : > { %12416 = vst [vmem:[#allocation244_spill] sm:$0xff] %v8490_v53 }
 0x22a   : > { %2399 = vrot.lane.b32.xlu0 %v8488_v1, %s6698_s17  ;;  %v8500_v15 = vpop.permute.xlu1 %1601  ;;  %v8505_v56 = vsel %vm3865_vm11, %v11874_v27, %v4201_v22  ;;  %v2609_v22 = vrot.slane %v8385_v33, %v6999_v11  ;;  %v2456_v27 = vmul.f32 %v7887_v25, %v2451_v31 }
 0x22b   : > { %12418 = vst [vmem:[#allocation245_spill] sm:$0xff] %v8500_v15  ;;  %12419 = vst [vmem:[#allocation246_spill] sm:$0xff] %v8505_v56  ;;  %v2455_v15 = vmul.f32 %v7899_v52, %v12420_v32  ;;  %v8543_v32 = vmul.f32 %v8014_v45, %v2451_v31  ;;  %v12433_v31 = vld [vmem:[#allocation64_spill] sm:$0xff] }
 0x22c   : > { %v8510_v6 = vpop.permute.xlu0 %1599  ;;  %2405 = vrot.lane.b32.xlu1 %v8488_v1, %s6698_s17  ;;  %v2468_v3 = vrot.slane %v2456_v27, 1 }
 0x22d   : > { %12421 = vst [vmem:[#allocation61_spill] sm:$0xff] %v8510_v6  ;;  %v2467_v1 = vrot.slane %v2455_v15, 1  ;;  %12427 = vst [vmem:[#allocation252_spill] sm:$0xff] %v8543_v32  ;;  %v12435_v6 = vrot.slane %v8529_v50, 1  ;;  %v2537_v50 = vmul.f32 %v7887_v25, %v12433_v31 }
 0x22e   : > { %2403 = vrot.lane.b32.xlu0 %v2392_v48, %s6698_s17  ;;  %v8523_v56 = vpop.permute.xlu1 %1605  ;;  %v2457_v48 = vmul.f32 %v7797_v28, %v7376_v17 }
 0x22f   : > { %12422 = vst [vmem:[#allocation247_spill] sm:$0xff] %v8523_v56  ;;  %v2471_v53 = vsel %vm2109_vm10, %v2467_v1, %v12435_v6  ;;  %v8590_v6 = vld [vmem:[#allocation2 + $0xb8] sm:$0xff] }
 0x230   : > { %v8531_v23 = vpop.permute.xlu0 %1603  ;;  %2618 = vrot.lane.b32.xlu1 %v2613_v40, %s6697_s6  ;;  %v8556_v27 = vrot.slane %v2457_v48, 1 }
 0x231   : > { %12424 = vst [vmem:[#allocation249_spill] sm:$0xff] %v8531_v23 }
 0x232   : > { %2616 = vrot.lane.b32.xlu0 %v2609_v22, %s6697_s6  ;;  %v8537_v11 = vpop.permute.xlu1 %4259  ;;  %12430 = vst [vmem:[#allocation255_spill] sm:$0xff] %v8556_v27  ;;  %v12432_v22 = vld [vmem:[#allocation63_spill] sm:$0xff] }
 0x233   : > { %12425 = vst [vmem:[#allocation250_spill] sm:$0xff] %v8537_v11  ;;  %v2533_v56 = vsel %vm292_vm0, %v12433_v31, %v12432_v22 }
 0x234   : > { %v8540_v52 = vpop.permute.xlu0 %4257  ;;  %2478 = vrot.lane.b32.xlu1 %v2468_v3, %s6696_s7 }
 0x235   : > { %12426 = vst [vmem:[#allocation251_spill] sm:$0xff] %v8540_v52  ;;  %v8548_v40 = vsel %vm704_vm4, %v8540_v52, %v8537_v11  ;;  %v11891_v11 = vrot.slane %v8543_v32, 1  ;;  %v2601_v32 = vld [vmem:[#allocation2 + $0x68] sm:$0xf8] }
 0x236   : > { %12428 = vst [vmem:[#allocation253_spill] sm:$0xff] %v8548_v40  ;;  %2476 = vrot.lane.b32.xlu0 %v2467_v1, %s6696_s7  ;;  %v8554_v17 = vmul.f32 %v7797_v28, %v8548_v40  ;;  %v8558_v15 = vpop.permute.xlu1 %1690  ;;  %v4272_v13 = vmul.f32 %v8548_v40, %v3901_v44  ;;  %v8581_v1 = vmul.f32 %v8014_v45, %v12433_v31  ;;  %v12524_v40 = vld [vmem:[#allocation30_spill] sm:$0xff] }
 0x237   : > { %12431 = vst [vmem:[#allocation256_spill] sm:$0xff] %v8558_v15  ;;  %v2538_v15 = vmul.f32 %v7797_v28, %v2533_v56  ;;  %v2473_v25 = vsel %vm2109_vm10, %v2468_v3, %v11891_v11  ;;  %v2539_v31 = vmul.f32 %v12432_v22, %v7782_v24 }
 0x238   : > { %12429 = vst [vmem:[#allocation254_spill] sm:$0xff] %v8554_v17  ;;  %v8563_v23 = vpop.permute.xlu0 %1688  ;;  %v11889_v9 = vrot.slane %v8554_v17, 2  ;;  %2482 = vrot.lane.b32.xlu1 %v2471_v53, %s6696_s7  ;;  %v4294_v48 = vrot.slane %v4272_v13, 2  ;;  %12437 = vst [vmem:[#allocation257_spill] sm:$0xff] %v8581_v1 }
 0x239   : > { %12434 = vst [vmem:[#allocation63_spill] sm:$0xff] %v8563_v23  ;;  %v8598_v13 = vrot.slane %v2538_v15, 1  ;;  %v2551_v15 = vrot.slane %v2539_v31, 1 }
 0x23a   : > { %2480 = vrot.lane.b32.xlu0 %v8556_v27, %s6696_s7  ;;  %v8575_v52 = vpop.permute.xlu1 %1694  ;;  %v8588_v53 = vsel %vm3865_vm11, %v11889_v9, %v4294_v48  ;;  %v8606_v48 = vmul.f32 %v12432_v22, %v8590_v6  ;;  %v2549_v9 = vrot.slane %v2537_v50, 1  ;;  %v8622_v22 = vld [vmem:[#allocation2 + $0x70] sm:$0xf8] }
 0x23b   : > { %12436 = vst [vmem:[#allocation64_spill] sm:$0xff] %v8575_v52  ;;  %12439 = vst [vmem:[#allocation259_spill] sm:$0xff] %v8588_v53  ;;  %v11894_v53 = vrot.slane %v8581_v1, 1 }
 0x23c   : > { %v8583_v44 = vpop.permute.xlu0 %1692  ;;  %2486 = vrot.lane.b32.xlu1 %v8556_v27, %s6696_s7  ;;  %12440 = vst [vmem:[#allocation260_spill] sm:$0xff] %v8598_v13  ;;  %12442 = vst [vmem:[#allocation262_spill] sm:$0xff] %v8606_v48  ;;  %v12450_v52 = vrot.slane %v8606_v48, 1 }
 0x23d   : > { %12438 = vst [vmem:[#allocation258_spill] sm:$0xff] %v8583_v44  ;;  %v2553_v50 = vsel %vm2109_vm10, %v2549_v9, %v11894_v53  ;;  %v8648_v44 = vmul.f32 %v7797_v28, %v7411_v10 }
 0x23e   : > { %2484 = vrot.lane.b32.xlu0 %v2473_v25, %s6696_s7  ;;  %v8600_v56 = vpop.permute.xlu1 %1698  ;;  %v4153_v25 = vld [vmem:[#allocation2 + $0x110] sm:$0x1] }
 0x23f   : > { %12441 = vst [vmem:[#allocation261_spill] sm:$0xff] %v8600_v56 }
 0x240   : > { %v8609_v27 = vpop.permute.xlu0 %1696  ;;  %2560 = vrot.lane.b32.xlu1 %v8598_v13, %s6695_s15 }
 0x241   : > { %12443 = vst [vmem:[#allocation263_spill] sm:$0xff] %v8609_v27  ;;  %v2696_v27 = vmul.f32 %v7411_v10, %v2601_v32 }
 0x242   : > { %2558 = vrot.lane.b32.xlu0 %v2549_v9, %s6695_s15  ;;  %v8614_v3 = vpop.permute.xlu1 %4355  ;;  %v2697_v9 = vmul.f32 %v7580_v42, %v8622_v22 }
 0x243   : > { %12444 = vst [vmem:[#allocation264_spill] sm:$0xff] %v8614_v3 }
 0x244   : > { %v8617_v24 = vpop.permute.xlu0 %4353  ;;  %2564 = vrot.lane.b32.xlu1 %v2553_v50, %s6695_s15  ;;  %v2557_v50 = vsel %vm2109_vm10, %v2551_v15, %v12450_v52  ;;  %v2715_v48 = vrot.slane %v2697_v9, 4 }
 0x245   : > { %12445 = vst [vmem:[#allocation265_spill] sm:$0xff] %v8617_v24  ;;  %v8627_v11 = vsel %vm292_vm0, %v8617_v24, %v8614_v3 }
 0x246   : > { %12446 = vst [vmem:[#allocation266_spill] sm:$0xff] %v8627_v11  ;;  %2562 = vrot.lane.b32.xlu0 %v2551_v15, %s6695_s15  ;;  %v8633_v31 = vmul.f32 %v7797_v28, %v8627_v11  ;;  %v8635_v1 = vpop.permute.xlu1 %1762  ;;  %v4368_v53 = vmul.f32 %v8627_v11, %v4153_v25  ;;  %v11909_v11 = vrot.slane %v8648_v44, 4 }
 0x247   : > { %12448 = vst [vmem:[#allocation268_spill] sm:$0xff] %v8635_v1  ;;  %v8652_v1 = vld [vmem:[#allocation2 + $0x78] sm:$0xf8] }
 0x248   : > { %12447 = vst [vmem:[#allocation267_spill] sm:$0xff] %v8633_v31  ;;  %v8640_v56 = vpop.permute.xlu0 %1760  ;;  %v11904_v23 = vrot.slane %v8633_v31, 2  ;;  %2568 = vrot.lane.b32.xlu1 %v2557_v50, %s6695_s15  ;;  %v4390_v42 = vrot.slane %v4368_v53, 2  ;;  %v12454_v50 = vld [vmem:[#allocation66_spill] sm:$0xff] }
 0x249   : > { %12449 = vst [vmem:[#allocation269_spill] sm:$0xff] %v8640_v56  ;;  %v2714_v56 = vrot.slane %v2696_v27, 4  ;;  %v2698_v3 = vmul.f32 %v12454_v50, %v8652_v1  ;;  %v8670_v53 = vmul.f32 %v8014_v45, %v12454_v50 }
 0x24a   : > { %2566 = vrot.lane.b32.xlu0 %v8598_v13, %s6695_s15  ;;  %v8656_v25 = vpop.permute.xlu1 %1766  ;;  %v8661_v52 = vsel %vm3865_vm11, %v11904_v23, %v4390_v42 }
 0x24b   : > { %12451 = vst [vmem:[#allocation270_spill] sm:$0xff] %v8656_v25  ;;  %12452 = vst [vmem:[#allocation271_spill] sm:$0xff] %v8661_v52  ;;  %v2718_v27 = vsel %vm2642_vm6, %v2714_v56, %v11909_v11  ;;  %v2716_v23 = vrot.slane %v2698_v3, 4  ;;  %v11911_v52 = vrot.slane %v8670_v53, 4  ;;  %v8696_v3 = vmul.f32 %v7797_v28, %v7428_v47 }
 0x24c   : > { %v8663_v15 = vpop.permute.xlu0 %1764  ;;  %2731 = vrot.lane.b32.xlu1 %v2715_v48, %s6693_s26 }
 0x24d   : > { %12453 = vst [vmem:[#allocation272_spill] sm:$0xff] %v8663_v15  ;;  %v2790_v15 = vmul.f32 %v7610_v57, %v8622_v22 }
 0x24e   : > { %2729 = vrot.lane.b32.xlu0 %v2714_v56, %s6693_s26  ;;  %v8674_v9 = vpop.permute.xlu1 %1848  ;;  %v2789_v56 = vmul.f32 %v7428_v47, %v2601_v32  ;;  %v11914_v32 = vrot.slane %v8696_v3, 4 }
 0x24f   : > { %12455 = vst [vmem:[#allocation66_spill] sm:$0xff] %v8674_v9  ;;  %v8887_v9 = vld [vmem:[#allocation2 + $0xa0] sm:$0xff] }
 0x250   : > { %v8676_v42 = vpop.permute.xlu0 %1846  ;;  %2735 = vrot.lane.b32.xlu1 %v2718_v27, %s6693_s26  ;;  %v12459_v27 = vrot.slane %v7598_v39, 4 }
 0x251   : > { %12456 = vst [vmem:[#allocation273_spill] sm:$0xff] %v8676_v42  ;;  %v2722_v42 = vsel %vm2642_vm6, %v2716_v23, %v11911_v52  ;;  %v12462_v52 = vld [vmem:[#allocation69_spill] sm:$0xff] }
 0x252   : > { %2733 = vrot.lane.b32.xlu0 %v2716_v23, %s6693_s26  ;;  %v8684_v13 = vpop.permute.xlu1 %1852  ;;  %v2720_v11 = vsel %vm2642_vm6, %v2715_v48, %v12459_v27  ;;  %v2807_v23 = vrot.slane %v2789_v56, 4  ;;  %v2791_v28 = vmul.f32 %v12462_v52, %v8652_v1  ;;  %v8727_v27 = vrot.slane %v8385_v33, %v7092_v38 }
 0x253   : > { %12457 = vst [vmem:[#allocation274_spill] sm:$0xff] %v8684_v13  ;;  %v2808_v13 = vrot.slane %v2790_v15, 4 }
 0x254   : > { %v8688_v25 = vpop.permute.xlu0 %1850  ;;  %2739 = vrot.lane.b32.xlu1 %v2722_v42, %s6693_s26  ;;  %v8712_v42 = vmul.f32 %v8014_v45, %v12462_v52  ;;  %v2811_v48 = vsel %vm2642_vm6, %v2807_v23, %v11914_v32  ;;  %v2809_v15 = vrot.slane %v2791_v28, 4  ;;  %12466 = vst [vmem:[#allocation280_spill] sm:$0xff] %v8727_v27  ;;  %v8739_v28 = vld [vmem:[#allocation2 + $0x68] sm:$0x7f]  ;;  %v2872_v32 = vmul.f32 %v8727_v27, %v8622_v22 }
 0x255   : > { %12458 = vst [vmem:[#allocation275_spill] sm:$0xff] %v8688_v25 }
 0x256   : > { %2737 = vrot.lane.b32.xlu0 %v2720_v11, %s6693_s26  ;;  %v8703_v57 = vpop.permute.xlu1 %1856  ;;  %12463 = vst [vmem:[#allocation69_spill] sm:$0xff] %v8712_v42  ;;  %v11916_v56 = vrot.slane %v8712_v42, 4 }
 0x257   : > { %12460 = vst [vmem:[#allocation276_spill] sm:$0xff] %v8703_v57 }
 0x258   : > { %v8705_v25 = vpop.permute.xlu0 %1854  ;;  %2824 = vrot.lane.b32.xlu1 %v2808_v13, %s6692_s24 }
 0x259   : > { %12461 = vst [vmem:[#allocation277_spill] sm:$0xff] %v8705_v25  ;;  %v8765_v25 = vld [vmem:[#allocation2 + $0x78] sm:$0x7f] }
 0x25a   : > { %2822 = vrot.lane.b32.xlu0 %v2807_v23, %s6692_s24  ;;  %v8716_v11 = vpop.permute.xlu1 %2091  ;;  %v8737_v23 = vld [vmem:[#allocation2 + $0x70] sm:$0x7f] }
 0x25b   : > { %12464 = vst [vmem:[#allocation278_spill] sm:$0xff] %v8716_v11 }
 0x25c   : > { %v8718_v39 = vpop.permute.xlu0 %2089  ;;  %2828 = vrot.lane.b32.xlu1 %v2811_v48, %s6692_s24  ;;  %v12469_v48 = vrot.slane %v7637_v2, 4 }
 0x25d   : > { %12465 = vst [vmem:[#allocation279_spill] sm:$0xff] %v8718_v39  ;;  %v2815_v39 = vsel %vm2642_vm6, %v2809_v15, %v11916_v56 }
 0x25e   : > { %2826 = vrot.lane.b32.xlu0 %v2809_v15, %s6692_s24  ;;  %v8730_v57 = vpop.permute.xlu1 %1941  ;;  %v2813_v33 = vsel %vm2642_vm6, %v2808_v13, %v12469_v48  ;;  %v8754_v15 = vrot.slane %v8379_v30, %v7092_v38  ;;  %v12475_v13 = vld [vmem:[#allocation26_spill] sm:$0xff] }
 0x25f   : > { %12467 = vst [vmem:[#allocation281_spill] sm:$0xff] %v8730_v57  ;;  %v421_v48 = vmul.f32 %v12475_v13, %v8739_v28 }
 0x260   : > { %v8732_v11 = vpop.permute.xlu0 %1939  ;;  %2832 = vrot.lane.b32.xlu1 %v2815_v39, %s6692_s24  ;;  %12471 = vst [vmem:[#allocation284_spill] sm:$0xff] %v8754_v15  ;;  %v12473_v39 = vld [vmem:[#allocation34_spill] sm:$0xff]  ;;  %v2873_v38 = vmul.f32 %v8754_v15, %v8652_v1 }
 0x261   : > { %12468 = vst [vmem:[#allocation282_spill] sm:$0xff] %v8732_v11  ;;  %v8750_v11 = vmul.f32 %v7921_v34, %v8727_v27  ;;  %v422_v2 = vmul.f32 %v12473_v39, %v8737_v23  ;;  %v8775_v39 = vmul.f32 %v8014_v45, %v8754_v15  ;;  %v12483_v15 = vld [vmem:[#allocation27_spill] sm:$0xff] }
 0x262   : > { %2830 = vrot.lane.b32.xlu0 %v2813_v33, %s6692_s24  ;;  %v8756_v56 = vpop.permute.xlu1 %1945  ;;  %v2884_v33 = vrot.slane %v2872_v32, 4 }
 0x263   : > { %12470 = vst [vmem:[#allocation283_spill] sm:$0xff] %v8750_v11  ;;  %12472 = vst [vmem:[#allocation285_spill] sm:$0xff] %v8756_v56  ;;  %v11923_v30 = vrot.slane %v8750_v11, 4 }
 0x264   : > { %v8760_v57 = vpop.permute.xlu0 %1943  ;;  %447 = vrot.lane.b32.xlu1 %v422_v2, %s6693_s26  ;;  %12477 = vst [vmem:[#allocation286_spill] sm:$0xff] %v8775_v39  ;;  %v12479_v2 = vld [vmem:[#allocation28_spill] sm:$0xff] }
 0x265   : > { %12474 = vst [vmem:[#allocation34_spill] sm:$0xff] %v8760_v57  ;;  %v423_v32 = vmul.f32 %v12479_v2, %v8765_v25  ;;  %v2887_v13 = vsel %vm2642_vm6, %v2884_v33, %v11923_v30 }
 0x266   : > { %445 = vrot.lane.b32.xlu0 %v421_v48, %s6693_s26  ;;  %v8771_v27 = vpop.permute.xlu1 %1949  ;;  %v2885_v48 = vrot.slane %v2873_v38, 4 }
 0x267   : > { %12476 = vst [vmem:[#allocation26_spill] sm:$0xff] %v8771_v27  ;;  %v11928_v27 = vrot.slane %v8775_v39, 4 }
 0x268   : > { %v8777_v56 = vpop.permute.xlu0 %1947  ;;  %2894 = vrot.lane.b32.xlu1 %v2884_v33, %s6697_s6 }
 0x269   : > { %12478 = vst [vmem:[#allocation287_spill] sm:$0xff] %v8777_v56  ;;  %v2889_v33 = vsel %vm2642_vm6, %v2885_v48, %v11928_v27 }
 0x26a   : > { %449 = vrot.lane.b32.xlu0 %v423_v32, %s6693_s26  ;;  %v8786_v57 = vpop.permute.xlu1 %2036  ;;  %v500_v32 = vmul.f32 %v12483_v15, %v8739_v28  ;;  %v12488_v15 = vld [vmem:[#allocation37_spill] sm:$0xff] }
 0x26b   : > { %12480 = vst [vmem:[#allocation28_spill] sm:$0xff] %v8786_v57  ;;  %v501_v39 = vmul.f32 %v12488_v15, %v8737_v23 }
 0x26c   : > { %v8789_v45 = vpop.permute.xlu0 %2034  ;;  %2898 = vrot.lane.b32.xlu1 %v2887_v13, %s6697_s6  ;;  %v12486_v13 = vld [vmem:[#allocation29_spill] sm:$0xff] }
 0x26d   : > { %12481 = vst [vmem:[#allocation288_spill] sm:$0xff] %v8789_v45  ;;  %v502_v11 = vmul.f32 %v12486_v13, %v8765_v25 }
 0x26e   : > { %2896 = vrot.lane.b32.xlu0 %v2885_v48, %s6697_s6  ;;  %v8793_v2 = vpop.permute.xlu1 %2040  ;;  %v2947_v48 = vmul.f32 %v7467_v58, %v8622_v22 }
 0x26f   : > { %12482 = vst [vmem:[#allocation289_spill] sm:$0xff] %v8793_v2  ;;  %v2948_v2 = vmul.f32 %v7627_v5, %v8652_v1 }
 0x270   : > { %v8800_v38 = vpop.permute.xlu0 %2038  ;;  %524 = vrot.lane.b32.xlu1 %v500_v32, %s6692_s24  ;;  %v8818_v32 = vmul.f32 %v7921_v34, %v7467_v58 }
 0x271   : > { %12484 = vst [vmem:[#allocation27_spill] sm:$0xff] %v8800_v38  ;;  %v2966_v5 = vrot.slane %v2948_v2, 4  ;;  %v8831_v38 = vld [vmem:[#allocation2 + $0x18] sm:$0xff] }
 0x272   : > { %2900 = vrot.lane.b32.xlu0 %v2889_v33, %s6697_s6  ;;  %v8804_v30 = vpop.permute.xlu1 %2044  ;;  %12489 = vst [vmem:[#allocation37_spill] sm:$0xff] %v8818_v32  ;;  %v8821_v33 = vld [vmem:[#allocation2 + $0x80] sm:$0xf8]  ;;  %v11934_v15 = vrot.slane %v8818_v32, 4  ;;  %v8835_v34 = vmul.f32 %v8831_v38, %v7465_v51 }
 0x273   : > { %12485 = vst [vmem:[#allocation290_spill] sm:$0xff] %v8804_v30  ;;  %v2965_v30 = vrot.slane %v2947_v48, 4 }
 0x274   : > { %v8810_v45 = vpop.permute.xlu0 %2042  ;;  %528 = vrot.lane.b32.xlu1 %v502_v11, %s6692_s24  ;;  %12492 = vst [vmem:[#allocation293_spill] sm:$0xff] %v8835_v34 }
 0x275   : > { %12487 = vst [vmem:[#allocation29_spill] sm:$0xff] %v8810_v45  ;;  %v2949_v45 = vmul.f32 %v7465_v51, %v8821_v33  ;;  %v2969_v2 = vsel %vm2642_vm6, %v2965_v30, %v11934_v15  ;;  %v12498_v15 = vld [vmem:[#allocation22_spill] sm:$0xff] }
 0x276   : > { %526 = vrot.lane.b32.xlu0 %v501_v39, %s6692_s24  ;;  %v8824_v13 = vpop.permute.xlu1 %2179 }
 0x277   : > { %12490 = vst [vmem:[#allocation291_spill] sm:$0xff] %v8824_v13  ;;  %v2967_v48 = vrot.slane %v2949_v45, 4  ;;  %v8860_v45 = vld [vmem:[#allocation6 + $0x48] sm:$0xff] }
 0x278   : > { %v8826_v27 = vpop.permute.xlu0 %2177  ;;  %2982 = vrot.lane.b32.xlu1 %v2966_v5, %s6698_s17 }
 0x279   : > { %12491 = vst [vmem:[#allocation292_spill] sm:$0xff] %v8826_v27  ;;  %v11937_v27 = vrot.slane %v8835_v34, 4 }
 0x27a   : > { %2980 = vrot.lane.b32.xlu0 %v2965_v30, %s6698_s17  ;;  %v8839_v11 = vpop.permute.xlu1 %2183 }
 0x27b   : > { %12493 = vst [vmem:[#allocation294_spill] sm:$0xff] %v8839_v11  ;;  %v2973_v11 = vsel %vm2642_vm6, %v2967_v48, %v11937_v27  ;;  %v3041_v27 = vmul.f32 %v7668_v7, %v8652_v1 }
 0x27c   : > { %v8841_v39 = vpop.permute.xlu0 %2181  ;;  %2986 = vrot.lane.b32.xlu1 %v2969_v2, %s6698_s17  ;;  %v3223_v2 = vrot.slane %v8860_v45, %v12498_v15 }
 0x27d   : > { %12494 = vst [vmem:[#allocation295_spill] sm:$0xff] %v8841_v39  ;;  %v12497_v39 = vrot.slane %v7656_v43, 4  ;;  %v12501_v43 = vld [vmem:[#allocation24_spill] sm:$0xff] }
 0x27e   : > { %2984 = vrot.lane.b32.xlu0 %v2967_v48, %s6698_s17  ;;  %v8849_v13 = vpop.permute.xlu1 %2187 }
 0x27f   : > { %12495 = vst [vmem:[#allocation296_spill] sm:$0xff] %v8849_v13  ;;  %v2971_v30 = vsel %vm2642_vm6, %v2966_v5, %v12497_v39  ;;  %v8865_v13 = vld [vmem:[#allocation6 + $0x40] sm:$0xff]  ;;  %v567_v5 = vmul.f32 %v12501_v43, %v8765_v25  ;;  %v3059_v43 = vrot.slane %v3041_v27, 4 }
 0x280   : > { %v8851_v57 = vpop.permute.xlu0 %2185  ;;  %2990 = vrot.lane.b32.xlu1 %v2973_v11, %s6698_s17  ;;  %v12502_v11 = vld [vmem:[#allocation25_spill] sm:$0xff] }
 0x281   : > { %12496 = vst [vmem:[#allocation297_spill] sm:$0xff] %v8851_v57  ;;  %v3219_v57 = vrot.slane %v8865_v13, %v12498_v15  ;;  %v566_v39 = vmul.f32 %v12502_v11, %v8737_v23 }
 0x282   : > { %2988 = vrot.lane.b32.xlu0 %v2971_v30, %s6698_s17  ;;  %v8869_v56 = vpop.permute.xlu1 %2260 }
 0x283   : > { %12499 = vst [vmem:[#allocation298_spill] sm:$0xff] %v8869_v56  ;;  %v12505_v56 = vld [vmem:[#allocation77_spill] sm:$0xff] }
 0x284   : > { %v8871_v48 = vpop.permute.xlu0 %2258  ;;  %3228 = vrot.lane.b32.xlu1 %v3223_v2, %s6697_s6  ;;  %v8891_v2 = vmul.f32 %v8887_v9, %v12505_v56 }
 0x285   : > { %12500 = vst [vmem:[#allocation299_spill] sm:$0xff] %v8871_v48  ;;  %v3040_v48 = vmul.f32 %v12505_v56, %v8622_v22  ;;  %v12509_v22 = vld [vmem:[#allocation76_spill] sm:$0xff] }
 0x286   : > { %3226 = vrot.lane.b32.xlu0 %v3219_v57, %s6697_s6  ;;  %v8879_v30 = vpop.permute.xlu1 %2264  ;;  %12506 = vst [vmem:[#allocation77_spill] sm:$0xff] %v8891_v2  ;;  %v8904_v31 = vmul.f32 %v8831_v38, %v12509_v22 }
 0x287   : > { %12503 = vst [vmem:[#allocation24_spill] sm:$0xff] %v8879_v30  ;;  %v3058_v7 = vrot.slane %v3040_v48, 4  ;;  %v11949_v30 = vrot.slane %v8891_v2, 4 }
 0x288   : > { %v8883_v15 = vpop.permute.xlu0 %2262  ;;  %584 = vrot.lane.b32.xlu1 %v567_v5, %s6697_s6  ;;  %12510 = vst [vmem:[#allocation76_spill] sm:$0xff] %v8904_v31 }
 0x289   : > { %12504 = vst [vmem:[#allocation25_spill] sm:$0xff] %v8883_v15  ;;  %v3042_v15 = vmul.f32 %v12509_v22, %v8821_v33  ;;  %v3062_v27 = vsel %vm2642_vm6, %v3058_v7, %v11949_v30 }
 0x28a   : > { %582 = vrot.lane.b32.xlu0 %v566_v39, %s6697_s6  ;;  %v8895_v57 = vpop.permute.xlu1 %2268 }
 0x28b   : > { %12507 = vst [vmem:[#allocation300_spill] sm:$0xff] %v8895_v57  ;;  %v3060_v48 = vrot.slane %v3042_v15, 4  ;;  %v11953_v57 = vrot.slane %v8904_v31, 4 }
 0x28c   : > { %v8897_v11 = vpop.permute.xlu0 %2266  ;;  %3075 = vrot.lane.b32.xlu1 %v3059_v43, %s6696_s7 }
 0x28d   : > { %12508 = vst [vmem:[#allocation301_spill] sm:$0xff] %v8897_v11 }
 0x28e   : > { %3073 = vrot.lane.b32.xlu0 %v3058_v7, %s6696_s7  ;;  %v8908_v5 = vpop.permute.xlu1 %2324 }
 0x28f   : > { %12511 = vst [vmem:[#allocation302_spill] sm:$0xff] %v8908_v5  ;;  %v3066_v5 = vsel %vm2642_vm6, %v3060_v48, %v11953_v57 }
 0x290   : > { %v8910_v39 = vpop.permute.xlu0 %2322  ;;  %3079 = vrot.lane.b32.xlu1 %v3062_v27, %s6696_s7  ;;  %v12517_v27 = vld [vmem:[#allocation42_spill] sm:$0xff] }
 0x291   : > { %12512 = vst [vmem:[#allocation303_spill] sm:$0xff] %v8910_v39  ;;  %v12515_v39 = vrot.slane %v7693_v29, 4  ;;  %v636_v30 = vmul.f32 %v12517_v27, %v8765_v25  ;;  %v609_v29 = vld [vmem:[#allocation2 + $0x80] sm:$0x7f] }
 0x292   : > { %3077 = vrot.lane.b32.xlu0 %v3060_v48, %s6696_s7  ;;  %v8918_v11 = vpop.permute.xlu1 %2328  ;;  %v12520_v48 = vld [vmem:[#allocation31_spill] sm:$0xff] }
 0x293   : > { %12513 = vst [vmem:[#allocation304_spill] sm:$0xff] %v8918_v11  ;;  %v3064_v15 = vsel %vm2642_vm6, %v3059_v43, %v12515_v39  ;;  %v12518_v11 = vld [vmem:[#allocation81_spill] sm:$0xff]  ;;  %v635_v57 = vmul.f32 %v12520_v48, %v8737_v23  ;;  %v8951_v48 = vld [vmem:[#allocation2 + $0xa8] sm:$0xff] }
 0x294   : > { %v8920_v24 = vpop.permute.xlu0 %2326  ;;  %3083 = vrot.lane.b32.xlu1 %v3066_v5, %s6696_s7  ;;  %v3115_v5 = vld [vmem:[#allocation2 + $0x88] sm:$0xf8] }
 0x295   : > { %12514 = vst [vmem:[#allocation305_spill] sm:$0xff] %v8920_v24  ;;  %v3135_v24 = vmul.f32 %v12518_v11, %v8652_v1  ;;  %v637_v1 = vmul.f32 %v12524_v40, %v609_v29 }
 0x296   : > { %3081 = vrot.lane.b32.xlu0 %v3064_v15, %s6696_s7  ;;  %v8930_v7 = vpop.permute.xlu1 %2397  ;;  %v12522_v15 = vld [vmem:[#allocation80_spill] sm:$0xff] }
 0x297   : > { %12516 = vst [vmem:[#allocation306_spill] sm:$0xff] %v8930_v7  ;;  %v3153_v39 = vrot.slane %v3135_v24, 4  ;;  %v3137_v7 = vmul.f32 %v12522_v15, %v3115_v5  ;;  %v8966_v40 = vmul.f32 %v12522_v15, %v8590_v6 }
 0x298   : > { %v8936_v17 = vpop.permute.xlu0 %2395  ;;  %661 = vrot.lane.b32.xlu1 %v636_v30, %s6698_s17  ;;  %v8955_v30 = vmul.f32 %v8951_v48, %v12518_v11 }
 0x299   : > { %12519 = vst [vmem:[#allocation42_spill] sm:$0xff] %v8936_v17  ;;  %v3136_v17 = vmul.f32 %v7680_v26, %v8821_v33  ;;  %12528 = vst [vmem:[#allocation308_spill] sm:$0xff] %v8966_v40 }
 0x29a   : > { %659 = vrot.lane.b32.xlu0 %v635_v57, %s6698_s17  ;;  %v8942_v43 = vpop.permute.xlu1 %2401  ;;  %12525 = vst [vmem:[#allocation80_spill] sm:$0xff] %v8955_v30  ;;  %v3155_v57 = vrot.slane %v3137_v7, 4  ;;  %v11964_v26 = vrot.slane %v8955_v30, 4 }
 0x29b   : > { %12521 = vst [vmem:[#allocation81_spill] sm:$0xff] %v8942_v43  ;;  %v3154_v43 = vrot.slane %v3136_v17, 4 }
 0x29c   : > { %v8945_v27 = vpop.permute.xlu0 %2399  ;;  %3168 = vrot.lane.b32.xlu1 %v3153_v39, %s6695_s15 }
 0x29d   : > { %12523 = vst [vmem:[#allocation31_spill] sm:$0xff] %v8945_v27 }
 0x29e   : > { %663 = vrot.lane.b32.xlu0 %v637_v1, %s6698_s17  ;;  %v8958_v24 = vpop.permute.xlu1 %2405  ;;  %v12531_v1 = vrot.slane %v7707_v41, 4 }
 0x29f   : > { %12526 = vst [vmem:[#allocation30_spill] sm:$0xff] %v8958_v24  ;;  %v3157_v24 = vsel %vm2642_vm6, %v3153_v39, %v11964_v26 }
 0x2a0   : > { %v8960_v5 = vpop.permute.xlu0 %2403  ;;  %3172 = vrot.lane.b32.xlu1 %v3155_v57, %s6695_s15  ;;  %v3159_v7 = vsel %vm2642_vm6, %v3154_v43, %v12531_v1 }
 0x2a1   : > { %12527 = vst [vmem:[#allocation307_spill] sm:$0xff] %v8960_v5  ;;  %v11973_v5 = vrot.slane %v8966_v40, 4 }
 0x2a2   : > { %3170 = vrot.lane.b32.xlu0 %v3154_v43, %s6695_s15  ;;  %v8969_v33 = vpop.permute.xlu1 %2618  ;;  %v12535_v43 = vld [vmem:[#allocation33_spill] sm:$0xff] }
 0x2a3   : > { %12529 = vst [vmem:[#allocation309_spill] sm:$0xff] %v8969_v33  ;;  %v715_v1 = vmul.f32 %v12535_v43, %v8737_v23  ;;  %v12538_v43 = vld [vmem:[#allocation32_spill] sm:$0xff] }
 0x2a4   : > { %v8971_v27 = vpop.permute.xlu0 %2616  ;;  %3176 = vrot.lane.b32.xlu1 %v3159_v7, %s6695_s15  ;;  %v717_v54 = vmul.f32 %v12538_v43, %v609_v29  ;;  %v12540_v7 = vld [vmem:[#allocation53_spill] sm:$0xff]  ;;  %v3306_v43 = vmul.f32 %v7788_v59, %v3211_v14 }
 0x2a5   : > { %12530 = vst [vmem:[#allocation310_spill] sm:$0xff] %v8971_v27  ;;  %v8979_v17 = vsel %vm370_vm7, %v8971_v27, %v8969_v33  ;;  %v8995_v27 = vld [vmem:[#allocation2 + $0xc8] sm:$0x7] }
 0x2a6   : > { %12532 = vst [vmem:[#allocation311_spill] sm:$0xff] %v8979_v17  ;;  %v8988_v60 = vmul.f32 %v8831_v38, %v8979_v17  ;;  %3174 = vrot.lane.b32.xlu0 %v3157_v24, %s6695_s15  ;;  %v8991_v41 = vpop.permute.xlu1 %2478  ;;  %v2631_v39 = vmul.f32 %v8979_v17, %v8995_v27  ;;  %v3161_v24 = vsel %vm2642_vm6, %v3155_v57, %v11973_v5 }
 0x2a7   : > { %12534 = vst [vmem:[#allocation313_spill] sm:$0xff] %v8991_v41 }
 0x2a8   : > { %12533 = vst [vmem:[#allocation312_spill] sm:$0xff] %v8988_v60  ;;  %v8998_v33 = vpop.permute.xlu0 %2476  ;;  %739 = vrot.lane.b32.xlu1 %v715_v1, %s6696_s7  ;;  %v2654_v26 = vrot.slane %v2631_v39, 4  ;;  %v12541_v17 = vrot.slane %v8988_v60, 4  ;;  %v12544_v39 = vld [vmem:[#allocation60_spill] sm:$0xff] }
 0x2a9   : > { %12536 = vst [vmem:[#allocation33_spill] sm:$0xff] %v8998_v33  ;;  %v716_v33 = vmul.f32 %v12540_v7, %v8765_v25  ;;  %v12546_v7 = vld [vmem:[#allocation36_spill] sm:$0xff] }
 0x2aa   : > { %3178 = vrot.lane.b32.xlu0 %v3161_v24, %s6695_s15  ;;  %v9007_v41 = vpop.permute.xlu1 %2482  ;;  %v9017_v1 = vsel %vm2642_vm6, %v12541_v17, %v2654_v26  ;;  %v797_v24 = vmul.f32 %v12544_v39, %v609_v29  ;;  %v771_v26 = vld [vmem:[#allocation2 + $0x88] sm:$0x7f]  ;;  %v9032_v17 = vld [vmem:[#allocation2 + $0x70] sm:$0xc0] }
 0x2ab   : > { %12537 = vst [vmem:[#allocation314_spill] sm:$0xff] %v9007_v41  ;;  %12542 = vst [vmem:[#allocation53_spill] sm:$0xff] %v9017_v1  ;;  %v796_v41 = vmul.f32 %v12546_v7, %v8765_v25  ;;  %v12549_v1 = vld [vmem:[#allocation35_spill] sm:$0xff]  ;;  %v3307_v25 = vmul.f32 %v7820_v46, %v9032_v17  ;;  %v9058_v46 = vmul.f32 %v8951_v48, %v7786_v8 }
 0x2ac   : > { %v9010_v49 = vpop.permute.xlu0 %2480  ;;  %743 = vrot.lane.b32.xlu1 %v717_v54, %s6696_s7  ;;  %v798_v60 = vmul.f32 %v12549_v1, %v771_v26 }
 0x2ad   : > { %12539 = vst [vmem:[#allocation32_spill] sm:$0xff] %v9010_v49  ;;  %v9029_v49 = vld [vmem:[#allocation2 + $0x78] sm:$0xc0]  ;;  %12553 = vst [vmem:[#allocation319_spill] sm:$0xff] %v9058_v46 }
 0x2ae   : > { %741 = vrot.lane.b32.xlu0 %v716_v33, %s6696_s7  ;;  %v9021_v57 = vpop.permute.xlu1 %2486  ;;  %v3324_v33 = vrot.slane %v3306_v43, 7  ;;  %v3308_v29 = vmul.f32 %v7786_v8, %v9029_v49 }
 0x2af   : > { %12543 = vst [vmem:[#allocation315_spill] sm:$0xff] %v9021_v57 }
 0x2b0   : > { %v9025_v5 = vpop.permute.xlu0 %2484  ;;  %822 = vrot.lane.b32.xlu1 %v797_v24, %s6695_s15  ;;  %v9047_v24 = vmul.f32 %v8831_v38, %v7788_v59  ;;  %v3326_v43 = vrot.slane %v3308_v29, 7  ;;  %v12556_v29 = vrot.slane %v7847_v0, 7  ;;  %v12560_v0 = vld [vmem:[#allocation143_spill] sm:$0xff] }
 0x2b1   : > { %12545 = vst [vmem:[#allocation60_spill] sm:$0xff] %v9025_v5 }
 0x2b2   : > { %820 = vrot.lane.b32.xlu0 %v796_v41, %s6695_s15  ;;  %v9035_v54 = vpop.permute.xlu1 %2560  ;;  %12550 = vst [vmem:[#allocation35_spill] sm:$0xff] %v9047_v24  ;;  %v11981_v1 = vrot.slane %v9047_v24, 7 }
 0x2b3   : > { %12547 = vst [vmem:[#allocation36_spill] sm:$0xff] %v9035_v54  ;;  %v3325_v54 = vrot.slane %v3307_v25, 7 }
 0x2b4   : > { %v9039_v39 = vpop.permute.xlu0 %2558  ;;  %3339 = vrot.lane.b32.xlu1 %v3324_v33, %s6693_s26 }
 0x2b5   : > { %12548 = vst [vmem:[#allocation316_spill] sm:$0xff] %v9039_v39  ;;  %v3330_v25 = vsel %vm3252_vm8, %v3325_v54, %v12556_v29 }
 0x2b6   : > { %824 = vrot.lane.b32.xlu0 %v798_v60, %s6695_s15  ;;  %v9050_v41 = vpop.permute.xlu1 %2564  ;;  %v3399_v60 = vmul.f32 %v7908_v18, %v3211_v14  ;;  %v12558_v14 = vld [vmem:[#allocation141_spill] sm:$0xff] }
 0x2b7   : > { %12551 = vst [vmem:[#allocation317_spill] sm:$0xff] %v9050_v41  ;;  %v3328_v41 = vsel %vm3252_vm8, %v3324_v33, %v11981_v1 }
 0x2b8   : > { %v9052_v7 = vpop.permute.xlu0 %2562  ;;  %3343 = vrot.lane.b32.xlu1 %v3326_v43, %s6693_s26 }
 0x2b9   : > { %12552 = vst [vmem:[#allocation318_spill] sm:$0xff] %v9052_v7  ;;  %v11985_v7 = vrot.slane %v9058_v46, 7  ;;  %v12571_v46 = vld [vmem:[#allocation38_spill] sm:$0xff] }
 0x2ba   : > { %3341 = vrot.lane.b32.xlu0 %v3325_v54, %s6693_s26  ;;  %v9061_v26 = vpop.permute.xlu1 %2568  ;;  %v3400_v54 = vmul.f32 %v12560_v0, %v9032_v17  ;;  %v12564_v0 = vld [vmem:[#allocation39_spill] sm:$0xff] }
 0x2bb   : > { %12554 = vst [vmem:[#allocation320_spill] sm:$0xff] %v9061_v26  ;;  %v3417_v26 = vrot.slane %v3399_v60, 7  ;;  %v3332_v33 = vsel %vm3252_vm8, %v3326_v43, %v11985_v7  ;;  %v9101_v43 = vmul.f32 %v8951_v48, %v12558_v14  ;;  %v9103_v7 = vld [vmem:[#allocation2 + $0xa8] sm:$0x3] }
 0x2bc   : > { %v9064_v39 = vpop.permute.xlu0 %2566  ;;  %3347 = vrot.lane.b32.xlu1 %v3330_v25, %s6693_s26  ;;  %v3418_v1 = vrot.slane %v3400_v54, 7 }
 0x2bd   : > { %12555 = vst [vmem:[#allocation321_spill] sm:$0xff] %v9064_v39  ;;  %v3401_v39 = vmul.f32 %v12558_v14, %v9029_v49  ;;  %12565 = vst [vmem:[#allocation39_spill] sm:$0xff] %v9101_v43  ;;  %v11994_v59 = vrot.slane %v9101_v43, 7 }
 0x2be   : > { %3345 = vrot.lane.b32.xlu0 %v3328_v41, %s6693_s26  ;;  %v9075_v57 = vpop.permute.xlu1 %2731  ;;  %v9089_v41 = vmul.f32 %v8831_v38, %v7908_v18  ;;  %v958_v18 = vmul.f32 %v12571_v46, %v9103_v7 }
 0x2bf   : > { %12557 = vst [vmem:[#allocation322_spill] sm:$0xff] %v9075_v57  ;;  %v3419_v29 = vrot.slane %v3401_v39, 7 }
 0x2c0   : > { %v9079_v5 = vpop.permute.xlu0 %2729  ;;  %3432 = vrot.lane.b32.xlu1 %v3417_v26, %s6692_s24  ;;  %12561 = vst [vmem:[#allocation143_spill] sm:$0xff] %v9089_v41  ;;  %v12572_v14 = vrot.slane %v9089_v41, 7  ;;  %v12618_v41 = vld [vmem:[#allocation17_spill] sm:$0xff] }
 0x2c1   : > { %12559 = vst [vmem:[#allocation323_spill] sm:$0xff] %v9079_v5  ;;  %v6452_v5 = vld [vmem:[#allocation2 + $0x98] sm:$0x3] }
 0x2c2   : > { %3349 = vrot.lane.b32.xlu0 %v3332_v33, %s6693_s26  ;;  %v9092_v60 = vpop.permute.xlu1 %2735  ;;  %v956_v57 = vmul.f32 %v6452_v5, %v12564_v0  ;;  %v9105_v33 = vld [vmem:[#allocation2 + $0xa0] sm:$0x3]  ;;  %v3421_v8 = vsel %vm3252_vm8, %v3417_v26, %v12572_v14  ;;  %v12579_v26 = vld [vmem:[#allocation65_spill] sm:$0xff] }
 0x2c3   : > { %12562 = vst [vmem:[#allocation324_spill] sm:$0xff] %v9092_v60  ;;  %12566 = vst [vmem:[#allocation326_spill] sm:$0xff] %v9105_v33  ;;  %v12569_v60 = vld [vmem:[#allocation144_spill] sm:$0xff]  ;;  %v12580_v14 = vrot.slane %v12579_v26, 3 }
 0x2c4   : > { %v9094_v25 = vpop.permute.xlu0 %2733  ;;  %3436 = vrot.lane.b32.xlu1 %v3419_v29, %s6692_s24  ;;  %v12570_v0 = vrot.slane %v12569_v60, 7  ;;  %v977_v24 = vrot.slane %v956_v57, 3 }
 0x2c5   : > { %12563 = vst [vmem:[#allocation325_spill] sm:$0xff] %v9094_v25 }
 0x2c6   : > { %3434 = vrot.lane.b32.xlu0 %v3418_v1, %s6692_s24  ;;  %v9108_v39 = vpop.permute.xlu1 %2739  ;;  %v3423_v25 = vsel %vm3252_vm8, %v3418_v1, %v12570_v0  ;;  %v981_v0 = vrot.slane %v958_v18, 3 }
 0x2c7   : > { %12567 = vst [vmem:[#allocation327_spill] sm:$0xff] %v9108_v39  ;;  %v12573_v39 = vld [vmem:[#allocation62_spill] sm:$0xff] }
 0x2c8   : > { %v9110_v54 = vpop.permute.xlu0 %2737  ;;  %3440 = vrot.lane.b32.xlu1 %v3423_v25, %s6692_s24  ;;  %v957_v40 = vmul.f32 %v12573_v39, %v9105_v33  ;;  %v978_v25 = vsel %vm895_vm5, %v12580_v14, %v977_v24 }
 0x2c9   : > { %12568 = vst [vmem:[#allocation328_spill] sm:$0xff] %v9110_v54  ;;  %v12574_v54 = vld [vmem:[#allocation20_spill] sm:$0xff] }
 0x2ca   : > { %v9126_v60 = vrot.slane %v8860_v45, %v12574_v54  ;;  %3438 = vrot.lane.b32.xlu0 %v3421_v8, %s6692_s24  ;;  %v9131_v57 = vrot.slane %v8865_v13, %v12574_v54  ;;  %v9133_v1 = vpop.permute.xlu1 %2824  ;;  %v3425_v45 = vsel %vm3252_vm8, %v3419_v29, %v11994_v59  ;;  %v979_v8 = vrot.slane %v957_v40, 3  ;;  %v12585_v40 = vld [vmem:[#allocation67_spill] sm:$0xff] }
 0x2cb   : > { %12577 = vst [vmem:[#allocation62_spill] sm:$0xff] %v9133_v1  ;;  %v12586_v14 = vrot.slane %v12585_v40, 3 }
 0x2cc   : > { %12575 = vst [vmem:[#allocation144_spill] sm:$0xff] %v9126_v60  ;;  %12576 = vst [vmem:[#allocation38_spill] sm:$0xff] %v9131_v57  ;;  %v9135_v46 = vpop.permute.xlu0 %2822  ;;  %995 = vrot.lane.b32.xlu1 %v978_v25, %s6693_s26  ;;  %v3483_v13 = vmul.f32 %v9126_v60, %v9029_v49  ;;  %v3482_v39 = vmul.f32 %v9131_v57, %v9032_v17  ;;  %v9151_v26 = vmul.f32 %v8951_v48, %v9126_v60 }
 0x2cd   : > { %12578 = vst [vmem:[#allocation329_spill] sm:$0xff] %v9135_v46  ;;  %v9157_v24 = vmul.f32 %v8887_v9, %v9131_v57  ;;  %v982_v25 = vsel %vm895_vm5, %v12586_v14, %v981_v0  ;;  %v12591_v0 = vld [vmem:[#allocation72_spill] sm:$0xff]  ;;  %v12592_v14 = vld [vmem:[#allocation41_spill] sm:$0xff] }
 0x2ce   : > { %3442 = vrot.lane.b32.xlu0 %v3425_v45, %s6692_s24  ;;  %12581 = vst [vmem:[#allocation65_spill] sm:$0xff] %v9151_v26  ;;  %v9153_v18 = vpop.permute.xlu1 %2828  ;;  %v12587_v45 = vld [vmem:[#allocation68_spill] sm:$0xff]  ;;  %v3495_v60 = vrot.slane %v3483_v13, 7  ;;  %v12001_v46 = vrot.slane %v9151_v26, 7  ;;  %v1050_v40 = vmul.f32 %v12591_v0, %v9105_v33 }
 0x2cf   : > { %12582 = vst [vmem:[#allocation330_spill] sm:$0xff] %v9153_v18  ;;  %12583 = vst [vmem:[#allocation331_spill] sm:$0xff] %v9157_v24  ;;  %v12588_v59 = vrot.slane %v12587_v45, 3  ;;  %v3494_v18 = vrot.slane %v3482_v39, 7 }
 0x2d0   : > { %v9159_v29 = vpop.permute.xlu0 %2826  ;;  %999 = vrot.lane.b32.xlu1 %v982_v25, %s6693_s26  ;;  %v1049_v25 = vmul.f32 %v6452_v5, %v12592_v14  ;;  %v1072_v39 = vrot.slane %v1050_v40, 3  ;;  %v12595_v5 = vld [vmem:[#allocation40_spill] sm:$0xff]  ;;  %v9203_v40 = vld [vmem:[#allocation2 + $0x80] sm:$0xc0] }
 0x2d1   : > { %12584 = vst [vmem:[#allocation332_spill] sm:$0xff] %v9159_v29  ;;  %v980_v54 = vsel %vm895_vm5, %v12588_v59, %v979_v8  ;;  %v12004_v29 = vrot.slane %v9157_v24, 7  ;;  %v3499_v59 = vsel %vm3252_vm8, %v3495_v60, %v12001_v46  ;;  %v1051_v0 = vmul.f32 %v12595_v5, %v9103_v7  ;;  %v12599_v24 = vld [vmem:[#allocation75_spill] sm:$0xff] }
 0x2d2   : > { %997 = vrot.lane.b32.xlu0 %v980_v54, %s6693_s26  ;;  %v9170_v57 = vpop.permute.xlu1 %2832  ;;  %v1070_v45 = vrot.slane %v1049_v25, 3  ;;  %v12601_v25 = vld [vmem:[#allocation73_spill] sm:$0xff] }
 0x2d3   : > { %12589 = vst [vmem:[#allocation67_spill] sm:$0xff] %v9170_v57  ;;  %v3497_v8 = vsel %vm3252_vm8, %v3494_v18, %v12004_v29 }
 0x2d4   : > { %v9173_v1 = vpop.permute.xlu0 %2830  ;;  %3506 = vrot.lane.b32.xlu1 %v3495_v60, %s6697_s6  ;;  %v12597_v60 = vld [vmem:[#allocation157_spill] sm:$0xff] }
 0x2d5   : > { %12590 = vst [vmem:[#allocation68_spill] sm:$0xff] %v9173_v1  ;;  %v3557_v46 = vmul.f32 %v12597_v60, %v9032_v17  ;;  %v12604_v1 = vld [vmem:[#allocation156_spill] sm:$0xff] }
 0x2d6   : > { %3504 = vrot.lane.b32.xlu0 %v3494_v18, %s6697_s6  ;;  %v9183_v54 = vpop.permute.xlu1 %447  ;;  %v12600_v18 = vrot.slane %v12599_v24, 3 }
 0x2d7   : > { %12593 = vst [vmem:[#allocation72_spill] sm:$0xff] %v9183_v54  ;;  %v3575_v57 = vrot.slane %v3557_v46, 7 }
 0x2d8   : > { %v9188_v13 = vpop.permute.xlu0 %445  ;;  %3510 = vrot.lane.b32.xlu1 %v3499_v59, %s6697_s6  ;;  %v1073_v29 = vsel %vm895_vm5, %v12600_v18, %v1072_v39  ;;  %v12602_v59 = vrot.slane %v12601_v25, 3  ;;  %v12606_v39 = vld [vmem:[#allocation158_spill] sm:$0xff] }
 0x2d9   : > { %12594 = vst [vmem:[#allocation41_spill] sm:$0xff] %v9188_v13  ;;  %v3558_v18 = vmul.f32 %v12606_v39, %v9029_v49 }
 0x2da   : > { %3508 = vrot.lane.b32.xlu0 %v3497_v8, %s6697_s6  ;;  %v9194_v14 = vpop.permute.xlu1 %2894  ;;  %v1071_v5 = vsel %vm895_vm5, %v12602_v59, %v1070_v45  ;;  %v1074_v8 = vrot.slane %v1051_v0, 3  ;;  %v9224_v0 = vmul.f32 %v8887_v9, %v12597_v60 }
 0x2db   : > { %12596 = vst [vmem:[#allocation40_spill] sm:$0xff] %v9194_v14 }
 0x2dc   : > { %v9198_v26 = vpop.permute.xlu0 %449  ;;  %1090 = vrot.lane.b32.xlu1 %v1073_v29, %s6692_s24  ;;  %v12607_v29 = vld [vmem:[#allocation74_spill] sm:$0xff]  ;;  %12609 = vst [vmem:[#allocation158_spill] sm:$0xff] %v9224_v0  ;;  %v12015_v39 = vrot.slane %v9224_v0, 7 }
 0x2dd   : > { %12598 = vst [vmem:[#allocation333_spill] sm:$0xff] %v9198_v26  ;;  %v3559_v26 = vmul.f32 %v12604_v1, %v9203_v40  ;;  %v12608_v25 = vrot.slane %v12607_v29, 3  ;;  %v9235_v29 = vmul.f32 %v8831_v38, %v12604_v1  ;;  %v9251_v1 = vld [vmem:[#allocation6 + $0x50] sm:$0xff] }
 0x2de   : > { %1088 = vrot.lane.b32.xlu0 %v1071_v5, %s6692_s24  ;;  %v9210_v14 = vpop.permute.xlu1 %2898  ;;  %v3579_v43 = vsel %vm3252_vm8, %v3575_v57, %v12015_v39  ;;  %v3832_v60 = vrot.slane %v9251_v1, %v12618_v41 }
 0x2df   : > { %12603 = vst [vmem:[#allocation75_spill] sm:$0xff] %v9210_v14  ;;  %v1075_v45 = vsel %vm895_vm5, %v12608_v25, %v1074_v8  ;;  %v3577_v59 = vrot.slane %v3559_v26, 7  ;;  %v3576_v14 = vrot.slane %v3558_v18, 7  ;;  %12612 = vst [vmem:[#allocation335_spill] sm:$0xff] %v9235_v29  ;;  %v12613_v8 = vld [vmem:[#allocation79_spill] sm:$0xff]  ;;  %v12616_v26 = vld [vmem:[#allocation161_spill] sm:$0xff] }
 0x2e0   : > { %v9214_v24 = vpop.permute.xlu0 %2896  ;;  %3590 = vrot.lane.b32.xlu1 %v3575_v57, %s6698_s17  ;;  %v1130_v25 = vmul.f32 %v12613_v8, %v9105_v33  ;;  %v12020_v8 = vrot.slane %v9235_v29, 7 }
 0x2e1   : > { %12605 = vst [vmem:[#allocation73_spill] sm:$0xff] %v9214_v24 }
 0x2e2   : > { %1092 = vrot.lane.b32.xlu0 %v1075_v45, %s6692_s24  ;;  %v9227_v46 = vpop.permute.xlu1 %524  ;;  %v3583_v57 = vsel %vm3252_vm8, %v3577_v59, %v12020_v8  ;;  %v12630_v8 = vld [vmem:[#allocation171_spill] sm:$0xff] }
 0x2e3   : > { %12610 = vst [vmem:[#allocation74_spill] sm:$0xff] %v9227_v46 }
 0x2e4   : > { %v9229_v5 = vpop.permute.xlu0 %2900  ;;  %3594 = vrot.lane.b32.xlu1 %v3577_v59, %s6698_s17 }
 0x2e5   : > { %12611 = vst [vmem:[#allocation334_spill] sm:$0xff] %v9229_v5  ;;  %v12617_v5 = vrot.slane %v12616_v26, 7 }
 0x2e6   : > { %3592 = vrot.lane.b32.xlu0 %v3576_v14, %s6698_s17  ;;  %v9240_v45 = vpop.permute.xlu1 %528 }
 0x2e7   : > { %12614 = vst [vmem:[#allocation79_spill] sm:$0xff] %v9240_v45  ;;  %v3581_v18 = vsel %vm3252_vm8, %v3576_v14, %v12617_v5  ;;  %v1144_v45 = vrot.slane %v1130_v25, 3  ;;  %v12620_v14 = vld [vmem:[#allocation78_spill] sm:$0xff]  ;;  %v9271_v25 = vld [vmem:[#allocation6 + $0x58] sm:$0xff] }
 0x2e8   : > { %v9242_v24 = vpop.permute.xlu0 %526  ;;  %3598 = vrot.lane.b32.xlu1 %v3581_v18, %s6698_s17  ;;  %v1131_v5 = vmul.f32 %v12620_v14, %v9103_v7  ;;  %v12622_v18 = vld [vmem:[#allocation83_spill] sm:$0xff] }
 0x2e9   : > { %12615 = vst [vmem:[#allocation336_spill] sm:$0xff] %v9242_v24  ;;  %v12623_v39 = vrot.slane %v12622_v18, 3 }
 0x2ea   : > { %3596 = vrot.lane.b32.xlu0 %v3579_v43, %s6698_s17  ;;  %v9257_v30 = vpop.permute.xlu1 %2982  ;;  %v1146_v0 = vrot.slane %v1131_v5, 3 }
 0x2eb   : > { %12619 = vst [vmem:[#allocation161_spill] sm:$0xff] %v9257_v30  ;;  %v1145_v43 = vsel %vm895_vm5, %v12623_v39, %v1144_v45  ;;  %v3836_v30 = vrot.slane %v9271_v25, %v12618_v41  ;;  %v12628_v45 = vld [vmem:[#allocation82_spill] sm:$0xff]  ;;  %v3652_v41 = vmul.f32 %v12630_v8, %v9203_v40 }
 0x2ec   : > { %v9261_v26 = vpop.permute.xlu0 %2980  ;;  %3839 = vrot.lane.b32.xlu1 %v3832_v60, %s6697_s6 }
 0x2ed   : > { %12621 = vst [vmem:[#allocation78_spill] sm:$0xff] %v9261_v26  ;;  %v12625_v26 = vld [vmem:[#allocation172_spill] sm:$0xff] }
 0x2ee   : > { %3600 = vrot.lane.b32.xlu0 %v3583_v57, %s6698_s17  ;;  %v9275_v14 = vpop.permute.xlu1 %2986  ;;  %v3650_v60 = vmul.f32 %v12625_v26, %v9032_v17  ;;  %v12629_v57 = vrot.slane %v12628_v45, 3  ;;  %v3651_v17 = vmul.f32 %v8085_v20, %v9029_v49  ;;  %v12635_v45 = vld [vmem:[#allocation44_spill] sm:$0xff] }
 0x2ef   : > { %12624 = vst [vmem:[#allocation83_spill] sm:$0xff] %v9275_v14 }
 0x2f0   : > { %v9279_v29 = vpop.permute.xlu0 %2984  ;;  %1156 = vrot.lane.b32.xlu1 %v1145_v43, %s6697_s6  ;;  %v3668_v39 = vrot.slane %v3650_v60, 7  ;;  %v1147_v18 = vsel %vm895_vm5, %v12629_v57, %v1146_v0  ;;  %v3670_v43 = vrot.slane %v3652_v41, 7  ;;  %v3669_v60 = vrot.slane %v3651_v17, 7 }
 0x2f1   : > { %12626 = vst [vmem:[#allocation337_spill] sm:$0xff] %v9279_v29  ;;  %v1208_v57 = vmul.f32 %v12635_v45, %v9105_v33  ;;  %v9317_v41 = vmul.f32 %v8831_v38, %v12630_v8  ;;  %v12640_v45 = vld [vmem:[#allocation43_spill] sm:$0xff]  ;;  %v12645_v29 = vld [vmem:[#allocation86_spill] sm:$0xff] }
 0x2f2   : > { %3841 = vrot.lane.b32.xlu0 %v3836_v30, %s6697_s6  ;;  %v9283_v59 = vpop.permute.xlu1 %2990  ;;  %v9297_v30 = vmul.f32 %v8887_v9, %v12625_v26  ;;  %v1209_v32 = vmul.f32 %v12645_v29, %v9103_v7 }
 0x2f3   : > { %12627 = vst [vmem:[#allocation338_spill] sm:$0xff] %v9283_v59  ;;  %v9306_v59 = vld [vmem:[#allocation2 + $0xb0] sm:$0x3]  ;;  %12637 = vst [vmem:[#allocation342_spill] sm:$0xff] %v9317_v41  ;;  %v1229_v26 = vrot.slane %v1208_v57, 3  ;;  %v12037_v2 = vrot.slane %v9317_v41, 7 }
 0x2f4   : > { %v9290_v14 = vpop.permute.xlu0 %2988  ;;  %3683 = vrot.lane.b32.xlu1 %v3668_v39, %s6696_s7  ;;  %12632 = vst [vmem:[#allocation339_spill] sm:$0xff] %v9297_v30  ;;  %v12644_v34 = vrot.slane %v9297_v30, 7  ;;  %v1231_v29 = vrot.slane %v1209_v32, 3  ;;  %v12657_v32 = vld [vmem:[#allocation93_spill] sm:$0xff] }
 0x2f5   : > { %12631 = vst [vmem:[#allocation82_spill] sm:$0xff] %v9290_v14  ;;  %v1210_v14 = vmul.f32 %v12640_v45, %v9306_v59 }
 0x2f6   : > { %1158 = vrot.lane.b32.xlu0 %v1147_v18, %s6697_s6  ;;  %v9300_v5 = vpop.permute.xlu1 %3228  ;;  %v3672_v45 = vsel %vm3252_vm8, %v3668_v39, %v12644_v34 }
 0x2f7   : > { %12633 = vst [vmem:[#allocation340_spill] sm:$0xff] %v9300_v5 }
 0x2f8   : > { %v9302_v0 = vpop.permute.xlu0 %3226  ;;  %3687 = vrot.lane.b32.xlu1 %v3670_v43, %s6696_s7 }
 0x2f9   : > { %12634 = vst [vmem:[#allocation341_spill] sm:$0xff] %v9302_v0  ;;  %v9311_v20 = vsel %vm370_vm7, %v9302_v0, %v9300_v5  ;;  %v9328_v0 = vld [vmem:[#allocation2 + $0xc8] sm:$0x3f]  ;;  %v12643_v5 = vrot.slane %v8098_v12, 7 }
 0x2fa   : > { %12636 = vst [vmem:[#allocation44_spill] sm:$0xff] %v9311_v20  ;;  %v9321_v18 = vmul.f32 %v8831_v38, %v9311_v20  ;;  %3685 = vrot.lane.b32.xlu0 %v3669_v60, %s6696_s7  ;;  %v9324_v17 = vpop.permute.xlu1 %584  ;;  %12641 = vst [vmem:[#allocation43_spill] sm:$0xff] %v9328_v0  ;;  %v3241_v31 = vmul.f32 %v9311_v20, %v9328_v0  ;;  %v1233_v20 = vrot.slane %v1210_v14, 3 }
 0x2fb   : > { %12639 = vst [vmem:[#allocation344_spill] sm:$0xff] %v9324_v17  ;;  %v3674_v8 = vsel %vm3252_vm8, %v3669_v60, %v12643_v5  ;;  %v12648_v60 = vld [vmem:[#allocation89_spill] sm:$0xff] }
 0x2fc   : > { %12638 = vst [vmem:[#allocation343_spill] sm:$0xff] %v9321_v18  ;;  %v9331_v9 = vpop.permute.xlu0 %582  ;;  %3691 = vrot.lane.b32.xlu1 %v3674_v8, %s6696_s7  ;;  %v3264_v12 = vrot.slane %v3241_v31, 7  ;;  %v12649_v57 = vrot.slane %v12648_v60, 3  ;;  %v12650_v30 = vrot.slane %v9321_v18, 7  ;;  %v3676_v31 = vsel %vm3252_vm8, %v3670_v43, %v12037_v2 }
 0x2fd   : > { %12642 = vst [vmem:[#allocation345_spill] sm:$0xff] %v9331_v9  ;;  %v9376_v43 = vmul.f32 %v8951_v48, %v8159_v21 }
 0x2fe   : > { %3689 = vrot.lane.b32.xlu0 %v3672_v45, %s6696_s7  ;;  %v9346_v42 = vpop.permute.xlu1 %3075  ;;  %v1230_v8 = vsel %vm895_vm5, %v12649_v57, %v1229_v26  ;;  %v9356_v34 = vsel %vm3252_vm8, %v12650_v30, %v3264_v12  ;;  %v3746_v26 = vmul.f32 %v8166_v4, %v9203_v40  ;;  %v12654_v45 = vld [vmem:[#allocation92_spill] sm:$0xff]  ;;  %v3745_v12 = vmul.f32 %v8159_v21, %v9029_v49  ;;  %v3725_v4 = vld [vmem:[#allocation2 + $0x88] sm:$0xc0] }
 0x2ff   : > { %12646 = vst [vmem:[#allocation86_spill] sm:$0xff] %v9346_v42  ;;  %12651 = vst [vmem:[#allocation89_spill] sm:$0xff] %v9356_v34  ;;  %v12655_v60 = vrot.slane %v12654_v45, 3  ;;  %v12658_v57 = vrot.slane %v12657_v32, 3  ;;  %v12038_v49 = vrot.slane %v9376_v43, 7  ;;  %v3747_v48 = vmul.f32 %v8157_v62, %v3725_v4 }
 0x300   : > { %v9348_v5 = vpop.permute.xlu0 %3073  ;;  %1247 = vrot.lane.b32.xlu1 %v1230_v8, %s6698_s17  ;;  %12656 = vst [vmem:[#allocation92_spill] sm:$0xff] %v9376_v43  ;;  %v3763_v45 = vrot.slane %v3745_v12, 7  ;;  %v9483_v42 = vmul.f32 %v8831_v38, %v8275_v36 }
 0x301   : > { %12647 = vst [vmem:[#allocation346_spill] sm:$0xff] %v9348_v5  ;;  %v1234_v30 = vsel %vm895_vm5, %v12655_v60, %v1233_v20  ;;  %v1232_v8 = vsel %vm895_vm5, %v12658_v57, %v1231_v29  ;;  %v9391_v60 = vmul.f32 %v8157_v62, %v8590_v6  ;;  %v3765_v12 = vrot.slane %v3747_v48, 7  ;;  %v12664_v57 = vld [vmem:[#allocation101_spill] sm:$0xff]  ;;  %v12665_v6 = vld [vmem:[#allocation46_spill] sm:$0xff] }
 0x302   : > { %3693 = vrot.lane.b32.xlu0 %v3676_v31, %s6696_s7  ;;  %v9363_v39 = vpop.permute.xlu1 %3079  ;;  %v3764_v31 = vrot.slane %v3746_v26, 7  ;;  %v3767_v26 = vsel %vm3252_vm8, %v3763_v45, %v12038_v49  ;;  %v1301_v4 = vmul.f32 %v12665_v6, %v9105_v33  ;;  %v12668_v49 = vld [vmem:[#allocation48_spill] sm:$0xff]  ;;  %v12708_v41 = vrot.slane %v9483_v42, 2  ;;  %v12743_v33 = vld [vmem:[#allocation155_spill] sm:$0xff] }
 0x303   : > { %12652 = vst [vmem:[#allocation347_spill] sm:$0xff] %v9363_v39  ;;  %12661 = vst [vmem:[#allocation350_spill] sm:$0xff] %v9391_v60  ;;  %v12043_v32 = vrot.slane %v9391_v60, 7  ;;  %v1397_v18 = vmul.f32 %v12668_v49, %v9103_v7 }
 0x304   : > { %v9367_v14 = vpop.permute.xlu0 %3077  ;;  %1251 = vrot.lane.b32.xlu1 %v1234_v30, %s6698_s17  ;;  %v1322_v6 = vrot.slane %v1301_v4, 3 }
 0x305   : > { %12653 = vst [vmem:[#allocation348_spill] sm:$0xff] %v9367_v14  ;;  %v1418_v49 = vrot.slane %v1397_v18, 3  ;;  %v9485_v14 = vld [vmem:[#allocation2 + $0xa8] sm:$0xfe] }
 0x306   : > { %1249 = vrot.lane.b32.xlu0 %v1232_v8, %s6698_s17  ;;  %v9383_v40 = vpop.permute.xlu1 %3083  ;;  %v1302_v8 = vmul.f32 %v12664_v57, %v9103_v7 }
 0x307   : > { %12659 = vst [vmem:[#allocation93_spill] sm:$0xff] %v9383_v40  ;;  %v12670_v40 = vld [vmem:[#allocation45_spill] sm:$0xff] }
 0x308   : > { %v9385_v20 = vpop.permute.xlu0 %3081  ;;  %3780 = vrot.lane.b32.xlu1 %v3764_v31, %s6695_s15  ;;  %v1324_v48 = vrot.slane %v1302_v8, 3  ;;  %v1303_v39 = vmul.f32 %v12670_v40, %v9306_v59  ;;  %v12673_v8 = vld [vmem:[#allocation110_spill] sm:$0xff] }
 0x309   : > { %12660 = vst [vmem:[#allocation349_spill] sm:$0xff] %v9385_v20  ;;  %v1372_v20 = vld [vmem:[#allocation2 + $0xb8] sm:$0x3] }
 0x30a   : > { %3778 = vrot.lane.b32.xlu0 %v3763_v45, %s6695_s15  ;;  %v9395_v29 = vpop.permute.xlu1 %661  ;;  %v3771_v45 = vsel %vm3252_vm8, %v3765_v12, %v12043_v32  ;;  %v12674_v32 = vrot.slane %v12673_v8, 3 }
 0x30b   : > { %12662 = vst [vmem:[#allocation351_spill] sm:$0xff] %v9395_v29 }
 0x30c   : > { %v9397_v30 = vpop.permute.xlu0 %659  ;;  %3784 = vrot.lane.b32.xlu1 %v3767_v26, %s6695_s15  ;;  %v12669_v26 = vrot.slane %v8182_v61, 7  ;;  %v1325_v7 = vsel %vm895_vm5, %v12674_v32, %v1324_v48 }
 0x30d   : > { %12663 = vst [vmem:[#allocation352_spill] sm:$0xff] %v9397_v30 }
 0x30e   : > { %3782 = vrot.lane.b32.xlu0 %v3765_v12, %s6695_s15  ;;  %v9409_v2 = vpop.permute.xlu1 %3168  ;;  %v3769_v57 = vsel %vm3252_vm8, %v3764_v31, %v12669_v26  ;;  %v12676_v31 = vld [vmem:[#allocation104_spill] sm:$0xff]  ;;  %v1326_v26 = vrot.slane %v1303_v39, 3 }
 0x30f   : > { %12666 = vst [vmem:[#allocation101_spill] sm:$0xff] %v9409_v2  ;;  %v12677_v4 = vrot.slane %v12676_v31, 3  ;;  %v12685_v39 = vld [vmem:[#allocation108_spill] sm:$0xff] }
 0x310   : > { %v9411_v34 = vpop.permute.xlu0 %663  ;;  %3788 = vrot.lane.b32.xlu1 %v3771_v45, %s6695_s15  ;;  %v12675_v45 = vld [vmem:[#allocation47_spill] sm:$0xff]  ;;  %v12686_v31 = vrot.slane %v12685_v39, 3 }
 0x311   : > { %12667 = vst [vmem:[#allocation46_spill] sm:$0xff] %v9411_v34  ;;  %v1399_v61 = vmul.f32 %v12675_v45, %v1372_v20  ;;  %v1323_v40 = vsel %vm895_vm5, %v12677_v4, %v1322_v6  ;;  %v12683_v20 = vld [vmem:[#allocation120_spill] sm:$0xff]  ;;  %v9450_v6 = vld [vmem:[#allocation2 + $0xa0] sm:$0xfe] }
 0x312   : > { %3786 = vrot.lane.b32.xlu0 %v3769_v57, %s6695_s15  ;;  %v9425_v2 = vpop.permute.xlu1 %3172  ;;  %v12678_v57 = vld [vmem:[#allocation117_spill] sm:$0xff]  ;;  %v12684_v48 = vrot.slane %v12683_v20, 3  ;;  %v1327_v4 = vsel %vm895_vm5, %v12686_v31, %v1326_v26  ;;  %v9472_v26 = vmul.f32 %v8303_v16, %v9450_v6  ;;  %v12690_v31 = vld [vmem:[#allocation123_spill] sm:$0xff]  ;;  %v588_v16 = vsel %vm370_vm7, %v9331_v9, %v9324_v17 }
 0x313   : > { %12671 = vst [vmem:[#allocation48_spill] sm:$0xff] %v9425_v2  ;;  %v1398_v5 = vmul.f32 %v12678_v57, %v9306_v59  ;;  %v12680_v2 = vld [vmem:[#allocation71_spill] sm:$0xff]  ;;  %v1422_v45 = vrot.slane %v1399_v61, 3  ;;  %v456_v59 = vsel %vm451_vm2, %v9188_v13, %v9183_v54  ;;  %v9459_v57 = vld [vmem:[#allocation2 + $0x98] sm:$0xfe]  ;;  %v9517_v9 = vmul.f32 %v8831_v38, %v8271_v63 }
 0x314   : > { %v9427_v12 = vpop.permute.xlu0 %3170  ;;  %1342 = vrot.lane.b32.xlu1 %v1325_v7, %s6696_s7  ;;  %v1419_v7 = vsel %vm895_vm5, %v12684_v48, %v1418_v49  ;;  %v353_v49 = vld [vmem:[#allocation2 + $0x60] sm:$0x7f]  ;;  %v534_v48 = vsel %vm410_vm1, %v9227_v46, %v9242_v24  ;;  %12692 = vst [vmem:[#allocation71_spill] sm:$0xff] %v9483_v42  ;;  %v6457_v54 = vld [vmem:[#allocation2 + $0x10] sm:$0x80]  ;;  %v12704_v46 = vld [vmem:[#allocation87_spill] sm:$0xff] }
 0x315   : > { %12672 = vst [vmem:[#allocation45_spill] sm:$0xff] %v9427_v12  ;;  %v12679_v12 = vld [vmem:[#allocation70_spill] sm:$0xff] }
 0x316   : > { %1340 = vrot.lane.b32.xlu0 %v1323_v40, %s6696_s7  ;;  %v371_v8 = vsel %vm370_vm7, %v12680_v2, %v12679_v12  ;;  %v9443_v32 = vpop.permute.xlu1 %3176  ;;  %v1420_v40 = vrot.slane %v1398_v5, 3  ;;  %v9463_v61 = vld [vmem:[#allocation2 + $0xa0] sm:$0x1f] }
 0x317   : > { %12681 = vst [vmem:[#allocation110_spill] sm:$0xff] %v9443_v32  ;;  %v382_v20 = vmul.f32 %v371_v8, %v8739_v28  ;;  %12687 = vst [vmem:[#allocation104_spill] sm:$0xff] %v9463_v61  ;;  %v12691_v28 = vrot.slane %v12690_v31, 3  ;;  %v3920_v32 = vmul.f32 %v8275_v36, %v9459_v57  ;;  %v378_v31 = vmul.f32 %v8831_v38, %v12680_v2 }
 0x318   : > { %v9445_v18 = vpop.permute.xlu0 %3174  ;;  %1436 = vrot.lane.b32.xlu1 %v1419_v7, %s6695_s15 }
 0x319   : > { %12682 = vst [vmem:[#allocation47_spill] sm:$0xff] %v9445_v18  ;;  %v347_v18 = vld [vmem:[#allocation2] sm:$0x80]  ;;  %v474_v5 = vadd.f32 %v456_v59, %v382_v20  ;;  %v12693_v59 = vld [vmem:[#allocation124_spill] sm:$0xff] }
 0x31a   : > { %1344 = vrot.lane.b32.xlu0 %v1327_v4, %s6696_s7  ;;  %v9468_v7 = vpop.permute.xlu1 %739  ;;  %v1423_v4 = vsel %vm895_vm5, %v12691_v28, %v1422_v45  ;;  %v375_v34 = vmul.f32 %v12680_v2, %v347_v18  ;;  %v12694_v45 = vrot.slane %v12693_v59, 3  ;;  %v9498_v28 = vmul.f32 %v12680_v2, %v353_v49  ;;  %v12696_v18 = vld [vmem:[#allocation131_spill] sm:$0xff]  ;;  %v12698_v2 = vld [vmem:[#allocation50_spill] sm:$0xff]  ;;  %12700 = vst [vmem:[#allocation124_spill] sm:$0xff] %v9517_v9 }
 0x31b   : > { %12688 = vst [vmem:[#allocation117_spill] sm:$0xff] %v9468_v7  ;;  %v1569_v24 = vmul.f32 %v12696_v18, %v9463_v61  ;;  %v3922_v59 = vmul.f32 %v8271_v63, %v9485_v14  ;;  %v12706_v63 = vld [vmem:[#allocation49_spill] sm:$0xff] }
 0x31c   : > { %v9474_v39 = vpop.permute.xlu0 %3178  ;;  %1440 = vrot.lane.b32.xlu1 %v1423_v4, %s6695_s15  ;;  %v1421_v20 = vsel %vm895_vm5, %v12694_v45, %v1420_v40  ;;  %12695 = vst [vmem:[#allocation120_spill] sm:$0xff] %v9498_v28  ;;  %v670_v4 = vsel %vm665_vm13, %v9397_v30, %v9395_v29  ;;  %v3939_v40 = vrot.slane %v9472_v26, 2  ;;  %v6455_v45 = vld [vmem:[#allocation2 + $0x98] sm:$0x1f]  ;;  %v9519_v29 = vld [vmem:[#allocation2 + $0xa8] sm:$0x1f]  ;;  %v9524_v30 = vmul.f32 %v8831_v38, %v371_v8 }
 0x31d   : > { %12689 = vst [vmem:[#allocation70_spill] sm:$0xff] %v9474_v39  ;;  %v552_v39 = vadd.f32 %v534_v48, %v474_v5  ;;  %v1568_v49 = vmul.f32 %v6455_v45, %v12698_v2  ;;  %v12702_v2 = vld [vmem:[#allocation85_spill] sm:$0xff]  ;;  %v1591_v13 = vrot.slane %v1569_v24, 6  ;;  %v1570_v36 = vmul.f32 %v12706_v63, %v9519_v29 }
 0x31e   : > { %1438 = vrot.lane.b32.xlu0 %v1421_v20, %s6695_s15  ;;  %v9506_v17 = vpop.permute.xlu1 %743  ;;  %v3938_v20 = vrot.slane %v3920_v32, 2 }
 0x31f   : > { %12697 = vst [vmem:[#allocation108_spill] sm:$0xff] %v9506_v17  ;;  %v605_v48 = vadd.f32 %v588_v16, %v552_v39  ;;  %v6456_v17 = vld [vmem:[#allocation2 + $0x8] sm:$0x80]  ;;  %v9527_v39 = vmul.f32 %v6457_v54, %v12679_v12  ;;  %v12701_v16 = vld [vmem:[#allocation84_spill] sm:$0xff]  ;;  %v1589_v28 = vrot.slane %v1568_v49, 6 }
 0x320   : > { %v9512_v5 = vpop.permute.xlu0 %741  ;;  %v9521_v26 = vmul.f32 %v6456_v17, %v371_v8  ;;  %3955 = vrot.lane.b32.xlu1 %v3939_v40, %s6693_s26  ;;  %v9536_v18 = vsel %vm370_vm7, %v12702_v2, %v12701_v16  ;;  %v9540_v17 = vmul.f32 %v8831_v38, %v12679_v12  ;;  %v9544_v8 = vmul.f32 %v12679_v12, %v8737_v23  ;;  %v12710_v49 = vld [vmem:[#allocation52_spill] sm:$0xff] }
 0x321   : > { %12699 = vst [vmem:[#allocation123_spill] sm:$0xff] %v9512_v5  ;;  %v749_v32 = vsel %vm292_vm0, %v9468_v7, %v9512_v5  ;;  %v688_v54 = vadd.f32 %v670_v4, %v605_v48  ;;  %v9548_v5 = vadd.f32 %v12704_v46, %v378_v31  ;;  %v3942_v23 = vsel %vm3865_vm11, %v3938_v20, %v12708_v41  ;;  %v12709_v48 = vld [vmem:[#allocation88_spill] sm:$0xff]  ;;  %v12712_v41 = vld [vmem:[#allocation147_spill] sm:$0xff] }
 0x322   : > { %12703 = vst [vmem:[#allocation131_spill] sm:$0xff] %v9544_v8  ;;  %3953 = vrot.lane.b32.xlu0 %v3938_v20, %s6693_s26  ;;  %v9550_v7 = vpop.permute.xlu1 %822  ;;  %v3940_v12 = vrot.slane %v3922_v59, 2  ;;  %v467_v31 = vadd.f32 %v12709_v48, %v375_v34  ;;  %v1661_v63 = vmul.f32 %v6455_v45, %v12710_v49  ;;  %v1662_v59 = vmul.f32 %v12712_v41, %v9463_v61  ;;  %v12713_v20 = vld [vmem:[#allocation55_spill] sm:$0xff] }
 0x323   : > { %12705 = vst [vmem:[#allocation50_spill] sm:$0xff] %v9550_v7  ;;  %v767_v60 = vadd.f32 %v749_v32, %v688_v54  ;;  %v12711_v32 = vld [vmem:[#allocation51_spill] sm:$0xff]  ;;  %v1820_v34 = vmul.f32 %v8066_v19, %v9519_v29  ;;  %v1819_v4 = vmul.f32 %v12713_v20, %v9463_v61  ;;  %v9579_v45 = vmul.f32 %v8398_v37, %v9450_v6 }
 0x324   : > { %v9554_v43 = vpop.permute.xlu0 %820  ;;  %3959 = vrot.lane.b32.xlu1 %v3942_v23, %s6693_s26  ;;  %v1663_v54 = vmul.f32 %v12711_v32, %v9519_v29  ;;  %v12715_v23 = vld [vmem:[#allocation140_spill] sm:$0xff]  ;;  %v12717_v49 = vld [vmem:[#allocation135_spill] sm:$0xff]  ;;  %v1593_v19 = vrot.slane %v1570_v36, 6 }
 0x325   : > { %12707 = vst [vmem:[#allocation84_spill] sm:$0xff] %v9554_v43  ;;  %v830_v24 = vsel %vm704_vm4, %v9554_v43, %v9550_v7  ;;  %v1794_v7 = vld [vmem:[#allocation2 + $0xb0] sm:$0x1f]  ;;  %v12718_v32 = vrot.slane %v12717_v49, 6  ;;  %v12726_v49 = vld [vmem:[#allocation54_spill] sm:$0xff] }
 0x326   : > { %v848_v8 = vadd.f32 %v830_v24, %v767_v60  ;;  %3957 = vrot.lane.b32.xlu0 %v3940_v12, %s6693_s26  ;;  %v9575_v42 = vpop.permute.xlu1 %3339  ;;  %v12716_v60 = vrot.slane %v12715_v23, 6  ;;  %v12719_v43 = vld [vmem:[#allocation132_spill] sm:$0xff]  ;;  %v4013_v23 = vmul.f32 %v8392_v55, %v9459_v57  ;;  %v12727_v57 = vld [vmem:[#allocation57_spill] sm:$0xff] }
 0x327   : > { %12714 = vst [vmem:[#allocation85_spill] sm:$0xff] %v9575_v42  ;;  %v9589_v41 = vsel %vm1508_vm9, %v12718_v32, %v1589_v28  ;;  %v12722_v42 = vrot.slane %v9517_v9, 2  ;;  %v12724_v28 = vld [vmem:[#allocation215_spill] sm:$0xff]  ;;  %v1821_v32 = vmul.f32 %v12726_v49, %v1794_v7 }
 0x328   : > { %v9584_v24 = vsel %vm1508_vm9, %v12716_v60, %v1591_v13  ;;  %v9592_v20 = vadd.f32 %v12719_v43, %v848_v8  ;;  %v9594_v62 = vpop.permute.xlu0 %824  ;;  %v9603_v13 = vmul.f32 %v8831_v38, %v8392_v55  ;;  %v12725_v36 = vrot.slane %v12724_v28, 2  ;;  %v12729_v55 = vld [vmem:[#allocation56_spill] sm:$0xff] }
 0x329   : > { %12721 = vst [vmem:[#allocation49_spill] sm:$0xff] %v9594_v62  ;;  %v3946_v37 = vsel %vm3865_vm11, %v3940_v12, %v12722_v42  ;;  %v1682_v8 = vrot.slane %v1661_v63, 6  ;;  %v1686_v60 = vrot.slane %v1663_v54, 6  ;;  %v1684_v42 = vrot.slane %v1662_v59, 6  ;;  %v12731_v54 = vld [vmem:[#allocation193_spill] sm:$0xff]  ;;  %v12740_v59 = vld [vmem:[#allocation154_spill] sm:$0xff] }
 0x32a   : > { %12720 = vst [vmem:[#allocation87_spill] sm:$0xff] %v9592_v20  ;;  %12723 = vst [vmem:[#allocation88_spill] sm:$0xff] %v9603_v13  ;;  %3963 = vrot.lane.b32.xlu1 %v3946_v37, %s6693_s26  ;;  %v3944_v43 = vsel %vm3865_vm11, %v3939_v40, %v12725_v36  ;;  %v1842_v12 = vrot.slane %v1820_v34, 6  ;;  %v1840_v20 = vrot.slane %v1819_v4, 6  ;;  %v1912_v62 = vmul.f32 %v12727_v57, %v9463_v61  ;;  %v9613_v9 = vpop.permute.xlu1 %3343  ;;  %v12730_v40 = vld [vmem:[#allocation183_spill] sm:$0xff]  ;;  %v12733_v4 = vld [vmem:[#allocation225_spill] sm:$0xff] }
 0x32b   : > { %3961 = vrot.lane.b32.xlu0 %v3944_v43, %s6693_s26  ;;  %12728 = vst [vmem:[#allocation52_spill] sm:$0xff] %v9613_v9  ;;  %v4032_v37 = vrot.slane %v9579_v45, 2  ;;  %v1914_v28 = vmul.f32 %v12729_v55, %v1794_v7  ;;  %v1913_v63 = vmul.f32 %v12730_v40, %v9519_v29  ;;  %v2008_v36 = vmul.f32 %v12731_v54, %v1794_v7  ;;  %v1982_v45 = vld [vmem:[#allocation2 + $0xb8] sm:$0x1f]  ;;  %v12735_v55 = vld [vmem:[#allocation138_spill] sm:$0xff]  ;;  %v12737_v7 = vld [vmem:[#allocation151_spill] sm:$0xff] }
 0x32c   : > { %v9620_v49 = vpop.permute.xlu0 %3341  ;;  %v4031_v43 = vrot.slane %v4013_v23, 2  ;;  %v4015_v34 = vmul.f32 %v12733_v4, %v9485_v14  ;;  %v9627_v57 = vmul.f32 %v8831_v38, %v12733_v4  ;;  %v12736_v9 = vrot.slane %v12735_v55, 6  ;;  %v12742_v61 = vld [vmem:[#allocation95_spill] sm:$0xff] }
 0x32d   : > { %12732 = vst [vmem:[#allocation51_spill] sm:$0xff] %v9620_v49  ;;  %v12738_v54 = vrot.slane %v12737_v7, 6  ;;  %v12741_v49 = vrot.slane %v12740_v59, 6  ;;  %v1844_v4 = vrot.slane %v1821_v32, 6  ;;  %v545_v0 = vadd.f32 %v12742_v61, %v467_v31  ;;  %v12746_v7 = vld [vmem:[#allocation59_spill] sm:$0xff] }
 0x32e   : > { %12734 = vst [vmem:[#allocation147_spill] sm:$0xff] %v9627_v57  ;;  %4048 = vrot.lane.b32.xlu1 %v4032_v37, %s6692_s24  ;;  %v9633_v40 = vsel %vm1508_vm9, %v12736_v9, %v1593_v19  ;;  %v12744_v55 = vrot.slane %v12743_v33, 6  ;;  %v1933_v19 = vrot.slane %v1912_v62, 6  ;;  %v1937_v59 = vrot.slane %v1914_v28, 6  ;;  %v12752_v28 = vld [vmem:[#allocation19_spill] sm:$0xff]  ;;  %v12760_v62 = vld [vmem:[#allocation186_spill] sm:$0xff] }
 0x32f   : > { %v9638_v23 = vsel %vm1508_vm9, %v12738_v54, %v1682_v8  ;;  %v9643_v21 = vsel %vm1508_vm9, %v12741_v49, %v1686_v60  ;;  %4046 = vrot.lane.b32.xlu0 %v4031_v43, %s6692_s24  ;;  %v2007_v8 = vmul.f32 %v12746_v7, %v9519_v29  ;;  %v9654_v54 = vpop.permute.xlu1 %3347  ;;  %v12748_v60 = vld [vmem:[#allocation58_spill] sm:$0xff]  ;;  %v2702_v31 = vmul.f32 %v7411_v10, %v8995_v27  ;;  %v12754_v10 = vld [vmem:[#allocation177_spill] sm:$0xff] }
 0x330   : > { %12739 = vst [vmem:[#allocation55_spill] sm:$0xff] %v9638_v23  ;;  %v9650_v9 = vsel %vm1508_vm9, %v12744_v55, %v1684_v42  ;;  %12747 = vst [vmem:[#allocation135_spill] sm:$0xff] %v9654_v54  ;;  %v1935_v23 = vrot.slane %v1913_v63, 6  ;;  %v2009_v49 = vmul.f32 %v12748_v60, %v1982_v45  ;;  %v9659_v32 = vpop.permute.xlu0 %3345  ;;  %v12750_v33 = vrot.slane %v9603_v13, 2  ;;  %v12751_v7 = vld [vmem:[#allocation94_spill] sm:$0xff]  ;;  %v12874_v13 = vld [vmem:[#allocation149_spill] sm:$0xff] }
 0x331   : > { %12745 = vst [vmem:[#allocation140_spill] sm:$0xff] %v9650_v9  ;;  %12749 = vst [vmem:[#allocation132_spill] sm:$0xff] %v9659_v32  ;;  %v4033_v55 = vrot.slane %v4015_v34, 2  ;;  %v2030_v9 = vrot.slane %v2008_v36, 6  ;;  %v9667_v54 = vadd.f32 %v12751_v7, %v9548_v5  ;;  %v9672_v63 = vrot.slane %v9251_v1, %v12752_v28  ;;  %v12758_v5 = vld [vmem:[#allocation176_spill] sm:$0xff] }
 0x332   : > { %v4035_v42 = vsel %vm3865_vm11, %v4031_v43, %v12750_v33  ;;  %v12755_v45 = vrot.slane %v12754_v10, 6  ;;  %v12756_v43 = vld [vmem:[#allocation173_spill] sm:$0xff]  ;;  %v9685_v36 = vadd.f32 %v12702_v2, %v545_v0  ;;  %v12761_v10 = vrot.slane %v12760_v62, 6 }
 0x333   : > { %4052 = vrot.lane.b32.xlu1 %v4035_v42, %s6692_s24  ;;  %12753 = vst [vmem:[#allocation215_spill] sm:$0xff] %v9672_v63  ;;  %v12757_v34 = vrot.slane %v12756_v43, 6  ;;  %4050 = vrot.lane.b32.xlu0 %v4033_v55, %s6692_s24  ;;  %v12759_v42 = vrot.slane %v12758_v5, 6  ;;  %v9698_v43 = vpop.permute.xlu1 %3432  ;;  %v2032_v2 = vrot.slane %v2009_v49, 6  ;;  %v2723_v32 = vrot.slane %v2702_v31, 4  ;;  %v12770_v49 = vld [vmem:[#allocation201_spill] sm:$0xff] }
 0x334   : > { %v9677_v60 = vsel %vm1508_vm9, %v12755_v45, %v1842_v12  ;;  %v9696_v12 = vsel %vm1508_vm9, %v12761_v10, %v1933_v19  ;;  %v2028_v45 = vrot.slane %v2007_v8, 6  ;;  %12762 = vst [vmem:[#allocation54_spill] sm:$0xff] %v9698_v43  ;;  %v2795_v5 = vmul.f32 %v7428_v47, %v8995_v27  ;;  %v12768_v10 = vld [vmem:[#allocation190_spill] sm:$0xff]  ;;  %v12772_v47 = vld [vmem:[#allocation91_spill] sm:$0xff] }
 0x335   : > { %v9682_v33 = vsel %vm1508_vm9, %v12757_v34, %v1840_v20  ;;  %v9691_v1 = vsel %vm1508_vm9, %v12759_v42, %v1844_v4  ;;  %v12763_v20 = vld [vmem:[#allocation189_spill] sm:$0xff]  ;;  %v12765_v4 = vld [vmem:[#allocation98_spill] sm:$0xff]  ;;  %v9710_v42 = vpop.permute.xlu0 %3349  ;;  %v12767_v19 = vrot.slane %v9627_v57, 2  ;;  %v12771_v31 = vrot.slane %v12770_v49, 6  ;;  %v12781_v49 = vld [vmem:[#allocation200_spill] sm:$0xff] }
 0x336   : > { %v12764_v34 = vrot.slane %v12763_v20, 6  ;;  %v452_v62 = vsel %vm451_vm2, %v12709_v48, %v12765_v4  ;;  %12766 = vst [vmem:[#allocation57_spill] sm:$0xff] %v9710_v42  ;;  %v12769_v20 = vrot.slane %v12768_v10, 6  ;;  %v453_v27 = vsel %vm451_vm2, %v12765_v4, %v12772_v47  ;;  %v12773_v48 = vld [vmem:[#allocation99_spill] sm:$0xff]  ;;  %v12775_v10 = vld [vmem:[#allocation90_spill] sm:$0xff] }
 0x337   : > { %v4039_v8 = vsel %vm3865_vm11, %v4033_v55, %v12767_v19  ;;  %v454_v43 = vsel %vm451_vm2, %v12704_v46, %v12773_v48  ;;  %v12774_v55 = vrot.slane %v8410_v35, 2  ;;  %v4096_v19 = vmul.f32 %v9672_v63, %v9450_v6  ;;  %v12778_v35 = vld [vmem:[#allocation197_spill] sm:$0xff]  ;;  %v12860_v57 = vld [vmem:[#allocation146_spill] sm:$0xff] }
 0x338   : > { %v9703_v0 = vsel %vm1508_vm9, %v12764_v34, %v1937_v59  ;;  %v9718_v59 = vsel %vm1508_vm9, %v12769_v20, %v1935_v23  ;;  %v9723_v34 = vsel %vm1508_vm9, %v12771_v31, %v2030_v9  ;;  %4056 = vrot.lane.b32.xlu1 %v4039_v8, %s6692_s24  ;;  %v455_v9 = vsel %vm451_vm2, %v12773_v48, %v12775_v10  ;;  %v9754_v20 = vpop.permute.xlu1 %3436 }
 0x339   : > { %v4037_v23 = vsel %vm3865_vm11, %v4032_v37, %v12774_v55  ;;  %v9743_v4 = vmul.f32 %v8831_v38, %v9672_v63  ;;  %v9747_v46 = vrot.slane %v9271_v25, %v12752_v28  ;;  %v12779_v8 = vrot.slane %v12778_v35, 6  ;;  %12780 = vst [vmem:[#allocation193_spill] sm:$0xff] %v9754_v20  ;;  %v6458_v25 = vld [vmem:[#allocation2 + $0xd8] sm:$0x7] }
 0x33a   : > { %4054 = vrot.lane.b32.xlu0 %v4037_v23, %s6692_s24  ;;  %v12782_v31 = vrot.slane %v12781_v49, 6  ;;  %v12783_v48 = vrot.slane %v8648_v44, 4  ;;  %v2816_v55 = vrot.slane %v2795_v5, 4  ;;  %v2704_v23 = vmul.f32 %v6458_v25, %v12454_v50  ;;  %v12786_v44 = vld [vmem:[#allocation102_spill] sm:$0xff]  ;;  %v6459_v5 = vld [vmem:[#allocation2 + $0xd0] sm:$0x7] }
 0x33b   : > { %12776 = vst [vmem:[#allocation56_spill] sm:$0xff] %v9743_v4  ;;  %12777 = vst [vmem:[#allocation183_spill] sm:$0xff] %v9747_v46  ;;  %v9752_v37 = vsel %vm1508_vm9, %v12779_v8, %v2028_v45  ;;  %v468_v10 = vadd.f32 %v452_v62, %v9521_v26  ;;  %v469_v45 = vadd.f32 %v453_v27, %v9527_v39  ;;  %v9770_v8 = vpop.permute.xlu0 %3434  ;;  %v4108_v50 = vrot.slane %v4096_v19, 2  ;;  %v12787_v39 = vld [vmem:[#allocation97_spill] sm:$0xff]  ;;  %v12789_v62 = vld [vmem:[#allocation103_spill] sm:$0xff] }
 0x33c   : > { %v9759_v47 = vsel %vm1508_vm9, %v12782_v31, %v2032_v2  ;;  %v9764_v38 = vsel %vm2642_vm6, %v12783_v48, %v2723_v32  ;;  %v471_v35 = vadd.f32 %v454_v43, %v9524_v30  ;;  %12785 = vst [vmem:[#allocation151_spill] sm:$0xff] %v9770_v8  ;;  %v2797_v2 = vmul.f32 %v6458_v25, %v12462_v52  ;;  %v12788_v43 = vld [vmem:[#allocation96_spill] sm:$0xff]  ;;  %v9793_v27 = vld [vmem:[#allocation2 + $0x18] sm:$0xff]  ;;  %v6461_v31 = vld [vmem:[#allocation2 + $0xe0] sm:$0x7] }
 0x33d   : > { %12784 = vst [vmem:[#allocation138_spill] sm:$0xff] %v9764_v38  ;;  %v472_v49 = vadd.f32 %v455_v9, %v9540_v17  ;;  %v530_v32 = vsel %vm410_vm1, %v12742_v61, %v12786_v44  ;;  %1609 = vrot.lane.b32.xlu1 %v9584_v24, %s6693_s26  ;;  %v2953_v26 = vmul.f32 %v6459_v5, %v7467_v58  ;;  %v9791_v24 = vpop.permute.xlu1 %3440  ;;  %v12792_v19 = vrot.slane %v8696_v3, 4  ;;  %v12846_v8 = vld [vmem:[#allocation237_spill] sm:$0xff] }
 0x33e   : > { %v531_v30 = vsel %vm410_vm1, %v12786_v44, %v12787_v39  ;;  %v533_v52 = vsel %vm410_vm1, %v12789_v62, %v12788_v43  ;;  %1607 = vrot.lane.b32.xlu0 %v9589_v41, %s6693_s26  ;;  %v4097_v17 = vmul.f32 %v9747_v46, %v9485_v14  ;;  %12790 = vst [vmem:[#allocation154_spill] sm:$0xff] %v9791_v24  ;;  %v3116_v44 = vld [vmem:[#allocation2 + $0xe8] sm:$0x7]  ;;  %v2727_v61 = vrot.slane %v2704_v23, 4  ;;  %v12843_v24 = vld [vmem:[#allocation130_spill] sm:$0xff] }
 0x33f   : > { %v9797_v58 = vmul.f32 %v9793_v27, %v9747_v46  ;;  %v9802_v9 = vsel %vm2642_vm6, %v12792_v19, %v2816_v55  ;;  %v3046_v41 = vmul.f32 %v6459_v5, %v12505_v56  ;;  %v2955_v48 = vmul.f32 %v6461_v31, %v7465_v51  ;;  %v9809_v43 = vpop.permute.xlu0 %3438 }
 0x340   : > { %12793 = vst [vmem:[#allocation155_spill] sm:$0xff] %v9802_v9  ;;  %v532_v39 = vsel %vm410_vm1, %v12751_v7, %v12789_v62  ;;  %12794 = vst [vmem:[#allocation59_spill] sm:$0xff] %v9809_v43  ;;  %v2820_v28 = vrot.slane %v2797_v2, 4  ;;  %v3048_v63 = vmul.f32 %v6461_v31, %v12509_v22  ;;  %v546_v3 = vadd.f32 %v530_v32, %v468_v10  ;;  %v12796_v2 = vld [vmem:[#allocation106_spill] sm:$0xff]  ;;  %v12797_v22 = vld [vmem:[#allocation107_spill] sm:$0xff] }
 0x341   : > { %12791 = vst [vmem:[#allocation95_spill] sm:$0xff] %v9797_v58  ;;  %v547_v46 = vadd.f32 %v531_v30, %v469_v45  ;;  %v550_v55 = vadd.f32 %v533_v52, %v472_v49  ;;  %4118 = vrot.lane.b32.xlu1 %v4108_v50, %s6697_s6  ;;  %v2974_v56 = vrot.slane %v2953_v26, 4  ;;  %v12795_v51 = vrot.slane %v9743_v4, 2  ;;  %v9823_v45 = vpop.permute.xlu1 %995  ;;  %v12840_v43 = vld [vmem:[#allocation140_spill] sm:$0xff] }
 0x342   : > { %1611 = vrot.lane.b32.xlu0 %v9633_v40, %s6693_s26  ;;  %v4109_v7 = vrot.slane %v4097_v17, 2  ;;  %v3141_v62 = vmul.f32 %v6458_v25, %v12518_v11  ;;  %v3143_v23 = vmul.f32 %v12522_v15, %v3116_v44  ;;  %v587_v10 = vsel %vm370_vm7, %v12797_v22, %v12796_v2  ;;  %v12801_v11 = vld [vmem:[#allocation69_spill] sm:$0xff] }
 0x343   : > { %v4111_v5 = vsel %vm3865_vm11, %v4108_v50, %v12795_v51  ;;  %v12085_v49 = vrot.slane %v9797_v58, 2  ;;  %v3067_v32 = vrot.slane %v3046_v41, 4  ;;  %v2978_v26 = vrot.slane %v2955_v48, 4  ;;  %v9826_v30 = vpop.permute.xlu0 %3442  ;;  %v12804_v41 = vld [vmem:[#allocation111_spill] sm:$0xff]  ;;  %v12805_v48 = vld [vmem:[#allocation112_spill] sm:$0xff]  ;;  %v12806_v51 = vld [vmem:[#allocation37_spill] sm:$0xff] }
 0x344   : > { %v549_v40 = vadd.f32 %v532_v39, %v471_v35  ;;  %12798 = vst [vmem:[#allocation58_spill] sm:$0xff] %v9826_v30  ;;  %v12799_v50 = vrot.slane %v8670_v53, 4  ;;  %v12802_v15 = vrot.slane %v12801_v11, 4  ;;  %v3071_v17 = vrot.slane %v3048_v63, 4  ;;  %v850_v39 = vld [vmem:[#allocation2 + $0x30] sm:$0xfc] }
 0x345   : > { %v599_v19 = vadd.f32 %v9536_v18, %v546_v3  ;;  %v603_v31 = vadd.f32 %v12796_v2, %v550_v55  ;;  %v666_v35 = vsel %vm665_vm13, %v12805_v48, %v12804_v41  ;;  %v600_v44 = vadd.f32 %v12701_v16, %v547_v46  ;;  %4122 = vrot.lane.b32.xlu1 %v4111_v5, %s6697_s6  ;;  %v856_v18 = vld [vmem:[#allocation2 + $0x90] sm:$0x3]  ;;  %v9848_v3 = vpop.permute.xlu1 %999  ;;  %v12809_v5 = vld [vmem:[#allocation77_spill] sm:$0xff] }
 0x346   : > { %v9831_v52 = vsel %vm2642_vm6, %v12799_v50, %v2727_v61  ;;  %v9836_v25 = vsel %vm2642_vm6, %v12802_v15, %v2820_v28  ;;  %v601_v53 = vadd.f32 %v12797_v22, %v9667_v54  ;;  %v602_v61 = vadd.f32 %v587_v10, %v549_v40  ;;  %4120 = vrot.lane.b32.xlu0 %v4109_v7, %s6697_s6  ;;  %v12812_v22 = vld [vmem:[#allocation293_spill] sm:$0xff] }
 0x347   : > { %12800 = vst [vmem:[#allocation94_spill] sm:$0xff] %v9831_v52  ;;  %12803 = vst [vmem:[#allocation177_spill] sm:$0xff] %v9836_v25  ;;  %v3162_v28 = vrot.slane %v3141_v62, 4  ;;  %v3166_v63 = vrot.slane %v3143_v23, 4  ;;  %v4113_v55 = vsel %vm3865_vm11, %v4109_v7, %v12085_v49  ;;  %v12807_v16 = vrot.slane %v12806_v51, 4  ;;  %v12815_v7 = vld [vmem:[#allocation114_spill] sm:$0xff]  ;;  %v9873_v11 = vpop.permute.xlu0 %997 }
 0x348   : > { %v12810_v54 = vrot.slane %v12809_v5, 4  ;;  %v12813_v62 = vrot.slane %v12812_v22, 4  ;;  %v681_v10 = vadd.f32 %v12805_v48, %v9685_v36  ;;  %v682_v40 = vadd.f32 %v666_v35, %v599_v19  ;;  %v12821_v36 = vld [vmem:[#allocation126_spill] sm:$0xff]  ;;  %v12822_v35 = vld [vmem:[#allocation55_spill] sm:$0xff] }
 0x349   : > { %v9856_v46 = vsel %vm2642_vm6, %v12807_v16, %v2974_v56  ;;  %v9871_v50 = vadd.f32 %v12815_v7, %v601_v53  ;;  %v12816_v56 = vld [vmem:[#allocation76_spill] sm:$0xff]  ;;  %v9887_v19 = vmul.f32 %v12821_v36, %v850_v39  ;;  %v880_v48 = vmul.f32 %v9793_v27, %v12821_v36  ;;  %1700 = vrot.lane.b32.xlu1 %v12822_v35, %s6692_s24  ;;  %v6462_v53 = vld [vmem:[#allocation2 + $0x38] sm:$0xfc] }
 0x34a   : > { %12808 = vst [vmem:[#allocation173_spill] sm:$0xff] %v9856_v46  ;;  %v9861_v2 = vsel %vm2642_vm6, %v12810_v54, %v3067_v32  ;;  %v9866_v23 = vsel %vm2642_vm6, %v12813_v62, %v2978_v26  ;;  %v12817_v15 = vrot.slane %v12816_v56, 4  ;;  %v12819_v32 = vld [vmem:[#allocation115_spill] sm:$0xff]  ;;  %v883_v22 = vmul.f32 %v12821_v36, %v856_v18  ;;  %4124 = vrot.lane.b32.xlu0 %v4113_v55, %s6697_s6  ;;  %v12827_v39 = vld [vmem:[#allocation308_spill] sm:$0xff] }
 0x34b   : > { %12811 = vst [vmem:[#allocation176_spill] sm:$0xff] %v9861_v2  ;;  %12814 = vst [vmem:[#allocation186_spill] sm:$0xff] %v9866_v23  ;;  %v667_v16 = vsel %vm665_vm13, %v12804_v41, %v12819_v32  ;;  %v12820_v26 = vld [vmem:[#allocation119_spill] sm:$0xff]  ;;  %v12824_v41 = vld [vmem:[#allocation80_spill] sm:$0xff]  ;;  %v12828_v56 = vrot.slane %v12827_v39, 4  ;;  %v9926_v39 = vpop.permute.xlu0 %3504 }
 0x34c   : > { %v9878_v51 = vsel %vm2642_vm6, %v12817_v15, %v3071_v17  ;;  %v668_v5 = vsel %vm665_vm13, %v12815_v7, %v12820_v26  ;;  %v12823_v17 = vld [vmem:[#allocation127_spill] sm:$0xff]  ;;  %v12825_v62 = vrot.slane %v12824_v41, 4  ;;  %v12830_v32 = vld [vmem:[#allocation118_spill] sm:$0xff]  ;;  %v9914_v18 = vld [vmem:[#allocation2 + $0x70] sm:$0xff]  ;;  %12834 = vst [vmem:[#allocation91_spill] sm:$0xff] %v9926_v39  ;;  %v905_v30 = vrot.slane %v883_v22, 3 }
 0x34d   : > { %12818 = vst [vmem:[#allocation189_spill] sm:$0xff] %v9878_v51  ;;  %v9894_v54 = vmul.f32 %v6462_v53, %v12823_v17  ;;  %v9906_v15 = vsel %vm2642_vm6, %v12828_v56, %v3166_v63  ;;  %v669_v35 = vsel %vm665_vm13, %v12820_v26, %v12830_v32  ;;  %v6463_v53 = vld [vmem:[#allocation2 + $0x40] sm:$0xfc]  ;;  %v12831_v17 = vld [vmem:[#allocation125_spill] sm:$0xff]  ;;  %v12833_v36 = vld [vmem:[#allocation240_spill] sm:$0xff]  ;;  %v683_v63 = vadd.f32 %v667_v16, %v600_v44 }
 0x34e   : > { %v9901_v7 = vsel %vm2642_vm6, %v12825_v62, %v3162_v28  ;;  %12829 = vst [vmem:[#allocation190_spill] sm:$0xff] %v9906_v15  ;;  %v9912_v49 = vmul.f32 %v6463_v53, %v12831_v17  ;;  %v882_v55 = vmul.f32 %v9914_v18, %v12831_v17  ;;  %v9918_v28 = vpop.permute.xlu1 %3506  ;;  %v9922_v41 = vmul.f32 %v12833_v36, %v9485_v14  ;;  %v12835_v26 = vld [vmem:[#allocation238_spill] sm:$0xff]  ;;  %v9939_v44 = vld [vmem:[#allocation2 + $0xb0] sm:$0xfe] }
 0x34f   : > { %12826 = vst [vmem:[#allocation98_spill] sm:$0xff] %v9901_v7  ;;  %12832 = vst [vmem:[#allocation201_spill] sm:$0xff] %v9918_v28  ;;  %v9924_v62 = vadd.f32 %v668_v5, %v602_v61  ;;  %v4172_v56 = vmul.f32 %v12835_v26, %v9450_v6  ;;  %v9932_v32 = vmul.f32 %v9793_v27, %v12835_v26  ;;  %v12837_v53 = vld [vmem:[#allocation326_spill] sm:$0xff]  ;;  %v899_v28 = vrot.slane %v880_v48, 3  ;;  %v12838_v61 = vld [vmem:[#allocation43_spill] sm:$0xff]  ;;  %v9959_v22 = vpop.permute.xlu0 %3508 }
 0x350   : > { %v885_v4 = vmul.f32 %v12831_v17, %v12837_v53  ;;  %1704 = vrot.lane.b32.xlu1 %v9643_v21, %s6692_s24  ;;  %v12839_v16 = vld [vmem:[#allocation122_spill] sm:$0xff]  ;;  %v9943_v36 = vadd.f32 %v669_v35, %v603_v31  ;;  %1702 = vrot.lane.b32.xlu0 %v12840_v43, %s6692_s24  ;;  %v9948_v17 = vld [vmem:[#allocation2 + $0xd8] sm:$0x3f]  ;;  %v903_v58 = vrot.slane %v882_v55, 3  ;;  %v4191_v35 = vrot.slane %v9922_v41, 2  ;;  %12845 = vst [vmem:[#allocation197_spill] sm:$0xff] %v9959_v22 }
 0x351   : > { %12836 = vst [vmem:[#allocation99_spill] sm:$0xff] %v9932_v32  ;;  %v3312_v5 = vmul.f32 %v12839_v16, %v12838_v61  ;;  %v12841_v53 = vld [vmem:[#allocation121_spill] sm:$0xff]  ;;  %v4190_v39 = vrot.slane %v4172_v56, 2  ;;  %v4174_v42 = vmul.f32 %v12846_v8, %v9939_v44  ;;  %v9966_v55 = vmul.f32 %v9793_v27, %v12846_v8  ;;  %v12849_v22 = vld [vmem:[#allocation128_spill] sm:$0xff] }
 0x352   : > { %v3314_v48 = vmul.f32 %v9948_v17, %v12841_v53  ;;  %v12842_v21 = vld [vmem:[#allocation129_spill] sm:$0xff]  ;;  %v9956_v31 = vpop.permute.xlu1 %3510  ;;  %v909_v53 = vrot.slane %v885_v4, 3  ;;  %v12848_v15 = vrot.slane %v9887_v19, 3  ;;  %v760_v41 = vadd.f32 %v12843_v24, %v681_v10 }
 0x353   : > { %v745_v20 = vsel %vm292_vm0, %v12843_v24, %v12842_v21  ;;  %12844 = vst [vmem:[#allocation90_spill] sm:$0xff] %v9956_v31  ;;  %12847 = vst [vmem:[#allocation200_spill] sm:$0xff] %v9966_v55  ;;  %v3333_v56 = vrot.slane %v3312_v5, 7  ;;  %v12850_v43 = vrot.slane %v12849_v22, 3  ;;  %v12851_v31 = vrot.slane %v9894_v54, 3  ;;  %v12853_v24 = vld [vmem:[#allocation134_spill] sm:$0xff] }
 0x354   : > { %v9971_v16 = vsel %vm895_vm5, %v12848_v15, %v899_v28  ;;  %4207 = vrot.lane.b32.xlu1 %v4191_v35, %s6698_s17  ;;  %v9983_v51 = vsel %vm895_vm5, %v899_v28, %v905_v30  ;;  %v761_v4 = vadd.f32 %v745_v20, %v682_v40  ;;  %4205 = vrot.lane.b32.xlu0 %v4190_v39, %s6698_s17  ;;  %v12852_v15 = vld [vmem:[#allocation159_spill] sm:$0xff]  ;;  %v12854_v5 = vrot.slane %v9912_v49, 3  ;;  %v12856_v30 = vld [vmem:[#allocation160_spill] sm:$0xff]  ;;  %v10000_v40 = vpop.permute.xlu0 %1088 }
 0x355   : > { %v9980_v7 = vsel %vm895_vm5, %v12851_v31, %v12850_v43  ;;  %v1743_v23 = vmul.f32 %v12852_v15, %v9519_v29  ;;  %v746_v10 = vsel %vm292_vm0, %v12842_v21, %v12853_v24  ;;  %v12855_v43 = vld [vmem:[#allocation104_spill] sm:$0xff]  ;;  %v3337_v20 = vrot.slane %v3314_v48, 7  ;;  %v12858_v24 = vld [vmem:[#allocation142_spill] sm:$0xff]  ;;  %v12861_v48 = vld [vmem:[#allocation35_spill] sm:$0xff] }
 0x356   : > { %v9994_v22 = vsel %vm895_vm5, %v12854_v5, %v903_v58  ;;  %v9996_v31 = vpop.permute.xlu1 %1090  ;;  %v1742_v28 = vmul.f32 %v12856_v30, %v12855_v43  ;;  %v12857_v2 = vrot.slane %v9932_v32, 2  ;;  %v4192_v15 = vrot.slane %v4174_v42, 2  ;;  %v12859_v5 = vld [vmem:[#allocation145_spill] sm:$0xff]  ;;  %v12866_v21 = vld [vmem:[#allocation150_spill] sm:$0xff] }
 0x357   : > { %v3405_v46 = vmul.f32 %v12858_v24, %v12838_v61  ;;  %v826_v25 = vsel %vm704_vm4, %v12860_v57, %v12859_v5  ;;  %v10012_v52 = vsel %vm895_vm5, %v903_v58, %v909_v53  ;;  %v12862_v30 = vrot.slane %v12861_v48, 7  ;;  %v12864_v42 = vld [vmem:[#allocation141_spill] sm:$0xff] }
 0x358   : > { %v4194_v29 = vsel %vm3865_vm11, %v4190_v39, %v12857_v2  ;;  %v3407_v2 = vmul.f32 %v9948_v17, %v12864_v42  ;;  %v12865_v39 = vld [vmem:[#allocation133_spill] sm:$0xff]  ;;  %v762_v24 = vadd.f32 %v746_v10, %v683_v63  ;;  %v827_v9 = vsel %vm704_vm4, %v12859_v5, %v12866_v21  ;;  %4209 = vrot.lane.b32.xlu0 %v4192_v15, %s6698_s17 }
 0x359   : > { %4211 = vrot.lane.b32.xlu1 %v4194_v29, %s6698_s17  ;;  %v10018_v32 = vsel %vm3252_vm8, %v12862_v30, %v3333_v56  ;;  %v763_v61 = vadd.f32 %v12865_v39, %v9871_v50  ;;  %v1758_v58 = vrot.slane %v1743_v23, 6  ;;  %v12867_v53 = vld [vmem:[#allocation137_spill] sm:$0xff]  ;;  %v12868_v56 = vld [vmem:[#allocation136_spill] sm:$0xff]  ;;  %v1756_v42 = vrot.slane %v1742_v28, 6  ;;  %v12870_v50 = vld [vmem:[#allocation319_spill] sm:$0xff]  ;;  %v10042_v23 = vpop.permute.xlu0 %1092 }
 0x35a   : > { %12863 = vst [vmem:[#allocation102_spill] sm:$0xff] %v10018_v32  ;;  %v747_v29 = vsel %vm292_vm0, %v12865_v39, %v12867_v53  ;;  %v748_v48 = vsel %vm292_vm0, %v12867_v53, %v12868_v56  ;;  %v10034_v30 = vpop.permute.xlu1 %3590  ;;  %v12871_v63 = vrot.slane %v12870_v50, 7  ;;  %v841_v21 = vadd.f32 %v12860_v57, %v760_v41  ;;  %v12875_v28 = vld [vmem:[#allocation241_spill] sm:$0xff] }
 0x35b   : > { %12869 = vst [vmem:[#allocation97_spill] sm:$0xff] %v10034_v30  ;;  %v842_v5 = vadd.f32 %v826_v25, %v761_v4  ;;  %v12873_v32 = vrot.slane %v9966_v55, 2  ;;  %v3426_v38 = vrot.slane %v3405_v46, 7  ;;  %v844_v53 = vadd.f32 %v12874_v13, %v763_v61  ;;  %v12877_v30 = vld [vmem:[#allocation153_spill] sm:$0xff]  ;;  %v12878_v25 = vld [vmem:[#allocation152_spill] sm:$0xff]  ;;  %v12994_v55 = vld [vmem:[#allocation230_spill] sm:$0xff] }
 0x35c   : > { %v10039_v10 = vsel %vm3252_vm8, %v12871_v63, %v3337_v20  ;;  %v843_v56 = vadd.f32 %v827_v9, %v762_v24  ;;  %v12876_v50 = vrot.slane %v12875_v28, 2  ;;  %v3430_v63 = vrot.slane %v3407_v2, 7  ;;  %v12879_v46 = vld [vmem:[#allocation164_spill] sm:$0xff] }
 0x35d   : > { %12872 = vst [vmem:[#allocation96_spill] sm:$0xff] %v10039_v10  ;;  %v4198_v39 = vsel %vm3865_vm11, %v4192_v15, %v12873_v32  ;;  %v828_v57 = vsel %vm704_vm4, %v12874_v13, %v12877_v30  ;;  %v829_v41 = vsel %vm704_vm4, %v12877_v30, %v12878_v25  ;;  %v12880_v32 = vrot.slane %v12879_v46, 6  ;;  %v6466_v4 = vld [vmem:[#allocation2 + $0xd0] sm:$0x3f]  ;;  %v12881_v15 = vld [vmem:[#allocation157_spill] sm:$0xff]  ;;  %v12883_v13 = vld [vmem:[#allocation167_spill] sm:$0xff]  ;;  %v10076_v25 = vpop.permute.xlu0 %3592 }
 0x35e   : > { %4215 = vrot.lane.b32.xlu1 %v4198_v39, %s6698_s17  ;;  %v4196_v20 = vsel %vm3865_vm11, %v4191_v35, %v12876_v50  ;;  %v3563_v61 = vmul.f32 %v6466_v4, %v12881_v15  ;;  %v764_v35 = vadd.f32 %v747_v29, %v9924_v62  ;;  %v765_v2 = vadd.f32 %v748_v48, %v9943_v36  ;;  %v10065_v24 = vpop.permute.xlu1 %3594  ;;  %v12885_v30 = vld [vmem:[#allocation253_spill] sm:$0xff]  ;;  %v12888_v46 = vld [vmem:[#allocation251_spill] sm:$0xff] }
 0x35f   : > { %4213 = vrot.lane.b32.xlu0 %v4196_v20, %s6698_s17  ;;  %v1759_v9 = vsel %vm1508_vm9, %v12880_v32, %v1758_v58  ;;  %12882 = vst [vmem:[#allocation103_spill] sm:$0xff] %v10065_v24  ;;  %v12884_v39 = vrot.slane %v12883_v13, 6  ;;  %v10072_v50 = vmul.f32 %v12885_v30, %v9485_v14  ;;  %v12886_v20 = vrot.slane %v9887_v19, 3  ;;  %12887 = vst [vmem:[#allocation106_spill] sm:$0xff] %v10076_v25  ;;  %v12890_v29 = vld [vmem:[#allocation143_spill] sm:$0xff] }
 0x360   : > { %v4265_v62 = vmul.f32 %v12888_v46, %v9450_v6  ;;  %v10082_v36 = vmul.f32 %v9793_v27, %v12888_v46  ;;  %v12891_v48 = vrot.slane %v12890_v29, 7  ;;  %v12893_v32 = vrot.slane %v9894_v54, 3  ;;  %v12896_v29 = vld [vmem:[#allocation39_spill] sm:$0xff] }
 0x361   : > { %v1757_v28 = vsel %vm1508_vm9, %v12884_v39, %v1756_v42  ;;  %v920_v58 = vadd.f32 %v12886_v20, %v841_v21  ;;  %v845_v13 = vadd.f32 %v828_v57, %v764_v35  ;;  %v846_v19 = vadd.f32 %v829_v41, %v765_v2  ;;  %v6467_v21 = vld [vmem:[#allocation2 + $0xe0] sm:$0x3f]  ;;  %v12894_v39 = vld [vmem:[#allocation156_spill] sm:$0xff]  ;;  %v12900_v57 = vld [vmem:[#allocation163_spill] sm:$0xff]  ;;  %v10110_v2 = vpop.permute.xlu0 %3596 }
 0x362   : > { %12889 = vst [vmem:[#allocation107_spill] sm:$0xff] %v10082_v36  ;;  %v10087_v42 = vsel %vm3252_vm8, %v12891_v48, %v3426_v38  ;;  %v921_v15 = vadd.f32 %v12893_v32, %v842_v5  ;;  %1770 = vrot.lane.b32.xlu1 %v1759_v9, %s6697_s6  ;;  %v3565_v30 = vmul.f32 %v6467_v21, %v12894_v39  ;;  %v12895_v20 = vrot.slane %v9912_v49, 3  ;;  %v12899_v5 = vld [vmem:[#allocation162_spill] sm:$0xff]  ;;  %v10105_v9 = vpop.permute.xlu1 %3598  ;;  %v12903_v49 = vld [vmem:[#allocation171_spill] sm:$0xff] }
 0x363   : > { %12892 = vst [vmem:[#allocation69_spill] sm:$0xff] %v10087_v42  ;;  %v923_v6 = vadd.f32 %v9971_v16, %v844_v53  ;;  %1768 = vrot.lane.b32.xlu0 %v1757_v28, %s6697_s6  ;;  %v12897_v38 = vrot.slane %v12896_v29, 7  ;;  %v3584_v54 = vrot.slane %v3563_v61, 7  ;;  %v1001_v41 = vsel %vm451_vm2, %v12900_v57, %v12899_v5  ;;  %12901 = vst [vmem:[#allocation112_spill] sm:$0xff] %v10105_v9  ;;  %v12902_v16 = vld [vmem:[#allocation172_spill] sm:$0xff] }
 0x364   : > { %v922_v24 = vadd.f32 %v12895_v20, %v843_v56  ;;  %v4284_v35 = vrot.slane %v10072_v50, 2  ;;  %v3656_v53 = vmul.f32 %v6466_v4, %v12902_v16  ;;  %v3658_v56 = vmul.f32 %v6467_v21, %v12903_v49  ;;  %12904 = vst [vmem:[#allocation37_spill] sm:$0xff] %v10110_v2  ;;  %v12908_v16 = vld [vmem:[#allocation170_spill] sm:$0xff]  ;;  %v12909_v49 = vld [vmem:[#allocation165_spill] sm:$0xff]  ;;  %v3726_v9 = vld [vmem:[#allocation2 + $0xe8] sm:$0x3f] }
 0x365   : > { %v10100_v48 = vsel %vm3252_vm8, %v12897_v38, %v3430_v63  ;;  %v4283_v28 = vrot.slane %v4265_v62, 2  ;;  %v12905_v63 = vld [vmem:[#allocation250_spill] sm:$0xff]  ;;  %v924_v20 = vadd.f32 %v9980_v7, %v845_v13  ;;  %v1016_v50 = vadd.f32 %v12900_v57, %v920_v58 }
 0x366   : > { %12898 = vst [vmem:[#allocation111_spill] sm:$0xff] %v10100_v48  ;;  %v4267_v61 = vmul.f32 %v12905_v63, %v9939_v44  ;;  %v10117_v39 = vmul.f32 %v9793_v27, %v12905_v63  ;;  %v925_v4 = vadd.f32 %v9994_v22, %v846_v19  ;;  %4300 = vrot.lane.b32.xlu1 %v4284_v35, %s6696_s7  ;;  %v3588_v21 = vrot.slane %v3565_v30, 7  ;;  %v12907_v62 = vld [vmem:[#allocation166_spill] sm:$0xff]  ;;  %v12913_v22 = vld [vmem:[#allocation169_spill] sm:$0xff]  ;;  %v12915_v19 = vld [vmem:[#allocation175_spill] sm:$0xff] }
 0x367   : > { %v1017_v29 = vadd.f32 %v1001_v41, %v921_v15  ;;  %v1002_v38 = vsel %vm451_vm2, %v12899_v5, %v12907_v62  ;;  %v1003_v32 = vsel %vm451_vm2, %v12909_v49, %v12908_v16  ;;  %4298 = vrot.lane.b32.xlu0 %v4283_v28, %s6696_s7  ;;  %v12910_v2 = vld [vmem:[#allocation158_spill] sm:$0xff]  ;;  %v1004_v13 = vsel %vm451_vm2, %v12908_v16, %v12913_v22  ;;  %v12916_v5 = vld [vmem:[#allocation180_spill] sm:$0xff]  ;;  %v10144_v41 = vpop.permute.xlu1 %3839 }
 0x368   : > { %12906 = vst [vmem:[#allocation77_spill] sm:$0xff] %v10117_v39  ;;  %v12911_v7 = vrot.slane %v12910_v2, 7  ;;  %v12914_v15 = vld [vmem:[#allocation174_spill] sm:$0xff]  ;;  %12917 = vst [vmem:[#allocation114_spill] sm:$0xff] %v10144_v41  ;;  %v3677_v62 = vrot.slane %v3656_v53, 7  ;;  %v10146_v2 = vpop.permute.xlu0 %3600  ;;  %v12102_v16 = vrot.slane %v10117_v39, 2  ;;  %v1019_v25 = vadd.f32 %v12909_v49, %v923_v6 }
 0x369   : > { %v1094_v30 = vsel %vm410_vm1, %v12915_v19, %v12914_v15  ;;  %v1095_v57 = vsel %vm410_vm1, %v12914_v15, %v12916_v5  ;;  %12918 = vst [vmem:[#allocation76_spill] sm:$0xff] %v10146_v2  ;;  %v3681_v22 = vrot.slane %v3658_v56, 7  ;;  %v1018_v48 = vadd.f32 %v1002_v38, %v922_v24  ;;  %v12920_v15 = vld [vmem:[#allocation335_spill] sm:$0xff]  ;;  %v12924_v56 = vld [vmem:[#allocation184_spill] sm:$0xff] }
 0x36a   : > { %v10133_v58 = vsel %vm3252_vm8, %v12911_v7, %v3584_v54  ;;  %v12919_v54 = vrot.slane %v10082_v36, 2  ;;  %v1020_v42 = vadd.f32 %v1003_v32, %v924_v20  ;;  %v12921_v5 = vrot.slane %v12920_v15, 7  ;;  %v12925_v24 = vld [vmem:[#allocation179_spill] sm:$0xff]  ;;  %v12982_v39 = vld [vmem:[#allocation72_spill] sm:$0xff] }
 0x36b   : > { %12912 = vst [vmem:[#allocation293_spill] sm:$0xff] %v10133_v58  ;;  %v4285_v58 = vrot.slane %v4267_v61, 2  ;;  %v1021_v2 = vadd.f32 %v1004_v13, %v925_v4  ;;  %v1109_v10 = vadd.f32 %v12915_v19, %v1016_v50  ;;  %v1110_v6 = vadd.f32 %v1094_v30, %v1017_v29  ;;  %v10165_v38 = vpop.permute.xlu1 %1156  ;;  %v12926_v49 = vld [vmem:[#allocation339_spill] sm:$0xff]  ;;  %v12929_v4 = vld [vmem:[#allocation182_spill] sm:$0xff]  ;;  %v12930_v13 = vld [vmem:[#allocation181_spill] sm:$0xff] }
 0x36c   : > { %v4287_v7 = vsel %vm3865_vm11, %v4283_v28, %v12919_v54  ;;  %v10157_v53 = vsel %vm3252_vm8, %v12921_v5, %v3588_v21  ;;  %v12923_v28 = vld [vmem:[#allocation185_spill] sm:$0xff]  ;;  %v3753_v54 = vmul.f32 %v12924_v56, %v3726_v9  ;;  %v1112_v32 = vadd.f32 %v12925_v24, %v1019_v25  ;;  %v10178_v9 = vpop.permute.xlu0 %3841  ;;  %v12935_v30 = vld [vmem:[#allocation187_spill] sm:$0xff]  ;;  %v12938_v5 = vld [vmem:[#allocation192_spill] sm:$0xff] }
 0x36d   : > { %4304 = vrot.lane.b32.xlu1 %v4287_v7, %s6696_s7  ;;  %12922 = vst [vmem:[#allocation115_spill] sm:$0xff] %v10157_v53  ;;  %4302 = vrot.lane.b32.xlu0 %v4285_v58, %s6696_s7  ;;  %v3751_v61 = vmul.f32 %v9948_v17, %v12923_v28  ;;  %v1111_v20 = vadd.f32 %v1095_v57, %v1018_v48  ;;  %v12927_v7 = vrot.slane %v12926_v49, 7  ;;  %12931 = vst [vmem:[#allocation126_spill] sm:$0xff] %v10178_v9  ;;  %v12932_v48 = vld [vmem:[#allocation342_spill] sm:$0xff]  ;;  %v12936_v57 = vld [vmem:[#allocation188_spill] sm:$0xff] }
 0x36e   : > { %v1096_v50 = vsel %vm410_vm1, %v12925_v24, %v12929_v4  ;;  %v1097_v17 = vsel %vm410_vm1, %v12929_v4, %v12930_v13  ;;  %v4291_v25 = vsel %vm3865_vm11, %v4285_v58, %v12102_v16  ;;  %v12933_v29 = vrot.slane %v12932_v48, 7  ;;  %v12937_v15 = vld [vmem:[#allocation191_spill] sm:$0xff]  ;;  %v12940_v58 = vld [vmem:[#allocation254_spill] sm:$0xff]  ;;  %v10203_v49 = vld [vmem:[#allocation2 + $0xf8] sm:$0x1] }
 0x36f   : > { %v10170_v21 = vsel %vm3252_vm8, %v12927_v7, %v3677_v62  ;;  %v1160_v62 = vsel %vm370_vm7, %v12936_v57, %v12935_v30  ;;  %v1161_v28 = vsel %vm370_vm7, %v12938_v5, %v12937_v15  ;;  %v10197_v56 = vsel %vm370_vm7, %v10144_v41, %v10178_v9  ;;  %v12976_v41 = vld [vmem:[#allocation74_spill] sm:$0xff] }
 0x370   : > { %12928 = vst [vmem:[#allocation119_spill] sm:$0xff] %v10170_v21  ;;  %v10186_v19 = vsel %vm3252_vm8, %v12933_v29, %v3681_v22  ;;  %12939 = vst [vmem:[#allocation127_spill] sm:$0xff] %v10197_v56  ;;  %v12941_v24 = vrot.slane %v12940_v58, 2  ;;  %v10207_v7 = vmul.f32 %v9793_v27, %v10197_v56  ;;  %v3772_v4 = vrot.slane %v3751_v61, 7  ;;  %v10213_v58 = vpop.permute.xlu1 %3683  ;;  %v10221_v61 = vpop.permute.xlu0 %1158 }
 0x371   : > { %12934 = vst [vmem:[#allocation55_spill] sm:$0xff] %v10186_v19  ;;  %4308 = vrot.lane.b32.xlu1 %v4291_v25, %s6696_s7  ;;  %v3776_v13 = vrot.slane %v3753_v54, 7  ;;  %v3854_v48 = vmul.f32 %v10197_v56, %v10203_v49  ;;  %v1113_v29 = vadd.f32 %v1096_v50, %v1020_v42  ;;  %v1114_v16 = vadd.f32 %v1097_v17, %v1021_v2  ;;  %v4340_v54 = vld [vmem:[#allocation2 + $0xb8] sm:$0xfe]  ;;  %v12945_v50 = vld [vmem:[#allocation194_spill] sm:$0xff]  ;;  %v12946_v17 = vld [vmem:[#allocation195_spill] sm:$0xff] }
 0x372   : > { %v4289_v22 = vsel %vm3865_vm11, %v4284_v35, %v12941_v24  ;;  %12942 = vst [vmem:[#allocation80_spill] sm:$0xff] %v10207_v7  ;;  %v1174_v25 = vadd.f32 %v12935_v30, %v1111_v20  ;;  %12943 = vst [vmem:[#allocation308_spill] sm:$0xff] %v10213_v58  ;;  %v12944_v35 = vld [vmem:[#allocation265_spill] sm:$0xff]  ;;  %v1172_v19 = vadd.f32 %v12936_v57, %v1109_v10  ;;  %v12947_v10 = vld [vmem:[#allocation199_spill] sm:$0xff] }
 0x373   : > { %4306 = vrot.lane.b32.xlu0 %v4289_v22, %s6696_s7  ;;  %v10217_v24 = vmul.f32 %v12944_v35, %v9485_v14  ;;  %v1173_v21 = vadd.f32 %v1160_v62, %v1110_v6  ;;  %v12105_v22 = vrot.slane %v10207_v7, 2  ;;  %v3877_v9 = vrot.slane %v3854_v48, 2  ;;  %v1466_v14 = vld [vmem:[#allocation2 + $0x30] sm:$0xe0]  ;;  %v12951_v62 = vld [vmem:[#allocation350_spill] sm:$0xff]  ;;  %v12955_v48 = vld [vmem:[#allocation203_spill] sm:$0xff] }
 0x374   : > { %v1177_v42 = vadd.f32 %v12937_v15, %v1114_v16  ;;  %v1175_v2 = vadd.f32 %v12938_v5, %v1112_v32  ;;  %v1176_v20 = vadd.f32 %v1161_v28, %v1113_v29  ;;  %v1253_v30 = vsel %vm665_vm13, %v12946_v17, %v12945_v50  ;;  %v12948_v57 = vld [vmem:[#allocation92_spill] sm:$0xff]  ;;  %v12956_v29 = vld [vmem:[#allocation198_spill] sm:$0xff] }
 0x375   : > { %1860 = vrot.lane.b32.xlu1 %v9677_v60, %s6698_s17  ;;  %v1254_v6 = vsel %vm665_vm13, %v12945_v50, %v12947_v10  ;;  %v12949_v16 = vrot.slane %v12948_v57, 7  ;;  %v12952_v15 = vrot.slane %v12951_v62, 7  ;;  %v10248_v60 = vsel %vm3865_vm11, %v12105_v22, %v3877_v9  ;;  %v10254_v50 = vpop.permute.xlu1 %3687  ;;  %v12958_v10 = vld [vmem:[#allocation264_spill] sm:$0xff]  ;;  %v12959_v62 = vld [vmem:[#allocation209_spill] sm:$0xff] }
 0x376   : > { %12954 = vst [vmem:[#allocation240_spill] sm:$0xff] %v10248_v60  ;;  %v1268_v28 = vadd.f32 %v12946_v17, %v1172_v19  ;;  %12957 = vst [vmem:[#allocation238_spill] sm:$0xff] %v10254_v50  ;;  %v10258_v57 = vmul.f32 %v12958_v10, %v4340_v54  ;;  %v1493_v9 = vmul.f32 %v9793_v27, %v12959_v62  ;;  %v10265_v19 = vpop.permute.xlu0 %3685  ;;  %v12961_v17 = vld [vmem:[#allocation266_spill] sm:$0xff]  ;;  %v12965_v50 = vld [vmem:[#allocation211_spill] sm:$0xff] }
 0x377   : > { %1858 = vrot.lane.b32.xlu0 %v9682_v33, %s6698_s17  ;;  %v10238_v32 = vsel %vm3252_vm8, %v12949_v16, %v3772_v4  ;;  %v10243_v5 = vsel %vm3252_vm8, %v12952_v15, %v3776_v13  ;;  %v1255_v33 = vsel %vm665_vm13, %v12956_v29, %v12955_v48  ;;  %v4379_v4 = vrot.slane %v10217_v24, 2  ;;  %v1469_v16 = vld [vmem:[#allocation2 + $0x90] sm:$0x1f]  ;;  %12960 = vst [vmem:[#allocation326_spill] sm:$0xff] %v10265_v19  ;;  %v12962_v24 = vld [vmem:[#allocation202_spill] sm:$0xff]  ;;  %v12969_v19 = vld [vmem:[#allocation213_spill] sm:$0xff] }
 0x378   : > { %12950 = vst [vmem:[#allocation118_spill] sm:$0xff] %v10238_v32  ;;  %12953 = vst [vmem:[#allocation125_spill] sm:$0xff] %v10243_v5  ;;  %v1269_v13 = vadd.f32 %v1253_v30, %v1173_v21  ;;  %v10261_v15 = vmul.f32 %v12959_v62, %v1466_v14  ;;  %v4362_v22 = vmul.f32 %v12961_v17, %v9939_v44  ;;  %v12964_v14 = vld [vmem:[#allocation207_spill] sm:$0xff]  ;;  %v6468_v32 = vld [vmem:[#allocation2 + $0x38] sm:$0xe0] }
 0x379   : > { %v1271_v60 = vadd.f32 %v12956_v29, %v1175_v2  ;;  %v1270_v5 = vadd.f32 %v1254_v6, %v1174_v25  ;;  %v1256_v54 = vsel %vm665_vm13, %v12955_v48, %v12962_v24  ;;  %4394 = vrot.lane.b32.xlu1 %v4379_v4, %s6695_s15  ;;  %v10276_v21 = vmul.f32 %v9793_v27, %v12944_v35  ;;  %v6469_v2 = vld [vmem:[#allocation2 + $0x40] sm:$0xe0]  ;;  %v4341_v6 = vld [vmem:[#allocation2 + $0xe8] sm:$0xff]  ;;  %v10291_v29 = vpop.permute.xlu1 %3691  ;;  %v12973_v24 = vld [vmem:[#allocation120_spill] sm:$0xff] }
 0x37a   : > { %v1272_v30 = vadd.f32 %v1255_v33, %v1176_v20  ;;  %v1495_v7 = vmul.f32 %v9914_v18, %v12964_v14  ;;  %v10281_v44 = vmul.f32 %v6468_v32, %v12965_v50  ;;  %v10284_v25 = vmul.f32 %v6469_v2, %v12964_v14  ;;  %12966 = vst [vmem:[#allocation122_spill] sm:$0xff] %v10291_v29  ;;  %v12967_v32 = vld [vmem:[#allocation205_spill] sm:$0xff] }
 0x37b   : > { %12963 = vst [vmem:[#allocation43_spill] sm:$0xff] %v10276_v21  ;;  %1862 = vrot.lane.b32.xlu0 %v9691_v1, %s6698_s17  ;;  %v1498_v48 = vmul.f32 %v12964_v14, %v12855_v43  ;;  %v1496_v20 = vmul.f32 %v12959_v62, %v1469_v16  ;;  %v4381_v33 = vrot.slane %v10258_v57, 2  ;;  %v10296_v50 = vmul.f32 %v12967_v32, %v10203_v49  ;;  %v10301_v1 = vpop.permute.xlu0 %3689  ;;  %v12970_v43 = vld [vmem:[#allocation214_spill] sm:$0xff]  ;;  %v10311_v14 = vld [vmem:[#allocation2 + $0x108] sm:$0x1] }
 0x37c   : > { %v10298_v17 = vadd.f32 %v1256_v54, %v1177_v42  ;;  %v1512_v2 = vrot.slane %v1493_v9, 6  ;;  %12968 = vst [vmem:[#allocation140_spill] sm:$0xff] %v10301_v1  ;;  %v4380_v58 = vrot.slane %v4362_v22, 2  ;;  %v1346_v16 = vsel %vm292_vm0, %v12970_v43, %v12969_v19  ;;  %v12972_v42 = vld [vmem:[#allocation204_spill] sm:$0xff]  ;;  %v12974_v1 = vld [vmem:[#allocation41_spill] sm:$0xff] }
 0x37d   : > { %4398 = vrot.lane.b32.xlu1 %v4381_v33, %s6695_s15  ;;  %v10309_v62 = vmul.f32 %v12958_v10, %v4341_v6  ;;  %v10315_v54 = vmul.f32 %v10311_v14, %v12972_v42  ;;  %v1516_v9 = vrot.slane %v1495_v7, 6  ;;  %v473_v29 = vadd.f32 %v12974_v1, %v12973_v24  ;;  %v10323_v10 = vpop.permute.xlu1 %1247  ;;  %v12978_v24 = vld [vmem:[#allocation267_spill] sm:$0xff] }
 0x37e   : > { %v1522_v57 = vrot.slane %v1498_v48, 6  ;;  %v1518_v56 = vrot.slane %v1496_v20, 6  ;;  %v1361_v6 = vadd.f32 %v12970_v43, %v1268_v28  ;;  %v3947_v53 = vrot.slane %v10296_v50, 2  ;;  %v12980_v20 = vld [vmem:[#allocation217_spill] sm:$0xff] }
 0x37f   : > { %12971 = vst [vmem:[#allocation121_spill] sm:$0xff] %v10309_v62  ;;  %4396 = vrot.lane.b32.xlu0 %v4380_v58, %s6695_s15  ;;  %v1362_v42 = vadd.f32 %v1346_v16, %v1269_v13  ;;  %v12975_v7 = vrot.slane %v10261_v15, 6  ;;  %v551_v32 = vadd.f32 %v12976_v41, %v473_v29  ;;  %v10330_v35 = vpop.permute.xlu0 %3693  ;;  %v12979_v1 = vrot.slane %v12978_v24, 2  ;;  %v12981_v43 = vld [vmem:[#allocation333_spill] sm:$0xff]  ;;  %v12984_v16 = vld [vmem:[#allocation223_spill] sm:$0xff]  ;;  %v12986_v24 = vld [vmem:[#allocation212_spill] sm:$0xff] }
 0x380   : > { %12977 = vst [vmem:[#allocation129_spill] sm:$0xff] %v10330_v35  ;;  %v1347_v28 = vsel %vm292_vm0, %v12969_v19, %v12980_v20  ;;  %v457_v13 = vsel %vm451_vm2, %v12982_v39, %v12981_v43  ;;  %v12983_v50 = vrot.slane %v10276_v21, 2  ;;  %v12988_v19 = vrot.slane %v10281_v44, 6  ;;  %v12990_v43 = vld [vmem:[#allocation345_spill] sm:$0xff]  ;;  %v12992_v29 = vld [vmem:[#allocation336_spill] sm:$0xff] }
 0x381   : > { %v1513_v22 = vsel %vm1508_vm9, %v12975_v7, %v1512_v2  ;;  %v4385_v48 = vsel %vm3865_vm11, %v4380_v58, %v12979_v1  ;;  %v12985_v7 = vld [vmem:[#allocation216_spill] sm:$0xff]  ;;  %v12987_v1 = vrot.slane %v12986_v24, 6  ;;  %v12989_v39 = vrot.slane %v10284_v25, 6  ;;  %v10365_v24 = vpop.permute.xlu1 %1251 }
 0x382   : > { %4402 = vrot.lane.b32.xlu1 %v4385_v48, %s6695_s15  ;;  %v4383_v41 = vsel %vm3865_vm11, %v4379_v4, %v12983_v50  ;;  %v1348_v58 = vsel %vm292_vm0, %v12985_v7, %v12984_v16  ;;  %v604_v21 = vadd.f32 %v12990_v43, %v551_v32  ;;  %v1364_v4 = vadd.f32 %v12985_v7, %v1271_v60  ;;  %v12991_v50 = vld [vmem:[#allocation79_spill] sm:$0xff]  ;;  %v12996_v60 = vld [vmem:[#allocation352_spill] sm:$0xff] }
 0x383   : > { %v1515_v20 = vsel %vm1508_vm9, %v12988_v19, %v12987_v1  ;;  %v10357_v48 = vsel %vm1508_vm9, %v12989_v39, %v1516_v9  ;;  %4400 = vrot.lane.b32.xlu0 %v4383_v41, %s6695_s15  ;;  %v535_v35 = vsel %vm410_vm1, %v12992_v29, %v12991_v50  ;;  %v10368_v36 = vsel %vm1508_vm9, %v1512_v2, %v1518_v56  ;;  %v12993_v39 = vld [vmem:[#allocation228_spill] sm:$0xff]  ;;  %v12995_v41 = vld [vmem:[#allocation131_spill] sm:$0xff]  ;;  %v10378_v63 = vpop.permute.xlu0 %1249 }
 0x384   : > { %v10371_v1 = vsel %vm1508_vm9, %v1516_v9, %v1522_v57  ;;  %v1363_v19 = vadd.f32 %v1347_v28, %v1270_v5  ;;  %v1442_v32 = vsel %vm704_vm4, %v12994_v55, %v12993_v39  ;;  %v475_v43 = vadd.f32 %v457_v13, %v12995_v41  ;;  %v12997_v29 = vld [vmem:[#allocation219_spill] sm:$0xff]  ;;  %v12999_v9 = vld [vmem:[#allocation232_spill] sm:$0xff] }
 0x385   : > { %v687_v7 = vadd.f32 %v12996_v60, %v604_v21  ;;  %v1349_v50 = vsel %vm292_vm0, %v12984_v16, %v12997_v29  ;;  %v1365_v56 = vadd.f32 %v1348_v58, %v1272_v30  ;;  %v12998_v5 = vrot.slane %v10309_v62, 2  ;;  %v13000_v28 = vld [vmem:[#allocation236_spill] sm:$0xff]  ;;  %v13001_v13 = vld [vmem:[#allocation231_spill] sm:$0xff]  ;;  %v13002_v16 = vld [vmem:[#allocation117_spill] sm:$0xff] }
 0x386   : > { %1951 = vrot.lane.b32.xlu1 %v9696_v12, %s6696_s7  ;;  %v3951_v57 = vrot.slane %v10315_v54, 2  ;;  %v1443_v21 = vsel %vm704_vm4, %v12993_v39, %v12999_v9  ;;  %v1444_v41 = vsel %vm704_vm4, %v13001_v13, %v13000_v28  ;;  %v553_v60 = vadd.f32 %v535_v35, %v475_v43  ;;  %v13003_v29 = vld [vmem:[#allocation46_spill] sm:$0xff] }
 0x387   : > { %v4387_v2 = vsel %vm3865_vm11, %v4381_v33, %v12998_v5  ;;  %v766_v30 = vadd.f32 %v13002_v16, %v687_v7  ;;  %v1457_v12 = vadd.f32 %v12994_v55, %v1361_v6  ;;  %v1458_v58 = vadd.f32 %v1442_v32, %v1362_v42  ;;  %v13004_v33 = vld [vmem:[#allocation351_spill] sm:$0xff]  ;;  %v10401_v5 = vpop.permute.xlu1 %3780  ;;  %v13006_v39 = vld [vmem:[#allocation226_spill] sm:$0xff]  ;;  %v13008_v7 = vld [vmem:[#allocation344_spill] sm:$0xff]  ;;  %v10413_v42 = vpop.permute.xlu0 %3778 }
 0x388   : > { %4404 = vrot.lane.b32.xlu0 %v4387_v2, %s6695_s15  ;;  %v671_v54 = vsel %vm665_vm13, %v13004_v33, %v13003_v29  ;;  %13005 = vst [vmem:[#allocation130_spill] sm:$0xff] %v10401_v5  ;;  %v10405_v9 = vmul.f32 %v13006_v39, %v10203_v49  ;;  %v1460_v62 = vadd.f32 %v13001_v13, %v1364_v4  ;;  %v13007_v35 = vld [vmem:[#allocation234_spill] sm:$0xff]  ;;  %v13009_v55 = vld [vmem:[#allocation84_spill] sm:$0xff]  ;;  %v13011_v5 = vld [vmem:[#allocation123_spill] sm:$0xff] }
 0x389   : > { %v1445_v43 = vsel %vm704_vm4, %v13000_v28, %v13007_v35  ;;  %v606_v2 = vadd.f32 %v13008_v7, %v553_v60  ;;  %v847_v6 = vadd.f32 %v13009_v55, %v766_v30  ;;  %v1366_v32 = vadd.f32 %v1349_v50, %v10298_v17  ;;  %v13010_v33 = vld [vmem:[#allocation108_spill] sm:$0xff]  ;;  %v13012_v28 = vld [vmem:[#allocation71_spill] sm:$0xff]  ;;  %v13017_v50 = vld [vmem:[#allocation225_spill] sm:$0xff] }
 0x38a   : > { %v1459_v16 = vadd.f32 %v1443_v21, %v1363_v19  ;;  %v1461_v29 = vadd.f32 %v1444_v41, %v1365_v56  ;;  %v750_v49 = vsel %vm292_vm0, %v13011_v5, %v13010_v33  ;;  %1955 = vrot.lane.b32.xlu1 %v9703_v0, %s6696_s7  ;;  %v13013_v13 = vrot.slane %v13012_v28, 2  ;;  %v13014_v30 = vld [vmem:[#allocation124_spill] sm:$0xff] }
 0x38b   : > { %v689_v4 = vadd.f32 %v671_v54, %v606_v2  ;;  %v13015_v17 = vrot.slane %v13014_v30, 2  ;;  %v10435_v56 = vmul.f32 %v10311_v14, %v13017_v50  ;;  %v13018_v0 = vrot.slane %v10261_v15, 6  ;;  %v13019_v54 = vld [vmem:[#allocation49_spill] sm:$0xff]  ;;  %v10442_v39 = vpop.permute.xlu1 %3784  ;;  %v10448_v33 = vpop.permute.xlu0 %3782 }
 0x38c   : > { %1953 = vrot.lane.b32.xlu0 %v9718_v59, %s6696_s7  ;;  %v10426_v60 = vsel %vm3865_vm11, %v13013_v13, %v3947_v53  ;;  %v1462_v41 = vadd.f32 %v1445_v43, %v1366_v32  ;;  %v13020_v59 = vld [vmem:[#allocation50_spill] sm:$0xff]  ;;  %v4040_v53 = vrot.slane %v10405_v9, 2  ;;  %v13021_v35 = vrot.slane %v10281_v44, 6  ;;  %v13023_v43 = vld [vmem:[#allocation244_spill] sm:$0xff]  ;;  %v13025_v30 = vld [vmem:[#allocation61_spill] sm:$0xff] }
 0x38d   : > { %v10431_v19 = vsel %vm3865_vm11, %v13015_v17, %v3951_v57  ;;  %v1533_v21 = vadd.f32 %v13018_v0, %v1457_v12  ;;  %v831_v5 = vsel %vm704_vm4, %v13020_v59, %v13019_v54  ;;  %v1536_v7 = vadd.f32 %v1513_v22, %v1460_v62  ;;  %v13022_v12 = vld [vmem:[#allocation242_spill] sm:$0xff]  ;;  %v13026_v44 = vld [vmem:[#allocation249_spill] sm:$0xff]  ;;  %v13028_v22 = vld [vmem:[#allocation247_spill] sm:$0xff] }
 0x38e   : > { %13016 = vst [vmem:[#allocation237_spill] sm:$0xff] %v10431_v19  ;;  %v1534_v57 = vadd.f32 %v13021_v35, %v1458_v58  ;;  %v768_v2 = vadd.f32 %v750_v49, %v689_v4  ;;  %v926_v55 = vadd.f32 %v9983_v51, %v847_v6  ;;  %v1537_v15 = vadd.f32 %v1515_v20, %v1461_v29  ;;  %v13027_v62 = vld [vmem:[#allocation245_spill] sm:$0xff]  ;;  %v10479_v4 = vld [vmem:[#allocation2 + $0x110] sm:$0x1] }
 0x38f   : > { %v1613_v32 = vsel %vm451_vm2, %v13023_v43, %v13022_v12  ;;  %v13024_v28 = vrot.slane %v10284_v25, 6  ;;  %v1614_v17 = vsel %vm451_vm2, %v13022_v12, %v13025_v30  ;;  %2048 = vrot.lane.b32.xlu1 %v9723_v34, %s6695_s15  ;;  %v1615_v51 = vsel %vm451_vm2, %v13027_v62, %v13026_v44  ;;  %v10471_v29 = vpop.permute.xlu1 %3788  ;;  %v10473_v34 = vld [vmem:[#allocation2 + $0x100] sm:$0x1]  ;;  %v13030_v35 = vld [vmem:[#allocation256_spill] sm:$0xff] }
 0x390   : > { %v1616_v20 = vsel %vm451_vm2, %v13026_v44, %v13028_v22  ;;  %v849_v58 = vadd.f32 %v831_v5, %v768_v2  ;;  %v1022_v6 = vadd.f32 %v9823_v45, %v926_v55  ;;  %2046 = vrot.lane.b32.xlu0 %v9752_v37, %s6695_s15  ;;  %v1628_v25 = vadd.f32 %v13023_v43, %v1533_v21  ;;  %v13032_v2 = vld [vmem:[#allocation258_spill] sm:$0xff] }
 0x391   : > { %v1535_v13 = vadd.f32 %v13024_v28, %v1459_v16  ;;  %v1538_v16 = vadd.f32 %v10357_v48, %v1462_v41  ;;  %v10477_v49 = vmul.f32 %v10473_v34, %v12835_v26  ;;  %v10483_v50 = vmul.f32 %v10479_v4, %v12846_v8  ;;  %v10487_v41 = vpop.permute.xlu0 %3786  ;;  %v13029_v8 = vld [vmem:[#allocation208_spill] sm:$0xff] }
 0x392   : > { %v1629_v0 = vadd.f32 %v1613_v32, %v1534_v57  ;;  %v1631_v37 = vadd.f32 %v13027_v62, %v1536_v7  ;;  %v1115_v48 = vadd.f32 %v10000_v40, %v1022_v6  ;;  %v1632_v54 = vadd.f32 %v1615_v51, %v1537_v15  ;;  %v13031_v57 = vld [vmem:[#allocation63_spill] sm:$0xff]  ;;  %v13039_v6 = vld [vmem:[#allocation268_spill] sm:$0xff] }
 0x393   : > { %v1630_v21 = vadd.f32 %v1614_v17, %v1535_v13  ;;  %v1633_v59 = vadd.f32 %v1616_v20, %v1538_v16  ;;  %v1005_v26 = vsel %vm451_vm2, %v9823_v45, %v9873_v11  ;;  %v1006_v5 = vsel %vm451_vm2, %v9873_v11, %v9848_v3  ;;  %2189 = vrot.lane.b32.xlu1 %v13029_v8, %s6693_s26  ;;  %v13033_v3 = vld [vmem:[#allocation263_spill] sm:$0xff]  ;;  %v13034_v11 = vld [vmem:[#allocation64_spill] sm:$0xff]  ;;  %v13035_v13 = vld [vmem:[#allocation261_spill] sm:$0xff] }
 0x394   : > { %v1706_v7 = vsel %vm410_vm1, %v13031_v57, %v13030_v35  ;;  %v1707_v55 = vsel %vm410_vm1, %v13030_v35, %v13032_v2  ;;  %v928_v15 = vadd.f32 %v10012_v52, %v849_v58  ;;  %v1178_v12 = vadd.f32 %v10165_v38, %v1115_v48  ;;  %2050 = vrot.lane.b32.xlu0 %v9759_v47, %s6695_s15  ;;  %v1343_v52 = vpop.permute.xlu1 %1342  ;;  %v13036_v47 = vld [vmem:[#allocation87_spill] sm:$0xff] }
 0x395   : > { %v1721_v45 = vadd.f32 %v13031_v57, %v1628_v25  ;;  %v1708_v43 = vsel %vm410_vm1, %v13034_v11, %v13033_v3  ;;  %v1098_v32 = vsel %vm410_vm1, %v10000_v40, %v9996_v31  ;;  %v1099_v28 = vsel %vm410_vm1, %v9996_v31, %v10042_v23  ;;  %v1341_v51 = vpop.permute.xlu0 %1340  ;;  %v13037_v31 = vld [vmem:[#allocation206_spill] sm:$0xff]  ;;  %v13040_v25 = vld [vmem:[#allocation269_spill] sm:$0xff] }
 0x396   : > { %v1709_v30 = vsel %vm410_vm1, %v13033_v3, %v13035_v13  ;;  %v1023_v17 = vadd.f32 %v1005_v26, %v13036_v47  ;;  %v1024_v44 = vadd.f32 %v1006_v5, %v928_v15  ;;  %v1274_v62 = vadd.f32 %v10323_v10, %v1178_v12  ;;  %v13048_v47 = vld [vmem:[#allocation66_spill] sm:$0xff] }
 0x397   : > { %v1722_v22 = vadd.f32 %v1706_v7, %v1629_v0  ;;  %v1724_v20 = vadd.f32 %v13034_v11, %v1631_v37  ;;  %v1723_v58 = vadd.f32 %v1707_v55, %v1630_v21  ;;  %v1162_v40 = vsel %vm370_vm7, %v10165_v38, %v10221_v61  ;;  %v13041_v0 = vld [vmem:[#allocation210_spill] sm:$0xff] }
 0x398   : > { %v13038_v23 = vrot.slane %v13037_v31, 1  ;;  %v1772_v16 = vsel %vm370_vm7, %v13040_v25, %v13039_v6  ;;  %v1116_v48 = vadd.f32 %v1098_v32, %v1023_v17  ;;  %v1117_v26 = vadd.f32 %v1099_v28, %v1024_v44  ;;  %v1437_v57 = vpop.permute.xlu1 %1436  ;;  %v13049_v17 = vld [vmem:[#allocation273_spill] sm:$0xff]  ;;  %v13053_v31 = vld [vmem:[#allocation278_spill] sm:$0xff] }
 0x399   : > { %v1367_v5 = vadd.f32 %v1341_v51, %v1274_v62  ;;  %v13042_v8 = vrot.slane %v13041_v0, 1  ;;  %v1725_v37 = vadd.f32 %v1708_v43, %v1632_v54  ;;  %v1726_v21 = vadd.f32 %v1709_v30, %v1633_v59  ;;  %v1345_v12 = vpop.permute.xlu0 %1344  ;;  %v13050_v62 = vld [vmem:[#allocation275_spill] sm:$0xff] }
 0x39a   : > { %2193 = vrot.lane.b32.xlu1 %v13038_v23, %s6693_s26  ;;  %v1257_v38 = vsel %vm665_vm13, %v10323_v10, %v10378_v63  ;;  %v1258_v35 = vsel %vm665_vm13, %v10378_v63, %v10365_v24  ;;  %v1786_v7 = vadd.f32 %v13039_v6, %v1723_v58  ;;  %v1179_v2 = vadd.f32 %v1162_v40, %v1116_v48  ;;  %v13043_v10 = vld [vmem:[#allocation224_spill] sm:$0xff]  ;;  %v13045_v63 = vld [vmem:[#allocation270_spill] sm:$0xff]  ;;  %v13054_v23 = vld [vmem:[#allocation279_spill] sm:$0xff] }
 0x39b   : > { %2191 = vrot.lane.b32.xlu0 %v13042_v8, %s6693_s26  ;;  %v1180_v55 = vadd.f32 %v10221_v61, %v1117_v26  ;;  %v1463_v15 = vadd.f32 %v1437_v57, %v1367_v5  ;;  %v1784_v3 = vadd.f32 %v13040_v25, %v1721_v45  ;;  %v1785_v54 = vadd.f32 %v1772_v16, %v1722_v22  ;;  %v13046_v61 = vld [vmem:[#allocation222_spill] sm:$0xff]  ;;  %v13047_v45 = vld [vmem:[#allocation272_spill] sm:$0xff] }
 0x39c   : > { %v1350_v59 = vsel %vm292_vm0, %v1341_v51, %v1343_v52  ;;  %v1351_v11 = vsel %vm292_vm0, %v1343_v52, %v1345_v12  ;;  %v13044_v43 = vrot.slane %v13043_v10, 1  ;;  %v1789_v24 = vadd.f32 %v13045_v63, %v1726_v21  ;;  %v1441_v22 = vpop.permute.xlu1 %1440  ;;  %v13052_v58 = vld [vmem:[#allocation274_spill] sm:$0xff]  ;;  %v13055_v48 = vld [vmem:[#allocation276_spill] sm:$0xff]  ;;  %v13056_v21 = vld [vmem:[#allocation229_spill] sm:$0xff] }
 0x39d   : > { %v1275_v32 = vadd.f32 %v1257_v38, %v1179_v2  ;;  %v1276_v28 = vadd.f32 %v1258_v35, %v1180_v55  ;;  %v10551_v13 = vadd.f32 %v10368_v36, %v1463_v15  ;;  %v1773_v30 = vsel %vm370_vm7, %v13047_v45, %v13045_v63  ;;  %v13051_v36 = vld [vmem:[#allocation277_spill] sm:$0xff]  ;;  %v10583_v35 = vld [vmem:[#allocation2 + $0xa0] sm:$0xff] }
 0x39e   : > { %2272 = vrot.lane.b32.xlu1 %v13044_v43, %s6692_s24  ;;  %v1787_v52 = vadd.f32 %v13047_v45, %v1724_v20  ;;  %v1864_v44 = vsel %vm665_vm13, %v13049_v17, %v13048_v47  ;;  %v1865_v51 = vsel %vm665_vm13, %v13048_v47, %v13050_v62  ;;  %v1866_v40 = vsel %vm665_vm13, %v13052_v58, %v13051_v36  ;;  %v1439_v20 = vpop.permute.xlu0 %1438  ;;  %v13059_v12 = vld [vmem:[#allocation221_spill] sm:$0xff] }
 0x39f   : > { %2270 = vrot.lane.b32.xlu0 %v13046_v61, %s6692_s24  ;;  %v2093_v6 = vsel %vm370_vm7, %v13054_v23, %v13053_v31  ;;  %v1368_v25 = vadd.f32 %v1350_v59, %v1275_v32  ;;  %v1369_v16 = vadd.f32 %v1351_v11, %v1276_v28  ;;  %v1867_v26 = vsel %vm665_vm13, %v13051_v36, %v13055_v48  ;;  %v13061_v61 = vld [vmem:[#allocation218_spill] sm:$0xff]  ;;  %v13068_v36 = vld [vmem:[#allocation287_spill] sm:$0xff]  ;;  %v13075_v48 = vld [vmem:[#allocation288_spill] sm:$0xff] }
 0x3a0   : > { %v10576_v5 = vmul.f32 %v9914_v18, %v13053_v31  ;;  %v1446_v0 = vsel %vm704_vm4, %v1437_v57, %v1439_v20  ;;  %v1447_v8 = vsel %vm704_vm4, %v1439_v20, %v1441_v22  ;;  %v13057_v38 = vrot.slane %v13056_v21, 1  ;;  %v10596_v63 = vpop.permute.xlu1 %3955  ;;  %v13074_v20 = vld [vmem:[#allocation28_spill] sm:$0xff]  ;;  %v13076_v21 = vld [vmem:[#allocation27_spill] sm:$0xff] }
 0x3a1   : > { %v10587_v2 = vmul.f32 %v10583_v35, %v13053_v31  ;;  %v2097_v55 = vmul.f32 %v9793_v27, %v13054_v23  ;;  %v1464_v15 = vadd.f32 %v1446_v0, %v1368_v25  ;;  %v1465_v18 = vadd.f32 %v1447_v8, %v1369_v16  ;;  %v13073_v25 = vld [vmem:[#allocation26_spill] sm:$0xff] }
 0x3a2   : > { %2330 = vrot.lane.b32.xlu1 %v13057_v38, %s6697_s6  ;;  %v13060_v57 = vrot.slane %v13059_v12, 1  ;;  %v1788_v59 = vadd.f32 %v1773_v30, %v1725_v37  ;;  %v1879_v11 = vadd.f32 %v13049_v17, %v1784_v3  ;;  %v1880_v10 = vadd.f32 %v1864_v44, %v1785_v54  ;;  %v10602_v47 = vpop.permute.xlu0 %3953  ;;  %v13062_v54 = vld [vmem:[#allocation281_spill] sm:$0xff]  ;;  %v13063_v30 = vld [vmem:[#allocation282_spill] sm:$0xff]  ;;  %v13064_v17 = vld [vmem:[#allocation235_spill] sm:$0xff] }
 0x3a3   : > { %13058 = vst [vmem:[#allocation128_spill] sm:$0xff] %v10587_v2  ;;  %v2098_v43 = vmul.f32 %v9793_v27, %v2093_v6  ;;  %v1882_v32 = vadd.f32 %v13052_v58, %v1787_v52  ;;  %v1881_v28 = vadd.f32 %v1865_v51, %v1786_v7  ;;  %v10600_v45 = vadd.f32 %v13061_v61, %v1464_v15  ;;  %v13067_v51 = vld [vmem:[#allocation34_spill] sm:$0xff]  ;;  %v13078_v15 = vld [vmem:[#allocation289_spill] sm:$0xff] }
 0x3a4   : > { %2274 = vrot.lane.b32.xlu0 %v13060_v57, %s6692_s24  ;;  %v10605_v62 = vadd.f32 %v10371_v1, %v1465_v18  ;;  %v1883_v22 = vadd.f32 %v1866_v40, %v1788_v59  ;;  %v1884_v37 = vadd.f32 %v1867_v26, %v1789_v24  ;;  %v2112_v3 = vrot.slane %v10576_v5, 1  ;;  %v13069_v24 = vld [vmem:[#allocation285_spill] sm:$0xff]  ;;  %v13070_v40 = vld [vmem:[#allocation227_spill] sm:$0xff]  ;;  %v10635_v5 = vpop.permute.xlu1 %3959 }
 0x3a5   : > { %v1957_v27 = vsel %vm292_vm0, %v13063_v30, %v13062_v54  ;;  %v13065_v52 = vrot.slane %v13064_v17, 1  ;;  %v12123_v7 = vrot.slane %v10587_v2, 1  ;;  %v10615_v44 = vrot.slane %v2097_v55, 1  ;;  %v13077_v55 = vld [vmem:[#allocation29_spill] sm:$0xff]  ;;  %v13130_v2 = vld [vmem:[#allocation284_spill] sm:$0xff] }
 0x3a6   : > { %v1958_v1 = vsel %vm292_vm0, %v13062_v54, %v13067_v51  ;;  %v1959_v58 = vsel %vm292_vm0, %v13069_v24, %v13068_v36  ;;  %v13071_v31 = vrot.slane %v13070_v40, 1  ;;  %v10626_v23 = vrot.slane %v2098_v43, 1  ;;  %v10644_v12 = vpop.permute.xlu0 %3957  ;;  %v13079_v43 = vld [vmem:[#allocation290_spill] sm:$0xff] }
 0x3a7   : > { %2407 = vrot.lane.b32.xlu1 %v13065_v52, %s6698_s17  ;;  %13066 = vst [vmem:[#allocation159_spill] sm:$0xff] %v10615_v44  ;;  %v1972_v6 = vadd.f32 %v13063_v30, %v1879_v11  ;;  %v1960_v16 = vsel %vm292_vm0, %v13068_v36, %v13073_v25  ;;  %v2052_v26 = vsel %vm704_vm4, %v13075_v48, %v13074_v20  ;;  %v13086_v25 = vld [vmem:[#allocation250_spill] sm:$0xff] }
 0x3a8   : > { %2332 = vrot.lane.b32.xlu0 %v13071_v31, %s6697_s6  ;;  %13072 = vst [vmem:[#allocation134_spill] sm:$0xff] %v10626_v23  ;;  %v1973_v0 = vadd.f32 %v1957_v27, %v1880_v10  ;;  %v1975_v8 = vadd.f32 %v13069_v24, %v1882_v32  ;;  %v2053_v38 = vsel %vm704_vm4, %v13074_v20, %v13076_v21  ;;  %v13080_v32 = vld [vmem:[#allocation243_spill] sm:$0xff]  ;;  %v10657_v51 = vpop.permute.xlu1 %3963  ;;  %v13087_v20 = vld [vmem:[#allocation252_spill] sm:$0xff] }
 0x3a9   : > { %v2054_v18 = vsel %vm704_vm4, %v13078_v15, %v13077_v55  ;;  %v1974_v57 = vadd.f32 %v1958_v1, %v1881_v28  ;;  %v1976_v59 = vadd.f32 %v1959_v58, %v1883_v22  ;;  %v2067_v11 = vadd.f32 %v13075_v48, %v1972_v6  ;;  %v13081_v27 = vld [vmem:[#allocation239_spill] sm:$0xff]  ;;  %v13083_v1 = vld [vmem:[#allocation88_spill] sm:$0xff] }
 0x3aa   : > { %v2055_v10 = vsel %vm704_vm4, %v13077_v55, %v13079_v43  ;;  %v1977_v61 = vadd.f32 %v1960_v16, %v1884_v37  ;;  %v2068_v54 = vadd.f32 %v2052_v26, %v1973_v0  ;;  %v2070_v30 = vadd.f32 %v13078_v15, %v1975_v8  ;;  %v10667_v40 = vpop.permute.xlu0 %3961  ;;  %v13090_v0 = vld [vmem:[#allocation292_spill] sm:$0xff] }
 0x3ab   : > { %2411 = vrot.lane.b32.xlu1 %v13080_v32, %s6698_s17  ;;  %v13082_v17 = vrot.slane %v13081_v27, 1  ;;  %v2069_v22 = vadd.f32 %v2053_v38, %v1974_v57  ;;  %v2071_v52 = vadd.f32 %v2054_v18, %v1976_v59  ;;  %v13084_v36 = vrot.slane %v13083_v1, 2  ;;  %v13092_v55 = vld [vmem:[#allocation248_spill] sm:$0xff]  ;;  %v13094_v59 = vld [vmem:[#allocation297_spill] sm:$0xff]  ;;  %v13097_v27 = vld [vmem:[#allocation298_spill] sm:$0xff] }
 0x3ac   : > { %v2072_v58 = vadd.f32 %v2055_v10, %v1977_v61  ;;  %v10671_v31 = vmul.f32 %v10473_v34, %v12888_v46  ;;  %v10676_v16 = vmul.f32 %v10479_v4, %v13086_v25  ;;  %v2128_v9 = vadd.f32 %v10615_v44, %v2067_v11  ;;  %v13089_v46 = vld [vmem:[#allocation291_spill] sm:$0xff]  ;;  %v13095_v11 = vld [vmem:[#allocation294_spill] sm:$0xff]  ;;  %v13096_v10 = vld [vmem:[#allocation296_spill] sm:$0xff]  ;;  %v10703_v61 = vpop.permute.xlu1 %4048 }
 0x3ad   : > { %2409 = vrot.lane.b32.xlu0 %v13082_v17, %s6698_s17  ;;  %v10664_v24 = vsel %vm3865_vm11, %v13084_v36, %v4040_v53  ;;  %v2118_v53 = vsel %vm2109_vm10, %v2112_v3, %v12123_v7  ;;  %v13088_v48 = vrot.slane %v13087_v20, 1  ;;  %v2129_v26 = vadd.f32 %v10626_v23, %v2068_v54  ;;  %v13091_v4 = vld [vmem:[#allocation295_spill] sm:$0xff]  ;;  %v13100_v20 = vld [vmem:[#allocation301_spill] sm:$0xff] }
 0x3ae   : > { %13085 = vst [vmem:[#allocation104_spill] sm:$0xff] %v10664_v24  ;;  %v2195_v8 = vsel %vm451_vm2, %v13090_v0, %v13089_v46  ;;  %v2131_v21 = vadd.f32 %v10615_v44, %v2070_v30  ;;  %v2196_v38 = vsel %vm451_vm2, %v13089_v46, %v13091_v4  ;;  %v13093_v15 = vrot.slane %v13092_v55, 1  ;;  %v13098_v17 = vld [vmem:[#allocation299_spill] sm:$0xff]  ;;  %v13102_v4 = vld [vmem:[#allocation300_spill] sm:$0xff] }
 0x3af   : > { %2490 = vrot.lane.b32.xlu1 %v13088_v48, %s6696_s7  ;;  %v2130_v18 = vadd.f32 %v2112_v3, %v2069_v22  ;;  %v2132_v57 = vadd.f32 %v10626_v23, %v2071_v52  ;;  %v2197_v43 = vsel %vm451_vm2, %v13095_v11, %v13094_v59  ;;  %v2198_v32 = vsel %vm451_vm2, %v13094_v59, %v13096_v10  ;;  %v13099_v3 = vld [vmem:[#allocation25_spill] sm:$0xff]  ;;  %v10712_v52 = vpop.permute.xlu0 %4046  ;;  %v13101_v48 = vld [vmem:[#allocation24_spill] sm:$0xff]  ;;  %v13105_v59 = vld [vmem:[#allocation302_spill] sm:$0xff] }
 0x3b0   : > { %v2210_v54 = vadd.f32 %v13090_v0, %v2128_v9  ;;  %v2133_v30 = vadd.f32 %v2118_v53, %v2072_v58  ;;  %v2276_v1 = vsel %vm410_vm1, %v13098_v17, %v13097_v27  ;;  %v2277_v22 = vsel %vm410_vm1, %v13097_v27, %v13099_v3  ;;  %v13103_v9 = vld [vmem:[#allocation257_spill] sm:$0xff]  ;;  %v13106_v10 = vld [vmem:[#allocation303_spill] sm:$0xff]  ;;  %v10730_v3 = vpop.permute.xlu1 %4052  ;;  %v13143_v24 = vld [vmem:[#allocation320_spill] sm:$0xff] }
 0x3b1   : > { %2488 = vrot.lane.b32.xlu0 %v13093_v15, %s6696_s7  ;;  %v2211_v36 = vadd.f32 %v2195_v8, %v2129_v26  ;;  %v2212_v25 = vadd.f32 %v2196_v38, %v2130_v18  ;;  %v2278_v46 = vsel %vm410_vm1, %v13101_v48, %v13100_v20  ;;  %v2279_v58 = vsel %vm410_vm1, %v13100_v20, %v13102_v4  ;;  %v13107_v8 = vld [vmem:[#allocation255_spill] sm:$0xff] }
 0x3b2   : > { %v13104_v53 = vrot.slane %v13103_v9, 1  ;;  %v2213_v0 = vadd.f32 %v13095_v11, %v2131_v21  ;;  %v2214_v55 = vadd.f32 %v2197_v43, %v2132_v57  ;;  %v2215_v15 = vadd.f32 %v2198_v32, %v2133_v30  ;;  %13108 = vst [vmem:[#allocation160_spill] sm:$0xff] %v10730_v3  ;;  %v13138_v44 = vld [vmem:[#allocation155_spill] sm:$0xff] }
 0x3b3   : > { %v2334_v26 = vsel %vm370_vm7, %v13106_v10, %v13105_v59  ;;  %v2291_v38 = vadd.f32 %v13098_v17, %v2210_v54  ;;  %v2292_v18 = vadd.f32 %v2276_v1, %v2211_v36  ;;  %v2293_v27 = vadd.f32 %v2277_v22, %v2212_v25  ;;  %v10734_v11 = vpop.permute.xlu0 %4050  ;;  %v13109_v54 = vld [vmem:[#allocation304_spill] sm:$0xff]  ;;  %v13110_v17 = vld [vmem:[#allocation305_spill] sm:$0xff]  ;;  %v2600_v22 = vld [vmem:[#allocation2 + $0x60] sm:$0xf8] }
 0x3b4   : > { %2570 = vrot.lane.b32.xlu1 %v13104_v53, %s6695_s15  ;;  %v2294_v4 = vadd.f32 %v13101_v48, %v2213_v0  ;;  %v2295_v21 = vadd.f32 %v2278_v46, %v2214_v55  ;;  %v2296_v57 = vadd.f32 %v2279_v58, %v2215_v15  ;;  %v2335_v1 = vsel %vm370_vm7, %v13110_v17, %v13109_v54  ;;  %v13111_v36 = vld [vmem:[#allocation262_spill] sm:$0xff]  ;;  %v13115_v55 = vld [vmem:[#allocation31_spill] sm:$0xff] }
 0x3b5   : > { %2492 = vrot.lane.b32.xlu0 %v13107_v8, %s6696_s7  ;;  %v2348_v32 = vadd.f32 %v13105_v59, %v2293_v27  ;;  %v2346_v30 = vadd.f32 %v13106_v10, %v2291_v38  ;;  %v2347_v9 = vadd.f32 %v2334_v26, %v2292_v18  ;;  %v13112_v25 = vrot.slane %v13111_v36, 1  ;;  %v13113_v58 = vld [vmem:[#allocation306_spill] sm:$0xff]  ;;  %v13116_v59 = vld [vmem:[#allocation260_spill] sm:$0xff]  ;;  %v13117_v10 = vld [vmem:[#allocation307_spill] sm:$0xff]  ;;  %v10771_v36 = vpop.permute.xlu1 %4056 }
 0x3b6   : > { %v2351_v48 = vadd.f32 %v13109_v54, %v2296_v57  ;;  %v2349_v46 = vadd.f32 %v13110_v17, %v2294_v4  ;;  %v13114_v53 = vld [vmem:[#allocation42_spill] sm:$0xff]  ;;  %v2414_v15 = vsel %vm665_vm13, %v13113_v58, %v13115_v55  ;;  %v13118_v26 = vld [vmem:[#allocation81_spill] sm:$0xff]  ;;  %13124 = vst [vmem:[#allocation146_spill] sm:$0xff] %v10771_v36  ;;  %v6475_v55 = vld [vmem:[#allocation2 + $0x68] sm:$0xf8] }
 0x3b7   : > { %v2413_v0 = vsel %vm665_vm13, %v13114_v53, %v13113_v58  ;;  %v2415_v8 = vsel %vm665_vm13, %v13118_v26, %v13117_v10  ;;  %v13119_v38 = vld [vmem:[#allocation30_spill] sm:$0xff]  ;;  %v13120_v27 = vld [vmem:[#allocation309_spill] sm:$0xff]  ;;  %v10782_v43 = vpop.permute.xlu0 %4054  ;;  %v2428_v20 = vadd.f32 %v13114_v53, %v2346_v30  ;;  %v2430_v28 = vadd.f32 %v2414_v15, %v2348_v32  ;;  %v13131_v32 = vld [vmem:[#allocation32_spill] sm:$0xff] }
 0x3b8   : > { %2574 = vrot.lane.b32.xlu1 %v13112_v25, %s6695_s15  ;;  %v2416_v18 = vsel %vm665_vm13, %v13117_v10, %v13119_v38  ;;  %v10763_v4 = vmul.f32 %v10583_v35, %v13120_v27  ;;  %v10765_v57 = vld [vmem:[#allocation2 + $0x18] sm:$0xff]  ;;  %v13122_v54 = vld [vmem:[#allocation310_spill] sm:$0xff]  ;;  %v2350_v25 = vadd.f32 %v2335_v1, %v2295_v21  ;;  %v6476_v10 = vld [vmem:[#allocation2 + $0x70] sm:$0xf8]  ;;  %v2429_v6 = vadd.f32 %v2413_v0, %v2347_v9 }
 0x3b9   : > { %2572 = vrot.lane.b32.xlu0 %v13116_v59, %s6695_s15  ;;  %v10769_v17 = vmul.f32 %v10765_v57, %v13122_v54  ;;  %v10774_v58 = vmul.f32 %v13122_v54, %v2600_v22  ;;  %v13125_v59 = vld [vmem:[#allocation311_spill] sm:$0xff]  ;;  %v10780_v38 = vmul.f32 %v6476_v10, %v13120_v27  ;;  %v2431_v37 = vadd.f32 %v13118_v26, %v2349_v46  ;;  %v13126_v21 = vld [vmem:[#allocation100_spill] sm:$0xff]  ;;  %v13127_v54 = vld [vmem:[#allocation313_spill] sm:$0xff]  ;;  %v10799_v53 = vpop.permute.xlu1 %1609 }
 0x3ba   : > { %13121 = vst [vmem:[#allocation142_spill] sm:$0xff] %v10763_v4  ;;  %v10777_v7 = vmul.f32 %v6475_v55, %v13125_v59  ;;  %v2432_v1 = vadd.f32 %v2415_v8, %v2350_v25  ;;  %v2433_v22 = vadd.f32 %v2416_v18, %v2351_v48  ;;  %v13128_v55 = vld [vmem:[#allocation33_spill] sm:$0xff]  ;;  %v13129_v10 = vld [vmem:[#allocation138_spill] sm:$0xff]  ;;  %v2495_v46 = vsel %vm292_vm0, %v13127_v54, %v13131_v32  ;;  %v6478_v48 = vld [vmem:[#allocation2 + $0xd0] sm:$0x7] }
 0x3bb   : > { %13123 = vst [vmem:[#allocation145_spill] sm:$0xff] %v10769_v17  ;;  %v2494_v59 = vsel %vm292_vm0, %v13128_v55, %v13127_v54  ;;  %v6477_v27 = vld [vmem:[#allocation2 + $0xd8] sm:$0x7]  ;;  %v13132_v0 = vld [vmem:[#allocation280_spill] sm:$0xff]  ;;  %v13134_v8 = vld [vmem:[#allocation314_spill] sm:$0xff]  ;;  %v2643_v25 = vrot.slane %v10774_v58, 4  ;;  %v2511_v58 = vadd.f32 %v2495_v46, %v2430_v28 }
 0x3bc   : > { %2743 = vrot.lane.b32.xlu1 %v13126_v21, %s6693_s26  ;;  %v2877_v23 = vmul.f32 %v6477_v27, %v13130_v2  ;;  %v2876_v15 = vmul.f32 %v6478_v48, %v13132_v0  ;;  %v13133_v26 = vld [vmem:[#allocation60_spill] sm:$0xff]  ;;  %v2644_v2 = vrot.slane %v10777_v7, 4  ;;  %v2645_v27 = vrot.slane %v10780_v38, 4  ;;  %v10808_v21 = vpop.permute.xlu0 %1607  ;;  %v13135_v32 = vld [vmem:[#allocation315_spill] sm:$0xff]  ;;  %v13139_v38 = vld [vmem:[#allocation318_spill] sm:$0xff] }
 0x3bd   : > { %2741 = vrot.lane.b32.xlu0 %v13129_v10, %s6693_s26  ;;  %v2496_v18 = vsel %vm292_vm0, %v13134_v8, %v13133_v26  ;;  %v2509_v10 = vadd.f32 %v13128_v55, %v2428_v20  ;;  %v2510_v54 = vadd.f32 %v2494_v59, %v2429_v6  ;;  %v2497_v30 = vsel %vm292_vm0, %v13133_v26, %v13135_v32  ;;  %v13136_v48 = vld [vmem:[#allocation36_spill] sm:$0xff]  ;;  %v13140_v6 = vld [vmem:[#allocation94_spill] sm:$0xff]  ;;  %v13141_v59 = vld [vmem:[#allocation321_spill] sm:$0xff]  ;;  %v10831_v36 = vpop.permute.xlu1 %4118 }
 0x3be   : > { %v13137_v0 = vld [vmem:[#allocation316_spill] sm:$0xff]  ;;  %v2512_v7 = vadd.f32 %v13134_v8, %v2431_v37  ;;  %v2577_v19 = vsel %vm704_vm4, %v13136_v48, %v13139_v38  ;;  %v2892_v20 = vrot.slane %v2877_v23, 4  ;;  %v2513_v55 = vadd.f32 %v2496_v18, %v2432_v1  ;;  %v13142_v26 = vld [vmem:[#allocation317_spill] sm:$0xff] }
 0x3bf   : > { %v2576_v9 = vsel %vm704_vm4, %v13137_v0, %v13136_v48  ;;  %v2578_v32 = vsel %vm704_vm4, %v13142_v26, %v13141_v59  ;;  %v2890_v28 = vrot.slane %v2876_v15, 4  ;;  %v2514_v37 = vadd.f32 %v2497_v30, %v2433_v22  ;;  %v13144_v1 = vld [vmem:[#allocation177_spill] sm:$0xff]  ;;  %v13150_v30 = vld [vmem:[#allocation99_spill] sm:$0xff] }
 0x3c0   : > { %2834 = vrot.lane.b32.xlu1 %v13138_v44, %s6692_s24  ;;  %v2579_v44 = vsel %vm704_vm4, %v13141_v59, %v13143_v24  ;;  %v2591_v46 = vadd.f32 %v13137_v0, %v2509_v10  ;;  %v2592_v8 = vadd.f32 %v2576_v9, %v2510_v54  ;;  %v2594_v48 = vadd.f32 %v13142_v26, %v2512_v7  ;;  %v10835_v38 = vpop.permute.xlu0 %1611 }
 0x3c1   : > { %2745 = vrot.lane.b32.xlu0 %v13140_v6, %s6693_s26  ;;  %v2593_v23 = vadd.f32 %v2577_v19, %v2511_v58  ;;  %v13145_v18 = vrot.slane %v10435_v56, 2  ;;  %v13146_v6 = vld [vmem:[#allocation147_spill] sm:$0xff]  ;;  %v13149_v22 = vrot.slane %v10477_v49, 2  ;;  %v13151_v15 = vrot.slane %v13150_v30, 2  ;;  %v13154_v19 = vld [vmem:[#allocation200_spill] sm:$0xff]  ;;  %v13157_v58 = vld [vmem:[#allocation105_spill] sm:$0xff] }
 0x3c2   : > { %v13147_v3 = vrot.slane %v13146_v6, 2  ;;  %v13153_v10 = vrot.slane %v10483_v50, 2  ;;  %v13155_v54 = vrot.slane %v13154_v19, 2  ;;  %v2595_v56 = vadd.f32 %v2578_v32, %v2513_v55 }
 0x3c3   : > { %v10851_v9 = vsel %vm3865_vm11, %v13151_v15, %v13149_v22  ;;  %v2596_v7 = vadd.f32 %v2579_v44, %v2514_v37  ;;  %v13160_v26 = vrot.slane %v10671_v31, 2  ;;  %v13164_v6 = vrot.slane %v10769_v17, 4  ;;  %v10878_v44 = vpop.permute.xlu1 %4122  ;;  %v13167_v37 = vld [vmem:[#allocation283_spill] sm:$0xff]  ;;  %v13170_v15 = vld [vmem:[#allocation77_spill] sm:$0xff] }
 0x3c4   : > { %2838 = vrot.lane.b32.xlu1 %v13144_v1, %s6692_s24  ;;  %v10844_v24 = vsel %vm3865_vm11, %v13147_v3, %v13145_v18  ;;  %13152 = vst [vmem:[#allocation141_spill] sm:$0xff] %v10851_v9  ;;  %v10858_v0 = vsel %vm3865_vm11, %v13155_v54, %v13153_v10  ;;  %v13158_v3 = vld [vmem:[#allocation286_spill] sm:$0xff]  ;;  %v13161_v1 = vld [vmem:[#allocation107_spill] sm:$0xff]  ;;  %v13165_v55 = vrot.slane %v10763_v4, 4  ;;  %13166 = vst [vmem:[#allocation137_spill] sm:$0xff] %v10878_v44  ;;  %v13168_v30 = vrot.slane %v13167_v37, 4 }
 0x3c5   : > { %13148 = vst [vmem:[#allocation35_spill] sm:$0xff] %v10844_v24  ;;  %13156 = vst [vmem:[#allocation133_spill] sm:$0xff] %v10858_v0  ;;  %2836 = vrot.lane.b32.xlu0 %v13157_v58, %s6692_s24  ;;  %v13159_v59 = vrot.slane %v13158_v3, 4  ;;  %v13162_v18 = vrot.slane %v13161_v1, 2  ;;  %v2647_v22 = vsel %vm2642_vm6, %v2643_v25, %v13164_v6  ;;  %v13169_v31 = vrot.slane %v10676_v16, 2  ;;  %v13175_v6 = vld [vmem:[#allocation322_spill] sm:$0xff] }
 0x3c6   : > { %v2651_v32 = vsel %vm2642_vm6, %v2645_v27, %v13165_v55  ;;  %v13171_v10 = vrot.slane %v13170_v15, 2  ;;  %v2667_v54 = vadd.f32 %v2643_v25, %v2591_v46  ;;  %v2668_v58 = vadd.f32 %v2644_v2, %v2592_v8  ;;  %v13176_v55 = vld [vmem:[#allocation323_spill] sm:$0xff]  ;;  %v13177_v16 = vld [vmem:[#allocation325_spill] sm:$0xff]  ;;  %v13179_v15 = vld [vmem:[#allocation324_spill] sm:$0xff] }
 0x3c7   : > { %v2893_v49 = vsel %vm2642_vm6, %v13159_v59, %v2892_v20  ;;  %v10870_v50 = vsel %vm3865_vm11, %v13162_v18, %v13160_v26  ;;  %v2891_v20 = vsel %vm2642_vm6, %v13168_v30, %v2890_v28  ;;  %v2670_v3 = vadd.f32 %v2647_v22, %v2594_v48  ;;  %v13173_v59 = vld [vmem:[#allocation312_spill] sm:$0xff]  ;;  %v10893_v18 = vpop.permute.xlu0 %4120  ;;  %v13180_v48 = vld [vmem:[#allocation327_spill] sm:$0xff]  ;;  %v13188_v4 = vld [vmem:[#allocation265_spill] sm:$0xff] }
 0x3c8   : > { %13163 = vst [vmem:[#allocation150_spill] sm:$0xff] %v10870_v50  ;;  %v10888_v19 = vsel %vm3865_vm11, %v13171_v10, %v13169_v31  ;;  %v13174_v26 = vrot.slane %v13173_v59, 4  ;;  %v2747_v28 = vsel %vm451_vm2, %v13176_v55, %v13175_v6  ;;  %v2669_v37 = vadd.f32 %v2645_v27, %v2593_v23  ;;  %v13178_v31 = vld [vmem:[#allocation328_spill] sm:$0xff]  ;;  %2904 = vrot.lane.b32.xlu1 %v2893_v49, %s6697_s6  ;;  %v13181_v23 = vld [vmem:[#allocation62_spill] sm:$0xff]  ;;  %v13182_v10 = vld [vmem:[#allocation329_spill] sm:$0xff] }
 0x3c9   : > { %13172 = vst [vmem:[#allocation136_spill] sm:$0xff] %v10888_v19  ;;  %v2748_v30 = vsel %vm451_vm2, %v13175_v6, %v13177_v16  ;;  %v2749_v25 = vsel %vm451_vm2, %v13179_v15, %v13178_v31  ;;  %v2762_v46 = vadd.f32 %v13176_v55, %v2667_v54  ;;  %v2672_v8 = vadd.f32 %v2651_v32, %v2596_v7  ;;  %v13184_v6 = vld [vmem:[#allocation68_spill] sm:$0xff]  ;;  %v13185_v54 = vld [vmem:[#allocation330_spill] sm:$0xff]  ;;  %v10920_v7 = vpop.permute.xlu1 %1700  ;;  %v13213_v50 = vld [vmem:[#allocation45_spill] sm:$0xff] }
 0x3ca   : > { %v2649_v1 = vsel %vm2642_vm6, %v2644_v2, %v13174_v26  ;;  %v2750_v22 = vsel %vm451_vm2, %v13178_v31, %v13180_v48  ;;  %2902 = vrot.lane.b32.xlu0 %v2891_v20, %s6697_s6  ;;  %v2765_v27 = vadd.f32 %v13179_v15, %v2670_v3  ;;  %v2840_v59 = vsel %vm410_vm1, %v13182_v10, %v13181_v23  ;;  %v13183_v26 = vld [vmem:[#allocation332_spill] sm:$0xff]  ;;  %v13186_v20 = vld [vmem:[#allocation67_spill] sm:$0xff]  ;;  %v13209_v19 = vld [vmem:[#allocation338_spill] sm:$0xff] }
 0x3cb   : > { %v2671_v2 = vadd.f32 %v2649_v1, %v2595_v56  ;;  %v2841_v49 = vsel %vm410_vm1, %v13181_v23, %v13183_v26  ;;  %v2842_v56 = vsel %vm410_vm1, %v13185_v54, %v13184_v6  ;;  %v2763_v32 = vadd.f32 %v2747_v28, %v2668_v58  ;;  %v10925_v16 = vpop.permute.xlu0 %4124  ;;  %v3210_v23 = vld [vmem:[#allocation2 + $0x60] sm:$0xc0]  ;;  %v13187_v26 = vld [vmem:[#allocation109_spill] sm:$0xff]  ;;  %v13212_v0 = vld [vmem:[#allocation48_spill] sm:$0xff] }
 0x3cc   : > { %v2764_v1 = vadd.f32 %v2748_v30, %v2669_v37  ;;  %v2843_v3 = vsel %vm410_vm1, %v13184_v6, %v13186_v20  ;;  %v2767_v31 = vadd.f32 %v2750_v22, %v2672_v8  ;;  %v2855_v15 = vadd.f32 %v13182_v10, %v2762_v46  ;;  %2994 = vrot.lane.b32.xlu1 %v13187_v26, %s6698_s17  ;;  %v13192_v8 = vld [vmem:[#allocation173_spill] sm:$0xff]  ;;  %v13219_v44 = vld [vmem:[#allocation347_spill] sm:$0xff] }
 0x3cd   : > { %v2766_v55 = vadd.f32 %v2749_v25, %v2671_v2  ;;  %v2858_v48 = vadd.f32 %v13185_v54, %v2765_v27  ;;  %v10933_v58 = vmul.f32 %v10311_v14, %v13188_v4  ;;  %v2856_v28 = vadd.f32 %v2840_v59, %v2763_v32  ;;  %v13190_v25 = vld [vmem:[#allocation73_spill] sm:$0xff]  ;;  %v13191_v2 = vld [vmem:[#allocation40_spill] sm:$0xff]  ;;  %v13193_v27 = vld [vmem:[#allocation75_spill] sm:$0xff]  ;;  %v10946_v14 = vpop.permute.xlu1 %1704 }
 0x3ce   : > { %v2857_v37 = vadd.f32 %v2841_v49, %v2764_v1  ;;  %v2906_v6 = vsel %vm370_vm7, %v13191_v2, %v13190_v25  ;;  %2992 = vrot.lane.b32.xlu0 %v13192_v8, %s6698_s17  ;;  %v2860_v46 = vadd.f32 %v2843_v3, %v2767_v31  ;;  %v2918_v22 = vadd.f32 %v13191_v2, %v2855_v15  ;;  %v13194_v54 = vld [vmem:[#allocation340_spill] sm:$0xff]  ;;  %v13196_v59 = vld [vmem:[#allocation337_spill] sm:$0xff]  ;;  %v13200_v15 = vld [vmem:[#allocation334_spill] sm:$0xff] }
 0x3cf   : > { %13189 = vst [vmem:[#allocation319_spill] sm:$0xff] %v10933_v58  ;;  %v2859_v30 = vadd.f32 %v2842_v56, %v2766_v55  ;;  %v2921_v10 = vadd.f32 %v13193_v27, %v2858_v48  ;;  %v10944_v20 = vmul.f32 %v10583_v35, %v13194_v54  ;;  %v13197_v49 = vld [vmem:[#allocation161_spill] sm:$0xff]  ;;  %v10957_v3 = vpop.permute.xlu0 %1702  ;;  %v2919_v31 = vadd.f32 %v2906_v6, %v2856_v28  ;;  %v6479_v48 = vld [vmem:[#allocation2 + $0x70] sm:$0xc0] }
 0x3d0   : > { %v2920_v4 = vadd.f32 %v13190_v25, %v2857_v37  ;;  %v2999_v56 = vsel %vm665_vm13, %v13197_v49, %v13196_v59  ;;  %v13198_v32 = vld [vmem:[#allocation341_spill] sm:$0xff]  ;;  %v2907_v35 = vsel %vm370_vm7, %v13193_v27, %v13200_v15  ;;  %v3236_v26 = vmul.f32 %v6479_v48, %v13194_v54  ;;  %v6480_v37 = vld [vmem:[#allocation2 + $0x68] sm:$0xc0]  ;;  %v13201_v25 = vld [vmem:[#allocation44_spill] sm:$0xff] }
 0x3d1   : > { %13195 = vst [vmem:[#allocation149_spill] sm:$0xff] %v10944_v20  ;;  %v10954_v1 = vmul.f32 %v10765_v57, %v13198_v32  ;;  %v3234_v55 = vmul.f32 %v13198_v32, %v3210_v23  ;;  %v10964_v2 = vmul.f32 %v6480_v37, %v13201_v25  ;;  %v13202_v8 = vld [vmem:[#allocation176_spill] sm:$0xff]  ;;  %v2923_v59 = vadd.f32 %v13200_v15, %v2860_v46  ;;  %v13203_v23 = vld [vmem:[#allocation78_spill] sm:$0xff]  ;;  %v13208_v54 = vld [vmem:[#allocation83_spill] sm:$0xff]  ;;  %v10985_v15 = vpop.permute.xlu1 %4207 }
 0x3d2   : > { %3085 = vrot.lane.b32.xlu1 %v13202_v8, %s6696_s7  ;;  %v2998_v28 = vsel %vm665_vm13, %v13203_v23, %v13197_v49  ;;  %v3013_v6 = vadd.f32 %v13203_v23, %v2918_v22  ;;  %v13204_v32 = vld [vmem:[#allocation348_spill] sm:$0xff]  ;;  %v13205_v27 = vld [vmem:[#allocation86_spill] sm:$0xff]  ;;  %v3015_v37 = vadd.f32 %v2999_v56, %v2920_v4  ;;  %13210 = vst [vmem:[#allocation153_spill] sm:$0xff] %v10985_v15  ;;  %v3255_v49 = vrot.slane %v3236_v26, 7  ;;  %v13215_v9 = vld [vmem:[#allocation189_spill] sm:$0xff] }
 0x3d3   : > { %13199 = vst [vmem:[#allocation241_spill] sm:$0xff] %v10954_v1  ;;  %v3092_v17 = vsel %vm292_vm0, %v13205_v27, %v13204_v32  ;;  %v13206_v48 = vld [vmem:[#allocation186_spill] sm:$0xff]  ;;  %v3187_v4 = vsel %vm704_vm4, %v13213_v50, %v13212_v0  ;;  %v3253_v56 = vrot.slane %v3234_v55, 7  ;;  %v2922_v22 = vadd.f32 %v2907_v35, %v2859_v30  ;;  %v13216_v24 = vld [vmem:[#allocation101_spill] sm:$0xff] }
 0x3d4   : > { %2996 = vrot.lane.b32.xlu0 %v13206_v48, %s6698_s17  ;;  %v13207_v25 = vld [vmem:[#allocation82_spill] sm:$0xff]  ;;  %v10992_v48 = vpop.permute.xlu0 %4205  ;;  %v3016_v15 = vadd.f32 %v13208_v54, %v2921_v10  ;;  %v13217_v55 = vld [vmem:[#allocation113_spill] sm:$0xff] }
 0x3d5   : > { %v3000_v8 = vsel %vm665_vm13, %v13208_v54, %v13207_v25  ;;  %v3001_v46 = vsel %vm665_vm13, %v13207_v25, %v13209_v19  ;;  %v13211_v23 = vld [vmem:[#allocation346_spill] sm:$0xff]  ;;  %13214 = vst [vmem:[#allocation152_spill] sm:$0xff] %v10992_v48  ;;  %v3108_v19 = vadd.f32 %v3092_v17, %v3015_v37  ;;  %v12137_v25 = vrot.slane %v10964_v2, 7  ;;  %v13218_v48 = vld [vmem:[#allocation349_spill] sm:$0xff] }
 0x3d6   : > { %v3106_v32 = vadd.f32 %v13211_v23, %v3013_v6  ;;  %v3091_v58 = vsel %vm292_vm0, %v13211_v23, %v13205_v27  ;;  %3089 = vrot.lane.b32.xlu1 %v13215_v9, %s6696_s7  ;;  %v3014_v6 = vadd.f32 %v2998_v28, %v2919_v31  ;;  %v3093_v27 = vsel %vm292_vm0, %v13219_v44, %v13218_v48  ;;  %v13220_v17 = vld [vmem:[#allocation93_spill] sm:$0xff]  ;;  %v11013_v31 = vpop.permute.xlu1 %4211 }
 0x3d7   : > { %v3094_v26 = vsel %vm292_vm0, %v13218_v48, %v13220_v17  ;;  %v3186_v9 = vsel %vm704_vm4, %v13216_v24, %v13213_v50  ;;  %v3203_v30 = vadd.f32 %v3187_v4, %v3108_v19  ;;  %v3017_v10 = vadd.f32 %v3000_v8, %v2922_v22  ;;  %v13226_v4 = vld [vmem:[#allocation98_spill] sm:$0xff]  ;;  %v4437_v19 = vld [vmem:[#allocation8 + $0x8] sm:$0xff]  ;;  %v4436_v17 = vld [vmem:[#allocation8] sm:$0xff] }
 0x3d8   : > { %v3201_v0 = vadd.f32 %v13216_v24, %v3106_v32  ;;  %3087 = vrot.lane.b32.xlu0 %v13217_v55, %s6696_s7  ;;  %v3018_v54 = vadd.f32 %v3001_v46, %v2923_v59  ;;  %v3107_v35 = vadd.f32 %v3091_v58, %v3014_v6  ;;  %v13221_v28 = vrot.slane %v10954_v1, 7  ;;  %v11018_v23 = vpop.permute.xlu0 %4209  ;;  %v13222_v55 = vld [vmem:[#allocation343_spill] sm:$0xff]  ;;  %v13225_v59 = vld [vmem:[#allocation116_spill] sm:$0xff]  ;;  %v4445_v6 = vld [vmem:[#allocation8 + $0x48] sm:$0xff] }
 0x3d9   : > { %v3109_v32 = vadd.f32 %v13219_v44, %v3016_v15  ;;  %v13223_v48 = vrot.slane %v13222_v55, 7  ;;  %v13224_v50 = vrot.slane %v10944_v20, 7  ;;  %v1618_v58 = vsel %vm451_vm2, %v10799_v53, %v10835_v38 }
 0x3da   : > { %v3257_v37 = vsel %vm3252_vm8, %v3253_v56, %v13221_v28  ;;  %3182 = vrot.lane.b32.xlu1 %v13225_v59, %s6695_s15  ;;  %v3110_v46 = vadd.f32 %v3093_v27, %v3017_v10  ;;  %v3111_v22 = vadd.f32 %v3094_v26, %v3018_v54  ;;  %v3202_v44 = vadd.f32 %v3186_v9, %v3107_v35  ;;  %v4444_v26 = vld [vmem:[#allocation8 + $0x40] sm:$0xff]  ;;  %v13229_v10 = vld [vmem:[#allocation70_spill] sm:$0xff] }
 0x3db   : > { %v3259_v24 = vsel %vm3252_vm8, %v12137_v25, %v13223_v48  ;;  %v3261_v8 = vsel %vm3252_vm8, %v3255_v49, %v13224_v50  ;;  %v3277_v15 = vadd.f32 %v3253_v56, %v3201_v0  ;;  %v3279_v28 = vadd.f32 %v3255_v49, %v3203_v30  ;;  %v11042_v48 = vpop.permute.xlu1 %4215  ;;  %v13227_v56 = vld [vmem:[#allocation110_spill] sm:$0xff]  ;;  %v13228_v0 = vld [vmem:[#allocation47_spill] sm:$0xff] }
 0x3dc   : > { %3180 = vrot.lane.b32.xlu0 %v13226_v4, %s6695_s15  ;;  %v1617_v55 = vsel %vm451_vm2, %v10808_v21, %v10799_v53  ;;  %v1711_v38 = vsel %vm410_vm1, %v10957_v3, %v10946_v14  ;;  %v5810_v27 = vpack.c.bf16 %v4445_v6, %v4437_v19  ;;  %v3188_v9 = vsel %vm704_vm4, %v13228_v0, %v13227_v56  ;;  %v11051_v54 = vpop.permute.xlu0 %4213  ;;  %v13230_v59 = vld [vmem:[#allocation102_spill] sm:$0xff]  ;;  %v11064_v19 = vld [vmem:[#allocation2 + $0xd0] sm:$0x3f] }
 0x3dd   : > { %v3189_v49 = vsel %vm704_vm4, %v13227_v56, %v13229_v10  ;;  %v1636_v30 = vadd.f32 %v1618_v58, %v10605_v62  ;;  %v5812_v53 = vpack.c.bf16 %v4444_v26, %v4436_v17  ;;  %v3204_v35 = vadd.f32 %v13228_v0, %v3109_v32  ;;  %v13231_v62 = vld [vmem:[#allocation190_spill] sm:$0xff]  ;;  %13232 = vst [vmem:[#allocation164_spill] sm:$0xff] %v11064_v19  ;;  %v4452_v17 = vld [vmem:[#allocation8 + $0x80] sm:$0xff]  ;;  %v13235_v10 = vld [vmem:[#allocation85_spill] sm:$0xff] }
 0x3de   : > { %v1634_v14 = vadd.f32 %v10808_v21, %v10551_v13  ;;  %v1710_v50 = vsel %vm410_vm1, %v10920_v7, %v10957_v3  ;;  %3351 = vrot.lane.b32.xlu1 %v13230_v59, %s6693_s26  ;;  %5811 = vmatprep.subr.bf16.mxu1 %v5810_v27  ;;  %v1635_v4 = vadd.f32 %v1617_v55, %v10600_v45  ;;  %v13233_v32 = vld [vmem:[#allocation38_spill] sm:$0xff]  ;;  %v4453_v13 = vld [vmem:[#allocation8 + $0x88] sm:$0xff]  ;;  %v4460_v45 = vld [vmem:[#allocation8 + $0xc0] sm:$0xff] }
 0x3df   : > { %v1729_v58 = vadd.f32 %v1711_v38, %v1636_v30  ;;  %v3486_v6 = vmul.f32 %v11064_v19, %v13233_v32  ;;  %5813 = vmatpush1.bf16.msra.mxu1 %v5812_v53  ;;  %v4461_v21 = vld [vmem:[#allocation8 + $0xc8] sm:$0xff]  ;;  %v3205_v3 = vadd.f32 %v3188_v9, %v3110_v46  ;;  %v3206_v26 = vadd.f32 %v3189_v49, %v3111_v22  ;;  %v1771_v27 = vpop.permute.xlu1 %1770  ;;  %v13234_v55 = vld [vmem:[#allocation51_spill] sm:$0xff]  ;;  %v13236_v53 = vld [vmem:[#allocation52_spill] sm:$0xff] }
 0x3e0   : > { %3184 = vrot.lane.b32.xlu0 %v13231_v62, %s6695_s15  ;;  %v1727_v56 = vadd.f32 %v10920_v7, %v1634_v14  ;;  %v5814_v0 = vpack.c.bf16 %v4461_v21, %v4453_v13  ;;  %v3357_v38 = vsel %vm451_vm2, %v13235_v10, %v13234_v55  ;;  %v1728_v30 = vadd.f32 %v1710_v50, %v1635_v4  ;;  %v1769_v62 = vpop.permute.xlu0 %1768  ;;  %v13237_v7 = vld [vmem:[#allocation96_spill] sm:$0xff]  ;;  %v13239_v4 = vld [vmem:[#allocation139_spill] sm:$0xff]  ;;  %v4469_v13 = vld [vmem:[#allocation8 + $0x108] sm:$0xff] }
 0x3e1   : > { %v11072_v59 = vadd.f32 %v1771_v27, %v1729_v58  ;;  %v5816_v32 = vpack.c.bf16 %v4460_v45, %v4452_v17  ;;  %v3358_v25 = vsel %vm451_vm2, %v13234_v55, %v13236_v53  ;;  %v1774_v46 = vsel %vm370_vm7, %v1769_v62, %v1771_v27  ;;  %v4477_v21 = vld [vmem:[#allocation8 + $0x148] sm:$0xff]  ;;  %v4468_v17 = vld [vmem:[#allocation8 + $0x100] sm:$0xff] }
 0x3e2   : > { %v11078_v22 = vadd.f32 %v1769_v62, %v1727_v56  ;;  %3355 = vrot.lane.b32.xlu1 %v13237_v7, %s6693_s26  ;;  %5815 = vmatprep.subr.bf16.mxu1 %v5814_v0  ;;  %v13238_v9 = vrot.slane %v10964_v2, 7  ;;  %v3280_v14 = vadd.f32 %v3257_v37, %v3204_v35  ;;  %v11084_v50 = vadd.f32 %v1774_v46, %v1728_v30  ;;  %v6482_v55 = vld [vmem:[#allocation2 + $0xd8] sm:$0x3f]  ;;  %v13240_v0 = vld [vmem:[#allocation144_spill] sm:$0xff] }
 0x3e3   : > { %v3500_v58 = vrot.slane %v3486_v6, 7  ;;  %5817 = vmatpush1.bf16.msra.mxu1 %v5816_v32  ;;  %v3281_v56 = vadd.f32 %v3259_v24, %v3205_v3  ;;  %v3282_v27 = vadd.f32 %v3261_v8, %v3206_v26  ;;  %v11088_v45 = vpop.permute.xlu1 %4300  ;;  %v3487_v62 = vmul.f32 %v6482_v55, %v13240_v0  ;;  %v13242_v32 = vld [vmem:[#allocation135_spill] sm:$0xff]  ;;  %v13243_v46 = vld [vmem:[#allocation132_spill] sm:$0xff]  ;;  %v13244_v8 = vld [vmem:[#allocation57_spill] sm:$0xff] }
 0x3e4   : > { %v3278_v49 = vadd.f32 %v13238_v9, %v3202_v44  ;;  %3353 = vrot.lane.b32.xlu0 %v13239_v4, %s6693_s26  ;;  %v5818_v2 = vpack.c.bf16 %v4477_v21, %v4469_v13  ;;  %v4476_v44 = vld [vmem:[#allocation8 + $0x140] sm:$0xff]  ;;  %v3372_v37 = vadd.f32 %v13235_v10, %v3277_v15  ;;  %v3374_v30 = vadd.f32 %v3358_v25, %v3279_v28  ;;  %v11092_v53 = vpop.permute.xlu0 %4298  ;;  %v13246_v15 = vld [vmem:[#allocation151_spill] sm:$0xff]  ;;  %v13247_v10 = vld [vmem:[#allocation54_spill] sm:$0xff] }
 0x3e5   : > { %13241 = vst [vmem:[#allocation157_spill] sm:$0xff] %v11092_v53  ;;  %v5820_v6 = vpack.c.bf16 %v4476_v44, %v4468_v17  ;;  %v3359_v7 = vsel %vm451_vm2, %v13243_v46, %v13242_v32  ;;  %v3375_v24 = vadd.f32 %v13243_v46, %v3280_v14  ;;  %v3360_v3 = vsel %vm451_vm2, %v13242_v32, %v13244_v8  ;;  %v13245_v26 = vld [vmem:[#allocation148_spill] sm:$0xff]  ;;  %v13248_v28 = vld [vmem:[#allocation193_spill] sm:$0xff]  ;;  %v13252_v55 = vld [vmem:[#allocation154_spill] sm:$0xff] }
 0x3e6   : > { %v3373_v35 = vadd.f32 %v3357_v38, %v3278_v49  ;;  %3446 = vrot.lane.b32.xlu1 %v13245_v26, %s6692_s24  ;;  %5819 = vmatprep.subr.bf16.mxu1 %v5818_v2  ;;  %v3450_v25 = vsel %vm410_vm1, %v13247_v10, %v13246_v15  ;;  %v3451_v38 = vsel %vm410_vm1, %v13246_v15, %v13248_v28  ;;  %v13249_v9 = vld [vmem:[#allocation69_spill] sm:$0xff]  ;;  %v13250_v49 = vld [vmem:[#allocation331_spill] sm:$0xff]  ;;  %v4484_v17 = vld [vmem:[#allocation8 + $0x180] sm:$0xff]  ;;  %v3502_v8 = vrot.slane %v3487_v62, 7 }
 0x3e7   : > { %v13251_v14 = vrot.slane %v13250_v49, 7  ;;  %5821 = vmatpush1.bf16.msra.mxu1 %v5820_v6  ;;  %v4485_v13 = vld [vmem:[#allocation8 + $0x188] sm:$0xff]  ;;  %v13253_v0 = vld [vmem:[#allocation59_spill] sm:$0xff]  ;;  %v13254_v44 = vld [vmem:[#allocation58_spill] sm:$0xff]  ;;  %v11120_v46 = vpop.permute.xlu1 %4304  ;;  %v3376_v28 = vadd.f32 %v3359_v7, %v3281_v56  ;;  %v3377_v6 = vadd.f32 %v3360_v3, %v3282_v27  ;;  %v3467_v20 = vadd.f32 %v3451_v38, %v3374_v30 }
 0x3e8   : > { %3444 = vrot.lane.b32.xlu0 %v13249_v9, %s6692_s24  ;;  %v4493_v21 = vld [vmem:[#allocation8 + $0x1c8] sm:$0xff]  ;;  %v3452_v2 = vsel %vm410_vm1, %v13253_v0, %v13252_v55  ;;  %v3453_v32 = vsel %vm410_vm1, %v13252_v55, %v13254_v44  ;;  %13255 = vst [vmem:[#allocation167_spill] sm:$0xff] %v11120_v46  ;;  %v4492_v15 = vld [vmem:[#allocation8 + $0x1c0] sm:$0xff]  ;;  %v11123_v9 = vpop.permute.xlu0 %4302  ;;  %v3468_v1 = vadd.f32 %v13253_v0, %v3375_v24  ;;  %v13259_v30 = vld [vmem:[#allocation90_spill] sm:$0xff] }
 0x3e9   : > { %v3501_v4 = vsel %vm3252_vm8, %v13251_v14, %v3500_v58  ;;  %v5822_v26 = vpack.c.bf16 %v4493_v21, %v4485_v13  ;;  %v3465_v58 = vadd.f32 %v13247_v10, %v3372_v37  ;;  %v5824_v49 = vpack.c.bf16 %v4492_v15, %v4484_v17  ;;  %v3820_v19 = vld [vmem:[#allocation2 + $0x90] sm:$0xfe]  ;;  %v13256_v62 = vld [vmem:[#allocation201_spill] sm:$0xff]  ;;  %v13257_v13 = vld [vmem:[#allocation91_spill] sm:$0xff] }
 0x3ea   : > { %v3466_v14 = vadd.f32 %v3450_v25, %v3373_v35  ;;  %3512 = vrot.lane.b32.xlu1 %v3501_v4, %s6697_s6  ;;  %v3469_v55 = vadd.f32 %v3452_v2, %v3376_v28  ;;  %v3470_v44 = vadd.f32 %v3453_v32, %v3377_v6  ;;  %v3516_v56 = vsel %vm370_vm7, %v13257_v13, %v13256_v62  ;;  %v13258_v37 = vld [vmem:[#allocation111_spill] sm:$0xff]  ;;  %v4501_v27 = vld [vmem:[#allocation8 + $0x208] sm:$0xff]  ;;  %v4500_v35 = vld [vmem:[#allocation8 + $0x200] sm:$0xff] }
 0x3eb   : > { %5823 = vmatprep.subr.bf16.mxu1 %v5822_v26  ;;  %v4509_v7 = vld [vmem:[#allocation8 + $0x248] sm:$0xff]  ;;  %v13261_v10 = vld [vmem:[#allocation106_spill] sm:$0xff]  ;;  %v11138_v4 = vpop.permute.xlu1 %4308  ;;  %v4508_v32 = vld [vmem:[#allocation8 + $0x240] sm:$0xff] }
 0x3ec   : > { %3448 = vrot.lane.b32.xlu0 %v13258_v37, %s6692_s24  ;;  %5825 = vmatpush1.bf16.msra.mxu1 %v5824_v49  ;;  %v13260_v3 = vld [vmem:[#allocation197_spill] sm:$0xff]  ;;  %v5826_v2 = vpack.c.bf16 %v4509_v7, %v4501_v27  ;;  %v13265_v26 = vld [vmem:[#allocation103_spill] sm:$0xff]  ;;  %v13266_v28 = vld [vmem:[#allocation114_spill] sm:$0xff]  ;;  %v11153_v37 = vpop.permute.xlu0 %4306  ;;  %v5828_v53 = vpack.c.bf16 %v4508_v32, %v4500_v35  ;;  %v3529_v27 = vadd.f32 %v3516_v56, %v3466_v14 }
 0x3ed   : > { %v3517_v24 = vsel %vm370_vm7, %v13260_v3, %v13259_v30  ;;  %v13262_v25 = vld [vmem:[#allocation97_spill] sm:$0xff]  ;;  %v3609_v15 = vsel %vm665_vm13, %v13261_v10, %v13265_v26  ;;  %v11148_v6 = vmul.f32 %v10765_v57, %v13266_v28  ;;  %v11151_v49 = vmul.f32 %v13266_v28, %v3820_v19  ;;  %13268 = vst [vmem:[#allocation251_spill] sm:$0xff] %v11153_v37  ;;  %v4516_v35 = vld [vmem:[#allocation8 + $0x280] sm:$0xff] }
 0x3ee   : > { %v3608_v38 = vsel %vm665_vm13, %v13262_v25, %v13261_v10  ;;  %v13263_v21 = vld [vmem:[#allocation65_spill] sm:$0xff]  ;;  %5827 = vmatprep.subr.bf16.mxu1 %v5826_v2  ;;  %v3533_v10 = vadd.f32 %v13259_v30, %v3470_v44  ;;  %v3532_v26 = vadd.f32 %v3517_v24, %v3469_v55  ;;  %v4524_v56 = vld [vmem:[#allocation8 + $0x2c0] sm:$0xff] }
 0x3ef   : > { %v13264_v17 = vrot.slane %v13263_v21, 7  ;;  %13267 = vst [vmem:[#allocation253_spill] sm:$0xff] %v11148_v6  ;;  %v3530_v21 = vadd.f32 %v13256_v62, %v3467_v20  ;;  %v13269_v7 = vld [vmem:[#allocation293_spill] sm:$0xff]  ;;  %v3624_v62 = vadd.f32 %v3608_v38, %v3529_v27  ;;  %v1861_v14 = vpop.permute.xlu1 %1860  ;;  %v13270_v32 = vld [vmem:[#allocation112_spill] sm:$0xff]  ;;  %v12145_v55 = vrot.slane %v11151_v49, 2 }
 0x3f0   : > { %3602 = vrot.lane.b32.xlu1 %v13269_v7, %s6698_s17  ;;  %5829 = vmatpush1.bf16.msra.mxu1 %v5828_v53  ;;  %v4517_v19 = vld [vmem:[#allocation8 + $0x288] sm:$0xff]  ;;  %v1859_v30 = vpop.permute.xlu0 %1858  ;;  %v5832_v53 = vpack.c.bf16 %v4524_v56, %v4516_v35  ;;  %v13275_v27 = vld [vmem:[#allocation168_spill] sm:$0xff] }
 0x3f1   : > { %v3503_v0 = vsel %vm3252_vm8, %v13264_v17, %v3502_v8  ;;  %v3528_v8 = vadd.f32 %v13257_v13, %v3465_v58  ;;  %v3531_v17 = vadd.f32 %v13260_v3, %v3468_v1  ;;  %v4525_v28 = vld [vmem:[#allocation8 + $0x2c8] sm:$0xff]  ;;  %v3625_v58 = vadd.f32 %v3609_v15, %v3530_v21  ;;  %v13272_v3 = vld [vmem:[#allocation76_spill] sm:$0xff] }
 0x3f2   : > { %3514 = vrot.lane.b32.xlu0 %v3503_v0, %s6697_s6  ;;  %v5830_v13 = vpack.c.bf16 %v4525_v28, %v4517_v19  ;;  %v13271_v2 = vld [vmem:[#allocation37_spill] sm:$0xff]  ;;  %v12144_v1 = vrot.slane %v11148_v6, 2  ;;  %v3611_v24 = vsel %vm665_vm13, %v13270_v32, %v13272_v3  ;;  %v11173_v38 = vadd.f32 %v1859_v30, %v11078_v22  ;;  %v13273_v0 = vld [vmem:[#allocation115_spill] sm:$0xff]  ;;  %v13274_v28 = vld [vmem:[#allocation126_spill] sm:$0xff] }
 0x3f3   : > { %v3623_v20 = vadd.f32 %v13262_v25, %v3528_v8  ;;  %v3610_v44 = vsel %vm665_vm13, %v13271_v2, %v13270_v32  ;;  %v1868_v25 = vsel %vm665_vm13, %v1859_v30, %v1861_v14  ;;  %v3626_v15 = vadd.f32 %v13271_v2, %v3531_v17  ;;  %v4533_v7 = vld [vmem:[#allocation8 + $0x308] sm:$0xff]  ;;  %v4532_v19 = vld [vmem:[#allocation8 + $0x300] sm:$0xff]  ;;  %v13276_v32 = vld [vmem:[#allocation127_spill] sm:$0xff] }
 0x3f4   : > { %3606 = vrot.lane.b32.xlu1 %v13273_v0, %s6698_s17  ;;  %5831 = vmatprep.subr.bf16.mxu1 %v5830_v13  ;;  %v11180_v21 = vmul.f32 %v10765_v57, %v13274_v28  ;;  %v11183_v8 = vadd.f32 %v1868_v25, %v11084_v50  ;;  %v4541_v22 = vld [vmem:[#allocation8 + $0x348] sm:$0xff]  ;;  %v3627_v35 = vadd.f32 %v3610_v44, %v3532_v26  ;;  %v6484_v17 = vld [vmem:[#allocation2 + $0xa0] sm:$0xfe]  ;;  %v11193_v57 = vpop.permute.xlu1 %4394  ;;  %v4540_v30 = vld [vmem:[#allocation8 + $0x340] sm:$0xff]  ;;  %v1863_v44 = vpop.permute.xlu0 %1862 }
 0x3f5   : > { %5833 = vmatpush1.bf16.msra.mxu1 %v5832_v53  ;;  %v6483_v56 = vld [vmem:[#allocation2 + $0x98] sm:$0xfe]  ;;  %v11191_v2 = vmul.f32 %v6484_v17, %v13274_v28  ;;  %13277 = vst [vmem:[#allocation143_spill] sm:$0xff] %v11193_v57  ;;  %v5834_v50 = vpack.c.bf16 %v4541_v22, %v4533_v7  ;;  %v3628_v3 = vadd.f32 %v3611_v24, %v3533_v10  ;;  %v13278_v25 = vld [vmem:[#allocation326_spill] sm:$0xff]  ;;  %v13279_v0 = vld [vmem:[#allocation308_spill] sm:$0xff] }
 0x3f6   : > { %3604 = vrot.lane.b32.xlu0 %v13275_v27, %s6698_s17  ;;  %v11188_v13 = vmul.f32 %v6483_v56, %v13276_v32  ;;  %v3701_v53 = vsel %vm292_vm0, %v13279_v0, %v13278_v25  ;;  %v11203_v26 = vsel %vm3865_vm11, %v12145_v55, %v12144_v1  ;;  %v5836_v27 = vpack.c.bf16 %v4540_v30, %v4532_v19  ;;  %v13280_v56 = vld [vmem:[#allocation238_spill] sm:$0xff]  ;;  %v13282_v22 = vld [vmem:[#allocation140_spill] sm:$0xff]  ;;  %v13284_v19 = vld [vmem:[#allocation119_spill] sm:$0xff] }
 0x3f7   : > { %v3702_v32 = vsel %vm292_vm0, %v13278_v25, %v13280_v56  ;;  %v13281_v7 = vld [vmem:[#allocation122_spill] sm:$0xff]  ;;  %v1869_v24 = vsel %vm665_vm13, %v1861_v14, %v1863_v44  ;;  %5835 = vmatprep.subr.bf16.mxu1 %v5834_v50  ;;  %v6485_v30 = vld [vmem:[#allocation2 + $0x108] sm:$0x1]  ;;  %v4549_v14 = vld [vmem:[#allocation8 + $0x388] sm:$0xff]  ;;  %v3716_v50 = vadd.f32 %v13279_v0, %v3623_v20  ;;  %v3717_v46 = vadd.f32 %v3701_v53, %v3624_v62 }
 0x3f8   : > { %v3703_v10 = vsel %vm292_vm0, %v13282_v22, %v13281_v7  ;;  %v13283_v17 = vld [vmem:[#allocation178_spill] sm:$0xff]  ;;  %v11216_v1 = vadd.f32 %v1869_v24, %v11072_v59  ;;  %v13285_v25 = vld [vmem:[#allocation183_spill] sm:$0xff]  ;;  %v4557_v44 = vld [vmem:[#allocation8 + $0x3c8] sm:$0xff]  ;;  %v3868_v59 = vrot.slane %v11191_v2, 2  ;;  %v11226_v24 = vpop.permute.xlu1 %4398  ;;  %v3718_v37 = vadd.f32 %v3702_v32, %v3625_v58 }
 0x3f9   : > { %3697 = vrot.lane.b32.xlu1 %v13283_v17, %s6696_s7  ;;  %v4101_v56 = vmul.f32 %v6485_v30, %v13285_v25  ;;  %v13286_v55 = vld [vmem:[#allocation215_spill] sm:$0xff]  ;;  %5837 = vmatpush1.bf16.msra.mxu1 %v5836_v27  ;;  %v4548_v57 = vld [vmem:[#allocation8 + $0x380] sm:$0xff]  ;;  %v3867_v17 = vrot.slane %v11188_v13, 2  ;;  %v5838_v6 = vpack.c.bf16 %v4557_v44, %v4549_v14  ;;  %v13287_v30 = vld [vmem:[#allocation130_spill] sm:$0xff]  ;;  %v3719_v25 = vadd.f32 %v13282_v22, %v3626_v15 }
 0x3fa   : > { %3695 = vrot.lane.b32.xlu0 %v13284_v19, %s6696_s7  ;;  %v4100_v28 = vmul.f32 %v10473_v34, %v13286_v55  ;;  %v4556_v19 = vld [vmem:[#allocation8 + $0x3c0] sm:$0xff]  ;;  %v3796_v34 = vsel %vm704_vm4, %v10413_v42, %v13287_v30  ;;  %v11231_v55 = vpop.permute.xlu0 %4396  ;;  %v3720_v20 = vadd.f32 %v3703_v10, %v3627_v35  ;;  %v13288_v0 = vld [vmem:[#allocation129_spill] sm:$0xff]  ;;  %v13289_v2 = vld [vmem:[#allocation118_spill] sm:$0xff]  ;;  %v3797_v62 = vsel %vm704_vm4, %v13287_v30, %v10448_v33 }
 0x3fb   : > { %v5840_v27 = vpack.c.bf16 %v4556_v19, %v4548_v57  ;;  %v3704_v13 = vsel %vm292_vm0, %v13281_v7, %v13288_v0  ;;  %5839 = vmatprep.subr.bf16.mxu1 %v5838_v6  ;;  %v3798_v58 = vsel %vm704_vm4, %v10442_v39, %v10487_v41  ;;  %v13290_v57 = vld [vmem:[#allocation55_spill] sm:$0xff]  ;;  %v4116_v15 = vrot.slane %v4101_v56, 2  ;;  %v4565_v53 = vld [vmem:[#allocation8 + $0x408] sm:$0xff]  ;;  %v4564_v7 = vld [vmem:[#allocation8 + $0x400] sm:$0xff] }
 0x3fc   : > { %v4114_v35 = vrot.slane %v4100_v28, 2  ;;  %v4573_v32 = vld [vmem:[#allocation8 + $0x448] sm:$0xff]  ;;  %v3811_v22 = vadd.f32 %v10413_v42, %v3716_v50  ;;  %v3812_v6 = vadd.f32 %v3796_v34, %v3717_v46  ;;  %v3799_v33 = vsel %vm704_vm4, %v10487_v41, %v10471_v29  ;;  %v11251_v10 = vpop.permute.xlu1 %4402  ;;  %v4572_v44 = vld [vmem:[#allocation8 + $0x440] sm:$0xff] }
 0x3fd   : > { %3790 = vrot.lane.b32.xlu1 %v13289_v2, %s6695_s15  ;;  %5841 = vmatpush1.bf16.msra.mxu1 %v5840_v27  ;;  %v5842_v14 = vpack.c.bf16 %v4573_v32, %v4565_v53  ;;  %v3721_v19 = vadd.f32 %v3704_v13, %v3628_v3  ;;  %v13291_v30 = vld [vmem:[#allocation80_spill] sm:$0xff]  ;;  %v13293_v56 = vrot.slane %v11180_v21, 2  ;;  %v5844_v42 = vpack.c.bf16 %v4572_v44, %v4564_v7  ;;  %v13294_v41 = vld [vmem:[#allocation125_spill] sm:$0xff]  ;;  %v13296_v13 = vld [vmem:[#allocation95_spill] sm:$0xff] }
 0x3fe   : > { %3699 = vrot.lane.b32.xlu0 %v13290_v57, %s6696_s7  ;;  %v13292_v0 = vrot.slane %v13291_v30, 2  ;;  %v11259_v2 = vpop.permute.xlu0 %4400  ;;  %v3814_v46 = vadd.f32 %v10442_v39, %v3719_v25  ;;  %v3813_v50 = vadd.f32 %v3797_v62, %v3718_v37  ;;  %v3815_v29 = vadd.f32 %v3798_v58, %v3720_v20  ;;  %v13295_v34 = vld [vmem:[#allocation196_spill] sm:$0xff]  ;;  %v4581_v39 = vld [vmem:[#allocation8 + $0x488] sm:$0xff] }
 0x3ff   : > { %v3874_v27 = vsel %vm3865_vm11, %v3868_v59, %v13293_v56  ;;  %5843 = vmatprep.subr.bf16.mxu1 %v5842_v14  ;;  %v3816_v3 = vadd.f32 %v3799_v33, %v3721_v19  ;;  %v13297_v57 = vrot.slane %v13296_v13, 2  ;;  %v13298_v32 = vld [vmem:[#allocation56_spill] sm:$0xff]  ;;  %v4589_v37 = vld [vmem:[#allocation8 + $0x4c8] sm:$0xff]  ;;  %v13300_v20 = vrot.slane %v11151_v49, 2 }
 0x400   : > { %v3872_v28 = vsel %vm3865_vm11, %v3867_v17, %v13292_v0  ;;  %v13299_v30 = vrot.slane %v13298_v32, 2  ;;  %v4580_v25 = vld [vmem:[#allocation8 + $0x480] sm:$0xff]  ;;  %v3891_v58 = vadd.f32 %v3867_v17, %v3812_v6  ;;  %v3971_v33 = vsel %vm451_vm2, %v10602_v47, %v10596_v63  ;;  %v1952_v14 = vpop.permute.xlu1 %1951 }
 0x401   : > { %3794 = vrot.lane.b32.xlu1 %v13294_v41, %s6695_s15  ;;  %v11269_v53 = vsel %vm3865_vm11, %v13297_v57, %v4116_v15  ;;  %5845 = vmatpush1.bf16.msra.mxu1 %v5844_v42  ;;  %v3890_v62 = vadd.f32 %v13300_v20, %v3811_v22  ;;  %v5846_v15 = vpack.c.bf16 %v4589_v37, %v4581_v39  ;;  %v4588_v44 = vld [vmem:[#allocation8 + $0x4c0] sm:$0xff]  ;;  %v13305_v20 = vld [vmem:[#allocation237_spill] sm:$0xff] }
 0x402   : > { %3792 = vrot.lane.b32.xlu0 %v13295_v34, %s6695_s15  ;;  %v11274_v7 = vsel %vm3865_vm11, %v13299_v30, %v4114_v35  ;;  %v3972_v35 = vsel %vm451_vm2, %v10596_v63, %v10644_v12  ;;  %v3973_v19 = vsel %vm451_vm2, %v10635_v5, %v10667_v40  ;;  %v1978_v0 = vadd.f32 %v1952_v14, %v11173_v38  ;;  %v11288_v49 = vpop.permute.xlu0 %4404  ;;  %v13301_v42 = vld [vmem:[#allocation220_spill] sm:$0xff]  ;;  %v4597_v38 = vld [vmem:[#allocation8 + $0x508] sm:$0xff]  ;;  %v13303_v30 = vld [vmem:[#allocation146_spill] sm:$0xff] }
 0x403   : > { %v5848_v17 = vpack.c.bf16 %v4588_v44, %v4580_v25  ;;  %v3893_v22 = vadd.f32 %v11203_v26, %v3814_v46  ;;  %v3892_v6 = vadd.f32 %v3868_v59, %v3813_v50  ;;  %v3894_v56 = vadd.f32 %v3872_v28, %v3815_v29  ;;  %5847 = vmatprep.subr.bf16.mxu1 %v5846_v15  ;;  %v4605_v34 = vld [vmem:[#allocation8 + $0x548] sm:$0xff]  ;;  %v4596_v13 = vld [vmem:[#allocation8 + $0x500] sm:$0xff] }
 0x404   : > { %v11294_v41 = vadd.f32 %v10602_v47, %v3890_v62  ;;  %v3987_v63 = vadd.f32 %v3971_v33, %v3891_v58  ;;  %v3895_v12 = vadd.f32 %v3874_v27, %v3816_v3  ;;  %v3974_v26 = vsel %vm451_vm2, %v10667_v40, %v10657_v51  ;;  %v1956_v28 = vpop.permute.xlu1 %1955  ;;  %v4604_v50 = vld [vmem:[#allocation8 + $0x540] sm:$0xff]  ;;  %v4613_v62 = vld [vmem:[#allocation8 + $0x588] sm:$0xff] }
 0x405   : > { %3967 = vrot.lane.b32.xlu1 %v13301_v42, %s6693_s26  ;;  %5849 = vmatpush1.bf16.msra.mxu1 %v5848_v17  ;;  %v3988_v57 = vadd.f32 %v3972_v35, %v3892_v6  ;;  %v3990_v59 = vadd.f32 %v3973_v19, %v3894_v56  ;;  %v5850_v46 = vpack.c.bf16 %v4605_v34, %v4597_v38  ;;  %v13302_v27 = vld [vmem:[#allocation160_spill] sm:$0xff]  ;;  %v4621_v58 = vld [vmem:[#allocation8 + $0x5c8] sm:$0xff] }
 0x406   : > { %3965 = vrot.lane.b32.xlu0 %v10426_v60, %s6693_s26  ;;  %v4064_v47 = vsel %vm410_vm1, %v10712_v52, %v10703_v61  ;;  %v4065_v60 = vsel %vm410_vm1, %v10703_v61, %v10734_v11  ;;  %v4066_v29 = vsel %vm410_vm1, %v13302_v27, %v10782_v43  ;;  %v1954_v3 = vpop.permute.xlu0 %1953  ;;  %v5852_v32 = vpack.c.bf16 %v4604_v50, %v4596_v13  ;;  %v13304_v37 = vld [vmem:[#allocation104_spill] sm:$0xff]  ;;  %v13306_v42 = vld [vmem:[#allocation137_spill] sm:$0xff] }
 0x407   : > { %v4067_v51 = vsel %vm410_vm1, %v10782_v43, %v13303_v30  ;;  %v1961_v40 = vsel %vm292_vm0, %v1952_v14, %v1954_v3  ;;  %v1962_v39 = vsel %vm292_vm0, %v1954_v3, %v1956_v28  ;;  %5851 = vmatprep.subr.bf16.mxu1 %v5850_v46  ;;  %v3991_v25 = vadd.f32 %v3974_v26, %v3895_v12  ;;  %v4612_v43 = vld [vmem:[#allocation8 + $0x580] sm:$0xff]  ;;  %v4629_v26 = vld [vmem:[#allocation8 + $0x608] sm:$0xff] }
 0x408   : > { %v1979_v61 = vadd.f32 %v1961_v40, %v11183_v8  ;;  %v1980_v11 = vadd.f32 %v1962_v39, %v11216_v1  ;;  %v11322_v33 = vadd.f32 %v10635_v5, %v3893_v22  ;;  %v4080_v14 = vadd.f32 %v4064_v47, %v3987_v63  ;;  %v2049_v44 = vpop.permute.xlu1 %2048  ;;  %v4620_v8 = vld [vmem:[#allocation8 + $0x5c0] sm:$0xff]  ;;  %v13307_v63 = vld [vmem:[#allocation35_spill] sm:$0xff]  ;;  %v13309_v46 = vld [vmem:[#allocation153_spill] sm:$0xff] }
 0x409   : > { %4058 = vrot.lane.b32.xlu1 %v13304_v37, %s6692_s24  ;;  %5853 = vmatpush1.bf16.msra.mxu1 %v5852_v32  ;;  %v4130_v15 = vsel %vm370_vm7, %v10831_v36, %v10893_v18  ;;  %v5854_v35 = vpack.c.bf16 %v4621_v58, %v4613_v62  ;;  %v4081_v19 = vadd.f32 %v4065_v60, %v3988_v57  ;;  %v13308_v57 = vld [vmem:[#allocation233_spill] sm:$0xff]  ;;  %v4628_v28 = vld [vmem:[#allocation8 + $0x600] sm:$0xff]  ;;  %v13310_v60 = vld [vmem:[#allocation159_spill] sm:$0xff] }
 0x40a   : > { %3969 = vrot.lane.b32.xlu0 %v13305_v20, %s6693_s26  ;;  %v4083_v1 = vadd.f32 %v4066_v29, %v3990_v59  ;;  %v4084_v17 = vadd.f32 %v4067_v51, %v3991_v25  ;;  %v2047_v6 = vpop.permute.xlu0 %2046  ;;  %v5856_v56 = vpack.c.bf16 %v4620_v8, %v4612_v43  ;;  %v4131_v12 = vsel %vm370_vm7, %v13306_v42, %v10925_v16  ;;  %v4637_v59 = vld [vmem:[#allocation8 + $0x648] sm:$0xff]  ;;  %v4636_v3 = vld [vmem:[#allocation8 + $0x640] sm:$0xff]  ;;  %s11587_s26 = scalar_lea.hbm %s11637_s5, %s5809_s16 }
 0x40b   : > { %v2056_v5 = vsel %vm704_vm4, %v2047_v6, %v2049_v44  ;;  %v2073_v22 = vadd.f32 %v2047_v6, %v1978_v0  ;;  %5855 = vmatprep.subr.bf16.mxu1 %v5854_v35  ;;  %v4143_v38 = vadd.f32 %v4130_v15, %v4080_v14  ;;  %v4144_v34 = vadd.f32 %v10893_v18, %v4081_v19  ;;  %v4644_v58 = vld [vmem:[#allocation8 + $0x680] sm:$0xff]  ;;  %v13312_v15 = vld [vmem:[#allocation251_spill] sm:$0xff]  ;;  %v13314_v19 = vld [vmem:[#allocation134_spill] sm:$0xff] }
 0x40c   : > { %v2074_v13 = vadd.f32 %v2056_v5, %v1979_v61  ;;  %v4224_v50 = vsel %vm665_vm13, %v13309_v46, %v11018_v23  ;;  %v4225_v0 = vsel %vm665_vm13, %v11013_v31, %v11051_v54  ;;  %v2190_v47 = vpop.permute.xlu1 %2189  ;;  %v5858_v18 = vpack.c.bf16 %v4637_v59, %v4629_v26  ;;  %v13311_v23 = vld [vmem:[#allocation152_spill] sm:$0xff]  ;;  %v13318_v26 = vld [vmem:[#allocation141_spill] sm:$0xff]  ;;  %v13319_v59 = vld [vmem:[#allocation319_spill] sm:$0xff] }
 0x40d   : > { %4062 = vrot.lane.b32.xlu1 %v13307_v63, %s6692_s24  ;;  %5857 = vmatpush1.bf16.msra.mxu1 %v5856_v56  ;;  %v2134_v29 = vadd.f32 %v13310_v60, %v2073_v22  ;;  %v4146_v32 = vadd.f32 %v4131_v12, %v4083_v1  ;;  %v4147_v30 = vadd.f32 %v10925_v16, %v4084_v17  ;;  %v4652_v8 = vld [vmem:[#allocation8 + $0x6c0] sm:$0xff]  ;;  %v13317_v63 = vld [vmem:[#allocation246_spill] sm:$0xff] }
 0x40e   : > { %4060 = vrot.lane.b32.xlu0 %v13308_v57, %s6692_s24  ;;  %v4226_v51 = vsel %vm665_vm13, %v11051_v54, %v11042_v48  ;;  %v2051_v40 = vpop.permute.xlu0 %2050  ;;  %v5860_v39 = vpack.c.bf16 %v4636_v3, %v4628_v28  ;;  %v4223_v37 = vsel %vm665_vm13, %v13311_v23, %v13309_v46  ;;  %5859 = vmatprep.subr.bf16.mxu1 %v5858_v18  ;;  %v4645_v48 = vld [vmem:[#allocation8 + $0x688] sm:$0xff]  ;;  %v13315_v17 = vld [vmem:[#allocation128_spill] sm:$0xff]  ;;  %v4388_v28 = vrot.slane %v13319_v59, 2 }
 0x40f   : > { %v2216_v25 = vadd.f32 %v2190_v47, %v2134_v29  ;;  %v2057_v61 = vsel %vm704_vm4, %v2049_v44, %v2051_v40  ;;  %v4240_v20 = vadd.f32 %v4224_v50, %v4144_v34  ;;  %v4242_v62 = vadd.f32 %v4225_v0, %v4146_v32  ;;  %v4653_v54 = vld [vmem:[#allocation8 + $0x6c8] sm:$0xff] }
 0x410   : > { %v2075_v16 = vadd.f32 %v2057_v61, %v1980_v11  ;;  %v4243_v43 = vadd.f32 %v4226_v51, %v4147_v30  ;;  %v4317_v14 = vsel %vm292_vm0, %v11088_v45, %v11123_v9  ;;  %v2194_v44 = vpop.permute.xlu1 %2193  ;;  %v5862_v35 = vpack.c.bf16 %v4653_v54, %v4645_v48  ;;  %v13313_v11 = vld [vmem:[#allocation167_spill] sm:$0xff]  ;;  %v13320_v46 = vld [vmem:[#allocation157_spill] sm:$0xff] }
 0x411   : > { %4128 = vrot.lane.b32.xlu1 %v11269_v53, %s6697_s6  ;;  %5861 = vmatpush1.bf16.msra.mxu1 %v5860_v39  ;;  %v4319_v53 = vsel %vm292_vm0, %v13312_v15, %v11138_v4  ;;  %v2135_v1 = vadd.f32 %v13314_v19, %v2074_v13  ;;  %v13316_v6 = vrot.slane %v13315_v17, 1  ;;  %v5864_v5 = vpack.c.bf16 %v4652_v8, %v4644_v58 }
 0x412   : > { %4126 = vrot.lane.b32.xlu0 %v11274_v7, %s6697_s6  ;;  %v4318_v7 = vsel %vm292_vm0, %v13313_v11, %v13312_v15  ;;  %v2192_v12 = vpop.permute.xlu0 %2191  ;;  %v4415_v9 = vsel %vm704_vm4, %v11251_v10, %v11288_v49  ;;  %5863 = vmatprep.subr.bf16.mxu1 %v5862_v35  ;;  %v4336_v34 = vadd.f32 %v4319_v53, %v4243_v43  ;;  %v4668_v43 = vld [vmem:[#allocation8 + $0x740] sm:$0xff] }
 0x413   : > { %v2136_v56 = vadd.f32 %v13316_v6, %v2075_v16  ;;  %v2199_v4 = vsel %vm451_vm2, %v2190_v47, %v2192_v12  ;;  %v2200_v22 = vsel %vm451_vm2, %v2192_v12, %v2194_v44  ;;  %v4079_v49 = vadd.f32 %v10712_v52, %v11294_v41  ;;  %v4342_v52 = vld [vmem:[#allocation2 + $0x118] sm:$0x1]  ;;  %v13326_v6 = vld [vmem:[#allocation259_spill] sm:$0xff] }
 0x414   : > { %v2217_v57 = vadd.f32 %v2199_v4, %v2135_v1  ;;  %v4316_v50 = vsel %vm292_vm0, %v13320_v46, %v11088_v45  ;;  %v4413_v0 = vsel %vm704_vm4, %v11231_v55, %v11226_v24  ;;  %v4414_v47 = vsel %vm704_vm4, %v11259_v2, %v11251_v10  ;;  %v2273_v60 = vpop.permute.xlu1 %2272  ;;  %v13321_v45 = vld [vmem:[#allocation143_spill] sm:$0xff]  ;;  %v13322_v10 = vld [vmem:[#allocation150_spill] sm:$0xff] }
 0x415   : > { %4219 = vrot.lane.b32.xlu1 %v13317_v63, %s6698_s17  ;;  %v2218_v13 = vadd.f32 %v2200_v22, %v2136_v56  ;;  %5865 = vmatpush1.bf16.msra.mxu1 %v5864_v5  ;;  %v4239_v29 = vadd.f32 %v4223_v37, %v4143_v38  ;;  %v4333_v18 = vadd.f32 %v4317_v14, %v4240_v20  ;;  %v13323_v20 = vld [vmem:[#allocation133_spill] sm:$0xff]  ;;  %v13327_v56 = vld [vmem:[#allocation43_spill] sm:$0xff] }
 0x416   : > { %4217 = vrot.lane.b32.xlu0 %v13318_v26, %s6698_s17  ;;  %v4335_v3 = vadd.f32 %v4318_v7, %v4242_v62  ;;  %v11388_v32 = vadd.f32 %v4415_v9, %v4336_v34  ;;  %v2271_v30 = vpop.permute.xlu0 %2270  ;;  %v4082_v41 = vadd.f32 %v13302_v27, %v11322_v33  ;;  %v4412_v51 = vsel %vm704_vm4, %v13321_v45, %v11231_v55  ;;  %v4661_v62 = vld [vmem:[#allocation8 + $0x708] sm:$0xff]  ;;  %v4660_v33 = vld [vmem:[#allocation8 + $0x700] sm:$0xff] }
 0x417   : > { %v2280_v24 = vsel %vm410_vm1, %v2271_v30, %v2273_v60  ;;  %v2297_v40 = vadd.f32 %v2271_v30, %v2216_v25  ;;  %v4332_v38 = vadd.f32 %v4316_v50, %v4239_v29  ;;  %v4429_v39 = vadd.f32 %v4413_v0, %v4333_v18  ;;  %v4669_v27 = vld [vmem:[#allocation8 + $0x748] sm:$0xff]  ;;  %v13324_v25 = vld [vmem:[#allocation264_spill] sm:$0xff]  ;;  %v4447_v29 = vld [vmem:[#allocation8 + $0x58] sm:$0xff] }
 0x418   : > { %v11398_v37 = vadd.f32 %v4414_v47, %v4335_v3  ;;  %v2298_v61 = vadd.f32 %v2280_v24, %v2217_v57  ;;  %v4142_v16 = vadd.f32 %v10831_v36, %v4079_v49  ;;  %v4145_v55 = vadd.f32 %v13306_v42, %v4082_v41  ;;  %v2331_v48 = vpop.permute.xlu1 %2330  ;;  %v13325_v36 = vld [vmem:[#allocation136_spill] sm:$0xff]  ;;  %v2603_v18 = vld [vmem:[#allocation2 + $0xc0] sm:$0x7] }
 0x419   : > { %4310 = vrot.lane.b32.xlu1 %v13322_v10, %s6696_s7  ;;  %v4369_v54 = vmul.f32 %v13324_v25, %v4342_v52  ;;  %v5866_v58 = vpack.c.bf16 %v4669_v27, %v4661_v62  ;;  %v4428_v14 = vadd.f32 %v4412_v51, %v4332_v38  ;;  %v4750_v15 = vrot.slane %v11388_v32, 7  ;;  %v4676_v9 = vld [vmem:[#allocation8 + $0x780] sm:$0xff]  ;;  %v4486_v32 = vld [vmem:[#allocation8 + $0x190] sm:$0xff] }
 0x41a   : > { %4221 = vrot.lane.b32.xlu0 %v13323_v20, %s6698_s17  ;;  %v2352_v53 = vadd.f32 %v2331_v48, %v2297_v40  ;;  %v2275_v44 = vpop.permute.xlu0 %2274  ;;  %v5868_v35 = vpack.c.bf16 %v4668_v43, %v4660_v33  ;;  %v4238_v8 = vadd.f32 %v13311_v23, %v4142_v16  ;;  %v4241_v7 = vadd.f32 %v11013_v31, %v4145_v55  ;;  %v4677_v23 = vld [vmem:[#allocation8 + $0x788] sm:$0xff]  ;;  %v4684_v26 = vld [vmem:[#allocation8 + $0x7c0] sm:$0xff] }
 0x41b   : > { %v2281_v19 = vsel %vm410_vm1, %v2273_v60, %v2275_v44  ;;  %5867 = vmatprep.subr.bf16.mxu1 %v5866_v58  ;;  %v4749_v42 = vrot.slane %v4429_v39, 7  ;;  %v4747_v1 = vrot.slane %v11398_v37, 7  ;;  %v13328_v12 = vrot.slane %v13327_v56, 2  ;;  %v4685_v31 = vld [vmem:[#allocation8 + $0x7c8] sm:$0xff]  ;;  %v4439_v60 = vld [vmem:[#allocation8 + $0x18] sm:$0xff]  ;;  %v13332_v39 = vld [vmem:[#allocation310_spill] sm:$0xff] }
 0x41c   : > { %v2299_v17 = vadd.f32 %v2281_v19, %v2218_v13  ;;  %5869 = vmatpush1.bf16.msra.mxu1 %v5868_v35  ;;  %v4331_v4 = vadd.f32 %v13320_v46, %v4238_v8  ;;  %v4334_v22 = vadd.f32 %v13313_v11, %v4241_v7  ;;  %v2408_v63 = vpop.permute.xlu1 %2407  ;;  %v4392_v34 = vrot.slane %v4369_v54, 2  ;;  %v13329_v11 = vld [vmem:[#allocation271_spill] sm:$0xff]  ;;  %v13330_v40 = vld [vmem:[#allocation121_spill] sm:$0xff] }
 0x41d   : > { %4314 = vrot.lane.b32.xlu1 %v13325_v36, %s6696_s7  ;;  %v4389_v5 = vsel %vm3865_vm11, %v13328_v12, %v4388_v28  ;;  %v5870_v57 = vpack.c.bf16 %v4685_v31, %v4677_v23  ;;  %v4746_v13 = vrot.slane %v4428_v14, 7  ;;  %v4751_v59 = vsel %vm3252_vm8, %v4749_v42, %v4750_v15  ;;  %v13333_v44 = vld [vmem:[#allocation309_spill] sm:$0xff] }
 0x41e   : > { %4312 = vrot.lane.b32.xlu0 %v13326_v6, %s6696_s7  ;;  %v2434_v49 = vadd.f32 %v2408_v63, %v2352_v53  ;;  %v2333_v50 = vpop.permute.xlu0 %2332  ;;  %v5872_v28 = vpack.c.bf16 %v4684_v26, %v4676_v9  ;;  %v11423_v0 = vadd.f32 %v11259_v2, %v4334_v22  ;;  %v5874_v2 = vpack.c.bf16 %v4447_v29, %v4439_v60  ;;  %v6486_v53 = vld [vmem:[#allocation2 + $0xd0] sm:$0x7]  ;;  %v13334_v42 = vld [vmem:[#allocation145_spill] sm:$0xff] }
 0x41f   : > { %v2336_v47 = vsel %vm370_vm7, %v2331_v48, %v2333_v50  ;;  %v2354_v46 = vadd.f32 %v2333_v50, %v2299_v17  ;;  %5871 = vmatprep.subr.bf16.mxu1 %v5870_v57  ;;  %v4748_v3 = vsel %vm3252_vm8, %v4746_v13, %v4747_v1  ;;  %v4427_v52 = vadd.f32 %v13321_v45, %v4331_v4  ;;  %v13336_v57 = vld [vmem:[#allocation142_spill] sm:$0xff] }
 0x420   : > { %v2353_v30 = vadd.f32 %v2336_v47, %v2298_v61  ;;  %5873 = vmatpush1.bf16.msra.mxu1 %v5872_v28  ;;  %v2412_v41 = vpop.permute.xlu1 %2411  ;;  %v6428_v51 = vpack.i.bf16 %v4751_v59, %v4748_v3  ;;  %v13331_v10 = vrot.slane %v13330_v40, 2  ;;  %v2630_v20 = vmul.f32 %v13332_v39, %v2603_v18  ;;  %v13338_v59 = vld [vmem:[#allocation53_spill] sm:$0xff] }
 0x421   : > { %4408 = vrot.lane.b32.xlu1 %v13329_v11, %s6695_s15  ;;  %5875 = vmatprep.subr.bf16.mxu1 %v5874_v2  ;;  %v4744_v62 = vrot.slane %v11423_v0, 7  ;;  %v4743_v16 = vrot.slane %v4427_v52, 7  ;;  %v2632_v35 = vmul.f32 %v6486_v53, %v13333_v44  ;;  %v13335_v17 = vrot.slane %v13334_v42, 4  ;;  %v3213_v52 = vld [vmem:[#allocation2 + $0xc0] sm:$0x3f] }
 0x422   : > { %4406 = vrot.lane.b32.xlu0 %v4389_v5, %s6695_s15  ;;  %v2410_v24 = vpop.permute.xlu0 %2409  ;;  %v4393_v38 = vsel %vm3865_vm11, %v13331_v10, %v4392_v34  ;;  %v2652_v25 = vrot.slane %v2630_v20, 4  ;;  %v13337_v26 = vrot.slane %v13336_v57, 4 }
 0x423   : > { %v2417_v61 = vsel %vm665_vm13, %v2408_v63, %v2410_v24  ;;  %v2418_v27 = vsel %vm665_vm13, %v2410_v24, %v2412_v41  ;;  %v4745_v43 = vsel %vm3252_vm8, %v4743_v16, %v4744_v62  ;;  %v2656_v5 = vrot.slane %v2632_v35, 4 }
 0x424   : > { %v2435_v33 = vadd.f32 %v2417_v61, %v2353_v30  ;;  %v2436_v45 = vadd.f32 %v2418_v27, %v2354_v46  ;;  %v2491_v55 = vpop.permute.xlu1 %2490  ;;  %v2653_v6 = vsel %vm2642_vm6, %v13335_v17, %v2652_v25  ;;  %v13339_v27 = vld [vmem:[#allocation341_spill] sm:$0xff] }
 0x425   : > { %6429 = vrot.lane.b32.xlu1 %v6428_v51, %s6696_s7  ;;  %v2657_v13 = vsel %vm2642_vm6, %v13337_v26, %v2656_v5 }
 0x426   : > { %4410 = vrot.lane.b32.xlu0 %v4393_v38, %s6695_s15  ;;  %v2489_v48 = vpop.permute.xlu0 %2488  ;;  %s6699_s15 = smov [#allocation11]  }
 0x427   : > { %v2498_v54 = vsel %vm292_vm0, %v2489_v48, %v2491_v55  ;;  %v2515_v58 = vadd.f32 %v2489_v48, %v2434_v49  ;;  %s6611_s6 = sshll.u32 %s6699_s15, 4  ;;  %s6612_s6 = int_to_ptr.vmem [resolvable:$false] %s6611_s6 }
 0x428   : > { %v2516_v14 = vadd.f32 %v2498_v54, %v2435_v33  ;;  %v2571_v8 = vpop.permute.xlu1 %2570  ;;  %v3240_v33 = vmul.f32 %v13339_v27, %v3213_v52  ;;  %s6613_s17 = scalar_lea.vmem %s6612_s6, 1024  ;;  %p6614_p12 = scmp.lt.s32.totalorder %s11582_s11, %s6612_s6 }
 0x429   : > { %v2597_v7 = vadd.f32 %v2571_v8, %v2515_v58  ;;  %p6615_p1 = scmp.lt.s32.totalorder %s6613_s17, %s6607_s14 }
 0x42a   : > { %4758 = vrot.lane.b32.xlu0 %v4745_v43, %s6696_s7  ;;  %v2493_v19 = vpop.permute.xlu0 %2492  ;;  %v3262_v44 = vrot.slane %v3240_v33, 7  ;;  %v13347_v33 = vld [vmem:[#allocation114_spill] sm:$0xff] }
 0x42b   : > { %v2499_v36 = vsel %vm292_vm0, %v2491_v55, %v2493_v19  ;;  %v2673_v12 = vadd.f32 %v2653_v6, %v2597_v7  ;;  %v13341_v7 = vld [vmem:[#allocation164_spill] sm:$0xff]  ;;  %p6616_p2 = por %p6615_p1, %p6614_p12 }
 0x42c   : > { %v2517_v56 = vadd.f32 %v2499_v36, %v2436_v45  ;;  %v2575_v23 = vpop.permute.xlu1 %2574 }
 0x42d   : > { %p6617_p4 = pnand %p6616_p2, %p6610_p7 }
 0x42e   : > { %v2573_v31 = vpop.permute.xlu0 %2572 }
 0x42f   : > { %v2580_v9 = vsel %vm704_vm4, %v2571_v8, %v2573_v31  ;;  %v2581_v4 = vsel %vm704_vm4, %v2573_v31, %v2575_v23  ;;  %v13340_v8 = vld [vmem:[#allocation340_spill] sm:$0xff] }
 0x430   : > { %v2598_v22 = vadd.f32 %v2580_v9, %v2516_v14  ;;  %v2599_v63 = vadd.f32 %v2581_v4, %v2517_v56  ;;  %v2744_v34 = vpop.permute.xlu1 %2743  ;;  %v3242_v19 = vmul.f32 %v13341_v7, %v13340_v8 }
 0x432   : > { %v2674_v49 = vadd.f32 %v13338_v59, %v2598_v22  ;;  %v2742_v50 = vpop.permute.xlu0 %2741  ;;  %v2675_v28 = vadd.f32 %v2657_v13, %v2599_v63  ;;  %v13342_v22 = vld [vmem:[#allocation241_spill] sm:$0xff]  ;;  %v3266_v57 = vrot.slane %v3242_v19, 7 }
 0x433   : > { %v2751_v2 = vsel %vm451_vm2, %v2742_v50, %v2744_v34  ;;  %v2768_v41 = vadd.f32 %v2742_v50, %v2673_v12  ;;  %v13343_v63 = vrot.slane %v13342_v22, 7  ;;  %v13344_v50 = vld [vmem:[#allocation89_spill] sm:$0xff] }
 0x434   : > { %v2835_v47 = vpop.permute.xlu1 %2834  ;;  %v2769_v10 = vadd.f32 %v2751_v2, %v2674_v49 }
 0x435   : > { %v2861_v39 = vadd.f32 %v2835_v47, %v2768_v41 }
 0x436   : > { %v2746_v46 = vpop.permute.xlu0 %2745 }
 0x437   : > { %v2752_v51 = vsel %vm451_vm2, %v2744_v34, %v2746_v46  ;;  %v3263_v34 = vsel %vm3252_vm8, %v13343_v63, %v3262_v44  ;;  %v13349_v63 = vld [vmem:[#allocation253_spill] sm:$0xff] }
 0x438   : > { %v2839_v11 = vpop.permute.xlu1 %2838  ;;  %v2770_v45 = vadd.f32 %v2752_v51, %v2675_v28 }
 0x43a   : > { %v2837_v60 = vpop.permute.xlu0 %2836 }
 0x43b   : > { %v2844_v24 = vsel %vm410_vm1, %v2835_v47, %v2837_v60  ;;  %v2845_v20 = vsel %vm410_vm1, %v2837_v60, %v2839_v11  ;;  %v13345_v60 = vld [vmem:[#allocation149_spill] sm:$0xff] }
 0x43c   : > { %v2905_v29 = vpop.permute.xlu1 %2904  ;;  %v2862_v16 = vadd.f32 %v2844_v24, %v2769_v10  ;;  %v2863_v54 = vadd.f32 %v2845_v20, %v2770_v45  ;;  %v3826_v10 = vld [vmem:[#allocation2 + $0xf0] sm:$0x1] }
 0x43d   : > { %v3853_v45 = vmul.f32 %v13347_v33, %v3826_v10 }
 0x43e   : > { %v2903_v18 = vpop.permute.xlu0 %2902  ;;  %v2926_v6 = vadd.f32 %v2905_v29, %v2863_v54 }
 0x43f   : > { %v2908_v61 = vsel %vm370_vm7, %v2903_v18, %v2905_v29  ;;  %v2924_v55 = vadd.f32 %v2903_v18, %v2861_v39  ;;  %v13346_v29 = vrot.slane %v13345_v60, 7 }
 0x440   : > { %v2995_v3 = vpop.permute.xlu1 %2994  ;;  %v2925_v58 = vadd.f32 %v2908_v61, %v2862_v16 }
 0x441   : > { %v3267_v18 = vsel %vm3252_vm8, %v13346_v29, %v3266_v57 }
 0x442   : > { %v2993_v30 = vpop.permute.xlu0 %2992 }
 0x443   : > { %v3002_v48 = vsel %vm665_vm13, %v2993_v30, %v2995_v3  ;;  %v3019_v14 = vadd.f32 %v2993_v30, %v2924_v55 }
 0x444   : > { %v3086_v40 = vpop.permute.xlu1 %3085  ;;  %v3020_v35 = vadd.f32 %v3002_v48, %v2925_v58 }
 0x445   : > { %v3112_v36 = vadd.f32 %v3086_v40, %v3019_v14 }
 0x446   : > { %v2997_v38 = vpop.permute.xlu0 %2996 }
 0x447   : > { %v3003_v42 = vsel %vm665_vm13, %v2995_v3, %v2997_v38 }
 0x448   : > { %v3090_v25 = vpop.permute.xlu1 %3089  ;;  %v3021_v9 = vadd.f32 %v3003_v42, %v2926_v6  ;;  %v13348_v42 = vld [vmem:[#allocation126_spill] sm:$0xff] }
 0x44a   : > { %v3088_v43 = vpop.permute.xlu0 %3087 }
 0x44b   : > { %v3095_v53 = vsel %vm292_vm0, %v3086_v40, %v3088_v43  ;;  %v3096_v5 = vsel %vm292_vm0, %v3088_v43, %v3090_v25 }
 0x44c   : > { %v3183_v17 = vpop.permute.xlu1 %3182  ;;  %v3113_v56 = vadd.f32 %v3095_v53, %v3020_v35  ;;  %v3114_v59 = vadd.f32 %v3096_v5, %v3021_v9  ;;  %v3875_v35 = vrot.slane %v3853_v45, 2 }
 0x44e   : > { %v3181_v12 = vpop.permute.xlu0 %3180 }
 0x44f   : > { %v3190_v23 = vsel %vm704_vm4, %v3181_v12, %v3183_v17  ;;  %v3207_v31 = vadd.f32 %v3181_v12, %v3112_v36  ;;  %v6487_v36 = vld [vmem:[#allocation2 + $0x100] sm:$0x1] }
 0x450   : > { %v3208_v4 = vadd.f32 %v3190_v23, %v3113_v56  ;;  %v3352_v26 = vpop.permute.xlu1 %3351 }
 0x451   : > { %v3283_v13 = vadd.f32 %v3263_v34, %v3207_v31  ;;  %v13350_v34 = vrot.slane %v13349_v63, 2 }
 0x452   : > { %v3185_v49 = vpop.permute.xlu0 %3184  ;;  %v3284_v28 = vadd.f32 %v13344_v50, %v3208_v4 }
 0x453   : > { %v3191_v47 = vsel %vm704_vm4, %v3183_v17, %v3185_v49  ;;  %v3378_v38 = vadd.f32 %v3352_v26, %v3283_v13  ;;  %v3855_v17 = vmul.f32 %v6487_v36, %v13348_v42  ;;  %v3876_v57 = vsel %vm3865_vm11, %v13350_v34, %v3875_v35 }
 0x454   : > { %v3209_v46 = vadd.f32 %v3191_v47, %v3114_v59  ;;  %v3356_v11 = vpop.permute.xlu1 %3355 }
 0x455   : > { %v3879_v49 = vrot.slane %v3855_v17, 2 }
 0x456   : > { %v3285_v3 = vadd.f32 %v3267_v18, %v3209_v46  ;;  %v3354_v30 = vpop.permute.xlu0 %3353 }
 0x457   : > { %v3362_v39 = vsel %vm451_vm2, %v3354_v30, %v3356_v11  ;;  %v3361_v16 = vsel %vm451_vm2, %v3352_v26, %v3354_v30  ;;  %v13351_v30 = vrot.slane %v11180_v21, 2 }
 0x458   : > { %v3447_v2 = vpop.permute.xlu1 %3446  ;;  %v3380_v48 = vadd.f32 %v3362_v39, %v3285_v3  ;;  %v3379_v43 = vadd.f32 %v3361_v16, %v3284_v28 }
 0x45a   : > { %v3445_v52 = vpop.permute.xlu0 %3444 }
 0x45b   : > { %v3471_v61 = vadd.f32 %v3445_v52, %v3378_v38  ;;  %v3454_v54 = vsel %vm410_vm1, %v3445_v52, %v3447_v2  ;;  %v13352_v52 = vld [vmem:[#allocation240_spill] sm:$0xff] }
 0x45c   : > { %v3513_v41 = vpop.permute.xlu1 %3512  ;;  %v3472_v7 = vadd.f32 %v3454_v54, %v3379_v43 }
 0x45d   : > { %v3534_v25 = vadd.f32 %v3513_v41, %v3471_v61 }
 0x45e   : > { %v3449_v51 = vpop.permute.xlu0 %3448 }
 0x45f   : > { %v3455_v55 = vsel %vm410_vm1, %v3447_v2, %v3449_v51  ;;  %v3880_v2 = vsel %vm3865_vm11, %v13351_v30, %v3879_v49 }
 0x460   : > { %v3473_v14 = vadd.f32 %v3455_v55, %v3380_v48 }
 0x462   : > { %v3603_v24 = vpop.permute.xlu1 %3602 }
 0x463   : > { %v3629_v53 = vadd.f32 %v3603_v24, %v3534_v25 }
 0x464   : > { %v3515_v40 = vpop.permute.xlu0 %3514 }
 0x465   : > { %v3518_v8 = vsel %vm370_vm7, %v3513_v41, %v3515_v40  ;;  %v3536_v23 = vadd.f32 %v3515_v40, %v3473_v14 }
 0x466   : > { %v3607_v20 = vpop.permute.xlu1 %3606  ;;  %v3535_v5 = vadd.f32 %v3518_v8, %v3472_v7 }
 0x468   : > { %v3605_v27 = vpop.permute.xlu0 %3604 }
 0x469   : > { %v3612_v6 = vsel %vm665_vm13, %v3603_v24, %v3605_v27  ;;  %v3613_v56 = vsel %vm665_vm13, %v3605_v27, %v3607_v20 }
 0x46a   : > { %v3630_v26 = vadd.f32 %v3612_v6, %v3535_v5  ;;  %v3631_v13 = vadd.f32 %v3613_v56, %v3536_v23 }
 0x46b   : > { %v3698_v58 = vpop.permute.xlu1 %3697 }
 0x46c   : > { %v3696_v44 = vpop.permute.xlu0 %3695 }
 0x46d   : > { %v3722_v19 = vadd.f32 %v3696_v44, %v3629_v53  ;;  %v3705_v4 = vsel %vm292_vm0, %v3696_v44, %v3698_v58 }
 0x46e   : > { %v3723_v28 = vadd.f32 %v3705_v4, %v3630_v26 }
 0x46f   : > { %v3791_v12 = vpop.permute.xlu1 %3790 }
 0x470   : > { %v3817_v31 = vadd.f32 %v3791_v12, %v3722_v19  ;;  %v3700_v9 = vpop.permute.xlu0 %3699 }
 0x471   : > { %v3706_v22 = vsel %vm292_vm0, %v3698_v58, %v3700_v9 }
 0x472   : > { %v3896_v59 = vadd.f32 %v3876_v57, %v3817_v31  ;;  %v3724_v47 = vadd.f32 %v3706_v22, %v3631_v13 }
 0x473   : > { %v3795_v50 = vpop.permute.xlu1 %3794 }
 0x474   : > { %v3793_v46 = vpop.permute.xlu0 %3792 }
 0x475   : > { %v3800_v11 = vsel %vm704_vm4, %v3791_v12, %v3793_v46  ;;  %v3801_v60 = vsel %vm704_vm4, %v3793_v46, %v3795_v50  ;;  %v4438_v46 = vld [vmem:[#allocation8 + $0x10] sm:$0xff] }
 0x476   : > { %v3818_v29 = vadd.f32 %v3800_v11, %v3723_v28  ;;  %v3819_v18 = vadd.f32 %v3801_v60, %v3724_v47  ;;  %v4446_v11 = vld [vmem:[#allocation8 + $0x50] sm:$0xff] }
 0x477   : > { %v3968_v3 = vpop.permute.xlu1 %3967 }
 0x478   : > { %v3897_v41 = vadd.f32 %v13352_v52, %v3818_v29  ;;  %v3966_v51 = vpop.permute.xlu0 %3965  ;;  %v3898_v24 = vadd.f32 %v3880_v2, %v3819_v18  ;;  %v4455_v18 = vld [vmem:[#allocation8 + $0x98] sm:$0xff] }
 0x479   : > { %v3975_v45 = vsel %vm451_vm2, %v3966_v51, %v3968_v3  ;;  %v3992_v16 = vadd.f32 %v3966_v51, %v3896_v59 }
 0x47a   : > { %v3993_v25 = vadd.f32 %v3975_v45, %v3897_v41  ;;  %v5876_v41 = vpack.c.bf16 %v4446_v11, %v4438_v46  ;;  %v5105_v46 = vld [vmem:[#allocation9 + $0x18] sm:$0xff]  ;;  %v5102_v11 = vld [vmem:[#allocation9] sm:$0xff] }
 0x47b   : > { %v4059_v40 = vpop.permute.xlu1 %4058 }
 0x47c   : > { %v3970_v10 = vpop.permute.xlu0 %3969  ;;  %v4085_v58 = vadd.f32 %v4059_v40, %v3992_v16  ;;  %v4470_v16 = vld [vmem:[#allocation8 + $0x110] sm:$0xff] }
 0x47d   : > { %v3976_v55 = vsel %vm451_vm2, %v3968_v3, %v3970_v10  ;;  %v4463_v3 = vld [vmem:[#allocation8 + $0xd8] sm:$0xff]  ;;  %v4454_v10 = vld [vmem:[#allocation8 + $0x90] sm:$0xff] }
 0x47e   : > { %v3994_v53 = vadd.f32 %v3976_v55, %v3898_v24  ;;  %v4478_v55 = vld [vmem:[#allocation8 + $0x150] sm:$0xff] }
 0x47f   : > { %v4063_v38 = vpop.permute.xlu1 %4062  ;;  %v5884_v37 = vpack.c.bf16 %v4478_v55, %v4470_v16  ;;  %v4615_v16 = vld [vmem:[#allocation8 + $0x598] sm:$0xff] }
 0x480   : > { %v4061_v39 = vpop.permute.xlu0 %4060  ;;  %v4623_v55 = vld [vmem:[#allocation8 + $0x5d8] sm:$0xff] }
 0x481   : > { %v4068_v21 = vsel %vm410_vm1, %v4059_v40, %v4061_v39  ;;  %v4069_v43 = vsel %vm410_vm1, %v4061_v39, %v4063_v38  ;;  %v5878_v40 = vpack.c.bf16 %v4463_v3, %v4455_v18  ;;  %v4462_v38 = vld [vmem:[#allocation8 + $0xd0] sm:$0xff]  ;;  %v4479_v39 = vld [vmem:[#allocation8 + $0x158] sm:$0xff] }
 0x482   : > { %v4086_v44 = vadd.f32 %v4068_v21, %v3993_v25  ;;  %v4087_v19 = vadd.f32 %v4069_v43, %v3994_v53  ;;  %v4487_v21 = vld [vmem:[#allocation8 + $0x198] sm:$0xff]  ;;  %v4494_v25 = vld [vmem:[#allocation8 + $0x1d0] sm:$0xff] }
 0x483   : > { %v4129_v20 = vpop.permute.xlu1 %4128  ;;  %v4510_v53 = vld [vmem:[#allocation8 + $0x250] sm:$0xff] }
 0x484   : > { %v4127_v61 = vpop.permute.xlu0 %4126  ;;  %v4150_v31 = vadd.f32 %v4129_v20, %v4087_v19  ;;  %v4518_v19 = vld [vmem:[#allocation8 + $0x290] sm:$0xff] }
 0x485   : > { %v4132_v14 = vsel %vm370_vm7, %v4127_v61, %v4129_v20  ;;  %v4148_v35 = vadd.f32 %v4127_v61, %v4085_v58  ;;  %v5888_v58 = vpack.c.bf16 %v4494_v25, %v4486_v32  ;;  %v4582_v3 = vld [vmem:[#allocation8 + $0x490] sm:$0xff] }
 0x486   : > { %v4149_v36 = vadd.f32 %v4132_v14, %v4086_v44  ;;  %v4502_v14 = vld [vmem:[#allocation8 + $0x210] sm:$0xff]  ;;  %v4519_v44 = vld [vmem:[#allocation8 + $0x298] sm:$0xff] }
 0x487   : > { %v4220_v27 = vpop.permute.xlu1 %4219  ;;  %v5112_v32 = vld [vmem:[#allocation9 + $0x50] sm:$0xff] }
 0x488   : > { %v4218_v33 = vpop.permute.xlu0 %4217 }
 0x489   : > { %v4227_v8 = vsel %vm665_vm13, %v4218_v33, %v4220_v27  ;;  %v4244_v17 = vadd.f32 %v4218_v33, %v4148_v35  ;;  %v5880_v33 = vpack.c.bf16 %v4462_v38, %v4454_v10  ;;  %v4527_v35 = vld [vmem:[#allocation8 + $0x2d8] sm:$0xff]  ;;  %v5106_v38 = vld [vmem:[#allocation9 + $0x20] sm:$0xff] }
 0x48a   : > { %v4245_v56 = vadd.f32 %v4227_v8, %v4149_v36  ;;  %v5892_v8 = vpack.c.bf16 %v4510_v53, %v4502_v14  ;;  %v4526_v36 = vld [vmem:[#allocation8 + $0x2d0] sm:$0xff]  ;;  %v5109_v10 = vld [vmem:[#allocation9 + $0x38] sm:$0xff] }
 0x48b   : > { %v4311_v48 = vpop.permute.xlu1 %4310  ;;  %v4631_v14 = vld [vmem:[#allocation8 + $0x618] sm:$0xff] }
 0x48c   : > { %v4222_v54 = vpop.permute.xlu0 %4221  ;;  %v4337_v12 = vadd.f32 %v4311_v48, %v4244_v17  ;;  %v4543_v17 = vld [vmem:[#allocation8 + $0x358] sm:$0xff] }
 0x48d   : > { %v4228_v5 = vsel %vm665_vm13, %v4220_v27, %v4222_v54  ;;  %v4511_v54 = vld [vmem:[#allocation8 + $0x258] sm:$0xff] }
 0x48e   : > { %v4246_v57 = vadd.f32 %v4228_v5, %v4150_v31  ;;  %v4542_v5 = vld [vmem:[#allocation8 + $0x350] sm:$0xff]  ;;  %v4559_v31 = vld [vmem:[#allocation8 + $0x3d8] sm:$0xff] }
 0x48f   : > { %v4315_v7 = vpop.permute.xlu1 %4314  ;;  %v4639_v53 = vld [vmem:[#allocation8 + $0x658] sm:$0xff] }
 0x490   : > { %v4313_v42 = vpop.permute.xlu0 %4312 }
 0x491   : > { %v4320_v6 = vsel %vm292_vm0, %v4311_v48, %v4313_v42  ;;  %v4321_v22 = vsel %vm292_vm0, %v4313_v42, %v4315_v7  ;;  %v4495_v48 = vld [vmem:[#allocation8 + $0x1d8] sm:$0xff]  ;;  %v5894_v7 = vpack.c.bf16 %v4527_v35, %v4519_v44  ;;  %v5115_v44 = vld [vmem:[#allocation9 + $0x68] sm:$0xff] }
 0x492   : > { %v4338_v9 = vadd.f32 %v4320_v6, %v4245_v56  ;;  %v4339_v49 = vadd.f32 %v4321_v22, %v4246_v57  ;;  %v4535_v42 = vld [vmem:[#allocation8 + $0x318] sm:$0xff]  ;;  %v5896_v6 = vpack.c.bf16 %v4526_v36, %v4518_v19  ;;  %v4550_v22 = vld [vmem:[#allocation8 + $0x390] sm:$0xff] }
 0x493   : > { %v4409_v23 = vpop.permute.xlu1 %4408  ;;  %v5898_v56 = vpack.c.bf16 %v4543_v17, %v4535_v42  ;;  %v4575_v57 = vld [vmem:[#allocation8 + $0x458] sm:$0xff]  ;;  %v5116_v19 = vld [vmem:[#allocation9 + $0x70] sm:$0xff] }
 0x494   : > { %v4407_v4 = vpop.permute.xlu0 %4406  ;;  %v5117_v35 = vld [vmem:[#allocation9 + $0x78] sm:$0xff]  ;;  %v4630_v42 = vld [vmem:[#allocation8 + $0x610] sm:$0xff] }
 0x495   : > { %v4416_v63 = vsel %vm704_vm4, %v4407_v4, %v4409_v23  ;;  %v4433_v34 = vadd.f32 %v4407_v4, %v4337_v12  ;;  %v4534_v12 = vld [vmem:[#allocation8 + $0x310] sm:$0xff] }
 0x496   : > { %v4434_v26 = vadd.f32 %v4416_v63, %v4338_v9  ;;  %v5900_v9 = vpack.c.bf16 %v4542_v5, %v4534_v12  ;;  %v4558_v63 = vld [vmem:[#allocation8 + $0x3d0] sm:$0xff]  ;;  %v4647_v12 = vld [vmem:[#allocation8 + $0x698] sm:$0xff] }
 0x497   : > { %v4752_v13 = vrot.slane %v4433_v34, 7  ;;  %v6430_v59 = vpop.permute.xlu1 %6429  ;;  %v4567_v34 = vld [vmem:[#allocation8 + $0x418] sm:$0xff] }
 0x498   : > { %v4411_v50 = vpop.permute.xlu0 %4410  ;;  %v6432_v28 = vunpack.i.h.bf16 %v6430_v59  ;;  %v6431_v47 = vunpack.i.l.bf16 %v6430_v59  ;;  %v4754_v30 = vrot.slane %v4434_v26, 7  ;;  %v5904_v26 = vpack.c.bf16 %v4558_v63, %v4550_v22  ;;  %v4655_v5 = vld [vmem:[#allocation8 + $0x6d8] sm:$0xff]  ;;  %v5120_v22 = vld [vmem:[#allocation9 + $0x90] sm:$0xff] }
 0x499   : > { %v4417_v60 = vsel %vm704_vm4, %v4409_v23, %v4411_v50  ;;  %v4753_v29 = vsel %vm3252_vm8, %v4744_v62, %v4752_v13  ;;  %v4471_v62 = vld [vmem:[#allocation8 + $0x118] sm:$0xff]  ;;  %v4566_v13 = vld [vmem:[#allocation8 + $0x410] sm:$0xff]  ;;  %v5906_v59 = vpack.c.bf16 %v4575_v57, %v4567_v34 }
 0x49a   : > { %v4435_v2 = vadd.f32 %v4417_v60, %v4339_v49  ;;  %4764 = vrot.lane.b32.xlu0 %v4753_v29, %s6696_s7  ;;  %v11515_v52 = vsel %vm292_vm0, %v6431_v47, %v6432_v28  ;;  %v4755_v20 = vsel %vm3252_vm8, %v4747_v1, %v4754_v30  ;;  %v5882_v45 = vpack.c.bf16 %v4479_v39, %v4471_v62  ;;  %v4551_v23 = vld [vmem:[#allocation8 + $0x398] sm:$0xff]  ;;  %v4574_v49 = vld [vmem:[#allocation8 + $0x450] sm:$0xff] }
 0x49b   : > { %4842 = vmatprep.mubr.f32.mxu1 %v11515_v52  ;;  %v5886_v1 = vpack.c.bf16 %v4495_v48, %v4487_v21  ;;  %v5902_v4 = vpack.c.bf16 %v4559_v31, %v4551_v23  ;;  %v4583_v50 = vld [vmem:[#allocation8 + $0x498] sm:$0xff]  ;;  %v5104_v29 = vld [vmem:[#allocation9 + $0x10] sm:$0xff]  ;;  %v5908_v18 = vpack.c.bf16 %v4574_v49, %v4566_v13  ;;  %v5111_v21 = vld [vmem:[#allocation9 + $0x48] sm:$0xff] }
 0x49c   : > { %v4756_v51 = vrot.slane %v4435_v2, 7  ;;  %v4759_v24 = vpop.permute.xlu0 %4758  ;;  %v4591_v28 = vld [vmem:[#allocation8 + $0x4d8] sm:$0xff]  ;;  %v6068_v30 = vpack.c.bf16 %v5104_v29, %v5102_v11  ;;  %v5108_v39 = vld [vmem:[#allocation9 + $0x30] sm:$0xff]  ;;  %v5119_v23 = vld [vmem:[#allocation9 + $0x88] sm:$0xff] }
 0x49d   : > { %v11519_v0 = vsel %vm292_vm0, %v4759_v24, %v6431_v47  ;;  %v5103_v47 = vld [vmem:[#allocation9 + $0x8] sm:$0xff]  ;;  %v5910_v2 = vpack.c.bf16 %v4591_v28, %v4583_v50  ;;  %v4607_v24 = vld [vmem:[#allocation8 + $0x558] sm:$0xff]  ;;  %v4646_v34 = vld [vmem:[#allocation8 + $0x690] sm:$0xff] }
 0x49e   : > { %v4757_v61 = vsel %vm3252_vm8, %v4750_v15, %v4756_v51  ;;  %4843 = vmatmul.mubr.f32.vlgmr.msra.gmra.mrb[0].mxu1 %v11519_v0  ;;  %v4503_v15 = vld [vmem:[#allocation8 + $0x218] sm:$0xff]  ;;  %v6066_v60 = vpack.c.bf16 %v5105_v46, %v5103_v47  ;;  %v4654_v13 = vld [vmem:[#allocation8 + $0x6d0] sm:$0xff]  ;;  %v5123_v50 = vld [vmem:[#allocation9 + $0xa8] sm:$0xff] }
 0x49f   : > { %v6433_v27 = vpack.i.bf16 %v4757_v61, %v4755_v20  ;;  %5877 = vmatpush1.bf16.msra.mxu1 %v5876_v41  ;;  %v5890_v43 = vpack.c.bf16 %v4511_v54, %v4503_v15  ;;  %v4590_v41 = vld [vmem:[#allocation8 + $0x4d0] sm:$0xff]  ;;  %v4599_v51 = vld [vmem:[#allocation8 + $0x518] sm:$0xff]  ;;  %v5122_v47 = vld [vmem:[#allocation9 + $0xa0] sm:$0xff] }
 0x4a0   : > { %5879 = vmatprep.subr.bf16.mxu1 %v5878_v40  ;;  %6067 = vmatprep.subr.bf16.mxu0 %v6066_v60  ;;  %v5107_v40 = vld [vmem:[#allocation9 + $0x28] sm:$0xff]  ;;  %v5912_v20 = vpack.c.bf16 %v4590_v41, %v4582_v3  ;;  %v4598_v61 = vld [vmem:[#allocation8 + $0x510] sm:$0xff]  ;;  %v5113_v48 = vld [vmem:[#allocation9 + $0x58] sm:$0xff]  ;;  %v5928_v60 = vpack.c.bf16 %v4654_v13, %v4646_v34 }
 0x4a1   : > { %6434 = vrot.lane.b32.xlu1 %v6433_v27, %s6696_s7  ;;  %6069 = vmatpush1.bf16.msra.mxu0 %v6068_v30  ;;  %v6070_v62 = vpack.c.bf16 %v5109_v10, %v5107_v40  ;;  %v6072_v27 = vpack.c.bf16 %v5108_v39, %v5106_v38  ;;  %v4614_v15 = vld [vmem:[#allocation8 + $0x590] sm:$0xff]  ;;  %v5121_v31 = vld [vmem:[#allocation9 + $0x98] sm:$0xff]  ;;  %v5126_v40 = vld [vmem:[#allocation9 + $0xc0] sm:$0xff] }
 0x4a2   : > { %v4671_v49 = vld [vmem:[#allocation8 + $0x758] sm:$0xff]  ;;  %v5124_v11 = vld [vmem:[#allocation9 + $0xb0] sm:$0xff]  ;;  %v5151_v34 = vld [vmem:[#allocation9 + $0x188] sm:$0xff] }
 0x4a3   : > { %5881 = vmatpush1.bf16.msra.mxu1 %v5880_v33  ;;  %v5914_v33 = vpack.c.bf16 %v4607_v24, %v4599_v51  ;;  %6071 = vmatprep.subr.bf16.mxu0 %v6070_v62  ;;  %v5125_v28 = vld [vmem:[#allocation9 + $0xb8] sm:$0xff]  ;;  %v4662_v29 = vld [vmem:[#allocation8 + $0x710] sm:$0xff]  ;;  %v5127_v51 = vld [vmem:[#allocation9 + $0xc8] sm:$0xff] }
 0x4a4   : > { %5883 = vmatprep.subr.bf16.mxu1 %v5882_v45  ;;  %v4606_v45 = vld [vmem:[#allocation8 + $0x550] sm:$0xff]  ;;  %v6086_v46 = vpack.c.bf16 %v5125_v28, %v5123_v50  ;;  %v4687_v41 = vld [vmem:[#allocation8 + $0x7d8] sm:$0xff]  ;;  %v5155_v50 = vld [vmem:[#allocation9 + $0x1a8] sm:$0xff] }
 0x4a5   : > { %6073 = vmatpush1.bf16.msra.mxu0 %v6072_v27  ;;  %v5916_v25 = vpack.c.bf16 %v4606_v45, %v4598_v61  ;;  %v4670_v30 = vld [vmem:[#allocation8 + $0x750] sm:$0xff]  ;;  %v5129_v24 = vld [vmem:[#allocation9 + $0xd8] sm:$0xff]  ;;  %v4449_v45 = vld [vmem:[#allocation8 + $0x68] sm:$0xff] }
 0x4a6   : > { %v6090_v10 = vpack.c.bf16 %v5129_v24, %v5127_v51  ;;  %v5128_v38 = vld [vmem:[#allocation9 + $0xd0] sm:$0xff]  ;;  %v5932_v62 = vpack.c.bf16 %v4670_v30, %v4662_v29  ;;  %v5157_v28 = vld [vmem:[#allocation9 + $0x1b8] sm:$0xff]  ;;  %v5159_v29 = vld [vmem:[#allocation9 + $0x1c8] sm:$0xff] }
 0x4a7   : > { %5885 = vmatpush1.bf16.msra.mxu1 %v5884_v37  ;;  %v5110_v37 = vld [vmem:[#allocation9 + $0x40] sm:$0xff]  ;;  %v4678_v39 = vld [vmem:[#allocation8 + $0x790] sm:$0xff]  ;;  %v5163_v51 = vld [vmem:[#allocation9 + $0x1e8] sm:$0xff] }
 0x4a8   : > { %5887 = vmatprep.subr.bf16.mxu1 %v5886_v1  ;;  %v6074_v1 = vpack.c.bf16 %v5113_v48, %v5111_v21  ;;  %v6076_v54 = vpack.c.bf16 %v5112_v32, %v5110_v37  ;;  %v4686_v27 = vld [vmem:[#allocation8 + $0x7d0] sm:$0xff]  ;;  %v5130_v21 = vld [vmem:[#allocation9 + $0xe0] sm:$0xff]  ;;  %v5165_v24 = vld [vmem:[#allocation9 + $0x1f8] sm:$0xff] }
 0x4a9   : > { %v5132_v37 = vld [vmem:[#allocation9 + $0xf0] sm:$0xff]  ;;  %v5158_v30 = vld [vmem:[#allocation9 + $0x1c0] sm:$0xff] }
 0x4aa   : > { %6075 = vmatprep.subr.bf16.mxu0 %v6074_v1  ;;  %v5936_v1 = vpack.c.bf16 %v4686_v27, %v4678_v39  ;;  %v6096_v32 = vpack.c.bf16 %v5132_v37, %v5130_v21  ;;  %v4457_v21 = vld [vmem:[#allocation8 + $0xa8] sm:$0xff] }
 0x4ab   : > { %5889 = vmatpush1.bf16.msra.mxu1 %v5888_v58  ;;  %v5918_v58 = vpack.c.bf16 %v4623_v55, %v4615_v16  ;;  %6077 = vmatpush1.bf16.msra.mxu0 %v6076_v54  ;;  %v5131_v16 = vld [vmem:[#allocation9 + $0xe8] sm:$0xff]  ;;  %v5133_v55 = vld [vmem:[#allocation9 + $0xf8] sm:$0xff] }
 0x4ac   : > { %5891 = vmatprep.subr.bf16.mxu1 %v5890_v43  ;;  %v4622_v43 = vld [vmem:[#allocation8 + $0x5d0] sm:$0xff]  ;;  %v6094_v48 = vpack.c.bf16 %v5133_v55, %v5131_v16  ;;  %v5137_v54 = vld [vmem:[#allocation9 + $0x118] sm:$0xff]  ;;  %v4440_v16 = vld [vmem:[#allocation8 + $0x20] sm:$0xff] }
 0x4ad   : > { %v5920_v36 = vpack.c.bf16 %v4622_v43, %v4614_v15  ;;  %v5135_v15 = vld [vmem:[#allocation9 + $0x108] sm:$0xff]  ;;  %v4448_v55 = vld [vmem:[#allocation8 + $0x60] sm:$0xff] }
 0x4ae   : > { %v6098_v43 = vpack.c.bf16 %v5137_v54, %v5135_v15  ;;  %v5940_v37 = vpack.c.bf16 %v4448_v55, %v4440_v16  ;;  %v4473_v15 = vld [vmem:[#allocation8 + $0x128] sm:$0xff] }
 0x4af   : > { %5893 = vmatpush1.bf16.msra.mxu1 %v5892_v8  ;;  %v5114_v8 = vld [vmem:[#allocation9 + $0x60] sm:$0xff]  ;;  %v4481_v54 = vld [vmem:[#allocation8 + $0x168] sm:$0xff] }
 0x4b0   : > { %5895 = vmatprep.subr.bf16.mxu1 %v5894_v7  ;;  %v6078_v7 = vpack.c.bf16 %v5117_v35, %v5115_v44  ;;  %v6080_v17 = vpack.c.bf16 %v5116_v19, %v5114_v8  ;;  %v5139_v44 = vld [vmem:[#allocation9 + $0x128] sm:$0xff]  ;;  %v5141_v35 = vld [vmem:[#allocation9 + $0x138] sm:$0xff]  ;;  %v5138_v8 = vld [vmem:[#allocation9 + $0x120] sm:$0xff] }
 0x4b1   : > { %v6102_v19 = vpack.c.bf16 %v5141_v35, %v5139_v44  ;;  %v4489_v44 = vld [vmem:[#allocation8 + $0x1a8] sm:$0xff] }
 0x4b2   : > { %6079 = vmatprep.subr.bf16.mxu0 %v6078_v7  ;;  %v5140_v7 = vld [vmem:[#allocation9 + $0x130] sm:$0xff]  ;;  %v4497_v35 = vld [vmem:[#allocation8 + $0x1e8] sm:$0xff] }
 0x4b3   : > { %5897 = vmatpush1.bf16.msra.mxu1 %v5896_v6  ;;  %v5922_v6 = vpack.c.bf16 %v4639_v53, %v4631_v14  ;;  %6081 = vmatpush1.bf16.msra.mxu0 %v6080_v17  ;;  %v5136_v14 = vld [vmem:[#allocation9 + $0x110] sm:$0xff]  ;;  %v5145_v17 = vld [vmem:[#allocation9 + $0x158] sm:$0xff]  ;;  %v4609_v16 = vld [vmem:[#allocation8 + $0x568] sm:$0xff] }
 0x4b4   : > { %5899 = vmatprep.subr.bf16.mxu1 %v5898_v56  ;;  %v4638_v56 = vld [vmem:[#allocation8 + $0x650] sm:$0xff] }
 0x4b5   : > { %v5924_v63 = vpack.c.bf16 %v4638_v56, %v4630_v42  ;;  %v5143_v42 = vld [vmem:[#allocation9 + $0x148] sm:$0xff]  ;;  %v5142_v56 = vld [vmem:[#allocation9 + $0x140] sm:$0xff] }
 0x4b7   : > { %5901 = vmatpush1.bf16.msra.mxu1 %v5900_v9  ;;  %v5118_v9 = vld [vmem:[#allocation9 + $0x80] sm:$0xff] }
 0x4b8   : > { %5903 = vmatprep.subr.bf16.mxu1 %v5902_v4  ;;  %v6082_v4 = vpack.c.bf16 %v5121_v31, %v5119_v23  ;;  %v6084_v57 = vpack.c.bf16 %v5120_v22, %v5118_v9  ;;  %v5147_v23 = vld [vmem:[#allocation9 + $0x168] sm:$0xff]  ;;  %v5149_v31 = vld [vmem:[#allocation9 + $0x178] sm:$0xff]  ;;  %v5146_v9 = vld [vmem:[#allocation9 + $0x160] sm:$0xff] }
 0x4b9   : > { %v5148_v22 = vld [vmem:[#allocation9 + $0x170] sm:$0xff] }
 0x4ba   : > { %6083 = vmatprep.subr.bf16.mxu0 %v6082_v4  ;;  %v6110_v4 = vpack.c.bf16 %v5149_v31, %v5147_v23  ;;  %v4504_v31 = vld [vmem:[#allocation8 + $0x220] sm:$0xff] }
 0x4bb   : > { %5905 = vmatpush1.bf16.msra.mxu1 %v5904_v26  ;;  %v5926_v26 = vpack.c.bf16 %v4655_v5, %v4647_v12  ;;  %6085 = vmatpush1.bf16.msra.mxu0 %v6084_v57  ;;  %v5144_v12 = vld [vmem:[#allocation9 + $0x150] sm:$0xff]  ;;  %v5153_v57 = vld [vmem:[#allocation9 + $0x198] sm:$0xff] }
 0x4bc   : > { %5907 = vmatprep.subr.bf16.mxu1 %v5906_v59  ;;  %v4663_v59 = vld [vmem:[#allocation8 + $0x718] sm:$0xff]  ;;  %6087 = vmatprep.subr.bf16.mxu0 %v6086_v46  ;;  %v6108_v5 = vpack.c.bf16 %v5144_v12, %v5142_v56  ;;  %v6114_v13 = vpack.c.bf16 %v5153_v57, %v5151_v34  ;;  %v6118_v46 = vpack.c.bf16 %v5157_v28, %v5155_v50  ;;  %v4505_v56 = vld [vmem:[#allocation8 + $0x228] sm:$0xff]  ;;  %v4520_v57 = vld [vmem:[#allocation8 + $0x2a0] sm:$0xff] }
 0x4bd   : > { %v5930_v3 = vpack.c.bf16 %v4671_v49, %v4663_v59  ;;  %v5152_v59 = vld [vmem:[#allocation9 + $0x190] sm:$0xff]  ;;  %v4513_v12 = vld [vmem:[#allocation8 + $0x268] sm:$0xff]  ;;  %v4536_v28 = vld [vmem:[#allocation8 + $0x320] sm:$0xff] }
 0x4be   : > { %v5954_v23 = vpack.c.bf16 %v4513_v12, %v4505_v56  ;;  %v4665_v56 = vld [vmem:[#allocation8 + $0x728] sm:$0xff] }
 0x4bf   : > { %5909 = vmatpush1.bf16.msra.mxu1 %v5908_v18  ;;  %v6088_v18 = vpack.c.bf16 %v5124_v11, %v5122_v47  ;;  %v5154_v47 = vld [vmem:[#allocation9 + $0x1a0] sm:$0xff]  ;;  %v5156_v11 = vld [vmem:[#allocation9 + $0x1b0] sm:$0xff]  ;;  %v4673_v12 = vld [vmem:[#allocation8 + $0x768] sm:$0xff] }
 0x4c0   : > { %5911 = vmatprep.subr.bf16.mxu1 %v5910_v2  ;;  %v4679_v2 = vld [vmem:[#allocation8 + $0x798] sm:$0xff] }
 0x4c1   : > { %6089 = vmatpush1.bf16.msra.mxu0 %v6088_v18  ;;  %v5934_v61 = vpack.c.bf16 %v4687_v41, %v4679_v2  ;;  %v5161_v18 = vld [vmem:[#allocation9 + $0x1d8] sm:$0xff]  ;;  %v5160_v2 = vld [vmem:[#allocation9 + $0x1d0] sm:$0xff] }
 0x4c2   : > { %6091 = vmatprep.subr.bf16.mxu0 %v6090_v10  ;;  %v6124_v41 = vpack.c.bf16 %v5160_v2, %v5158_v30  ;;  %v6126_v10 = vpack.c.bf16 %v5165_v24, %v5163_v51  ;;  %v4569_v30 = vld [vmem:[#allocation8 + $0x428] sm:$0xff]  ;;  %v4568_v24 = vld [vmem:[#allocation8 + $0x420] sm:$0xff] }
 0x4c3   : > { %5913 = vmatpush1.bf16.msra.mxu1 %v5912_v20  ;;  %v6092_v20 = vpack.c.bf16 %v5128_v38, %v5126_v40  ;;  %v5162_v40 = vld [vmem:[#allocation9 + $0x1e0] sm:$0xff]  ;;  %v5164_v38 = vld [vmem:[#allocation9 + $0x1f0] sm:$0xff]  ;;  %v4577_v2 = vld [vmem:[#allocation8 + $0x468] sm:$0xff] }
 0x4c4   : > { %5915 = vmatprep.subr.bf16.mxu1 %v5914_v33  ;;  %v4441_v33 = vld [vmem:[#allocation8 + $0x28] sm:$0xff]  ;;  %v5970_v51 = vpack.c.bf16 %v4577_v2, %v4569_v30  ;;  %v4475_v30 = vld [vmem:[#allocation8 + $0x138] sm:$0xff] }
 0x4c5   : > { %6093 = vmatpush1.bf16.msra.mxu0 %v6092_v20  ;;  %v4483_v2 = vld [vmem:[#allocation8 + $0x178] sm:$0xff] }
 0x4c6   : > { %6095 = vmatprep.subr.bf16.mxu0 %v6094_v48  ;;  %v4465_v48 = vld [vmem:[#allocation8 + $0xe8] sm:$0xff] }
 0x4c7   : > { %5917 = vmatpush1.bf16.msra.mxu1 %v5916_v25  ;;  %v5938_v25 = vpack.c.bf16 %v4449_v45, %v4441_v33 }
 0x4c8   : > { %5919 = vmatprep.subr.bf16.mxu1 %v5918_v58  ;;  %v5134_v58 = vld [vmem:[#allocation9 + $0x100] sm:$0xff] }
 0x4c9   : > { %6097 = vmatpush1.bf16.msra.mxu0 %v6096_v32  ;;  %v6100_v53 = vpack.c.bf16 %v5136_v14, %v5134_v58  ;;  %v4456_v32 = vld [vmem:[#allocation8 + $0xa0] sm:$0xff] }
 0x4ca   : > { %6099 = vmatprep.subr.bf16.mxu0 %v6098_v43  ;;  %v5946_v43 = vpack.c.bf16 %v4481_v54, %v4473_v15  ;;  %v4472_v14 = vld [vmem:[#allocation8 + $0x120] sm:$0xff] }
 0x4cb   : > { %5921 = vmatpush1.bf16.msra.mxu1 %v5920_v36  ;;  %v6104_v36 = vpack.c.bf16 %v5140_v7, %v5138_v8  ;;  %v5167_v8 = vld [vmem:[#allocation9 + $0x208] sm:$0xff]  ;;  %v5169_v7 = vld [vmem:[#allocation9 + $0x218] sm:$0xff]  ;;  %v4616_v54 = vld [vmem:[#allocation8 + $0x5a0] sm:$0xff] }
 0x4cc   : > { %5923 = vmatprep.subr.bf16.mxu1 %v5922_v6  ;;  %v6106_v6 = vpack.c.bf16 %v5145_v17, %v5143_v42  ;;  %v5950_v42 = vpack.c.bf16 %v4497_v35, %v4489_v44  ;;  %v4488_v17 = vld [vmem:[#allocation8 + $0x1a0] sm:$0xff] }
 0x4cd   : > { %6101 = vmatpush1.bf16.msra.mxu0 %v6100_v53  ;;  %v4480_v53 = vld [vmem:[#allocation8 + $0x160] sm:$0xff] }
 0x4ce   : > { %6103 = vmatprep.subr.bf16.mxu0 %v6102_v19  ;;  %v5948_v19 = vpack.c.bf16 %v4480_v53, %v4472_v14  ;;  %v4641_v14 = vld [vmem:[#allocation8 + $0x668] sm:$0xff]  ;;  %v4632_v35 = vld [vmem:[#allocation8 + $0x620] sm:$0xff] }
 0x4cf   : > { %5925 = vmatpush1.bf16.msra.mxu1 %v5924_v63  ;;  %v6112_v63 = vpack.c.bf16 %v5148_v22, %v5146_v9  ;;  %v4512_v9 = vld [vmem:[#allocation8 + $0x260] sm:$0xff]  ;;  %v4529_v22 = vld [vmem:[#allocation8 + $0x2e8] sm:$0xff] }
 0x4d0   : > { %5927 = vmatprep.subr.bf16.mxu1 %v5926_v26  ;;  %v5150_v26 = vld [vmem:[#allocation9 + $0x180] sm:$0xff] }
 0x4d1   : > { %6105 = vmatpush1.bf16.msra.mxu0 %v6104_v36  ;;  %v6116_v49 = vpack.c.bf16 %v5152_v59, %v5150_v26  ;;  %v6130_v36 = vpack.c.bf16 %v5169_v7, %v5167_v8  ;;  %v4528_v26 = vld [vmem:[#allocation8 + $0x2e0] sm:$0xff]  ;;  %v4545_v59 = vld [vmem:[#allocation8 + $0x368] sm:$0xff] }
 0x4d2   : > { %6107 = vmatprep.subr.bf16.mxu0 %v6106_v6  ;;  %v4496_v6 = vld [vmem:[#allocation8 + $0x1e0] sm:$0xff]  ;;  %v4649_v7 = vld [vmem:[#allocation8 + $0x6a8] sm:$0xff] }
 0x4d3   : > { %5929 = vmatpush1.bf16.msra.mxu1 %v5928_v60  ;;  %v6120_v60 = vpack.c.bf16 %v5156_v11, %v5154_v47  ;;  %v4544_v47 = vld [vmem:[#allocation8 + $0x360] sm:$0xff]  ;;  %v4561_v11 = vld [vmem:[#allocation8 + $0x3e8] sm:$0xff] }
 0x4d4   : > { %5931 = vmatprep.subr.bf16.mxu1 %v5930_v3  ;;  %v6122_v3 = vpack.c.bf16 %v5161_v18, %v5159_v29  ;;  %v4552_v18 = vld [vmem:[#allocation8 + $0x3a0] sm:$0xff] }
 0x4d5   : > { %6109 = vmatpush1.bf16.msra.mxu0 %v6108_v5  ;;  %v5952_v5 = vpack.c.bf16 %v4496_v6, %v4488_v17  ;;  %v4640_v8 = vld [vmem:[#allocation8 + $0x660] sm:$0xff] }
 0x4d6   : > { %6111 = vmatprep.subr.bf16.mxu0 %v6110_v4  ;;  %v4521_v4 = vld [vmem:[#allocation8 + $0x2a8] sm:$0xff]  ;;  %v4648_v17 = vld [vmem:[#allocation8 + $0x6a0] sm:$0xff] }
 0x4d7   : > { %5933 = vmatpush1.bf16.msra.mxu1 %v5932_v62  ;;  %v6128_v62 = vpack.c.bf16 %v5164_v38, %v5162_v40  ;;  %v5958_v34 = vpack.c.bf16 %v4529_v22, %v4521_v4  ;;  %v4576_v40 = vld [vmem:[#allocation8 + $0x460] sm:$0xff]  ;;  %v4593_v38 = vld [vmem:[#allocation8 + $0x4e8] sm:$0xff] }
 0x4d8   : > { %5935 = vmatprep.subr.bf16.mxu1 %v5934_v61  ;;  %v4656_v6 = vld [vmem:[#allocation8 + $0x6e0] sm:$0xff]  ;;  %v4681_v4 = vld [vmem:[#allocation8 + $0x7a8] sm:$0xff] }
 0x4d9   : > { %6113 = vmatpush1.bf16.msra.mxu0 %v6112_v63  ;;  %v5956_v63 = vpack.c.bf16 %v4512_v9, %v4504_v31  ;;  %v4664_v31 = vld [vmem:[#allocation8 + $0x720] sm:$0xff]  ;;  %v4689_v22 = vld [vmem:[#allocation8 + $0x7e8] sm:$0xff] }
 0x4da   : > { %6115 = vmatprep.subr.bf16.mxu0 %v6114_v13  ;;  %v4537_v13 = vld [vmem:[#allocation8 + $0x328] sm:$0xff]  ;;  %v4672_v9 = vld [vmem:[#allocation8 + $0x760] sm:$0xff] }
 0x4db   : > { %5937 = vmatpush1.bf16.msra.mxu1 %v5936_v1  ;;  %v5942_v1 = vpack.c.bf16 %v4465_v48, %v4457_v21  ;;  %v5962_v50 = vpack.c.bf16 %v4545_v59, %v4537_v13  ;;  %v4600_v48 = vld [vmem:[#allocation8 + $0x520] sm:$0xff]  ;;  %v4443_v13 = vld [vmem:[#allocation8 + $0x38] sm:$0xff] }
 0x4dc   : > { %5939 = vmatprep.subr.bf16.mxu1 %v5938_v25  ;;  %v4464_v25 = vld [vmem:[#allocation8 + $0xe0] sm:$0xff]  ;;  %v4451_v59 = vld [vmem:[#allocation8 + $0x78] sm:$0xff] }
 0x4dd   : > { %6117 = vmatpush1.bf16.msra.mxu0 %v6116_v49  ;;  %v5944_v58 = vpack.c.bf16 %v4464_v25, %v4456_v32  ;;  %v5960_v49 = vpack.c.bf16 %v4528_v26, %v4520_v57  ;;  %v4625_v32 = vld [vmem:[#allocation8 + $0x5e8] sm:$0xff]  ;;  %v4680_v57 = vld [vmem:[#allocation8 + $0x7a0] sm:$0xff] }
 0x4de   : > { %6119 = vmatprep.subr.bf16.mxu0 %v6118_v46  ;;  %v4553_v46 = vld [vmem:[#allocation8 + $0x3a8] sm:$0xff]  ;;  %v4688_v26 = vld [vmem:[#allocation8 + $0x7e0] sm:$0xff] }
 0x4df   : > { %v5966_v29 = vpack.c.bf16 %v4561_v11, %v4553_v46  ;;  %v4459_v46 = vld [vmem:[#allocation8 + $0xb8] sm:$0xff] }
 0x4e0   : > { %v4467_v11 = vld [vmem:[#allocation8 + $0xf8] sm:$0xff] }
 0x4e1   : > { %6121 = vmatpush1.bf16.msra.mxu0 %v6120_v60  ;;  %v5964_v60 = vpack.c.bf16 %v4544_v47, %v4536_v28  ;;  %v4442_v28 = vld [vmem:[#allocation8 + $0x30] sm:$0xff] }
 0x4e2   : > { %6123 = vmatprep.subr.bf16.mxu0 %v6122_v3  ;;  %v4560_v3 = vld [vmem:[#allocation8 + $0x3e0] sm:$0xff]  ;;  %v4450_v47 = vld [vmem:[#allocation8 + $0x70] sm:$0xff] }
 0x4e5   : > { %6125 = vmatpush1.bf16.msra.mxu0 %v6124_v41  ;;  %v5968_v41 = vpack.c.bf16 %v4560_v3, %v4552_v18  ;;  %v4458_v18 = vld [vmem:[#allocation8 + $0xb0] sm:$0xff] }
 0x4e6   : > { %6127 = vmatprep.subr.bf16.mxu0 %v6126_v10  ;;  %v4585_v10 = vld [vmem:[#allocation8 + $0x4a8] sm:$0xff]  ;;  %v4466_v3 = vld [vmem:[#allocation8 + $0xf0] sm:$0xff] }
 0x4e9   : > { %6129 = vmatpush1.bf16.msra.mxu0 %v6128_v62  ;;  %v5972_v62 = vpack.c.bf16 %v4576_v40, %v4568_v24  ;;  %v4474_v24 = vld [vmem:[#allocation8 + $0x130] sm:$0xff] }
 0x4ea   : > { %6131 = vmatprep.subr.bf16.mxu0 %v6130_v36  ;;  %v5988_v36 = vpack.c.bf16 %v4640_v8, %v4632_v35  ;;  %v4482_v40 = vld [vmem:[#allocation8 + $0x170] sm:$0xff] }
 0x50c   : > { %v4765_v27 = vpop.permute.xlu0 %4764 }
 0x513   : > { %v6435_v39 = vpop.permute.xlu1 %6434 }
 0x514   : > { %v6437_v20 = vunpack.i.h.bf16 %v6435_v39  ;;  %v6436_v61 = vunpack.i.l.bf16 %v6435_v39  ;;  %v5974_v39 = vpack.c.bf16 %v4593_v38, %v4585_v10  ;;  %v4491_v10 = vld [vmem:[#allocation8 + $0x1b8] sm:$0xff] }
 0x515   : > { %v4499_v38 = vld [vmem:[#allocation8 + $0x1f8] sm:$0xff] }
 0x516   : > { %v11530_v33 = vsel %vm292_vm0, %v6436_v61, %v6437_v20  ;;  %v11533_v45 = vsel %vm292_vm0, %v4765_v27, %v6436_v61  ;;  %v4584_v20 = vld [vmem:[#allocation8 + $0x4a0] sm:$0xff]  ;;  %v4601_v27 = vld [vmem:[#allocation8 + $0x528] sm:$0xff] }
 0x517   : > { %4848 = vmatprep.mubr.f32.mxu1 %v11530_v33  ;;  %v4592_v61 = vld [vmem:[#allocation8 + $0x4e0] sm:$0xff]  ;;  %v5978_v21 = vpack.c.bf16 %v4609_v16, %v4601_v27  ;;  %v4507_v27 = vld [vmem:[#allocation8 + $0x238] sm:$0xff] }
 0x518   : > { %4849 = vmatmul.mubr.f32.gmra.mrb[2].mxu1 %v11533_v45  ;;  %v5976_v55 = vpack.c.bf16 %v4592_v61, %v4584_v20  ;;  %v4490_v20 = vld [vmem:[#allocation8 + $0x1b0] sm:$0xff]  ;;  %v4515_v16 = vld [vmem:[#allocation8 + $0x278] sm:$0xff] }
 0x519   : > { %4919 = vmatprep.mubr.f32.mxu1 %v11515_v52  ;;  %v4498_v61 = vld [vmem:[#allocation8 + $0x1f0] sm:$0xff] }
 0x51c   : > { %4920 = vmatmul.mubr.f32.vlgmr.msra.gmra.mrb[4].mxu1 %v11519_v0 }
 0x51d   : > { %5941 = vmatpush1.bf16.msra.mxu1 %v5940_v37  ;;  %4925 = vmatprep.mubr.f32.mxu1 %v11530_v33  ;;  %v4608_v37 = vld [vmem:[#allocation8 + $0x560] sm:$0xff] }
 0x51e   : > { %5943 = vmatprep.subr.bf16.mxu1 %v5942_v1  ;;  %v4617_v1 = vld [vmem:[#allocation8 + $0x5a8] sm:$0xff]  ;;  %v5980_v25 = vpack.c.bf16 %v4608_v37, %v4600_v48  ;;  %v4506_v48 = vld [vmem:[#allocation8 + $0x230] sm:$0xff] }
 0x51f   : > { %v5982_v15 = vpack.c.bf16 %v4625_v32, %v4617_v1  ;;  %v4514_v37 = vld [vmem:[#allocation8 + $0x270] sm:$0xff]  ;;  %v4523_v1 = vld [vmem:[#allocation8 + $0x2b8] sm:$0xff] }
 0x520   : > { %4926 = vmatmul.mubr.f32.gmra.mrb[6].mxu1 %v11533_v45  ;;  %v4531_v32 = vld [vmem:[#allocation8 + $0x2f8] sm:$0xff] }
 0x521   : > { %5945 = vmatpush1.bf16.msra.mxu1 %v5944_v58  ;;  %4996 = vmatprep.mubr.f32.mxu1 %v11515_v52  ;;  %v4624_v58 = vld [vmem:[#allocation8 + $0x5e0] sm:$0xff] }
 0x522   : > { %5947 = vmatprep.subr.bf16.mxu1 %v5946_v43  ;;  %v4633_v43 = vld [vmem:[#allocation8 + $0x628] sm:$0xff]  ;;  %v5984_v53 = vpack.c.bf16 %v4624_v58, %v4616_v54  ;;  %v4530_v54 = vld [vmem:[#allocation8 + $0x2f0] sm:$0xff] }
 0x523   : > { %v5986_v44 = vpack.c.bf16 %v4641_v14, %v4633_v43  ;;  %v11549_v58 = vld [vmem:[%s11635_s3] sm:$0xff]  ;;  %v4539_v43 = vld [vmem:[#allocation8 + $0x338] sm:$0xff] }
 0x524   : > { %v4547_v14 = vld [vmem:[#allocation8 + $0x378] sm:$0xff] }
 0x525   : > { %5949 = vmatpush1.bf16.msra.mxu1 %v5948_v19  ;;  %v4657_v19 = vld [vmem:[#allocation8 + $0x6e8] sm:$0xff]  ;;  %v6026_v8 = vpack.c.bf16 %v4547_v14, %v4539_v43  ;;  %v5180_v43 = vld [vmem:[#allocation9 + $0x270] sm:$0xff]  ;;  %v4627_v14 = vld [vmem:[#allocation8 + $0x5f8] sm:$0xff] }
 0x526   : > { %5951 = vmatprep.subr.bf16.mxu1 %v5950_v42  ;;  %v5990_v42 = vpack.c.bf16 %v4657_v19, %v4649_v7  ;;  %v4538_v7 = vld [vmem:[#allocation8 + $0x330] sm:$0xff] }
 0x527   : > { %v4546_v19 = vld [vmem:[#allocation8 + $0x370] sm:$0xff] }
 0x529   : > { %5953 = vmatpush1.bf16.msra.mxu1 %v5952_v5  ;;  %v5992_v5 = vpack.c.bf16 %v4656_v6, %v4648_v17  ;;  %v13354_v17 = vld [vmem:[#allocation16_spill] sm:$0xff] }
 0x52a   : > { %5955 = vmatprep.subr.bf16.mxu1 %v5954_v23  ;;  %v5994_v23 = vpack.c.bf16 %v4673_v12, %v4665_v56  ;;  %v11557_v6 = vrot.slane %v11549_v58, %v13354_v17  ;;  %v6028_v12 = vpack.c.bf16 %v4546_v19, %v4538_v7  ;;  %v4618_v7 = vld [vmem:[#allocation8 + $0x5b0] sm:$0xff]  ;;  %v4635_v17 = vld [vmem:[#allocation8 + $0x638] sm:$0xff] }
 0x52b   : > { %v4626_v19 = vld [vmem:[#allocation8 + $0x5f0] sm:$0xff] }
 0x52d   : > { %5957 = vmatpush1.bf16.msra.mxu1 %v5956_v63  ;;  %v5996_v63 = vpack.c.bf16 %v4672_v9, %v4664_v31 }
 0x52e   : > { %5959 = vmatprep.subr.bf16.mxu1 %v5958_v34  ;;  %v5998_v34 = vpack.c.bf16 %v4689_v22, %v4681_v4  ;;  %v4571_v22 = vld [vmem:[#allocation8 + $0x438] sm:$0xff] }
 0x531   : > { %5961 = vmatpush1.bf16.msra.mxu1 %v5960_v49  ;;  %v6000_v49 = vpack.c.bf16 %v4688_v26, %v4680_v57  ;;  %v4579_v26 = vld [vmem:[#allocation8 + $0x478] sm:$0xff] }
 0x532   : > { %5963 = vmatprep.subr.bf16.mxu1 %v5962_v50  ;;  %v6002_v50 = vpack.c.bf16 %v4451_v59, %v4443_v13  ;;  %v5171_v13 = vld [vmem:[#allocation9 + $0x228] sm:$0xff]  ;;  %v5173_v59 = vld [vmem:[#allocation9 + $0x238] sm:$0xff] }
 0x535   : > { %5965 = vmatpush1.bf16.msra.mxu1 %v5964_v60  ;;  %v6004_v60 = vpack.c.bf16 %v4450_v47, %v4442_v28  ;;  %v4570_v28 = vld [vmem:[#allocation8 + $0x430] sm:$0xff] }
 0x536   : > { %5967 = vmatprep.subr.bf16.mxu1 %v5966_v29  ;;  %v6006_v29 = vpack.c.bf16 %v4467_v11, %v4459_v46  ;;  %v4578_v47 = vld [vmem:[#allocation8 + $0x470] sm:$0xff] }
 0x539   : > { %5969 = vmatpush1.bf16.msra.mxu1 %v5968_v41  ;;  %v6008_v41 = vpack.c.bf16 %v4466_v3, %v4458_v18  ;;  %v6134_v18 = vpack.c.bf16 %v5173_v59, %v5171_v13  ;;  %v5170_v3 = vld [vmem:[#allocation9 + $0x220] sm:$0xff] }
 0x53a   : > { %5971 = vmatprep.subr.bf16.mxu1 %v5970_v51  ;;  %v6010_v51 = vpack.c.bf16 %v4483_v2, %v4475_v30  ;;  %v5172_v30 = vld [vmem:[#allocation9 + $0x230] sm:$0xff]  ;;  %v4595_v2 = vld [vmem:[#allocation8 + $0x4f8] sm:$0xff]  ;;  %v5186_v59 = vld [vmem:[#allocation9 + $0x2a0] sm:$0xff] }
 0x53d   : > { %5973 = vmatpush1.bf16.msra.mxu1 %v5972_v62  ;;  %v6012_v62 = vpack.c.bf16 %v4482_v40, %v4474_v24  ;;  %v6036_v24 = vpack.c.bf16 %v4578_v47, %v4570_v28  ;;  %v4586_v40 = vld [vmem:[#allocation8 + $0x4b0] sm:$0xff]  ;;  %v5191_v28 = vld [vmem:[#allocation9 + $0x2c8] sm:$0xff]  ;;  %v5193_v47 = vld [vmem:[#allocation9 + $0x2d8] sm:$0xff] }
 0x53e   : > { %5975 = vmatprep.subr.bf16.mxu1 %v5974_v39  ;;  %v6014_v39 = vpack.c.bf16 %v4499_v38, %v4491_v10  ;;  %v4594_v10 = vld [vmem:[#allocation8 + $0x4f0] sm:$0xff]  ;;  %v6136_v38 = vpack.c.bf16 %v5172_v30, %v5170_v3  ;;  %v4667_v3 = vld [vmem:[#allocation8 + $0x738] sm:$0xff]  ;;  %v6154_v30 = vpack.c.bf16 %v5193_v47, %v5191_v28  ;;  %v5219_v47 = vld [vmem:[#allocation9 + $0x3a8] sm:$0xff] }
 0x53f   : > { %v5216_v28 = vld [vmem:[#allocation9 + $0x390] sm:$0xff] }
 0x541   : > { %5977 = vmatpush1.bf16.msra.mxu1 %v5976_v55  ;;  %v6016_v55 = vpack.c.bf16 %v4498_v61, %v4490_v20  ;;  %v5174_v61 = vld [vmem:[#allocation9 + $0x240] sm:$0xff] }
 0x542   : > { %5979 = vmatprep.subr.bf16.mxu1 %v5978_v21  ;;  %v6018_v21 = vpack.c.bf16 %v4515_v16, %v4507_v27  ;;  %v5176_v27 = vld [vmem:[#allocation9 + $0x250] sm:$0xff]  ;;  %v4611_v16 = vld [vmem:[#allocation8 + $0x578] sm:$0xff] }
 0x545   : > { %5981 = vmatpush1.bf16.msra.mxu1 %v5980_v25  ;;  %v6020_v25 = vpack.c.bf16 %v4514_v37, %v4506_v48  ;;  %v6040_v48 = vpack.c.bf16 %v4594_v10, %v4586_v40  ;;  %v4602_v37 = vld [vmem:[#allocation8 + $0x530] sm:$0xff]  ;;  %v5197_v40 = vld [vmem:[#allocation9 + $0x2f8] sm:$0xff] }
 0x546   : > { %5983 = vmatprep.subr.bf16.mxu1 %v5982_v15  ;;  %v6022_v15 = vpack.c.bf16 %v4531_v32, %v4523_v1  ;;  %v4610_v1 = vld [vmem:[#allocation8 + $0x570] sm:$0xff]  ;;  %v6140_v32 = vpack.c.bf16 %v5176_v27, %v5174_v61  ;;  %v4683_v61 = vld [vmem:[#allocation8 + $0x7b8] sm:$0xff] }
 0x549   : > { %5985 = vmatpush1.bf16.msra.mxu1 %v5984_v53 }
 0x54a   : > { %5987 = vmatprep.subr.bf16.mxu1 %v5986_v44  ;;  %v13353_v44 = vld [vmem:[#allocation21_spill] sm:$0xff] }
 0x54b   : > { %v11553_v35 = vrot.slane %v11549_v58, %v13353_v44  ;;  %v5185_v44 = vld [vmem:[#allocation9 + $0x298] sm:$0xff] }
 0x54d   : > { %5989 = vmatpush1.bf16.msra.mxu1 %v5988_v36  ;;  %v4555_v36 = vld [vmem:[#allocation8 + $0x3b8] sm:$0xff] }
 0x54e   : > { %5991 = vmatprep.subr.bf16.mxu1 %v5990_v42  ;;  %v4563_v42 = vld [vmem:[#allocation8 + $0x3f8] sm:$0xff] }
 0x54f   : > { %v6030_v4 = vpack.c.bf16 %v4563_v42, %v4555_v36 }
 0x551   : > { %5993 = vmatpush1.bf16.msra.mxu1 %v5992_v5  ;;  %v4554_v5 = vld [vmem:[#allocation8 + $0x3b0] sm:$0xff] }
 0x552   : > { %5995 = vmatprep.subr.bf16.mxu1 %v5994_v23  ;;  %v4562_v23 = vld [vmem:[#allocation8 + $0x3f0] sm:$0xff] }
 0x555   : > { %5997 = vmatpush1.bf16.msra.mxu1 %v5996_v63  ;;  %v5166_v63 = vld [vmem:[#allocation9 + $0x200] sm:$0xff] }
 0x556   : > { %5999 = vmatprep.subr.bf16.mxu1 %v5998_v34  ;;  %v5168_v34 = vld [vmem:[#allocation9 + $0x210] sm:$0xff] }
 0x557   : > { %v6132_v46 = vpack.c.bf16 %v5168_v34, %v5166_v63  ;;  %v4642_v63 = vld [vmem:[#allocation8 + $0x670] sm:$0xff] }
 0x559   : > { %6001 = vmatpush1.bf16.msra.mxu1 %v6000_v49 }
 0x55a   : > { %6003 = vmatprep.subr.bf16.mxu1 %v6002_v50  ;;  %v6032_v50 = vpack.c.bf16 %v4562_v23, %v4554_v5  ;;  %v5184_v5 = vld [vmem:[#allocation9 + $0x290] sm:$0xff]  ;;  %v4643_v23 = vld [vmem:[#allocation8 + $0x678] sm:$0xff] }
 0x55c   : > { %4997 = vmatmul.mubr.f32.vlgmr.msra.gmra.mrb[8].mxu1 %v11519_v0 }
 0x55d   : > { %5002 = vmatprep.mubr.f32.mxu1 %v11530_v33  ;;  %6005 = vmatpush1.bf16.msra.mxu1 %v6004_v60  ;;  %v6034_v60 = vpack.c.bf16 %v4579_v26, %v4571_v22  ;;  %v4634_v22 = vld [vmem:[#allocation8 + $0x630] sm:$0xff]  ;;  %v4651_v26 = vld [vmem:[#allocation8 + $0x6b8] sm:$0xff] }
 0x55e   : > { %6007 = vmatprep.subr.bf16.mxu1 %v6006_v29  ;;  %v4587_v29 = vld [vmem:[#allocation8 + $0x4b8] sm:$0xff] }
 0x560   : > { %5003 = vmatmul.mubr.f32.gmra.mrb[10].mxu1 %v11533_v45 }
 0x561   : > { %6009 = vmatpush1.bf16.msra.mxu1 %v6008_v41  ;;  %5073 = vmatprep.mubr.f32.mxu1 %v11515_v52  ;;  %v4522_v52 = vld [vmem:[#allocation8 + $0x2b0] sm:$0xff]  ;;  %v5175_v41 = vld [vmem:[#allocation9 + $0x248] sm:$0xff] }
 0x562   : > { %6011 = vmatprep.subr.bf16.mxu1 %v6010_v51  ;;  %v6024_v53 = vpack.c.bf16 %v4530_v54, %v4522_v52  ;;  %v5177_v51 = vld [vmem:[#allocation9 + $0x258] sm:$0xff]  ;;  %v5178_v54 = vld [vmem:[#allocation9 + $0x260] sm:$0xff] }
 0x563   : > { %v6138_v20 = vpack.c.bf16 %v5177_v51, %v5175_v41  ;;  %v6144_v36 = vpack.c.bf16 %v5180_v43, %v5178_v54  ;;  %v5192_v41 = vld [vmem:[#allocation9 + $0x2d0] sm:$0xff]  ;;  %v4675_v51 = vld [vmem:[#allocation8 + $0x778] sm:$0xff]  ;;  %v5198_v43 = vld [vmem:[#allocation9 + $0x300] sm:$0xff] }
 0x565   : > { %6013 = vmatpush1.bf16.msra.mxu1 %v6012_v62  ;;  %v6038_v62 = vpack.c.bf16 %v4595_v2, %v4587_v29  ;;  %v5190_v2 = vld [vmem:[#allocation9 + $0x2c0] sm:$0xff] }
 0x566   : > { %6015 = vmatprep.subr.bf16.mxu1 %v6014_v39  ;;  %v4603_v39 = vld [vmem:[#allocation8 + $0x538] sm:$0xff] }
 0x569   : > { %6017 = vmatpush1.bf16.msra.mxu1 %v6016_v55  ;;  %v5179_v55 = vld [vmem:[#allocation9 + $0x268] sm:$0xff] }
 0x56a   : > { %6019 = vmatprep.subr.bf16.mxu1 %v6018_v21  ;;  %v5181_v21 = vld [vmem:[#allocation9 + $0x278] sm:$0xff] }
 0x56b   : > { %v6142_v52 = vpack.c.bf16 %v5181_v21, %v5179_v55  ;;  %v5196_v55 = vld [vmem:[#allocation9 + $0x2f0] sm:$0xff]  ;;  %v4691_v21 = vld [vmem:[#allocation8 + $0x7f8] sm:$0xff] }
 0x56d   : > { %6021 = vmatpush1.bf16.msra.mxu1 %v6020_v25  ;;  %v6042_v25 = vpack.c.bf16 %v4611_v16, %v4603_v39  ;;  %v6156_v39 = vpack.c.bf16 %v5192_v41, %v5190_v2  ;;  %v5194_v16 = vld [vmem:[#allocation9 + $0x2e0] sm:$0xff]  ;;  %v5224_v2 = vld [vmem:[#allocation9 + $0x3d0] sm:$0xff]  ;;  %v5227_v41 = vld [vmem:[#allocation9 + $0x3e8] sm:$0xff] }
 0x56e   : > { %6023 = vmatprep.subr.bf16.mxu1 %v6022_v15  ;;  %v4619_v15 = vld [vmem:[#allocation8 + $0x5b8] sm:$0xff] }
 0x56f   : > { %v6046_v42 = vpack.c.bf16 %v4627_v14, %v4619_v15  ;;  %v6062_v15 = vpack.c.bf16 %v4691_v21, %v4683_v61  ;;  %v5200_v14 = vld [vmem:[#allocation9 + $0x310] sm:$0xff]  ;;  %v13355_v21 = vld [vmem:[#allocation17_spill] sm:$0xff] }
 0x571   : > { %6025 = vmatpush1.bf16.msra.mxu1 %v6024_v53  ;;  %v4844_v56 = vpop.f32.mrb[0].mxu1  ;;  %v5183_v53 = vld [vmem:[#allocation9 + $0x288] sm:$0xff] }
 0x572   : > { %v4845_v31 = vadd.f32 %v4844_v56, %v11553_v35  ;;  %v4846_v9 = vpop.f32.mrb[1].mxu1  ;;  %6027 = vmatprep.subr.bf16.mxu1 %v6026_v8  ;;  %v6044_v8 = vpack.c.bf16 %v4610_v1, %v4602_v37  ;;  %v6146_v56 = vpack.c.bf16 %v5185_v44, %v5183_v53  ;;  %v5201_v37 = vld [vmem:[#allocation9 + $0x318] sm:$0xff]  ;;  %v5203_v53 = vld [vmem:[#allocation9 + $0x328] sm:$0xff] }
 0x573   : > { %v4847_v57 = vadd.f32 %v4846_v9, %v11557_v6  ;;  %v5189_v9 = vld [vmem:[#allocation9 + $0x2b8] sm:$0xff] }
 0x574   : > { %v5086_v11 = vmax.f32 %v4845_v31, 0.0  ;;  %v5187_v31 = vld [vmem:[#allocation9 + $0x2a8] sm:$0xff]  ;;  %v5205_v44 = vld [vmem:[#allocation9 + $0x338] sm:$0xff] }
 0x575   : > { %6029 = vmatpush1.bf16.msra.mxu1 %v6028_v12  ;;  %v5087_v49 = vmax.f32 %v4847_v57, 0.0  ;;  %v5182_v12 = vld [vmem:[#allocation9 + $0x280] sm:$0xff]  ;;  %v6050_v57 = vpack.c.bf16 %v4643_v23, %v4635_v17  ;;  %v6150_v13 = vpack.c.bf16 %v5189_v9, %v5187_v31  ;;  %v5207_v17 = vld [vmem:[#allocation9 + $0x348] sm:$0xff]  ;;  %v5208_v31 = vld [vmem:[#allocation9 + $0x350] sm:$0xff] }
 0x576   : > { %6031 = vmatprep.subr.bf16.mxu1 %v6030_v4  ;;  %v6048_v4 = vpack.c.bf16 %v4626_v19, %v4618_v7  ;;  %v6148_v34 = vpack.c.bf16 %v5184_v5, %v5182_v12  ;;  %v6164_v7 = vpack.c.bf16 %v5200_v14, %v5198_v43  ;;  %v6166_v19 = vpack.c.bf16 %v5205_v44, %v5203_v53  ;;  %v5206_v23 = vld [vmem:[#allocation9 + $0x340] sm:$0xff]  ;;  %v5211_v9 = vld [vmem:[#allocation9 + $0x368] sm:$0xff]  ;;  %v5232_v53 = vld [vmem:[#allocation9 + $0x410] sm:$0xff] }
 0x577   : > { %5422 = vmatprep.mubr.f32.mxu0 %v5087_v49  ;;  %v5188_v49 = vld [vmem:[#allocation9 + $0x2b0] sm:$0xff]  ;;  %v5230_v14 = vld [vmem:[#allocation9 + $0x400] sm:$0xff] }
 0x578   : > { %5423 = vmatmul.mubr.f32.vlgmr.msra.gmra.mrb[0].mxu0 %v5086_v11  ;;  %v4650_v11 = vld [vmem:[#allocation8 + $0x6b0] sm:$0xff]  ;;  %v6152_v29 = vpack.c.bf16 %v5188_v49, %v5186_v59 }
 0x579   : > { %6033 = vmatpush1.bf16.msra.mxu1 %v6032_v50  ;;  %6133 = vmatpush1.bf16.msra.mxu0 %v6132_v46  ;;  %v4659_v50 = vld [vmem:[#allocation8 + $0x6f8] sm:$0xff]  ;;  %v6052_v46 = vpack.c.bf16 %v4642_v63, %v4634_v22  ;;  %v6172_v22 = vpack.c.bf16 %v5208_v31, %v5206_v23  ;;  %v5239_v31 = vld [vmem:[#allocation9 + $0x448] sm:$0xff] }
 0x57a   : > { %6035 = vmatprep.subr.bf16.mxu1 %v6034_v60  ;;  %6135 = vmatprep.subr.bf16.mxu0 %v6134_v18  ;;  %v4658_v60 = vld [vmem:[#allocation8 + $0x6f0] sm:$0xff]  ;;  %v6054_v18 = vpack.c.bf16 %v4659_v50, %v4651_v26  ;;  %v5215_v26 = vld [vmem:[#allocation9 + $0x388] sm:$0xff]  ;;  %v5214_v50 = vld [vmem:[#allocation9 + $0x380] sm:$0xff] }
 0x57b   : > { %v6056_v10 = vpack.c.bf16 %v4658_v60, %v4650_v11  ;;  %v5218_v11 = vld [vmem:[#allocation9 + $0x3a0] sm:$0xff]  ;;  %v5220_v60 = vld [vmem:[#allocation9 + $0x3b0] sm:$0xff] }
 0x57d   : > { %6037 = vmatpush1.bf16.msra.mxu1 %v6036_v24  ;;  %6137 = vmatpush1.bf16.msra.mxu0 %v6136_v38  ;;  %v5195_v24 = vld [vmem:[#allocation9 + $0x2e8] sm:$0xff]  ;;  %v4666_v38 = vld [vmem:[#allocation8 + $0x730] sm:$0xff] }
 0x57e   : > { %6039 = vmatprep.subr.bf16.mxu1 %v6038_v62  ;;  %6139 = vmatprep.subr.bf16.mxu0 %v6138_v20  ;;  %v4674_v62 = vld [vmem:[#allocation8 + $0x770] sm:$0xff]  ;;  %v6058_v20 = vpack.c.bf16 %v4675_v51, %v4667_v3  ;;  %v6158_v27 = vpack.c.bf16 %v5197_v40, %v5195_v24  ;;  %v6184_v3 = vpack.c.bf16 %v5220_v60, %v5218_v11  ;;  %v5229_v51 = vld [vmem:[#allocation9 + $0x3f8] sm:$0xff]  ;;  %v5246_v60 = vld [vmem:[#allocation9 + $0x480] sm:$0xff] }
 0x57f   : > { %v6060_v1 = vpack.c.bf16 %v4674_v62, %v4666_v38  ;;  %v6190_v40 = vpack.c.bf16 %v5229_v51, %v5227_v41  ;;  %v5228_v38 = vld [vmem:[#allocation9 + $0x3f0] sm:$0xff]  ;;  %v5231_v62 = vld [vmem:[#allocation9 + $0x408] sm:$0xff] }
 0x580   : > { %v5252_v41 = vld [vmem:[#allocation9 + $0x4b0] sm:$0xff]  ;;  %v5255_v51 = vld [vmem:[#allocation9 + $0x4c8] sm:$0xff] }
 0x581   : > { %6041 = vmatpush1.bf16.msra.mxu1 %v6040_v48  ;;  %6141 = vmatpush1.bf16.msra.mxu0 %v6140_v32  ;;  %v5199_v48 = vld [vmem:[#allocation9 + $0x308] sm:$0xff]  ;;  %v4682_v32 = vld [vmem:[#allocation8 + $0x7b0] sm:$0xff] }
 0x582   : > { %6043 = vmatprep.subr.bf16.mxu1 %v6042_v25  ;;  %6143 = vmatprep.subr.bf16.mxu0 %v6142_v52  ;;  %v6160_v25 = vpack.c.bf16 %v5196_v55, %v5194_v16  ;;  %v4690_v52 = vld [vmem:[#allocation8 + $0x7f0] sm:$0xff]  ;;  %v6162_v54 = vpack.c.bf16 %v5201_v37, %v5199_v48  ;;  %v4705_v48 = vrot.slane %v11549_v58, %v13355_v21  ;;  %v5263_v21 = vld [vmem:[#allocation9 + $0x508] sm:$0xff] }
 0x585   : > { %6045 = vmatpush1.bf16.msra.mxu1 %v6044_v8  ;;  %6145 = vmatpush1.bf16.msra.mxu0 %v6144_v36  ;;  %v6064_v8 = vpack.c.bf16 %v4690_v52, %v4682_v32  ;;  %v5202_v36 = vld [vmem:[#allocation9 + $0x320] sm:$0xff] }
 0x586   : > { %6047 = vmatprep.subr.bf16.mxu1 %v6046_v42  ;;  %6147 = vmatprep.subr.bf16.mxu0 %v6146_v56  ;;  %v5204_v42 = vld [vmem:[#allocation9 + $0x330] sm:$0xff]  ;;  %v5209_v56 = vld [vmem:[#allocation9 + $0x358] sm:$0xff] }
 0x587   : > { %v6168_v12 = vpack.c.bf16 %v5204_v42, %v5202_v36  ;;  %v6170_v5 = vpack.c.bf16 %v5209_v56, %v5207_v17  ;;  %v6196_v36 = vpack.c.bf16 %v5232_v53, %v5230_v14  ;;  %v5266_v14 = vld [vmem:[#allocation9 + $0x520] sm:$0xff]  ;;  %v5268_v53 = vld [vmem:[#allocation9 + $0x530] sm:$0xff] }
 0x589   : > { %6049 = vmatpush1.bf16.msra.mxu1 %v6048_v4  ;;  %6149 = vmatpush1.bf16.msra.mxu0 %v6148_v34  ;;  %v5213_v4 = vld [vmem:[#allocation9 + $0x378] sm:$0xff]  ;;  %v5210_v34 = vld [vmem:[#allocation9 + $0x360] sm:$0xff] }
 0x58a   : > { %6051 = vmatprep.subr.bf16.mxu1 %v6050_v57  ;;  %6151 = vmatprep.subr.bf16.mxu0 %v6150_v13  ;;  %v6174_v63 = vpack.c.bf16 %v5213_v4, %v5211_v9  ;;  %v5212_v57 = vld [vmem:[#allocation9 + $0x370] sm:$0xff]  ;;  %v5217_v13 = vld [vmem:[#allocation9 + $0x398] sm:$0xff] }
 0x58b   : > { %v6176_v59 = vpack.c.bf16 %v5212_v57, %v5210_v34  ;;  %v6178_v49 = vpack.c.bf16 %v5217_v13, %v5215_v26  ;;  %v5241_v9 = vld [vmem:[#allocation9 + $0x458] sm:$0xff]  ;;  %v5238_v57 = vld [vmem:[#allocation9 + $0x440] sm:$0xff]  ;;  %v5240_v26 = vld [vmem:[#allocation9 + $0x450] sm:$0xff] }
 0x58c   : > { %v6202_v34 = vpack.c.bf16 %v5241_v9, %v5239_v31  ;;  %v5243_v13 = vld [vmem:[#allocation9 + $0x468] sm:$0xff]  ;;  %v5281_v31 = vld [vmem:[#allocation9 + $0x598] sm:$0xff] }
 0x58d   : > { %6053 = vmatpush1.bf16.msra.mxu1 %v6052_v46  ;;  %6153 = vmatpush1.bf16.msra.mxu0 %v6152_v29  ;;  %v5223_v29 = vld [vmem:[#allocation9 + $0x3c8] sm:$0xff] }
 0x58e   : > { %6055 = vmatprep.subr.bf16.mxu1 %v6054_v18  ;;  %6155 = vmatprep.subr.bf16.mxu0 %v6154_v30  ;;  %v5225_v18 = vld [vmem:[#allocation9 + $0x3d8] sm:$0xff]  ;;  %v5222_v30 = vld [vmem:[#allocation9 + $0x3c0] sm:$0xff] }
 0x58f   : > { %v6188_v24 = vpack.c.bf16 %v5224_v2, %v5222_v30  ;;  %v5250_v2 = vld [vmem:[#allocation9 + $0x4a0] sm:$0xff] }
 0x591   : > { %6057 = vmatpush1.bf16.msra.mxu1 %v6056_v10  ;;  %6157 = vmatpush1.bf16.msra.mxu0 %v6156_v39  ;;  %v5226_v10 = vld [vmem:[#allocation9 + $0x3e0] sm:$0xff]  ;;  %v5233_v39 = vld [vmem:[#allocation9 + $0x418] sm:$0xff] }
 0x592   : > { %6059 = vmatprep.subr.bf16.mxu1 %v6058_v20  ;;  %6159 = vmatprep.subr.bf16.mxu0 %v6158_v27  ;;  %v6192_v20 = vpack.c.bf16 %v5228_v38, %v5226_v10  ;;  %v6194_v61 = vpack.c.bf16 %v5233_v39, %v5231_v62  ;;  %v5254_v38 = vld [vmem:[#allocation9 + $0x4c0] sm:$0xff]  ;;  %v5256_v62 = vld [vmem:[#allocation9 + $0x4d0] sm:$0xff]  ;;  %v5259_v39 = vld [vmem:[#allocation9 + $0x4e8] sm:$0xff] }
 0x595   : > { %6061 = vmatpush1.bf16.msra.mxu1 %v6060_v1  ;;  %6161 = vmatpush1.bf16.msra.mxu0 %v6160_v25  ;;  %v13356_v1 = vld [vmem:[#allocation22_spill] sm:$0xff] }
 0x596   : > { %6063 = vmatprep.subr.bf16.mxu1 %v6062_v15  ;;  %6163 = vmatprep.subr.bf16.mxu0 %v6162_v54  ;;  %v4709_v32 = vrot.slane %v11549_v58, %v13356_v1 }
 0x599   : > { %6065 = vmatpush1.bf16.msra.mxu1 %v6064_v8  ;;  %6165 = vmatpush1.bf16.msra.mxu0 %v6164_v7  ;;  %v5235_v8 = vld [vmem:[#allocation9 + $0x428] sm:$0xff] }
 0x59a   : > { %6167 = vmatprep.subr.bf16.mxu0 %v6166_v19 }
 0x59c   : > { %5074 = vmatmul.mubr.f32.vlgmr.msra.gmra.mrb[12].mxu1 %v11519_v0  ;;  %v5221_v0 = vld [vmem:[#allocation9 + $0x3b8] sm:$0xff] }
 0x59d   : > { %5079 = vmatprep.mubr.f32.mxu1 %v11530_v33  ;;  %6169 = vmatpush1.bf16.msra.mxu0 %v6168_v12  ;;  %v6180_v33 = vpack.c.bf16 %v5216_v28, %v5214_v50  ;;  %v6182_v46 = vpack.c.bf16 %v5221_v0, %v5219_v47  ;;  %v5234_v12 = vld [vmem:[#allocation9 + $0x420] sm:$0xff]  ;;  %v5244_v47 = vld [vmem:[#allocation9 + $0x470] sm:$0xff]  ;;  %v5247_v0 = vld [vmem:[#allocation9 + $0x488] sm:$0xff] }
 0x59e   : > { %6171 = vmatprep.subr.bf16.mxu0 %v6170_v5  ;;  %v5236_v5 = vld [vmem:[#allocation9 + $0x430] sm:$0xff]  ;;  %v5242_v28 = vld [vmem:[#allocation9 + $0x460] sm:$0xff] }
 0x5a0   : > { %5080 = vmatmul.mubr.f32.gmra.mrb[14].mxu1 %v11533_v45  ;;  %v6186_v45 = vpack.c.bf16 %v5225_v18, %v5223_v29  ;;  %v5248_v29 = vld [vmem:[#allocation9 + $0x490] sm:$0xff]  ;;  %v5251_v18 = vld [vmem:[#allocation9 + $0x4a8] sm:$0xff] }
 0x5a1   : > { %6173 = vmatpush1.bf16.msra.mxu0 %v6172_v22  ;;  %v6200_v22 = vpack.c.bf16 %v5236_v5, %v5234_v12  ;;  %v5274_v12 = vld [vmem:[#allocation9 + $0x560] sm:$0xff]  ;;  %v5276_v5 = vld [vmem:[#allocation9 + $0x570] sm:$0xff] }
 0x5a2   : > { %6175 = vmatprep.subr.bf16.mxu0 %v6174_v63  ;;  %v6240_v9 = vpack.c.bf16 %v5276_v5, %v5274_v12  ;;  %v5306_v12 = vld [vmem:[#allocation9 + $0x660] sm:$0xff]  ;;  %v5308_v5 = vld [vmem:[#allocation9 + $0x670] sm:$0xff] }
 0x5a5   : > { %6177 = vmatpush1.bf16.msra.mxu0 %v6176_v59  ;;  %v5245_v59 = vld [vmem:[#allocation9 + $0x478] sm:$0xff] }
 0x5a6   : > { %6179 = vmatprep.subr.bf16.mxu0 %v6178_v49  ;;  %v6204_v49 = vpack.c.bf16 %v5240_v26, %v5238_v57  ;;  %v6206_v50 = vpack.c.bf16 %v5245_v59, %v5243_v13  ;;  %v5285_v57 = vld [vmem:[#allocation9 + $0x5b8] sm:$0xff]  ;;  %v5282_v59 = vld [vmem:[#allocation9 + $0x5a0] sm:$0xff] }
 0x5a9   : > { %6181 = vmatpush1.bf16.msra.mxu0 %v6180_v33  ;;  %v5249_v33 = vld [vmem:[#allocation9 + $0x498] sm:$0xff] }
 0x5aa   : > { %6183 = vmatprep.subr.bf16.mxu0 %v6182_v46  ;;  %v6208_v46 = vpack.c.bf16 %v5244_v47, %v5242_v28  ;;  %v6210_v11 = vpack.c.bf16 %v5249_v33, %v5247_v0  ;;  %v5289_v28 = vld [vmem:[#allocation9 + $0x5d8] sm:$0xff]  ;;  %v5286_v33 = vld [vmem:[#allocation9 + $0x5c0] sm:$0xff] }
 0x5ad   : > { %6185 = vmatpush1.bf16.msra.mxu0 %v6184_v3  ;;  %v5253_v3 = vld [vmem:[#allocation9 + $0x4b8] sm:$0xff] }
 0x5ae   : > { %6187 = vmatprep.subr.bf16.mxu0 %v6186_v45  ;;  %v6212_v45 = vpack.c.bf16 %v5248_v29, %v5246_v60  ;;  %v6214_v30 = vpack.c.bf16 %v5253_v3, %v5251_v18  ;;  %v5293_v60 = vld [vmem:[#allocation9 + $0x5f8] sm:$0xff]  ;;  %v13357_v18 = vld [vmem:[#allocation18_spill] sm:$0xff] }
 0x5af   : > { %v4713_v3 = vrot.slane %v11549_v58, %v13357_v18 }
 0x5b1   : > { %6189 = vmatpush1.bf16.msra.mxu0 %v6188_v24  ;;  %v5257_v24 = vld [vmem:[#allocation9 + $0x4d8] sm:$0xff] }
 0x5b2   : > { %6191 = vmatprep.subr.bf16.mxu0 %v6190_v40  ;;  %v6216_v40 = vpack.c.bf16 %v5252_v41, %v5250_v2  ;;  %v6218_v10 = vpack.c.bf16 %v5257_v24, %v5255_v51  ;;  %v5292_v2 = vld [vmem:[#allocation9 + $0x5f0] sm:$0xff]  ;;  %v13358_v41 = vld [vmem:[#allocation19_spill] sm:$0xff]  ;;  %v5295_v24 = vld [vmem:[#allocation9 + $0x608] sm:$0xff] }
 0x5b3   : > { %v4717_v51 = vrot.slane %v11549_v58, %v13358_v41 }
 0x5b5   : > { %6193 = vmatpush1.bf16.msra.mxu0 %v6192_v20  ;;  %v5261_v20 = vld [vmem:[#allocation9 + $0x4f8] sm:$0xff] }
 0x5b6   : > { %6195 = vmatprep.subr.bf16.mxu0 %v6194_v61  ;;  %v6220_v61 = vpack.c.bf16 %v5256_v62, %v5254_v38 }
 0x5eb   : > { %v4850_v27 = vpop.f32.mrb[2].mxu1 }
 0x5ec   : > { %v4851_v16 = vadd.f32 %v4850_v27, %v11553_v35  ;;  %v4852_v55 = vpop.f32.mrb[3].mxu1  ;;  %v5237_v35 = vld [vmem:[#allocation9 + $0x438] sm:$0xff]  ;;  %v6222_v27 = vpack.c.bf16 %v5261_v20, %v5259_v39 }
 0x5ed   : > { %v4853_v37 = vadd.f32 %v4852_v55, %v11557_v6  ;;  %v6198_v56 = vpack.c.bf16 %v5237_v35, %v5235_v8  ;;  %v5260_v55 = vld [vmem:[#allocation9 + $0x4f0] sm:$0xff]  ;;  %v5273_v8 = vld [vmem:[#allocation9 + $0x558] sm:$0xff]  ;;  %v6232_v35 = vpack.c.bf16 %v5268_v53, %v5266_v14  ;;  %v5303_v14 = vld [vmem:[#allocation9 + $0x648] sm:$0xff] }
 0x5ee   : > { %v5094_v52 = vmax.f32 %v4851_v16, 0.0  ;;  %v5258_v16 = vld [vmem:[#allocation9 + $0x4e0] sm:$0xff]  ;;  %v5305_v53 = vld [vmem:[#allocation9 + $0x658] sm:$0xff] }
 0x5ef   : > { %v5095_v25 = vmax.f32 %v4853_v37, 0.0  ;;  %v4921_v15 = vpop.f32.mrb[4].mxu1  ;;  %v6224_v37 = vpack.c.bf16 %v5260_v55, %v5258_v16  ;;  %v5299_v55 = vld [vmem:[#allocation9 + $0x628] sm:$0xff] }
 0x5f0   : > { %v4922_v54 = vadd.f32 %v4921_v15, %v4705_v48  ;;  %v4923_v43 = vpop.f32.mrb[5].mxu1  ;;  %v5267_v15 = vld [vmem:[#allocation9 + $0x528] sm:$0xff] }
 0x5f1   : > { %v4924_v44 = vadd.f32 %v4923_v43, %v4709_v32  ;;  %5428 = vmatprep.mubr.f32.mxu0 %v5095_v25  ;;  %v5264_v25 = vld [vmem:[#allocation9 + $0x510] sm:$0xff] }
 0x5f2   : > { %5429 = vmatmul.mubr.f32.gmra.mrb[2].mxu0 %v5094_v52  ;;  %v5088_v42 = vmax.f32 %v4922_v54, 0.0  ;;  %v5269_v52 = vld [vmem:[#allocation9 + $0x538] sm:$0xff] }
 0x5f3   : > { %v5089_v7 = vmax.f32 %v4924_v44, 0.0  ;;  %v4927_v19 = vpop.f32.mrb[6].mxu1  ;;  %v6230_v43 = vpack.c.bf16 %v5269_v52, %v5267_v15  ;;  %v5271_v44 = vld [vmem:[#allocation9 + $0x548] sm:$0xff]  ;;  %v5298_v52 = vld [vmem:[#allocation9 + $0x620] sm:$0xff] }
 0x5f4   : > { %v4928_v6 = vadd.f32 %v4927_v19, %v4705_v48  ;;  %v4929_v17 = vpop.f32.mrb[7].mxu1  ;;  %v5265_v48 = vld [vmem:[#allocation9 + $0x518] sm:$0xff]  ;;  %v5270_v19 = vld [vmem:[#allocation9 + $0x540] sm:$0xff] }
 0x5f5   : > { %v4930_v23 = vadd.f32 %v4929_v17, %v4709_v32  ;;  %5499 = vmatprep.mubr.f32.mxu0 %v5089_v7  ;;  %v6226_v1 = vpack.c.bf16 %v5265_v48, %v5263_v21  ;;  %v5262_v32 = vld [vmem:[#allocation9 + $0x500] sm:$0xff]  ;;  %v6234_v7 = vpack.c.bf16 %v5273_v8, %v5271_v44  ;;  %v5301_v21 = vld [vmem:[#allocation9 + $0x638] sm:$0xff] }
 0x5f6   : > { %5500 = vmatmul.mubr.f32.vlgmr.msra.gmra.mrb[0].mxu0 %v5088_v42  ;;  %v5096_v63 = vmax.f32 %v4928_v6, 0.0  ;;  %v6228_v54 = vpack.c.bf16 %v5264_v25, %v5262_v32  ;;  %v5275_v42 = vld [vmem:[#allocation9 + $0x568] sm:$0xff]  ;;  %v5277_v6 = vld [vmem:[#allocation9 + $0x578] sm:$0xff]  ;;  %v6262_v15 = vpack.c.bf16 %v5301_v21, %v5299_v55 }
 0x5f7   : > { %v5097_v4 = vmax.f32 %v4930_v23, 0.0  ;;  %6197 = vmatpush1.bf16.msra.mxu0 %v6196_v36  ;;  %v5272_v36 = vld [vmem:[#allocation9 + $0x550] sm:$0xff]  ;;  %v5279_v23 = vld [vmem:[#allocation9 + $0x588] sm:$0xff] }
 0x5f8   : > { %6199 = vmatprep.subr.bf16.mxu0 %v6198_v56  ;;  %v6236_v17 = vpack.c.bf16 %v5272_v36, %v5270_v19  ;;  %v6238_v56 = vpack.c.bf16 %v5277_v6, %v5275_v42  ;;  %v5302_v19 = vld [vmem:[#allocation9 + $0x640] sm:$0xff]  ;;  %v5304_v36 = vld [vmem:[#allocation9 + $0x650] sm:$0xff]  ;;  %v5307_v42 = vld [vmem:[#allocation9 + $0x668] sm:$0xff] }
 0x5f9   : > { %5505 = vmatprep.mubr.f32.mxu0 %v5097_v4  ;;  %v6242_v4 = vpack.c.bf16 %v5281_v31, %v5279_v23  ;;  %v5309_v6 = vld [vmem:[#allocation9 + $0x678] sm:$0xff]  ;;  %v5311_v23 = vld [vmem:[#allocation9 + $0x688] sm:$0xff] }
 0x5fa   : > { %5506 = vmatmul.mubr.f32.gmra.mrb[2].mxu0 %v5096_v63  ;;  %v5280_v63 = vld [vmem:[#allocation9 + $0x590] sm:$0xff]  ;;  %v5313_v31 = vld [vmem:[#allocation9 + $0x698] sm:$0xff] }
 0x5fb   : > { %6201 = vmatpush1.bf16.msra.mxu0 %v6200_v22  ;;  %v5278_v22 = vld [vmem:[#allocation9 + $0x580] sm:$0xff] }
 0x5fc   : > { %6203 = vmatprep.subr.bf16.mxu0 %v6202_v34  ;;  %v5283_v34 = vld [vmem:[#allocation9 + $0x5a8] sm:$0xff]  ;;  %v6244_v26 = vpack.c.bf16 %v5280_v63, %v5278_v22  ;;  %v5310_v22 = vld [vmem:[#allocation9 + $0x680] sm:$0xff]  ;;  %v5312_v63 = vld [vmem:[#allocation9 + $0x690] sm:$0xff] }
 0x5fd   : > { %v6246_v13 = vpack.c.bf16 %v5285_v57, %v5283_v34  ;;  %v5315_v34 = vld [vmem:[#allocation9 + $0x6a8] sm:$0xff]  ;;  %v5317_v57 = vld [vmem:[#allocation9 + $0x6b8] sm:$0xff] }
 0x5ff   : > { %6205 = vmatpush1.bf16.msra.mxu0 %v6204_v49  ;;  %v5284_v49 = vld [vmem:[#allocation9 + $0x5b0] sm:$0xff] }
 0x600   : > { %6207 = vmatprep.subr.bf16.mxu0 %v6206_v50  ;;  %v5287_v50 = vld [vmem:[#allocation9 + $0x5c8] sm:$0xff]  ;;  %v6248_v47 = vpack.c.bf16 %v5284_v49, %v5282_v59  ;;  %v5314_v59 = vld [vmem:[#allocation9 + $0x6a0] sm:$0xff]  ;;  %v5316_v49 = vld [vmem:[#allocation9 + $0x6b0] sm:$0xff] }
 0x601   : > { %v6250_v0 = vpack.c.bf16 %v5289_v28, %v5287_v50  ;;  %v5319_v50 = vld [vmem:[#allocation9 + $0x6c8] sm:$0xff]  ;;  %v5321_v28 = vld [vmem:[#allocation9 + $0x6d8] sm:$0xff] }
 0x603   : > { %6209 = vmatpush1.bf16.msra.mxu0 %v6208_v46  ;;  %v5288_v46 = vld [vmem:[#allocation9 + $0x5d0] sm:$0xff] }
 0x604   : > { %6211 = vmatprep.subr.bf16.mxu0 %v6210_v11  ;;  %v5291_v11 = vld [vmem:[#allocation9 + $0x5e8] sm:$0xff]  ;;  %v6252_v29 = vpack.c.bf16 %v5288_v46, %v5286_v33  ;;  %v5318_v33 = vld [vmem:[#allocation9 + $0x6c0] sm:$0xff]  ;;  %v5320_v46 = vld [vmem:[#allocation9 + $0x6d0] sm:$0xff] }
 0x607   : > { %6213 = vmatpush1.bf16.msra.mxu0 %v6212_v45  ;;  %v6254_v45 = vpack.c.bf16 %v5293_v60, %v5291_v11  ;;  %v5323_v11 = vld [vmem:[#allocation9 + $0x6e8] sm:$0xff]  ;;  %v5325_v60 = vld [vmem:[#allocation9 + $0x6f8] sm:$0xff] }
 0x608   : > { %6215 = vmatprep.subr.bf16.mxu0 %v6214_v30  ;;  %v5290_v30 = vld [vmem:[#allocation9 + $0x5e0] sm:$0xff]  ;;  %v6286_v18 = vpack.c.bf16 %v5325_v60, %v5323_v11 }
 0x609   : > { %v6256_v38 = vpack.c.bf16 %v5292_v2, %v5290_v30  ;;  %v5327_v30 = vld [vmem:[#allocation9 + $0x708] sm:$0xff]  ;;  %v5329_v2 = vld [vmem:[#allocation9 + $0x718] sm:$0xff] }
 0x60b   : > { %6217 = vmatpush1.bf16.msra.mxu0 %v6216_v40  ;;  %v5297_v40 = vld [vmem:[#allocation9 + $0x618] sm:$0xff] }
 0x60c   : > { %6219 = vmatprep.subr.bf16.mxu0 %v6218_v10  ;;  %v6258_v20 = vpack.c.bf16 %v5297_v40, %v5295_v24  ;;  %v5326_v24 = vld [vmem:[#allocation9 + $0x700] sm:$0xff]  ;;  %v5328_v40 = vld [vmem:[#allocation9 + $0x710] sm:$0xff] }
 0x60f   : > { %6221 = vmatpush1.bf16.msra.mxu0 %v6220_v61  ;;  %v5294_v61 = vld [vmem:[#allocation9 + $0x600] sm:$0xff] }
 0x610   : > { %6223 = vmatprep.subr.bf16.mxu0 %v6222_v27  ;;  %v5296_v27 = vld [vmem:[#allocation9 + $0x610] sm:$0xff] }
 0x613   : > { %6225 = vmatpush1.bf16.msra.mxu0 %v6224_v37 }
 0x614   : > { %6227 = vmatprep.subr.bf16.mxu0 %v6226_v1  ;;  %v6260_v1 = vpack.c.bf16 %v5296_v27, %v5294_v61  ;;  %v5332_v61 = vld [vmem:[#allocation9 + $0x730] sm:$0xff]  ;;  %v5335_v27 = vld [vmem:[#allocation9 + $0x748] sm:$0xff] }
 0x617   : > { %6229 = vmatpush1.bf16.msra.mxu0 %v6228_v54  ;;  %v5300_v54 = vld [vmem:[#allocation9 + $0x630] sm:$0xff] }
 0x618   : > { %6231 = vmatprep.subr.bf16.mxu0 %v6230_v43  ;;  %v6264_v8 = vpack.c.bf16 %v5300_v54, %v5298_v52  ;;  %v5340_v52 = vld [vmem:[#allocation9 + $0x770] sm:$0xff]  ;;  %v5343_v54 = vld [vmem:[#allocation9 + $0x788] sm:$0xff] }
 0x61b   : > { %6233 = vmatpush1.bf16.msra.mxu0 %v6232_v35 }
 0x61c   : > { %6235 = vmatprep.subr.bf16.mxu0 %v6234_v7  ;;  %v6266_v7 = vpack.c.bf16 %v5305_v53, %v5303_v14 }
 0x61f   : > { %6237 = vmatpush1.bf16.msra.mxu0 %v6236_v17  ;;  %v6268_v17 = vpack.c.bf16 %v5304_v36, %v5302_v19 }
 0x620   : > { %6239 = vmatprep.subr.bf16.mxu0 %v6238_v56  ;;  %v6270_v56 = vpack.c.bf16 %v5309_v6, %v5307_v42  ;;  %v5346_v42 = vld [vmem:[#allocation9 + $0x7a0] sm:$0xff]  ;;  %v5348_v6 = vld [vmem:[#allocation9 + $0x7b0] sm:$0xff] }
 0x623   : > { %6241 = vmatpush1.bf16.msra.mxu0 %v6240_v9  ;;  %v6272_v9 = vpack.c.bf16 %v5308_v5, %v5306_v12  ;;  %v6312_v12 = vpack.c.bf16 %v5348_v6, %v5346_v42 }
 0x624   : > { %6243 = vmatprep.subr.bf16.mxu0 %v6242_v4  ;;  %v6274_v4 = vpack.c.bf16 %v5313_v31, %v5311_v23  ;;  %v5350_v23 = vld [vmem:[#allocation9 + $0x7c0] sm:$0xff]  ;;  %v5352_v31 = vld [vmem:[#allocation9 + $0x7d0] sm:$0xff] }
 0x627   : > { %6245 = vmatpush1.bf16.msra.mxu0 %v6244_v26  ;;  %v6276_v26 = vpack.c.bf16 %v5312_v63, %v5310_v22  ;;  %v6316_v22 = vpack.c.bf16 %v5352_v31, %v5350_v23  ;;  %v6488_v63 = vld [vmem:[%s11635_s3] sm:$0xff] }
 0x628   : > { %6247 = vmatprep.subr.bf16.mxu0 %v6246_v13  ;;  %v6278_v13 = vpack.c.bf16 %v5317_v57, %v5315_v34  ;;  %v13359_v34 = vld [vmem:[#allocation20_spill] sm:$0xff] }
 0x629   : > { %v4721_v57 = vrot.slane %v6488_v63, %v13359_v34 }
 0x62b   : > { %6249 = vmatpush1.bf16.msra.mxu0 %v6248_v47  ;;  %v6280_v47 = vpack.c.bf16 %v5316_v49, %v5314_v59  ;;  %v5356_v59 = vld [vmem:[#allocation9 + $0x7f0] sm:$0xff]  ;;  %v13360_v49 = vld [vmem:[#allocation23_spill] sm:$0xff] }
 0x62c   : > { %6251 = vmatprep.subr.bf16.mxu0 %v6250_v0  ;;  %v6282_v0 = vpack.c.bf16 %v5321_v28, %v5319_v50  ;;  %v4725_v50 = vrot.slane %v6488_v63, %v13360_v49 }
 0x62f   : > { %v4998_v10 = vpop.f32.mrb[8].mxu1  ;;  %6253 = vmatpush1.bf16.msra.mxu0 %v6252_v29  ;;  %v6284_v29 = vpack.c.bf16 %v5320_v46, %v5318_v33 }
 0x630   : > { %v4999_v62 = vadd.f32 %v4998_v10, %v4713_v3  ;;  %v5000_v39 = vpop.f32.mrb[9].mxu1  ;;  %6255 = vmatprep.subr.bf16.mxu0 %v6254_v45  ;;  %v5324_v45 = vld [vmem:[#allocation9 + $0x6f0] sm:$0xff]  ;;  %v5331_v10 = vld [vmem:[#allocation9 + $0x728] sm:$0xff] }
 0x631   : > { %v5001_v16 = vadd.f32 %v5000_v39, %v4717_v51 }
 0x632   : > { %v5090_v32 = vmax.f32 %v4999_v62, 0.0  ;;  %v6292_v62 = vpack.c.bf16 %v5328_v40, %v5326_v24 }
 0x633   : > { %v5091_v48 = vmax.f32 %v5001_v16, 0.0  ;;  %v5004_v37 = vpop.f32.mrb[10].mxu1  ;;  %6257 = vmatpush1.bf16.msra.mxu0 %v6256_v38  ;;  %v5333_v38 = vld [vmem:[#allocation9 + $0x738] sm:$0xff] }
 0x634   : > { %v5005_v58 = vadd.f32 %v5004_v37, %v4713_v3  ;;  %v5006_v25 = vpop.f32.mrb[11].mxu1  ;;  %6259 = vmatprep.subr.bf16.mxu0 %v6258_v20  ;;  %v5322_v3 = vld [vmem:[#allocation9 + $0x6e0] sm:$0xff]  ;;  %v6294_v39 = vpack.c.bf16 %v5333_v38, %v5331_v10  ;;  %v5337_v16 = vld [vmem:[#allocation9 + $0x758] sm:$0xff]  ;;  %v5336_v37 = vld [vmem:[#allocation9 + $0x750] sm:$0xff] }
 0x635   : > { %v5007_v43 = vadd.f32 %v5006_v25, %v4717_v51  ;;  %5576 = vmatprep.mubr.f32.mxu0 %v5091_v48  ;;  %v6288_v41 = vpack.c.bf16 %v5324_v45, %v5322_v3  ;;  %v6290_v51 = vpack.c.bf16 %v5329_v2, %v5327_v30  ;;  %v5330_v20 = vld [vmem:[#allocation9 + $0x720] sm:$0xff]  ;;  %v6298_v21 = vpack.c.bf16 %v5337_v16, %v5335_v27  ;;  %v6490_v10 = vld [vmem:[#allocation2 + $0x78] sm:$0xff]  ;;  %v6492_v27 = vld [vmem:[#allocation2 + $0xa8] sm:$0xff] }
 0x636   : > { %5577 = vmatmul.mubr.f32.vlgmr.msra.gmra.mrb[0].mxu0 %v5090_v32  ;;  %v5098_v35 = vmax.f32 %v5005_v58, 0.0  ;;  %v6296_v55 = vpack.c.bf16 %v5332_v61, %v5330_v20  ;;  %v5334_v48 = vld [vmem:[#allocation9 + $0x740] sm:$0xff]  ;;  %v5341_v32 = vld [vmem:[#allocation9 + $0x778] sm:$0xff] }
 0x637   : > { %v5099_v44 = vmax.f32 %v5007_v43, 0.0  ;;  %6261 = vmatpush1.bf16.msra.mxu0 %v6260_v1  ;;  %v5339_v1 = vld [vmem:[#allocation9 + $0x768] sm:$0xff]  ;;  %v6300_v58 = vpack.c.bf16 %v5336_v37, %v5334_v48  ;;  %v5345_v43 = vld [vmem:[#allocation9 + $0x798] sm:$0xff] }
 0x638   : > { %6263 = vmatprep.subr.bf16.mxu0 %v6262_v15  ;;  %v6302_v25 = vpack.c.bf16 %v5341_v32, %v5339_v1  ;;  %v5338_v15 = vld [vmem:[#allocation9 + $0x760] sm:$0xff]  ;;  %v6306_v53 = vpack.c.bf16 %v5345_v43, %v5343_v54 }
 0x639   : > { %5582 = vmatprep.mubr.f32.mxu0 %v5099_v44  ;;  %v6304_v14 = vpack.c.bf16 %v5340_v52, %v5338_v15  ;;  %v5342_v44 = vld [vmem:[#allocation9 + $0x780] sm:$0xff] }
 0x63a   : > { %5583 = vmatmul.mubr.f32.gmra.mrb[2].mxu0 %v5098_v35  ;;  %v5347_v35 = vld [vmem:[#allocation9 + $0x7a8] sm:$0xff] }
 0x63b   : > { %6265 = vmatpush1.bf16.msra.mxu0 %v6264_v8  ;;  %v5344_v8 = vld [vmem:[#allocation9 + $0x790] sm:$0xff] }
 0x63c   : > { %6267 = vmatprep.subr.bf16.mxu0 %v6266_v7  ;;  %v5349_v7 = vld [vmem:[#allocation9 + $0x7b8] sm:$0xff]  ;;  %v6308_v19 = vpack.c.bf16 %v5344_v8, %v5342_v44 }
 0x63d   : > { %v6310_v36 = vpack.c.bf16 %v5349_v7, %v5347_v35 }
 0x63f   : > { %6269 = vmatpush1.bf16.msra.mxu0 %v6268_v17  ;;  %v5351_v17 = vld [vmem:[#allocation9 + $0x7c8] sm:$0xff] }
 0x640   : > { %6271 = vmatprep.subr.bf16.mxu0 %v6270_v56  ;;  %v5353_v56 = vld [vmem:[#allocation9 + $0x7d8] sm:$0xff] }
 0x641   : > { %v6314_v5 = vpack.c.bf16 %v5353_v56, %v5351_v17 }
 0x643   : > { %6273 = vmatpush1.bf16.msra.mxu0 %v6272_v9  ;;  %v5355_v9 = vld [vmem:[#allocation9 + $0x7e8] sm:$0xff] }
 0x644   : > { %6275 = vmatprep.subr.bf16.mxu0 %v6274_v4  ;;  %v5357_v4 = vld [vmem:[#allocation9 + $0x7f8] sm:$0xff] }
 0x647   : > { %6277 = vmatpush1.bf16.msra.mxu0 %v6276_v26  ;;  %v6318_v26 = vpack.c.bf16 %v5357_v4, %v5355_v9 }
 0x648   : > { %6279 = vmatprep.subr.bf16.mxu0 %v6278_v13  ;;  %v5354_v13 = vld [vmem:[#allocation9 + $0x7e0] sm:$0xff] }
 0x64b   : > { %6281 = vmatpush1.bf16.msra.mxu0 %v6280_v47  ;;  %v6320_v47 = vpack.c.bf16 %v5356_v59, %v5354_v13 }
 0x64c   : > { %6283 = vmatprep.subr.bf16.mxu0 %v6282_v0 }
 0x64f   : > { %6285 = vmatpush1.bf16.msra.mxu0 %v6284_v29 }
 0x650   : > { %6287 = vmatprep.subr.bf16.mxu0 %v6286_v18 }
 0x653   : > { %6289 = vmatpush1.bf16.msra.mxu0 %v6288_v41 }
 0x654   : > { %6291 = vmatprep.subr.bf16.mxu0 %v6290_v51  ;;  %v6489_v51 = vld [vmem:[#allocation2 + $0x70] sm:$0xff] }
 0x657   : > { %6293 = vmatpush1.bf16.msra.mxu0 %v6292_v62 }
 0x658   : > { %6295 = vmatprep.subr.bf16.mxu0 %v6294_v39  ;;  %v6491_v39 = vld [vmem:[#allocation2 + $0xa0] sm:$0xff] }
 0x65b   : > { %6297 = vmatpush1.bf16.msra.mxu0 %v6296_v55 }
 0x65c   : > { %6299 = vmatprep.subr.bf16.mxu0 %v6298_v21 }
 0x65f   : > { %6301 = vmatpush1.bf16.msra.mxu0 %v6300_v58 }
 0x660   : > { %6303 = vmatprep.subr.bf16.mxu0 %v6302_v25 }
 0x663   : > { %6305 = vmatpush1.bf16.msra.mxu0 %v6304_v14 }
 0x664   : > { %6307 = vmatprep.subr.bf16.mxu0 %v6306_v53 }
 0x667   : > { %6309 = vmatpush1.bf16.msra.mxu0 %v6308_v19 }
 0x668   : > { %6311 = vmatprep.subr.bf16.mxu0 %v6310_v36 }
 0x66b   : > { %6313 = vmatpush1.bf16.msra.mxu0 %v6312_v12 }
 0x66c   : > { %6315 = vmatprep.subr.bf16.mxu0 %v6314_v5 }
 0x66f   : > { %v5075_v28 = vpop.f32.mrb[12].mxu1  ;;  %6317 = vmatpush1.bf16.msra.mxu0 %v6316_v22 }
 0x670   : > { %v5076_v0 = vadd.f32 %v5075_v28, %v4721_v57  ;;  %v5077_v33 = vpop.f32.mrb[13].mxu1  ;;  %6319 = vmatprep.subr.bf16.mxu0 %v6318_v26 }
 0x671   : > { %v5078_v46 = vadd.f32 %v5077_v33, %v4725_v50 }
 0x672   : > { %v5092_v29 = vmax.f32 %v5076_v0, 0.0 }
 0x673   : > { %v5093_v11 = vmax.f32 %v5078_v46, 0.0  ;;  %v5081_v60 = vpop.f32.mrb[14].mxu1  ;;  %6321 = vmatpush1.bf16.msra.mxu0 %v6320_v47 }
 0x674   : > { %v5082_v18 = vadd.f32 %v5081_v60, %v4721_v57  ;;  %v5083_v3 = vpop.f32.mrb[15].mxu1 }
 0x675   : > { %v5084_v45 = vadd.f32 %v5083_v3, %v4725_v50  ;;  %5653 = vmatprep.mubr.f32.mxu0 %v5093_v11 }
 0x676   : > { %5654 = vmatmul.mubr.f32.vlgmr.msra.gmra.mrb[0].mxu0 %v5092_v29  ;;  %v5100_v2 = vmax.f32 %v5082_v18, 0.0 }
 0x677   : > { %v5101_v30 = vmax.f32 %v5084_v45, 0.0 }
 0x679   : > { %5659 = vmatprep.mubr.f32.mxu0 %v5101_v30 }
 0x67a   : > { %5660 = vmatmul.mubr.f32.gmra.mrb[2].mxu0 %v5100_v2 }
 0x749   : > { %v5655_v41 = vpop.f32.mrb[0].mxu0 }
 0x74a   : > { %v6322_v24 = vadd.f32 %v6489_v51, %v5655_v41  ;;  %v5657_v40 = vpop.f32.mrb[1].mxu0 }
 0x74b   : > { %v6323_v38 = vadd.f32 %v6490_v10, %v5657_v40 }
 0x74c   : > { %5666 = vst [vmem:[%s286_s9] sm:$0xff] %v6322_v24 }
 0x74d   : > { %5667 = vst [vmem:[%s286_s9 + $0x8] sm:$0xff] %v6323_v38  ;;  %v5661_v62 = vpop.f32.mrb[2].mxu0 }
 0x74e   : > { %v6324_v20 = vadd.f32 %v6491_v39, %v5661_v62  ;;  %v5663_v61 = vpop.f32.mrb[3].mxu0 }
 0x74f   : > { %v6325_v16 = vadd.f32 %v6492_v27, %v5663_v61 }
 0x750   : > { %5668 = vst [vmem:[%s286_s9 + $0x10] sm:$0xff] %v6324_v20 }
 0x751   : > { %5669 = vst [vmem:[%s286_s9 + $0x18] sm:$0xff] %v6325_v16 }
 0x752   : > { %6620 = shalt.err (!%p6617_p4)
}
 0x753   : > { %s6621_s13 = scalar_lea.hbm %s11587_s26, 512  ;;  %s6625_s29 = scalar_lea.hbm %s11637_s5, 1024 }
 0x754   : > { %p6622_p9 = scmp.ne.s32.totalorder %s11587_s26, %s6621_s13  ;;  %p6626_p8 = scmp.lt.u32.totalorder %s11587_s26, %s11637_s5 }
 0x755   : > { %p6627_p13 = scmp.lt.u32.totalorder %s6625_s29, %s6621_s13  ;;  %p6629_p10 = scmp.lt.u32.totalorder %s6621_s13, %s11587_s26 }
 0x756   : > { %p6623_p0 = pnand %p6622_p9, %p6879_p5 }
 0x757   : > { %p6628_p6 = por %p6627_p13, %p6626_p8 }
 0x758   : > { %p6624_p11 = pneg %p6623_p0 }
 0x759   : > { %p6630_p3 = por %p6629_p10, %p6628_p6 }
 0x75b   : > { %p6631_p7 = pnand %p6630_p3, %p6624_p11 }
 0x75d   : > { %6634 = shalt.err (!%p6631_p7)
}
 0x75e   : > { %s6700_s10 = smov 256  }
 0x75f   : > { %6352 = dma.vmem_to_hbm [thread:$0]  (%p6879_p5), %s11582_s11, 512, %s11587_s26, %s5671_s22, %s6700_s10, %s6700_s10, %s6696_s7  }
 0x760 PF: > { %s5699_s24 = sand.u32 1, %s6669_s18   ;;  %p13361_p12 = scmp.ne.s32.totalorder %s12151_s25, 0 }
 0x761   : > { %p13362_p1 = scmp.ge.s32.totalorder %s6681_s21, 2  ;;  %s5700_s14 = scalar_lea.sflag [#allocation5], %s5699_s24 }
 0x763   : > { %p6369_p2 = pnand %p13362_p1, %p13361_p12 }
 0x765   : > { %6664 = dma.done.wait (!%p6369_p2), %s5700_s14, 512  }
 0x766   : > { %6666 = vsyncadd (!%p6369_p2), %s5700_s14, 4294966784  ;;  %p20_p4 = scmp.ge.s32.totalorder %s6844_s8, 4   ;;  %s13363_s18 = smov %s6673_s19 }
 0x767   : > { %s13364_s19 = smov %s6677_s20  ;;  %s13365_s20 = smov %s6875_s23 }
 0x768   : > { %s13366_s21 = smov %s6844_s8  ;;  %22 = sbr.rel (!%p20_p4) target bundleno = 7 (0x7), region = 97 }
 0x76f   :  { %5705 = vsyncpa [#allocation4], 1 }
 0x770   :  { %5707 = vsyncpa [#allocation4 + $0x1], 1 }
 0x771   :  { %5708 = vsyncpa [#allocation7], 1 }
 0x772   :  { %5709 = vsyncpa [#allocation10], 1 }
 0x773   :  { %5710 = vsyncpa [#allocation5], 1 }
 0x774   :  { %5712 = vsyncpa [#allocation5 + $0x1], 1 }

</bundles_post_ra>
